<compile_context>
chip_gen: v5e
topology: v5e:2x2
jax: 0.10.0
libtpu: 0.0.40
codegen_flags: <defaults>
</compile_context>

<pallas_src>
import functools

import jax
import jax.numpy as jnp
from jax import lax
from jax.experimental import pallas as pl
from jax.experimental.pallas import tpu as pltpu

_EPS = 1e-5


def _round_up(x, m):
    return (x + m - 1) // m * m


def _mish_f32(y):
    # x * tanh(softplus(x)); tanh(softplus(y)) == 1 - 2 / ((1 + e^y)^2 + 1).
    # Clamp keeps (1+e^y)^2 finite in f32 (for y >= 30 the correction is ~1e-26).
    e = jnp.exp(jnp.minimum(y, 30.0))
    t = (1.0 + e) * (1.0 + e) + 1.0
    return y * (1.0 - 2.0 / t)


# ---------------------------------------------------------------------------
# Kernel 1: one (n, d) output plane of the 3x3x3 conv.
#   - loads 3 neighbouring reflect-padded depth slices (H+2, W+2, Cin)
#   - (optionally) applies the previous block's BN-normalize + Mish (prologue)
#   - builds (H*W, 27*Cin) im2col in VMEM from 27 static slices
#   - one MXU matmul against the resident (27*Cin, Cout) weight
#   - fused per-plane BN partial statistics (sum, sumsq) as a second output
# ---------------------------------------------------------------------------
def _make_conv_kernel(H, W, matmul_dtype, apply_act):
    def kernel(*refs):
        if apply_act:
            x0, x1, x2, w_ref, sc_ref, sh_ref, y_ref, st_ref = refs
        else:
            x0, x1, x2, w_ref, y_ref, st_ref = refs

        taps = []
        for xr in (x0, x1, x2):                         # kd = 0, 1, 2
            v = xr[...].astype(jnp.float32)             # (H+2, W+2, Cin)
            if apply_act:
                v = _mish_f32(v * sc_ref[...] + sh_ref[...])   # fused BN1+Mish
            for kh in range(3):
                for kw in range(3):
                    taps.append(v[kh:kh + H, kw:kw + W, :])
        # (H, W, 27*Cin) -> (H*W, 27*Cin); K order = (kd, kh, kw, cin), matching
        # the packed weight layout.
        cols = jnp.concatenate(taps, axis=-1).reshape(H * W, -1)
        y = jnp.dot(cols.astype(matmul_dtype), w_ref[...],
                    preferred_element_type=jnp.float32)        # (H*W, Cout) f32
        y_ref[...] = y.astype(y_ref.dtype)

        s = jnp.sum(y, axis=0, keepdims=True)                  # (1, Cout)
        ss = jnp.sum(y * y, axis=0, keepdims=True)             # (1, Cout)
        st_ref[...] = jnp.concatenate(
            [s, ss, jnp.zeros((6, y.shape[1]), jnp.float32)], axis=0)

    return kernel


def _conv_bnstats_call(x_pad, w_kc, *, out_dtype, matmul_dtype,
                       scale=None, shift=None):
    """3x3x3 'valid' conv over a padded NDHWC volume + per-plane BN stats."""
    N, Dp, Hp, Wp, C = x_pad.shape
    D, H, W = Dp - 2, Hp - 2, Wp - 2
    HW = H * W
    K, Cout = w_kc.shape
    apply_act = scale is not None

    def slab_spec(off):
        return pl.BlockSpec((None, None, Hp, Wp, C),
                            lambda n, d: (n, d + off, 0, 0, 0))

    in_specs = [slab_spec(0), slab_spec(1), slab_spec(2),
                pl.BlockSpec((K, Cout), lambda n, d: (0, 0))]   # weight resident
    args = [x_pad, x_pad, x_pad, w_kc]
    if apply_act:
        in_specs += [pl.BlockSpec((1, C), lambda n, d: (0, 0)),
                     pl.BlockSpec((1, C), lambda n, d: (0, 0))]
        args += [scale.reshape(1, C).astype(jnp.float32),
                 shift.reshape(1, C).astype(jnp.float32)]

    # TODO(synk): for very large H*W planes, additionally tile H (with a 2-row
    # halo) so the per-step VMEM footprint stays bounded on v7x (64 MiB), and
    # single-buffer the weight stream once pl.Buffered(1) is robust everywhere.
    return pl.pallas_call(
        _make_conv_kernel(H, W, matmul_dtype, apply_act),
        out_shape=(jax.ShapeDtypeStruct((N, D, HW, Cout), out_dtype),
                   jax.ShapeDtypeStruct((N, D, 8, Cout), jnp.float32)),
        grid_spec=pltpu.PrefetchScalarGridSpec(
            num_scalar_prefetch=0,
            grid=(N, D),
            in_specs=in_specs,
            out_specs=(
                pl.BlockSpec((None, None, HW, Cout), lambda n, d: (n, d, 0, 0)),
                pl.BlockSpec((None, None, 8, Cout), lambda n, d: (n, d, 0, 0)),
            ),
        ),
        compiler_params=pltpu.CompilerParams(
            dimension_semantics=("parallel", "parallel")),
    )(*args)


# ---------------------------------------------------------------------------
# Kernel 2: fused batch-norm normalize + Mish (used only for block 2's output).
# ---------------------------------------------------------------------------
def _bn_mish_kernel(x_ref, sc_ref, sh_ref, o_ref):
    y = x_ref[...].astype(jnp.float32) * sc_ref[...] + sh_ref[...]
    o_ref[...] = _mish_f32(y)


def _bn_mish_call(y2d, scale_vec, shift_vec):
    R, L = y2d.shape
    # >= 2 row tiles whenever possible so the 'parallel' axis can shard across
    # v7x's two TensorCores.
    tile = min(1024, max(8, _round_up((R + 1) // 2, 8)))
    Rp = _round_up(R, tile)
    ypad = jnp.pad(y2d, ((0, Rp - R), (0, 0)))
    out = pl.pallas_call(
        _bn_mish_kernel,
        out_shape=jax.ShapeDtypeStruct((Rp, L), jnp.float32),
        grid_spec=pltpu.PrefetchScalarGridSpec(
            num_scalar_prefetch=0,
            grid=(Rp // tile,),
            in_specs=[pl.BlockSpec((tile, L), lambda i: (i, 0)),
                      pl.BlockSpec((1, L), lambda i: (0, 0)),
                      pl.BlockSpec((1, L), lambda i: (0, 0))],
            out_specs=pl.BlockSpec((tile, L), lambda i: (i, 0)),
        ),
        compiler_params=pltpu.CompilerParams(
            dimension_semantics=("parallel",)),
    )(ypad, scale_vec.reshape(1, L), shift_vec.reshape(1, L))
    return out[:R]


# ---------------------------------------------------------------------------
# Glue (plain JAX): reflect padding, weight packing, cross-tile BN reduction.
# ---------------------------------------------------------------------------
def _pack_weight(w_oidhw, matmul_dtype):
    # PyTorch (Cout, Cin, kD, kH, kW) -> (27*Cin, Cout) with K = (kd, kh, kw, cin).
    cout, cin = w_oidhw.shape[0], w_oidhw.shape[1]
    w = jnp.transpose(w_oidhw.astype(jnp.float32), (2, 3, 4, 1, 0))
    return w.reshape(27 * cin, cout).astype(matmul_dtype)


def _reflect_pad(x_ndhwc):
    return jnp.pad(x_ndhwc, ((0, 0), (1, 1), (1, 1), (1, 1), (0, 0)),
                   mode='reflect')


@functools.partial(jax.jit, static_argnames=("matmul_dtype",))
def double_conv_forward(x_ncdhw, w1_oidhw, g1, b1, w2_oidhw, g2, b2,
                        matmul_dtype=jnp.bfloat16):
    """DoubleConv forward: NCDHW input, PyTorch OIDHW conv weights, BN gamma/beta."""
    x = jnp.transpose(x_ncdhw, (0, 2, 3, 4, 1)).astype(jnp.float32)   # NDHWC
    N, D, H, W, Cin = x.shape
    Cmid = w1_oidhw.shape[0]
    Cout = w2_oidhw.shape[0]
    R = N * D * H * W

    w1k = _pack_weight(w1_oidhw, matmul_dtype)        # (27*Cin,  Cmid)
    w2k = _pack_weight(w2_oidhw, matmul_dtype)        # (27*Cmid, Cout)

    def bn_affine(st, gamma, beta):
        # st: (N, D, 8, C) f32; row 0 = sum, row 1 = sumsq over one plane.
        total = jnp.sum(st[:, :, 0, :], axis=(0, 1))
        totsq = jnp.sum(st[:, :, 1, :], axis=(0, 1))
        mean = total / R
        # TODO(synk): E[x^2]-E[x]^2 can cancel for very large volumes; switch to a
        # two-pass / Welford scheme if R grows into the 1e8 range.
        var = jnp.maximum(totsq / R - mean * mean, 0.0)   # biased (training BN)
        scale = gamma.astype(jnp.float32) * lax.rsqrt(var + _EPS)
        shift = beta.astype(jnp.float32) - mean * scale
        return scale, shift

    # ---- conv1 (+ fused BN partial statistics) -------------------------------
    x_pad = _reflect_pad(x).astype(matmul_dtype)
    y1, st1 = _conv_bnstats_call(x_pad, w1k, out_dtype=matmul_dtype,
                                 matmul_dtype=matmul_dtype)
    scale1, shift1 = bn_affine(st1, g1, b1)

    # ---- conv2 with BN1 + Mish fused into its prologue -----------------------
    # Reflect padding commutes with elementwise ops, so pad the raw conv1 output
    # and apply BN1+Mish per tile inside the conv2 kernel (no standalone pass
    # over the intermediate activation).
    y1_pad = _reflect_pad(y1.reshape(N, D, H, W, Cmid))
    y2, st2 = _conv_bnstats_call(y1_pad, w2k, out_dtype=jnp.float32,
                                 matmul_dtype=matmul_dtype,
                                 scale=scale1, shift=shift1)
    scale2, shift2 = bn_affine(st2, g2, b2)

    # ---- BN2 + Mish (standalone, lane-packed elementwise pass) ---------------
    y2f = y2.reshape(R, Cout)
    if Cout < 128 and 128 % Cout == 0 and (R * Cout) % 128 == 0:
        rep = 128 // Cout                       # pack channels into full lanes
        z = _bn_mish_call(y2f.reshape((R * Cout) // 128, 128),
                          jnp.tile(scale2, rep), jnp.tile(shift2, rep))
        z = z.reshape(R, Cout)
    else:
        z = _bn_mish_call(y2f, scale2, shift2)

    out = z.reshape(N, D, H, W, Cout)
    return jnp.transpose(out, (0, 4, 1, 2, 3))            # back to NCDHW


# ---------------------------------------------------------------------------
# Pure-JAX reference (lax.conv_general_dilated) for correctness check.
# ---------------------------------------------------------------------------
def _reference(x_ncdhw, w1_oidhw, g1, b1, w2_oidhw, g2, b2, eps=_EPS):
    def mish(x):
        return x * jnp.tanh(jnp.maximum(x, 0.0) + jnp.log1p(jnp.exp(-jnp.abs(x))))

    def block(x_ndhwc, w_oidhw, gamma, beta):
        w_dhwio = jnp.transpose(w_oidhw, (2, 3, 4, 1, 0))
        xp = jnp.pad(x_ndhwc, ((0, 0), (1, 1), (1, 1), (1, 1), (0, 0)),
                     mode='reflect')
        y = lax.conv_general_dilated(
            xp, w_dhwio, window_strides=(1, 1, 1), padding='VALID',
            dimension_numbers=('NDHWC', 'DHWIO', 'NDHWC'))
        mean = jnp.mean(y, axis=(0, 1, 2, 3))
        var = jnp.mean((y - mean) ** 2, axis=(0, 1, 2, 3))
        yn = (y - mean) * lax.rsqrt(var + eps) * gamma + beta
        return mish(yn)

    x = jnp.transpose(x_ncdhw, (0, 2, 3, 4, 1))
    h = block(x, w1_oidhw, g1, b1)
    out = block(h, w2_oidhw, g2, b2)
    return jnp.transpose(out, (0, 4, 1, 2, 3))


if __name__ == "__main__":
    key = jax.random.PRNGKey(0)
    N, Cin, Cmid, Cout = 2, 4, 8, 8
    D = H = W = 8

    k_x, k_w1, k_w2 = jax.random.split(key, 3)
    x = jax.random.normal(k_x, (N, Cin, D, H, W), jnp.float32)

    # PyTorch-layout conv weights (Cout, Cin, kD, kH, kW); fresh-module BN
    # gamma=1, beta=0.
    w1 = jax.random.normal(k_w1, (Cmid, Cin, 3, 3, 3), jnp.float32) * 0.1
    w2 = jax.random.normal(k_w2, (Cout, Cmid, 3, 3, 3), jnp.float32) * 0.1
    g1 = jnp.ones((Cmid,), jnp.float32)
    b1 = jnp.zeros((Cmid,), jnp.float32)
    g2 = jnp.ones((Cout,), jnp.float32)
    b2 = jnp.zeros((Cout,), jnp.float32)

    ref = jax.block_until_ready(_reference(x, w1, g1, b1, w2, g2, b2))

    # Production path: bf16 MXU operands (v6e / v7x native), f32 accumulation.
    out = jax.block_until_ready(double_conv_forward(x, w1, g1, b1, w2, g2, b2))
    assert out.shape == (N, Cout, D, H, W)
    err_bf16 = float(jnp.max(jnp.abs(out - ref)))
    assert jnp.allclose(out, ref, rtol=5e-2, atol=5e-2), err_bf16

    # f32-operand path: tight check of the kernel algorithm itself.
    out32 = jax.block_until_ready(
        double_conv_forward(x, w1, g1, b1, w2, g2, b2,
                            matmul_dtype=jnp.float32))
    err_f32 = float(jnp.max(jnp.abs(out32 - ref)))
    assert jnp.allclose(out32, ref, rtol=2e-3, atol=2e-3), err_f32

    print("KERNEL_OK")
</pallas_src>

<mosaic_0001>
module attributes {stable_mosaic.version = 11 : i64} {
  func.func @kernel(%arg0: i32, %arg1: i32, %arg2: memref<1x1x10x10x4xbf16, #tpu.memory_space<vmem>>, %arg3: memref<1x1x10x10x4xbf16, #tpu.memory_space<vmem>>, %arg4: memref<1x1x10x10x4xbf16, #tpu.memory_space<vmem>>, %arg5: memref<108x8xbf16, #tpu.memory_space<vmem>>, %arg6: memref<1x1x64x8xbf16, #tpu.memory_space<vmem>>, %arg7: memref<1x1x8x8xf32, #tpu.memory_space<vmem>>) attributes {dimension_semantics = [#tpu.dimension_semantics<parallel>, #tpu.dimension_semantics<parallel>], iteration_bounds = array<i64: 2, 8>, scalar_prefetch = 0 : i64, scratch_operands = 0 : i64, tpu.core_type = #tpu.core_type<tc>, window_params = [{transform_indices = @transform_0, window_bounds = array<i64: 1, 1, 10, 10, 4>}, {transform_indices = @transform_1, window_bounds = array<i64: 1, 1, 10, 10, 4>}, {transform_indices = @transform_2, window_bounds = array<i64: 1, 1, 10, 10, 4>}, {pipeline_mode = #tpu.pipeline_mode<synchronous>, transform_indices = @transform_3, window_bounds = array<i64: 108, 8>}, {transform_indices = @transform_4, window_bounds = array<i64: 1, 1, 64, 8>}, {transform_indices = @transform_5, window_bounds = array<i64: 1, 1, 8, 8>}]} {
    %c0 = arith.constant 0 : index
    %c0_0 = arith.constant 0 : index
    %c0_1 = arith.constant 0 : index
    %c0_2 = arith.constant 0 : index
    %c0_3 = arith.constant 0 : index
    %0 = vector.load %arg2[%c0, %c0_0, %c0_1, %c0_2, %c0_3] : memref<1x1x10x10x4xbf16, #tpu.memory_space<vmem>>, vector<1x1x10x10x4xbf16>
    %1 = vector.shape_cast %0 : vector<1x1x10x10x4xbf16> to vector<10x10x4xbf16>
    %2 = arith.extf %1 : vector<10x10x4xbf16> to vector<10x10x4xf32>
    %3 = vector.extract_strided_slice %2 {offsets = [0, 0, 0], sizes = [8, 8, 4], strides = [1, 1, 1]} : vector<10x10x4xf32> to vector<8x8x4xf32>
    %4 = vector.extract_strided_slice %2 {offsets = [0, 1, 0], sizes = [8, 8, 4], strides = [1, 1, 1]} : vector<10x10x4xf32> to vector<8x8x4xf32>
    %5 = vector.extract_strided_slice %2 {offsets = [0, 2, 0], sizes = [8, 8, 4], strides = [1, 1, 1]} : vector<10x10x4xf32> to vector<8x8x4xf32>
    %6 = vector.extract_strided_slice %2 {offsets = [1, 0, 0], sizes = [8, 8, 4], strides = [1, 1, 1]} : vector<10x10x4xf32> to vector<8x8x4xf32>
    %7 = vector.extract_strided_slice %2 {offsets = [1, 1, 0], sizes = [8, 8, 4], strides = [1, 1, 1]} : vector<10x10x4xf32> to vector<8x8x4xf32>
    %8 = vector.extract_strided_slice %2 {offsets = [1, 2, 0], sizes = [8, 8, 4], strides = [1, 1, 1]} : vector<10x10x4xf32> to vector<8x8x4xf32>
    %9 = vector.extract_strided_slice %2 {offsets = [2, 0, 0], sizes = [8, 8, 4], strides = [1, 1, 1]} : vector<10x10x4xf32> to vector<8x8x4xf32>
    %10 = vector.extract_strided_slice %2 {offsets = [2, 1, 0], sizes = [8, 8, 4], strides = [1, 1, 1]} : vector<10x10x4xf32> to vector<8x8x4xf32>
    %11 = vector.extract_strided_slice %2 {offsets = [2, 2, 0], sizes = [8, 8, 4], strides = [1, 1, 1]} : vector<10x10x4xf32> to vector<8x8x4xf32>
    %c0_4 = arith.constant 0 : index
    %c0_5 = arith.constant 0 : index
    %c0_6 = arith.constant 0 : index
    %c0_7 = arith.constant 0 : index
    %c0_8 = arith.constant 0 : index
    %12 = vector.load %arg3[%c0_4, %c0_5, %c0_6, %c0_7, %c0_8] : memref<1x1x10x10x4xbf16, #tpu.memory_space<vmem>>, vector<1x1x10x10x4xbf16>
    %13 = vector.shape_cast %12 : vector<1x1x10x10x4xbf16> to vector<10x10x4xbf16>
    %14 = arith.extf %13 : vector<10x10x4xbf16> to vector<10x10x4xf32>
    %15 = vector.extract_strided_slice %14 {offsets = [0, 0, 0], sizes = [8, 8, 4], strides = [1, 1, 1]} : vector<10x10x4xf32> to vector<8x8x4xf32>
    %16 = vector.extract_strided_slice %14 {offsets = [0, 1, 0], sizes = [8, 8, 4], strides = [1, 1, 1]} : vector<10x10x4xf32> to vector<8x8x4xf32>
    %17 = vector.extract_strided_slice %14 {offsets = [0, 2, 0], sizes = [8, 8, 4], strides = [1, 1, 1]} : vector<10x10x4xf32> to vector<8x8x4xf32>
    %18 = vector.extract_strided_slice %14 {offsets = [1, 0, 0], sizes = [8, 8, 4], strides = [1, 1, 1]} : vector<10x10x4xf32> to vector<8x8x4xf32>
    %19 = vector.extract_strided_slice %14 {offsets = [1, 1, 0], sizes = [8, 8, 4], strides = [1, 1, 1]} : vector<10x10x4xf32> to vector<8x8x4xf32>
    %20 = vector.extract_strided_slice %14 {offsets = [1, 2, 0], sizes = [8, 8, 4], strides = [1, 1, 1]} : vector<10x10x4xf32> to vector<8x8x4xf32>
    %21 = vector.extract_strided_slice %14 {offsets = [2, 0, 0], sizes = [8, 8, 4], strides = [1, 1, 1]} : vector<10x10x4xf32> to vector<8x8x4xf32>
    %22 = vector.extract_strided_slice %14 {offsets = [2, 1, 0], sizes = [8, 8, 4], strides = [1, 1, 1]} : vector<10x10x4xf32> to vector<8x8x4xf32>
    %23 = vector.extract_strided_slice %14 {offsets = [2, 2, 0], sizes = [8, 8, 4], strides = [1, 1, 1]} : vector<10x10x4xf32> to vector<8x8x4xf32>
    %c0_9 = arith.constant 0 : index
    %c0_10 = arith.constant 0 : index
    %c0_11 = arith.constant 0 : index
    %c0_12 = arith.constant 0 : index
    %c0_13 = arith.constant 0 : index
    %24 = vector.load %arg4[%c0_9, %c0_10, %c0_11, %c0_12, %c0_13] : memref<1x1x10x10x4xbf16, #tpu.memory_space<vmem>>, vector<1x1x10x10x4xbf16>
    %25 = vector.shape_cast %24 : vector<1x1x10x10x4xbf16> to vector<10x10x4xbf16>
    %26 = arith.extf %25 : vector<10x10x4xbf16> to vector<10x10x4xf32>
    %27 = vector.extract_strided_slice %26 {offsets = [0, 0, 0], sizes = [8, 8, 4], strides = [1, 1, 1]} : vector<10x10x4xf32> to vector<8x8x4xf32>
    %28 = vector.extract_strided_slice %26 {offsets = [0, 1, 0], sizes = [8, 8, 4], strides = [1, 1, 1]} : vector<10x10x4xf32> to vector<8x8x4xf32>
    %29 = vector.extract_strided_slice %26 {offsets = [0, 2, 0], sizes = [8, 8, 4], strides = [1, 1, 1]} : vector<10x10x4xf32> to vector<8x8x4xf32>
    %30 = vector.extract_strided_slice %26 {offsets = [1, 0, 0], sizes = [8, 8, 4], strides = [1, 1, 1]} : vector<10x10x4xf32> to vector<8x8x4xf32>
    %31 = vector.extract_strided_slice %26 {offsets = [1, 1, 0], sizes = [8, 8, 4], strides = [1, 1, 1]} : vector<10x10x4xf32> to vector<8x8x4xf32>
    %32 = vector.extract_strided_slice %26 {offsets = [1, 2, 0], sizes = [8, 8, 4], strides = [1, 1, 1]} : vector<10x10x4xf32> to vector<8x8x4xf32>
    %33 = vector.extract_strided_slice %26 {offsets = [2, 0, 0], sizes = [8, 8, 4], strides = [1, 1, 1]} : vector<10x10x4xf32> to vector<8x8x4xf32>
    %34 = vector.extract_strided_slice %26 {offsets = [2, 1, 0], sizes = [8, 8, 4], strides = [1, 1, 1]} : vector<10x10x4xf32> to vector<8x8x4xf32>
    %35 = vector.extract_strided_slice %26 {offsets = [2, 2, 0], sizes = [8, 8, 4], strides = [1, 1, 1]} : vector<10x10x4xf32> to vector<8x8x4xf32>
    %36 = tpu.concatenate %3, %4, %5, %6, %7, %8, %9, %10, %11, %15, %16, %17, %18, %19, %20, %21 in 2 : vector<8x8x4xf32>, vector<8x8x4xf32>, vector<8x8x4xf32>, vector<8x8x4xf32>, vector<8x8x4xf32>, vector<8x8x4xf32>, vector<8x8x4xf32>, vector<8x8x4xf32>, vector<8x8x4xf32>, vector<8x8x4xf32>, vector<8x8x4xf32>, vector<8x8x4xf32>, vector<8x8x4xf32>, vector<8x8x4xf32>, vector<8x8x4xf32>, vector<8x8x4xf32> -> vector<8x8x64xf32>
    %37 = tpu.concatenate %22, %23, %27, %28, %29, %30, %31, %32, %33, %34, %35 in 2 : vector<8x8x4xf32>, vector<8x8x4xf32>, vector<8x8x4xf32>, vector<8x8x4xf32>, vector<8x8x4xf32>, vector<8x8x4xf32>, vector<8x8x4xf32>, vector<8x8x4xf32>, vector<8x8x4xf32>, vector<8x8x4xf32>, vector<8x8x4xf32> -> vector<8x8x44xf32>
    %38 = tpu.concatenate %36, %37 in 2 : vector<8x8x64xf32>, vector<8x8x44xf32> -> vector<8x8x108xf32>
    %39 = vector.shape_cast %38 : vector<8x8x108xf32> to vector<64x108xf32>
    %40 = arith.truncf %39 : vector<64x108xf32> to vector<64x108xbf16>
    %c0_14 = arith.constant 0 : index
    %c0_15 = arith.constant 0 : index
    %41 = vector.load %arg5[%c0_14, %c0_15] : memref<108x8xbf16, #tpu.memory_space<vmem>>, vector<108x8xbf16>
    %cst = arith.constant dense<0.000000e+00> : vector<64x8xf32>
    %42 = tpu.matmul %40, %41, %cst {dimension_numbers = #tpu.dot_dimension_numbers<[1], [0], [0], [1], [0, 0, 1, 1], [], []>} : vector<64x108xbf16>, vector<108x8xbf16>, vector<64x8xf32> -> vector<64x8xf32>
    %43 = arith.truncf %42 : vector<64x8xf32> to vector<64x8xbf16>
    %c0_16 = arith.constant 0 : index
    %c0_17 = arith.constant 0 : index
    %c0_18 = arith.constant 0 : index
    %c0_19 = arith.constant 0 : index
    %44 = vector.load %arg6[%c0_16, %c0_17, %c0_18, %c0_19] : memref<1x1x64x8xbf16, #tpu.memory_space<vmem>>, vector<1x1x64x8xbf16>
    %45 = vector.shape_cast %44 : vector<1x1x64x8xbf16> to vector<64x8xbf16>
    %46 = vector.shape_cast %43 : vector<64x8xbf16> to vector<1x1x64x8xbf16>
    tpu.vector_store %arg6[%c0_16, %c0_17, %c0_18, %c0_19], %46 {strides = array<i32>} : memref<1x1x64x8xbf16, #tpu.memory_space<vmem>>, vector<1x1x64x8xbf16>,
    %cst_20 = arith.constant dense<0.000000e+00> : vector<8xf32>
    %47 = vector.multi_reduction <add>, %42, %cst_20 [0] : vector<64x8xf32> to vector<8xf32>
    %48 = vector.shape_cast %47 : vector<8xf32> to vector<1x8xf32>
    %49 = arith.mulf %42, %42 : vector<64x8xf32>
    %cst_21 = arith.constant dense<0.000000e+00> : vector<8xf32>
    %50 = vector.multi_reduction <add>, %49, %cst_21 [0] : vector<64x8xf32> to vector<8xf32>
    %51 = vector.shape_cast %50 : vector<8xf32> to vector<1x8xf32>
    %cst_22 = arith.constant 0.000000e+00 : f32
    %52 = vector.broadcast %cst_22 : f32 to vector<6x8xf32>
    %53 = tpu.concatenate %48, %51, %52 in 0 : vector<1x8xf32>, vector<1x8xf32>, vector<6x8xf32> -> vector<8x8xf32>
    %c0_23 = arith.constant 0 : index
    %c0_24 = arith.constant 0 : index
    %c0_25 = arith.constant 0 : index
    %c0_26 = arith.constant 0 : index
    %54 = vector.load %arg7[%c0_23, %c0_24, %c0_25, %c0_26] : memref<1x1x8x8xf32, #tpu.memory_space<vmem>>, vector<1x1x8x8xf32>
    %55 = vector.shape_cast %54 : vector<1x1x8x8xf32> to vector<8x8xf32>
    %56 = vector.shape_cast %53 : vector<8x8xf32> to vector<1x1x8x8xf32>
    tpu.vector_store %arg7[%c0_23, %c0_24, %c0_25, %c0_26], %56 {strides = array<i32>} : memref<1x1x8x8xf32, #tpu.memory_space<vmem>>, vector<1x1x8x8xf32>,
    return
  }
  func.func @transform_0(%arg0: i32, %arg1: i32) -> (i32, i32, i32, i32, i32) {
    %c0_i32 = arith.constant 0 : i32
    %0 = arith.addi %arg1, %c0_i32 : i32
    %c0_i32_0 = arith.constant 0 : i32
    %c0_i32_1 = arith.constant 0 : i32
    %c0_i32_2 = arith.constant 0 : i32
    %c0_i32_3 = arith.constant 0 : i32
    return %arg0, %0, %c0_i32_0, %c0_i32_1, %c0_i32_2 : i32, i32, i32, i32, i32
  }
  func.func @transform_1(%arg0: i32, %arg1: i32) -> (i32, i32, i32, i32, i32) {
    %c1_i32 = arith.constant 1 : i32
    %0 = arith.addi %arg1, %c1_i32 : i32
    %c0_i32 = arith.constant 0 : i32
    %c0_i32_0 = arith.constant 0 : i32
    %c0_i32_1 = arith.constant 0 : i32
    %c0_i32_2 = arith.constant 0 : i32
    return %arg0, %0, %c0_i32, %c0_i32_0, %c0_i32_1 : i32, i32, i32, i32, i32
  }
  func.func @transform_2(%arg0: i32, %arg1: i32) -> (i32, i32, i32, i32, i32) {
    %c2_i32 = arith.constant 2 : i32
    %0 = arith.addi %arg1, %c2_i32 : i32
    %c0_i32 = arith.constant 0 : i32
    %c0_i32_0 = arith.constant 0 : i32
    %c0_i32_1 = arith.constant 0 : i32
    %c0_i32_2 = arith.constant 0 : i32
    return %arg0, %0, %c0_i32, %c0_i32_0, %c0_i32_1 : i32, i32, i32, i32, i32
  }
  func.func @transform_3(%arg0: i32, %arg1: i32) -> (i32, i32) {
    %c0_i32 = arith.constant 0 : i32
    %c0_i32_0 = arith.constant 0 : i32
    %c0_i32_1 = arith.constant 0 : i32
    return %c0_i32, %c0_i32_0 : i32, i32
  }
  func.func @transform_4(%arg0: i32, %arg1: i32) -> (i32, i32, i32, i32) {
    %c0_i32 = arith.constant 0 : i32
    %c0_i32_0 = arith.constant 0 : i32
    %c0_i32_1 = arith.constant 0 : i32
    return %arg0, %arg1, %c0_i32, %c0_i32_0 : i32, i32, i32, i32
  }
  func.func @transform_5(%arg0: i32, %arg1: i32) -> (i32, i32, i32, i32) {
    %c0_i32 = arith.constant 0 : i32
    %c0_i32_0 = arith.constant 0 : i32
    %c0_i32_1 = arith.constant 0 : i32
    return %arg0, %arg1, %c0_i32, %c0_i32_0 : i32, i32, i32, i32
  }
}

module attributes {stable_mosaic.version = 11 : i64} {
  func.func @kernel(%arg0: i32, %arg1: i32, %arg2: memref<1x1x10x10x8xbf16, #tpu.memory_space<vmem>>, %arg3: memref<1x1x10x10x8xbf16, #tpu.memory_space<vmem>>, %arg4: memref<1x1x10x10x8xbf16, #tpu.memory_space<vmem>>, %arg5: memref<216x8xbf16, #tpu.memory_space<vmem>>, %arg6: memref<1x8xf32, #tpu.memory_space<vmem>>, %arg7: memref<1x8xf32, #tpu.memory_space<vmem>>, %arg8: memref<1x1x64x8xf32, #tpu.memory_space<vmem>>, %arg9: memref<1x1x8x8xf32, #tpu.memory_space<vmem>>) attributes {dimension_semantics = [#tpu.dimension_semantics<parallel>, #tpu.dimension_semantics<parallel>], iteration_bounds = array<i64: 2, 8>, scalar_prefetch = 0 : i64, scratch_operands = 0 : i64, tpu.core_type = #tpu.core_type<tc>, window_params = [{transform_indices = @transform_0, window_bounds = array<i64: 1, 1, 10, 10, 8>}, {transform_indices = @transform_1, window_bounds = array<i64: 1, 1, 10, 10, 8>}, {transform_indices = @transform_2, window_bounds = array<i64: 1, 1, 10, 10, 8>}, {pipeline_mode = #tpu.pipeline_mode<synchronous>, transform_indices = @transform_3, window_bounds = array<i64: 216, 8>}, {pipeline_mode = #tpu.pipeline_mode<synchronous>, transform_indices = @transform_4, window_bounds = array<i64: 1, 8>}, {pipeline_mode = #tpu.pipeline_mode<synchronous>, transform_indices = @transform_5, window_bounds = array<i64: 1, 8>}, {transform_indices = @transform_6, window_bounds = array<i64: 1, 1, 64, 8>}, {transform_indices = @transform_7, window_bounds = array<i64: 1, 1, 8, 8>}]} {
    %c0 = arith.constant 0 : index
    %c0_0 = arith.constant 0 : index
    %c0_1 = arith.constant 0 : index
    %c0_2 = arith.constant 0 : index
    %c0_3 = arith.constant 0 : index
    %0 = vector.load %arg2[%c0, %c0_0, %c0_1, %c0_2, %c0_3] : memref<1x1x10x10x8xbf16, #tpu.memory_space<vmem>>, vector<1x1x10x10x8xbf16>
    %1 = vector.shape_cast %0 : vector<1x1x10x10x8xbf16> to vector<10x10x8xbf16>
    %2 = arith.extf %1 : vector<10x10x8xbf16> to vector<10x10x8xf32>
    %c0_4 = arith.constant 0 : index
    %c0_5 = arith.constant 0 : index
    %3 = vector.load %arg6[%c0_4, %c0_5] : memref<1x8xf32, #tpu.memory_space<vmem>>, vector<1x8xf32>
    %4 = vector.shape_cast %3 : vector<1x8xf32> to vector<1x1x8xf32>
    %5 = vector.broadcast %4 : vector<1x1x8xf32> to vector<10x10x8xf32>
    %6 = arith.mulf %2, %5 : vector<10x10x8xf32>
    %c0_6 = arith.constant 0 : index
    %c0_7 = arith.constant 0 : index
    %7 = vector.load %arg7[%c0_6, %c0_7] : memref<1x8xf32, #tpu.memory_space<vmem>>, vector<1x8xf32>
    %8 = vector.shape_cast %7 : vector<1x8xf32> to vector<1x1x8xf32>
    %9 = vector.broadcast %8 : vector<1x1x8xf32> to vector<10x10x8xf32>
    %10 = arith.addf %6, %9 : vector<10x10x8xf32>
    %cst = arith.constant 3.000000e+01 : f32
    %11 = vector.broadcast %cst : f32 to vector<10x10x8xf32>
    %12 = arith.minimumf %10, %11 : vector<10x10x8xf32>
    %13 = math.exp %12 : vector<10x10x8xf32>
    %cst_8 = arith.constant 1.000000e+00 : f32
    %14 = vector.broadcast %cst_8 : f32 to vector<10x10x8xf32>
    %15 = arith.addf %14, %13 : vector<10x10x8xf32>
    %cst_9 = arith.constant 1.000000e+00 : f32
    %16 = vector.broadcast %cst_9 : f32 to vector<10x10x8xf32>
    %17 = arith.addf %16, %13 : vector<10x10x8xf32>
    %18 = arith.mulf %15, %17 : vector<10x10x8xf32>
    %cst_10 = arith.constant 1.000000e+00 : f32
    %19 = vector.broadcast %cst_10 : f32 to vector<10x10x8xf32>
    %20 = arith.addf %18, %19 : vector<10x10x8xf32>
    %cst_11 = arith.constant 2.000000e+00 : f32
    %21 = vector.broadcast %cst_11 : f32 to vector<10x10x8xf32>
    %22 = arith.divf %21, %20 : vector<10x10x8xf32>
    %cst_12 = arith.constant 1.000000e+00 : f32
    %23 = vector.broadcast %cst_12 : f32 to vector<10x10x8xf32>
    %24 = arith.subf %23, %22 : vector<10x10x8xf32>
    %25 = arith.mulf %10, %24 : vector<10x10x8xf32>
    %26 = vector.extract_strided_slice %25 {offsets = [0, 0, 0], sizes = [8, 8, 8], strides = [1, 1, 1]} : vector<10x10x8xf32> to vector<8x8x8xf32>
    %27 = vector.extract_strided_slice %25 {offsets = [0, 1, 0], sizes = [8, 8, 8], strides = [1, 1, 1]} : vector<10x10x8xf32> to vector<8x8x8xf32>
    %28 = vector.extract_strided_slice %25 {offsets = [0, 2, 0], sizes = [8, 8, 8], strides = [1, 1, 1]} : vector<10x10x8xf32> to vector<8x8x8xf32>
    %29 = vector.extract_strided_slice %25 {offsets = [1, 0, 0], sizes = [8, 8, 8], strides = [1, 1, 1]} : vector<10x10x8xf32> to vector<8x8x8xf32>
    %30 = vector.extract_strided_slice %25 {offsets = [1, 1, 0], sizes = [8, 8, 8], strides = [1, 1, 1]} : vector<10x10x8xf32> to vector<8x8x8xf32>
    %31 = vector.extract_strided_slice %25 {offsets = [1, 2, 0], sizes = [8, 8, 8], strides = [1, 1, 1]} : vector<10x10x8xf32> to vector<8x8x8xf32>
    %32 = vector.extract_strided_slice %25 {offsets = [2, 0, 0], sizes = [8, 8, 8], strides = [1, 1, 1]} : vector<10x10x8xf32> to vector<8x8x8xf32>
    %33 = vector.extract_strided_slice %25 {offsets = [2, 1, 0], sizes = [8, 8, 8], strides = [1, 1, 1]} : vector<10x10x8xf32> to vector<8x8x8xf32>
    %34 = vector.extract_strided_slice %25 {offsets = [2, 2, 0], sizes = [8, 8, 8], strides = [1, 1, 1]} : vector<10x10x8xf32> to vector<8x8x8xf32>
    %c0_13 = arith.constant 0 : index
    %c0_14 = arith.constant 0 : index
    %c0_15 = arith.constant 0 : index
    %c0_16 = arith.constant 0 : index
    %c0_17 = arith.constant 0 : index
    %35 = vector.load %arg3[%c0_13, %c0_14, %c0_15, %c0_16, %c0_17] : memref<1x1x10x10x8xbf16, #tpu.memory_space<vmem>>, vector<1x1x10x10x8xbf16>
    %36 = vector.shape_cast %35 : vector<1x1x10x10x8xbf16> to vector<10x10x8xbf16>
    %37 = arith.extf %36 : vector<10x10x8xbf16> to vector<10x10x8xf32>
    %c0_18 = arith.constant 0 : index
    %c0_19 = arith.constant 0 : index
    %38 = vector.load %arg6[%c0_18, %c0_19] : memref<1x8xf32, #tpu.memory_space<vmem>>, vector<1x8xf32>
    %39 = vector.shape_cast %38 : vector<1x8xf32> to vector<1x1x8xf32>
    %40 = vector.broadcast %39 : vector<1x1x8xf32> to vector<10x10x8xf32>
    %41 = arith.mulf %37, %40 : vector<10x10x8xf32>
    %c0_20 = arith.constant 0 : index
    %c0_21 = arith.constant 0 : index
    %42 = vector.load %arg7[%c0_20, %c0_21] : memref<1x8xf32, #tpu.memory_space<vmem>>, vector<1x8xf32>
    %43 = vector.shape_cast %42 : vector<1x8xf32> to vector<1x1x8xf32>
    %44 = vector.broadcast %43 : vector<1x1x8xf32> to vector<10x10x8xf32>
    %45 = arith.addf %41, %44 : vector<10x10x8xf32>
    %cst_22 = arith.constant 3.000000e+01 : f32
    %46 = vector.broadcast %cst_22 : f32 to vector<10x10x8xf32>
    %47 = arith.minimumf %45, %46 : vector<10x10x8xf32>
    %48 = math.exp %47 : vector<10x10x8xf32>
    %cst_23 = arith.constant 1.000000e+00 : f32
    %49 = vector.broadcast %cst_23 : f32 to vector<10x10x8xf32>
    %50 = arith.addf %49, %48 : vector<10x10x8xf32>
    %cst_24 = arith.constant 1.000000e+00 : f32
    %51 = vector.broadcast %cst_24 : f32 to vector<10x10x8xf32>
    %52 = arith.addf %51, %48 : vector<10x10x8xf32>
    %53 = arith.mulf %50, %52 : vector<10x10x8xf32>
    %cst_25 = arith.constant 1.000000e+00 : f32
    %54 = vector.broadcast %cst_25 : f32 to vector<10x10x8xf32>
    %55 = arith.addf %53, %54 : vector<10x10x8xf32>
    %cst_26 = arith.constant 2.000000e+00 : f32
    %56 = vector.broadcast %cst_26 : f32 to vector<10x10x8xf32>
    %57 = arith.divf %56, %55 : vector<10x10x8xf32>
    %cst_27 = arith.constant 1.000000e+00 : f32
    %58 = vector.broadcast %cst_27 : f32 to vector<10x10x8xf32>
    %59 = arith.subf %58, %57 : vector<10x10x8xf32>
    %60 = arith.mulf %45, %59 : vector<10x10x8xf32>
    %61 = vector.extract_strided_slice %60 {offsets = [0, 0, 0], sizes = [8, 8, 8], strides = [1, 1, 1]} : vector<10x10x8xf32> to vector<8x8x8xf32>
    %62 = vector.extract_strided_slice %60 {offsets = [0, 1, 0], sizes = [8, 8, 8], strides = [1, 1, 1]} : vector<10x10x8xf32> to vector<8x8x8xf32>
    %63 = vector.extract_strided_slice %60 {offsets = [0, 2, 0], sizes = [8, 8, 8], strides = [1, 1, 1]} : vector<10x10x8xf32> to vector<8x8x8xf32>
    %64 = vector.extract_strided_slice %60 {offsets = [1, 0, 0], sizes = [8, 8, 8], strides = [1, 1, 1]} : vector<10x10x8xf32> to vector<8x8x8xf32>
    %65 = vector.extract_strided_slice %60 {offsets = [1, 1, 0], sizes = [8, 8, 8], strides = [1, 1, 1]} : vector<10x10x8xf32> to vector<8x8x8xf32>
    %66 = vector.extract_strided_slice %60 {offsets = [1, 2, 0], sizes = [8, 8, 8], strides = [1, 1, 1]} : vector<10x10x8xf32> to vector<8x8x8xf32>
    %67 = vector.extract_strided_slice %60 {offsets = [2, 0, 0], sizes = [8, 8, 8], strides = [1, 1, 1]} : vector<10x10x8xf32> to vector<8x8x8xf32>
    %68 = vector.extract_strided_slice %60 {offsets = [2, 1, 0], sizes = [8, 8, 8], strides = [1, 1, 1]} : vector<10x10x8xf32> to vector<8x8x8xf32>
    %69 = vector.extract_strided_slice %60 {offsets = [2, 2, 0], sizes = [8, 8, 8], strides = [1, 1, 1]} : vector<10x10x8xf32> to vector<8x8x8xf32>
    %c0_28 = arith.constant 0 : index
    %c0_29 = arith.constant 0 : index
    %c0_30 = arith.constant 0 : index
    %c0_31 = arith.constant 0 : index
    %c0_32 = arith.constant 0 : index
    %70 = vector.load %arg4[%c0_28, %c0_29, %c0_30, %c0_31, %c0_32] : memref<1x1x10x10x8xbf16, #tpu.memory_space<vmem>>, vector<1x1x10x10x8xbf16>
    %71 = vector.shape_cast %70 : vector<1x1x10x10x8xbf16> to vector<10x10x8xbf16>
    %72 = arith.extf %71 : vector<10x10x8xbf16> to vector<10x10x8xf32>
    %c0_33 = arith.constant 0 : index
    %c0_34 = arith.constant 0 : index
    %73 = vector.load %arg6[%c0_33, %c0_34] : memref<1x8xf32, #tpu.memory_space<vmem>>, vector<1x8xf32>
    %74 = vector.shape_cast %73 : vector<1x8xf32> to vector<1x1x8xf32>
    %75 = vector.broadcast %74 : vector<1x1x8xf32> to vector<10x10x8xf32>
    %76 = arith.mulf %72, %75 : vector<10x10x8xf32>
    %c0_35 = arith.constant 0 : index
    %c0_36 = arith.constant 0 : index
    %77 = vector.load %arg7[%c0_35, %c0_36] : memref<1x8xf32, #tpu.memory_space<vmem>>, vector<1x8xf32>
    %78 = vector.shape_cast %77 : vector<1x8xf32> to vector<1x1x8xf32>
    %79 = vector.broadcast %78 : vector<1x1x8xf32> to vector<10x10x8xf32>
    %80 = arith.addf %76, %79 : vector<10x10x8xf32>
    %cst_37 = arith.constant 3.000000e+01 : f32
    %81 = vector.broadcast %cst_37 : f32 to vector<10x10x8xf32>
    %82 = arith.minimumf %80, %81 : vector<10x10x8xf32>
    %83 = math.exp %82 : vector<10x10x8xf32>
    %cst_38 = arith.constant 1.000000e+00 : f32
    %84 = vector.broadcast %cst_38 : f32 to vector<10x10x8xf32>
    %85 = arith.addf %84, %83 : vector<10x10x8xf32>
    %cst_39 = arith.constant 1.000000e+00 : f32
    %86 = vector.broadcast %cst_39 : f32 to vector<10x10x8xf32>
    %87 = arith.addf %86, %83 : vector<10x10x8xf32>
    %88 = arith.mulf %85, %87 : vector<10x10x8xf32>
    %cst_40 = arith.constant 1.000000e+00 : f32
    %89 = vector.broadcast %cst_40 : f32 to vector<10x10x8xf32>
    %90 = arith.addf %88, %89 : vector<10x10x8xf32>
    %cst_41 = arith.constant 2.000000e+00 : f32
    %91 = vector.broadcast %cst_41 : f32 to vector<10x10x8xf32>
    %92 = arith.divf %91, %90 : vector<10x10x8xf32>
    %cst_42 = arith.constant 1.000000e+00 : f32
    %93 = vector.broadcast %cst_42 : f32 to vector<10x10x8xf32>
    %94 = arith.subf %93, %92 : vector<10x10x8xf32>
    %95 = arith.mulf %80, %94 : vector<10x10x8xf32>
    %96 = vector.extract_strided_slice %95 {offsets = [0, 0, 0], sizes = [8, 8, 8], strides = [1, 1, 1]} : vector<10x10x8xf32> to vector<8x8x8xf32>
    %97 = vector.extract_strided_slice %95 {offsets = [0, 1, 0], sizes = [8, 8, 8], strides = [1, 1, 1]} : vector<10x10x8xf32> to vector<8x8x8xf32>
    %98 = vector.extract_strided_slice %95 {offsets = [0, 2, 0], sizes = [8, 8, 8], strides = [1, 1, 1]} : vector<10x10x8xf32> to vector<8x8x8xf32>
    %99 = vector.extract_strided_slice %95 {offsets = [1, 0, 0], sizes = [8, 8, 8], strides = [1, 1, 1]} : vector<10x10x8xf32> to vector<8x8x8xf32>
    %100 = vector.extract_strided_slice %95 {offsets = [1, 1, 0], sizes = [8, 8, 8], strides = [1, 1, 1]} : vector<10x10x8xf32> to vector<8x8x8xf32>
    %101 = vector.extract_strided_slice %95 {offsets = [1, 2, 0], sizes = [8, 8, 8], strides = [1, 1, 1]} : vector<10x10x8xf32> to vector<8x8x8xf32>
    %102 = vector.extract_strided_slice %95 {offsets = [2, 0, 0], sizes = [8, 8, 8], strides = [1, 1, 1]} : vector<10x10x8xf32> to vector<8x8x8xf32>
    %103 = vector.extract_strided_slice %95 {offsets = [2, 1, 0], sizes = [8, 8, 8], strides = [1, 1, 1]} : vector<10x10x8xf32> to vector<8x8x8xf32>
    %104 = vector.extract_strided_slice %95 {offsets = [2, 2, 0], sizes = [8, 8, 8], strides = [1, 1, 1]} : vector<10x10x8xf32> to vector<8x8x8xf32>
    %105 = tpu.concatenate %26, %27, %28, %29, %30, %31, %32, %33, %34, %61, %62, %63, %64, %65, %66, %67 in 2 : vector<8x8x8xf32>, vector<8x8x8xf32>, vector<8x8x8xf32>, vector<8x8x8xf32>, vector<8x8x8xf32>, vector<8x8x8xf32>, vector<8x8x8xf32>, vector<8x8x8xf32>, vector<8x8x8xf32>, vector<8x8x8xf32>, vector<8x8x8xf32>, vector<8x8x8xf32>, vector<8x8x8xf32>, vector<8x8x8xf32>, vector<8x8x8xf32>, vector<8x8x8xf32> -> vector<8x8x128xf32>
    %106 = tpu.concatenate %68, %69, %96, %97, %98, %99, %100, %101, %102, %103, %104 in 2 : vector<8x8x8xf32>, vector<8x8x8xf32>, vector<8x8x8xf32>, vector<8x8x8xf32>, vector<8x8x8xf32>, vector<8x8x8xf32>, vector<8x8x8xf32>, vector<8x8x8xf32>, vector<8x8x8xf32>, vector<8x8x8xf32>, vector<8x8x8xf32> -> vector<8x8x88xf32>
    %107 = tpu.concatenate %105, %106 in 2 : vector<8x8x128xf32>, vector<8x8x88xf32> -> vector<8x8x216xf32>
    %108 = vector.shape_cast %107 : vector<8x8x216xf32> to vector<64x216xf32>
    %109 = arith.truncf %108 : vector<64x216xf32> to vector<64x216xbf16>
    %c0_43 = arith.constant 0 : index
    %c0_44 = arith.constant 0 : index
    %110 = vector.load %arg5[%c0_43, %c0_44] : memref<216x8xbf16, #tpu.memory_space<vmem>>, vector<216x8xbf16>
    %cst_45 = arith.constant dense<0.000000e+00> : vector<64x8xf32>
    %111 = tpu.matmul %109, %110, %cst_45 {dimension_numbers = #tpu.dot_dimension_numbers<[1], [0], [0], [1], [0, 0, 1, 1], [], []>} : vector<64x216xbf16>, vector<216x8xbf16>, vector<64x8xf32> -> vector<64x8xf32>
    %c0_46 = arith.constant 0 : index
    %c0_47 = arith.constant 0 : index
    %c0_48 = arith.constant 0 : index
    %c0_49 = arith.constant 0 : index
    %112 = vector.load %arg8[%c0_46, %c0_47, %c0_48, %c0_49] : memref<1x1x64x8xf32, #tpu.memory_space<vmem>>, vector<1x1x64x8xf32>
    %113 = vector.shape_cast %112 : vector<1x1x64x8xf32> to vector<64x8xf32>
    %114 = vector.shape_cast %111 : vector<64x8xf32> to vector<1x1x64x8xf32>
    tpu.vector_store %arg8[%c0_46, %c0_47, %c0_48, %c0_49], %114 {strides = array<i32>} : memref<1x1x64x8xf32, #tpu.memory_space<vmem>>, vector<1x1x64x8xf32>,
    %cst_50 = arith.constant dense<0.000000e+00> : vector<8xf32>
    %115 = vector.multi_reduction <add>, %111, %cst_50 [0] : vector<64x8xf32> to vector<8xf32>
    %116 = vector.shape_cast %115 : vector<8xf32> to vector<1x8xf32>
    %117 = arith.mulf %111, %111 : vector<64x8xf32>
    %cst_51 = arith.constant dense<0.000000e+00> : vector<8xf32>
    %118 = vector.multi_reduction <add>, %117, %cst_51 [0] : vector<64x8xf32> to vector<8xf32>
    %119 = vector.shape_cast %118 : vector<8xf32> to vector<1x8xf32>
    %cst_52 = arith.constant 0.000000e+00 : f32
    %120 = vector.broadcast %cst_52 : f32 to vector<6x8xf32>
    %121 = tpu.concatenate %116, %119, %120 in 0 : vector<1x8xf32>, vector<1x8xf32>, vector<6x8xf32> -> vector<8x8xf32>
    %c0_53 = arith.constant 0 : index
    %c0_54 = arith.constant 0 : index
    %c0_55 = arith.constant 0 : index
    %c0_56 = arith.constant 0 : index
    %122 = vector.load %arg9[%c0_53, %c0_54, %c0_55, %c0_56] : memref<1x1x8x8xf32, #tpu.memory_space<vmem>>, vector<1x1x8x8xf32>
    %123 = vector.shape_cast %122 : vector<1x1x8x8xf32> to vector<8x8xf32>
    %124 = vector.shape_cast %121 : vector<8x8xf32> to vector<1x1x8x8xf32>
    tpu.vector_store %arg9[%c0_53, %c0_54, %c0_55, %c0_56], %124 {strides = array<i32>} : memref<1x1x8x8xf32, #tpu.memory_space<vmem>>, vector<1x1x8x8xf32>,
    return
  }
  func.func @transform_0(%arg0: i32, %arg1: i32) -> (i32, i32, i32, i32, i32) {
    %c0_i32 = arith.constant 0 : i32
    %0 = arith.addi %arg1, %c0_i32 : i32
    %c0_i32_0 = arith.constant 0 : i32
    %c0_i32_1 = arith.constant 0 : i32
    %c0_i32_2 = arith.constant 0 : i32
    %c0_i32_3 = arith.constant 0 : i32
    return %arg0, %0, %c0_i32_0, %c0_i32_1, %c0_i32_2 : i32, i32, i32, i32, i32
  }
  func.func @transform_1(%arg0: i32, %arg1: i32) -> (i32, i32, i32, i32, i32) {
    %c1_i32 = arith.constant 1 : i32
    %0 = arith.addi %arg1, %c1_i32 : i32
    %c0_i32 = arith.constant 0 : i32
    %c0_i32_0 = arith.constant 0 : i32
    %c0_i32_1 = arith.constant 0 : i32
    %c0_i32_2 = arith.constant 0 : i32
    return %arg0, %0, %c0_i32, %c0_i32_0, %c0_i32_1 : i32, i32, i32, i32, i32
  }
  func.func @transform_2(%arg0: i32, %arg1: i32) -> (i32, i32, i32, i32, i32) {
    %c2_i32 = arith.constant 2 : i32
    %0 = arith.addi %arg1, %c2_i32 : i32
    %c0_i32 = arith.constant 0 : i32
    %c0_i32_0 = arith.constant 0 : i32
    %c0_i32_1 = arith.constant 0 : i32
    %c0_i32_2 = arith.constant 0 : i32
    return %arg0, %0, %c0_i32, %c0_i32_0, %c0_i32_1 : i32, i32, i32, i32, i32
  }
  func.func @transform_3(%arg0: i32, %arg1: i32) -> (i32, i32) {
    %c0_i32 = arith.constant 0 : i32
    %c0_i32_0 = arith.constant 0 : i32
    %c0_i32_1 = arith.constant 0 : i32
    return %c0_i32, %c0_i32_0 : i32, i32
  }
  func.func @transform_4(%arg0: i32, %arg1: i32) -> (i32, i32) {
    %c0_i32 = arith.constant 0 : i32
    %c0_i32_0 = arith.constant 0 : i32
    %c0_i32_1 = arith.constant 0 : i32
    return %c0_i32, %c0_i32_0 : i32, i32
  }
  func.func @transform_5(%arg0: i32, %arg1: i32) -> (i32, i32) {
    %c0_i32 = arith.constant 0 : i32
    %c0_i32_0 = arith.constant 0 : i32
    %c0_i32_1 = arith.constant 0 : i32
    return %c0_i32, %c0_i32_0 : i32, i32
  }
  func.func @transform_6(%arg0: i32, %arg1: i32) -> (i32, i32, i32, i32) {
    %c0_i32 = arith.constant 0 : i32
    %c0_i32_0 = arith.constant 0 : i32
    %c0_i32_1 = arith.constant 0 : i32
    return %arg0, %arg1, %c0_i32, %c0_i32_0 : i32, i32, i32, i32
  }
  func.func @transform_7(%arg0: i32, %arg1: i32) -> (i32, i32, i32, i32) {
    %c0_i32 = arith.constant 0 : i32
    %c0_i32_0 = arith.constant 0 : i32
    %c0_i32_1 = arith.constant 0 : i32
    return %arg0, %arg1, %c0_i32, %c0_i32_0 : i32, i32, i32, i32
  }
}

module attributes {stable_mosaic.version = 11 : i64} {
  func.func @_bn_mish_kernel(%arg0: i32, %arg1: memref<32x128xf32, #tpu.memory_space<vmem>>, %arg2: memref<1x128xf32, #tpu.memory_space<vmem>>, %arg3: memref<1x128xf32, #tpu.memory_space<vmem>>, %arg4: memref<32x128xf32, #tpu.memory_space<vmem>>) attributes {dimension_semantics = [#tpu.dimension_semantics<parallel>], iteration_bounds = array<i64: 2>, scalar_prefetch = 0 : i64, scratch_operands = 0 : i64, tpu.core_type = #tpu.core_type<tc>, window_params = [{transform_indices = @transform_0, window_bounds = array<i64: 32, 128>}, {pipeline_mode = #tpu.pipeline_mode<synchronous>, transform_indices = @transform_1, window_bounds = array<i64: 1, 128>}, {pipeline_mode = #tpu.pipeline_mode<synchronous>, transform_indices = @transform_2, window_bounds = array<i64: 1, 128>}, {transform_indices = @transform_3, window_bounds = array<i64: 32, 128>}]} {
    %c0 = arith.constant 0 : index
    %c0_0 = arith.constant 0 : index
    %0 = vector.load %arg1[%c0, %c0_0] : memref<32x128xf32, #tpu.memory_space<vmem>>, vector<32x128xf32>
    %c0_1 = arith.constant 0 : index
    %c0_2 = arith.constant 0 : index
    %1 = vector.load %arg2[%c0_1, %c0_2] : memref<1x128xf32, #tpu.memory_space<vmem>>, vector<1x128xf32>
    %2 = vector.broadcast %1 : vector<1x128xf32> to vector<32x128xf32>
    %3 = arith.mulf %0, %2 : vector<32x128xf32>
    %c0_3 = arith.constant 0 : index
    %c0_4 = arith.constant 0 : index
    %4 = vector.load %arg3[%c0_3, %c0_4] : memref<1x128xf32, #tpu.memory_space<vmem>>, vector<1x128xf32>
    %5 = vector.broadcast %4 : vector<1x128xf32> to vector<32x128xf32>
    %6 = arith.addf %3, %5 : vector<32x128xf32>
    %cst = arith.constant 3.000000e+01 : f32
    %7 = vector.broadcast %cst : f32 to vector<32x128xf32>
    %8 = arith.minimumf %6, %7 : vector<32x128xf32>
    %9 = math.exp %8 : vector<32x128xf32>
    %cst_5 = arith.constant 1.000000e+00 : f32
    %10 = vector.broadcast %cst_5 : f32 to vector<32x128xf32>
    %11 = arith.addf %10, %9 : vector<32x128xf32>
    %cst_6 = arith.constant 1.000000e+00 : f32
    %12 = vector.broadcast %cst_6 : f32 to vector<32x128xf32>
    %13 = arith.addf %12, %9 : vector<32x128xf32>
    %14 = arith.mulf %11, %13 : vector<32x128xf32>
    %cst_7 = arith.constant 1.000000e+00 : f32
    %15 = vector.broadcast %cst_7 : f32 to vector<32x128xf32>
    %16 = arith.addf %14, %15 : vector<32x128xf32>
    %cst_8 = arith.constant 2.000000e+00 : f32
    %17 = vector.broadcast %cst_8 : f32 to vector<32x128xf32>
    %18 = arith.divf %17, %16 : vector<32x128xf32>
    %cst_9 = arith.constant 1.000000e+00 : f32
    %19 = vector.broadcast %cst_9 : f32 to vector<32x128xf32>
    %20 = arith.subf %19, %18 : vector<32x128xf32>
    %21 = arith.mulf %6, %20 : vector<32x128xf32>
    %c0_10 = arith.constant 0 : index
    %c0_11 = arith.constant 0 : index
    %22 = vector.load %arg4[%c0_10, %c0_11] : memref<32x128xf32, #tpu.memory_space<vmem>>, vector<32x128xf32>
    tpu.vector_store %arg4[%c0_10, %c0_11], %21 {strides = array<i32>} : memref<32x128xf32, #tpu.memory_space<vmem>>, vector<32x128xf32>,
    return
  }
  func.func @transform_0(%arg0: i32) -> (i32, i32) {
    %c0_i32 = arith.constant 0 : i32
    %c0_i32_0 = arith.constant 0 : i32
    return %arg0, %c0_i32 : i32, i32
  }
  func.func @transform_1(%arg0: i32) -> (i32, i32) {
    %c0_i32 = arith.constant 0 : i32
    %c0_i32_0 = arith.constant 0 : i32
    %c0_i32_1 = arith.constant 0 : i32
    return %c0_i32, %c0_i32_0 : i32, i32
  }
  func.func @transform_2(%arg0: i32) -> (i32, i32) {
    %c0_i32 = arith.constant 0 : i32
    %c0_i32_0 = arith.constant 0 : i32
    %c0_i32_1 = arith.constant 0 : i32
    return %c0_i32, %c0_i32_0 : i32, i32
  }
  func.func @transform_3(%arg0: i32) -> (i32, i32) {
    %c0_i32 = arith.constant 0 : i32
    %c0_i32_0 = arith.constant 0 : i32
    return %arg0, %c0_i32 : i32, i32
  }
}

</mosaic_0001>

<bundles_post_ra>
// kernel: double_conv_forward.3
= control target key start
LH: loop header
LB: loop body
LE: loop exit
PB: predicated region body
PF: predicated region fallthrough
CT: control target
= control target key end

     0   :  { %s3081_s18 = smov 0   ;;  %s3083_s19 = smov 0   ;;  %s4652_s0 = inlined_call_operand.vmem [shape: bf16[2,10,10,10,4], index: 0, kind: input, shape index: {}, may-alias: {0,1,2}]   ;;  %s4653_s1 = inlined_call_operand.vmem [shape: bf16[2,10,10,10,4], index: 1, kind: input, shape index: {}, may-alias: {0,1,2}]   ;;  %s4654_s2 = inlined_call_operand.vmem [shape: bf16[2,10,10,10,4], index: 2, kind: input, shape index: {}, may-alias: {0,1,2}]   ;;  %s4655_s3 = inlined_call_operand.vmem [shape: bf16[108,8], index: 3, kind: input, shape index: {}]   ;;  %s4656_s4 = inlined_call_operand.vmem [shape: bf16[2,8,64,8], index: 4, kind: output, shape index: {0}]   ;;  %s4657_s5 = inlined_call_operand.vmem [shape: f32[2,8,8,8], index: 5, kind: output, shape index: {1}]  }
   0x1   :  { %s3085_s20 = smov 0   ;;  %s3087_s21 = smov 0  }
   0x2   :  { %s3089_s22 = smov 0  }
   0x3 LB: > { %s25_s23 = sadd.s32 1, %s3025_s20  ;;  %s28_s24 = sadd.s32 1, %s3029_s21  ;;  %s3033_s22 = sphi %s3089_s22, %s16_s22   ;;  %s3029_s21 = sphi %s3087_s21, %s4696_s21   ;;  %s3025_s20 = sphi %s3085_s20, %s4695_s20   ;;  %s3021_s19 = sphi %s3083_s19, %s4694_s19   ;;  %s3017_s18 = sphi %s3081_s18, %s4693_s18  }
   0x4   : > { %p26_p0 = scmp.ge.s32.totalorder %s25_s23, 8  ;;  %p2204_p1 = scmp.ge.s32.totalorder %s3033_s22, 1 }
   0x5   : > { %p252_p2 = scmp.lt.s32.totalorder %s3033_s22, 17 }
   0x6   : > { %s4698_s23 = smov (%p26_p0, %s25_s23), 0  ;;  %s4700_s24 = smov (!%p26_p0, %s28_s24), %s3029_s21 }
   0x7   : > { %p253_p3 = pnand %p2204_p1, %p252_p2  ;;  %p30_p4 = scmp.ge.s32.totalorder %s4700_s24, 2 }
   0x9   : > { %s4702_s24 = smov (%p30_p4, %s4700_s24), 0  ;;  %256 = sbr.rel (%p253_p3) target bundleno = 771 (0x303), region = 36 }
   0xe   : > { %p316_p5 = scmp.lt.s32.totalorder %s3021_s19, 1  ;;  %p318_p6 = scmp.lt.s32.totalorder %s3017_s18, 9  ;;  %vm501_vm0 = vcmask 1046528   ;;  %vm550_vm1 = vcmask 1045504   ;;  %vm1000_vm2 = vcmask 31744   ;;  %vm1009_vm3 = vcmask 64512  }
   0xf   : > { %s3035_s8 = smov 4   ;;  %s3036_s9 = smov 8   ;;  %vm1018_vm4 = vcmask 97280   ;;  %vm1027_vm5 = vcmask 130048   ;;  %vm1036_vm6 = vcmask 162816   ;;  %vm1045_vm7 = vcmask 195584  }
  0x10   : > { %s4704_s19 = smov (!%p316_p5, %s3021_s19), 1  ;;  %s3037_s10 = smov 12   ;;  %vm1054_vm8 = vcmask 228352   ;;  %vm1063_vm9 = vcmask 261120   ;;  %vm1072_vm10 = vcmask 293888   ;;  %vm1081_vm11 = vcmask 326656  }
  0x11   : > { %s319_s25 = scalar_select %p318_p6, %s3017_s18, 9  ;;  %vm1090_vm12 = vcmask 359424   ;;  %vm1099_vm13 = vcmask 392192   ;;  %vm1108_vm14 = vcmask 424960   ;;  %vm1117_vm15 = vcmask 457728  }
  0x12   : > { %s3118_s26 = smul.u32 200, %s4704_s19  ;;  %s3038_s11 = smov 16  }
  0x13   : > { %s2275_s27 = smul.u32 20, %s319_s25  ;;  %s3039_s12 = smov 20  }
  0x14   : > { %s325_s13 = sadd.s32 1, %s3017_s18  ;;  %s3040_s14 = smov 24  }
  0x15   : > { %s322_s28 = sadd.s32 %s3118_s26, %s2275_s27  ;;  %p328_p7 = scmp.lt.s32.totalorder %s325_s13, 9 }
  0x16   : > { %s2205_s29 = sshll.u32 %s322_s28, 2  ;;  %s3041_s17 = smov 28  }
  0x17   : > { %s3124_s7 = scalar_lea.vmem %s4652_s0, %s2205_s29  ;;  %s4706_s13 = smov (!%p328_p7, %s325_s13), 9 }
  0x18   : > { %v373_v0 = vld [vmem:[%s3124_s7 + $0x20] sm:$0xf]  ;;  %v3128_v1 = vld [vmem:[%s3124_s7 + $0x24] sm:$0x1]  ;;  %v375_v2 = vld [vmem:[%s3124_s7 + $0x28] sm:$0xf] }
  0x19   : > { %v3132_v3 = vld [vmem:[%s3124_s7 + $0x2c] sm:$0x1]  ;;  %v3134_v4 = vunpack.c.l.bf16 %v373_v0  ;;  %v394_v5 = vunpack.c.l.bf16 %v3128_v1  ;;  %v3137_v6 = vunpack.c.l.bf16 %v375_v2  ;;  %v367_v7 = vld [vmem:[%s3124_s7 + $0x8] sm:$0xf]  ;;  %v369_v10 = vld [vmem:[%s3124_s7 + $0x10] sm:$0xf] }
  0x1a   : > { %v368_v8 = vld [vmem:[%s3124_s7 + $0xc] sm:$0x1]  ;;  %v396_v9 = vunpack.c.l.bf16 %v3132_v3  ;;  %v370_v11 = vld [vmem:[%s3124_s7 + $0x14] sm:$0x1]  ;;  %v3144_v12 = vunpack.c.l.bf16 %v367_v7  ;;  %v365_v14 = vld [vmem:[%s3124_s7] sm:$0xf]  ;;  %v3151_v18 = vunpack.c.l.bf16 %v369_v10 }
  0x1b   : > { %v388_v13 = vunpack.c.l.bf16 %v368_v8  ;;  %v514_v15 = vrot.slane %v3134_v4, 1  ;;  %v515_v16 = vrot.slane %v394_v5, 1  ;;  %v517_v17 = vrot.slane %v3137_v6, 1  ;;  %v366_v19 = vld [vmem:[%s3124_s7 + $0x4] sm:$0x1]  ;;  %s2277_s15 = smul.u32 20, %s4706_s13 }
  0x1c   : > { %v518_v20 = vrot.slane %v396_v9, 1  ;;  %v390_v21 = vunpack.c.l.bf16 %v370_v11  ;;  %v554_v22 = vrot.slane %v3144_v12, 2  ;;  %v557_v25 = vrot.slane %v3151_v18, 2  ;;  %v377_v32 = vld [vmem:[%s3124_s7 + $0x30] sm:$0xf]  ;;  %s3042_s30 = smov 32  }
  0x1d   : > { %v555_v23 = vrot.slane %v388_v13, 2  ;;  %v3158_v24 = vsel %vm501_vm0, %v514_v15, %v515_v16  ;;  %v3161_v26 = vunpack.c.l.bf16 %v365_v14  ;;  %v386_v27 = vunpack.c.l.bf16 %v366_v19  ;;  %v378_v33 = vld [vmem:[%s3124_s7 + $0x34] sm:$0x1]  ;;  %v379_v38 = vld [vmem:[%s3124_s7 + $0x38] sm:$0xf]  ;;  %s332_s16 = sadd.s32 %s2277_s15, %s3118_s26  ;;  %s3043_s6 = smov 36  }
  0x1e   : > { %v3164_v28 = vsel %vm501_vm0, %v517_v17, %v518_v20  ;;  %v558_v30 = vrot.slane %v390_v21, 2  ;;  %v505_v31 = vrot.slane %v3144_v12, 1  ;;  %v506_v37 = vrot.slane %v388_v13, 1  ;;  %v380_v42 = vld [vmem:[%s3124_s7 + $0x3c] sm:$0x1]  ;;  %s2206_s25 = sshll.u32 %s332_s16, 2 }
  0x1f   : > { %v3167_v29 = vsel %vm550_vm1, %v554_v22, %v555_v23  ;;  %v3174_v34 = vpack.i.bf16 %v3164_v28, %v3158_v24  ;;  %v551_v35 = vrot.slane %v3161_v26, 2  ;;  %v552_v36 = vrot.slane %v386_v27, 2  ;;  %v371_v46 = vld [vmem:[%s3124_s7 + $0x18] sm:$0xf]  ;;  %v372_v51 = vld [vmem:[%s3124_s7 + $0x1c] sm:$0x1]  ;;  %s3300_s29 = scalar_lea.vmem %s4653_s1, %s2206_s25 }
  0x20   : > { %v508_v39 = vrot.slane %v3151_v18, 1  ;;  %v509_v40 = vrot.slane %v390_v21, 1  ;;  %v502_v41 = vrot.slane %v3161_v26, 1  ;;  %v3185_v44 = vsel %vm501_vm0, %v505_v31, %v506_v37  ;;  %s3045_s13 = smov 44   ;;  %s3046_s15 = smov 48  }
  0x21   : > { %2346 = vrot.lane.b32.xlu1 %v3174_v34, %s3035_s8  ;;  %v553_v43 = vsel %vm550_vm1, %v551_v35, %v552_v36  ;;  %v503_v45 = vrot.slane %v386_v27, 1  ;;  %v3189_v47 = vsel %vm550_vm1, %v557_v25, %v558_v30  ;;  %v3192_v49 = vunpack.c.l.bf16 %v377_v32  ;;  %s3047_s16 = smov 52   ;;  %s3048_s25 = smov 56  }
  0x22   : > { %v2355_v48 = vpack.i.bf16 %v3167_v29, %v553_v43  ;;  %v398_v50 = vunpack.c.l.bf16 %v378_v33  ;;  %v3196_v52 = vsel %vm501_vm0, %v508_v39, %v509_v40  ;;  %v3199_v54 = vunpack.c.l.bf16 %v379_v38  ;;  %v382_v39 = vld [vmem:[%s3124_s7 + $0x44] sm:$0x1]  ;;  %s336_s27 = sadd.s32 2, %s3017_s18  ;;  %s3049_s28 = smov 60  }
  0x23   : > { %v504_v53 = vsel %vm501_vm0, %v502_v41, %v503_v45  ;;  %v400_v55 = vunpack.c.l.bf16 %v380_v42  ;;  %v520_v57 = vrot.slane %v3192_v49, 1  ;;  %v3204_v59 = vunpack.c.l.bf16 %v371_v46  ;;  %p339_p8 = scmp.lt.s32.totalorder %s336_s27, 9  ;;  %p349_p9 = scmp.lt.s32.totalorder %s3017_s18, 7 }
  0x24   : > { %2356 = vrot.lane.b32.xlu2 %v2355_v48, %s3036_s9  ;;  %v2335_v56 = vpack.i.bf16 %v3185_v44, %v504_v53  ;;  %v521_v58 = vrot.slane %v398_v50, 1  ;;  %v523_v60 = vrot.slane %v3199_v54, 1  ;;  %v392_v62 = vunpack.c.l.bf16 %v372_v51 }
  0x25   : > { %v524_v61 = vrot.slane %v400_v55, 1  ;;  %v569_v63 = vrot.slane %v3192_v49, 2  ;;  %v560_v2 = vrot.slane %v3204_v59, 2  ;;  %v511_v7 = vrot.slane %v3204_v59, 1  ;;  %s4708_s27 = smov (!%p339_p8, %s336_s27), 9  ;;  %s4710_s18 = smov (!%p349_p9, %s3017_s18), 7 }
  0x26   : > { %2336 = vrot.lane.b32.xlu0 %v2335_v56, %s3035_s8  ;;  %v522_v0 = vsel %vm501_vm0, %v520_v57, %v521_v58  ;;  %v570_v8 = vrot.slane %v398_v50, 2  ;;  %v561_v11 = vrot.slane %v392_v62, 2  ;;  %v512_v13 = vrot.slane %v392_v62, 1 }
  0x27   : > { %v525_v10 = vsel %vm501_vm0, %v523_v60, %v524_v61  ;;  %v572_v14 = vrot.slane %v3199_v54, 2  ;;  %v573_v16 = vrot.slane %v400_v55, 2  ;;  %v563_v23 = vrot.slane %v3134_v4, 2  ;;  %v384_v61 = vld [vmem:[%s3124_s7 + $0x4c] sm:$0x1] }
  0x28   : > { %v3214_v15 = vpack.i.bf16 %v525_v10, %v522_v0  ;;  %v562_v17 = vsel %vm550_vm1, %v560_v2, %v561_v11  ;;  %v513_v19 = vsel %vm501_vm0, %v511_v7, %v512_v13  ;;  %v571_v22 = vsel %vm550_vm1, %v569_v63, %v570_v8  ;;  %v405_v8 = vld [vmem:[%s3300_s29] sm:$0xf] }
  0x29   : > { %v3221_v20 = vpack.i.bf16 %v562_v17, %v3189_v47  ;;  %v3224_v21 = vpack.i.bf16 %v513_v19, %v3196_v52  ;;  %v574_v25 = vsel %vm550_vm1, %v572_v14, %v573_v16  ;;  %v564_v27 = vrot.slane %v394_v5, 2  ;;  %v381_v5 = vld [vmem:[%s3124_s7 + $0x40] sm:$0xf] }
  0x2a   : > { %2351 = vrot.lane.b32.xlu1 %v3214_v15, %s3035_s8  ;;  %v566_v30 = vrot.slane %v3137_v6, 2  ;;  %v567_v31 = vrot.slane %v396_v9, 2  ;;  %v3238_v32 = vpack.i.bf16 %v574_v25, %v571_v22  ;;  %v2375_v1 = vpack.i.bf16 %v3151_v18, %v3144_v12 }
  0x2b   : > { %v565_v33 = vsel %vm550_vm1, %v563_v23, %v564_v27  ;;  %v401_v9 = vunpack.c.l.bf16 %v381_v5  ;;  %v2385_v36 = vpack.i.bf16 %v3192_v49, %v3137_v6  ;;  %v2380_v38 = vpack.i.bf16 %v3134_v4, %v3204_v59  ;;  %v417_v23 = vld [vmem:[%s3300_s29 + $0x30] sm:$0xf]  ;;  %v414_v5 = vld [vmem:[%s3300_s29 + $0x24] sm:$0x1] }
  0x2c   : > { %2361 = vrot.lane.b32.xlu2 %v3221_v20, %s3036_s9  ;;  %v568_v35 = vsel %vm550_vm1, %v566_v30, %v567_v31  ;;  %v2400_v40 = vpack.i.bf16 %v3158_v24, %v513_v19  ;;  %v402_v41 = vunpack.c.l.bf16 %v382_v39  ;;  %v2405_v42 = vpack.i.bf16 %v522_v0, %v3164_v28  ;;  %v415_v19 = vld [vmem:[%s3300_s29 + $0x28] sm:$0xf]  ;;  %v419_v30 = vld [vmem:[%s3300_s29 + $0x38] sm:$0xf]  ;;  %v409_v31 = vld [vmem:[%s3300_s29 + $0x10] sm:$0xf] }
  0x2d   : > { %v3247_v3 = vpack.i.bf16 %v568_v35, %v565_v33  ;;  %v2390_v37 = vpack.i.bf16 %v401_v9, %v3199_v54  ;;  %v2395_v43 = vpack.i.bf16 %v3196_v52, %v3185_v44  ;;  %v625_v45 = vrot.slane %v401_v9, 1  ;;  %v406_v39 = vld [vmem:[%s3300_s29 + $0x4] sm:$0x1] }
  0x2e   : > { %2341 = vrot.lane.b32.xlu0 %v3224_v21, %s3035_s8  ;;  %v626_v46 = vrot.slane %v402_v41, 1  ;;  %v2415_v48 = vpack.i.bf16 %v3189_v47, %v3167_v29  ;;  %v652_v28 = vrot.slane %v401_v9, 2  ;;  %v653_v50 = vrot.slane %v402_v41, 2  ;;  %v383_v47 = vld [vmem:[%s3124_s7 + $0x48] sm:$0xf]  ;;  %s3044_s7 = smov 40  }
  0x2f   : > { %v2420_v51 = vpack.i.bf16 %v565_v33, %v562_v17  ;;  %v2435_v29 = vpack.i.bf16 %v3204_v59, %v3151_v18  ;;  %v2425_v55 = vpack.i.bf16 %v571_v22, %v568_v35  ;;  %v403_v56 = vunpack.c.l.bf16 %v383_v47  ;;  %v413_v17 = vld [vmem:[%s3300_s29 + $0x20] sm:$0xf]  ;;  %v411_v33 = vld [vmem:[%s3300_s29 + $0x18] sm:$0xf] }
  0x30   : > { %v627_v24 = vsel %vm501_vm0, %v625_v45, %v626_v46  ;;  %v654_v52 = vsel %vm550_vm1, %v652_v28, %v653_v50  ;;  %v2445_v57 = vpack.i.bf16 %v3199_v54, %v3192_v49  ;;  %v2440_v60 = vpack.i.bf16 %v3137_v6, %v3134_v4 }
  0x31   : > { %v2410_v44 = vpack.i.bf16 %v627_v24, %v525_v10  ;;  %v2430_v53 = vpack.i.bf16 %v654_v52, %v574_v25  ;;  %v2450_v58 = vpack.i.bf16 %v403_v56, %v401_v9  ;;  %v404_v62 = vunpack.c.l.bf16 %v384_v61  ;;  %v407_v10 = vld [vmem:[%s3300_s29 + $0x8] sm:$0xf]  ;;  %v418_v61 = vld [vmem:[%s3300_s29 + $0x34] sm:$0x1] }
  0x32   : > { %2371 = vrot.lane.b32.xlu1 %v3238_v32, %s3036_s9  ;;  %v705_v63 = vrot.slane %v403_v56, 1  ;;  %v732_v2 = vrot.slane %v403_v56, 2  ;;  %v3310_v14 = vunpack.c.l.bf16 %v405_v8  ;;  %v3322_v25 = vunpack.c.l.bf16 %v413_v17 }
  0x33   : > { %v706_v0 = vrot.slane %v404_v62, 1  ;;  %v733_v7 = vrot.slane %v404_v62, 2  ;;  %v3324_v27 = vunpack.c.l.bf16 %v415_v19  ;;  %v3337_v9 = vunpack.c.l.bf16 %v417_v23  ;;  %v420_v62 = vld [vmem:[%s3300_s29 + $0x3c] sm:$0x1] }
  0x34   : > { %2376 = vrot.lane.b32.xlu2 %v2375_v1, %s3037_s10  ;;  %v426_v28 = vunpack.c.l.bf16 %v406_v39  ;;  %v799_v56 = vrot.slane %v3310_v14, 1  ;;  %v3413_v17 = vunpack.c.l.bf16 %v418_v61  ;;  %v3415_v19 = vunpack.c.l.bf16 %v420_v62 }
  0x35   : > { %v734_v13 = vsel %vm550_vm1, %v732_v2, %v733_v7  ;;  %4674 = vst [vmem:[#allocation2_spill] sm:$0xff] %v3324_v27  ;;  %v3349_v41 = vpack.i.bf16 %v3324_v27, %v3322_v25  ;;  %v847_v7 = vrot.slane %v3310_v14, 2 }
  0x36   : > { %2366 = vrot.lane.b32.xlu0 %v3247_v3, %s3036_s9  ;;  %v2490_v16 = vpack.i.bf16 %v734_v13, %v654_v52  ;;  %v814_v52 = vrot.slane %v3324_v27, 1  ;;  %v848_v8 = vrot.slane %v426_v28, 2 }
  0x3a   : > { %2386 = vrot.lane.b32.xlu1 %v2385_v36, %s3037_s10  ;;  %v3339_v36 = vunpack.c.l.bf16 %v419_v30 }
  0x3c   : > { %2391 = vrot.lane.b32.xlu2 %v2390_v37, %s3037_s10  ;;  %v3341_v37 = vunpack.c.l.bf16 %v409_v31  ;;  %v849_v31 = vsel %vm550_vm1, %v847_v7, %v848_v8  ;;  %v820_v39 = vrot.slane %v3339_v36, 1  ;;  %v859_v8 = vrot.slane %v3322_v25, 2 }
  0x3e   : > { %2381 = vrot.lane.b32.xlu0 %v2380_v38, %s3037_s10  ;;  %v3343_v38 = vunpack.c.l.bf16 %v411_v33  ;;  %v805_v45 = vrot.slane %v3341_v37, 1 }
  0x42   : > { %2401 = vrot.lane.b32.xlu1 %v2400_v40, %s3038_s11  ;;  %v408_v40 = vld [vmem:[%s3300_s29 + $0xc] sm:$0x1] }
  0x43   : > { %v428_v50 = vunpack.c.l.bf16 %v408_v40  ;;  %v821_v40 = vrot.slane %v3415_v19, 1 }
  0x44   : > { %2406 = vrot.lane.b32.xlu2 %v2405_v42, %s3038_s11  ;;  %v3351_v42 = vunpack.c.l.bf16 %v414_v5  ;;  %v817_v5 = vrot.slane %v3337_v9, 1 }
  0x46   : > { %2396 = vrot.lane.b32.xlu0 %v2395_v43, %s3038_s11 }
  0x4a   : > { %2416 = vrot.lane.b32.xlu1 %v2415_v48, %s3039_s12  ;;  %v808_v48 = vrot.slane %v3343_v38, 1 }
  0x4c   : > { %2421 = vrot.lane.b32.xlu2 %v2420_v51, %s3039_s12  ;;  %v3363_v51 = vpack.i.bf16 %v3339_v36, %v3337_v9 }
  0x4e   : > { %2411 = vrot.lane.b32.xlu0 %v2410_v44, %s3038_s11  ;;  %v811_v44 = vrot.slane %v3322_v25, 1 }
  0x52   : > { %2431 = vrot.lane.b32.xlu1 %v2430_v53, %s3039_s12 }
  0x54   : > { %2436 = vrot.lane.b32.xlu2 %v2435_v29, %s3040_s14  ;;  %v3373_v29 = vpack.i.bf16 %v3343_v38, %v3341_v37 }
  0x56   : > { %2426 = vrot.lane.b32.xlu0 %v2425_v55, %s3039_s12 }
  0x5a   : > { %2446 = vrot.lane.b32.xlu1 %v2445_v57, %s3040_s14  ;;  %v800_v57 = vrot.slane %v426_v28, 1 }
  0x5c   : > { %2451 = vrot.lane.b32.xlu2 %v2450_v58, %s3040_s14  ;;  %v801_v13 = vsel %vm501_vm0, %v799_v56, %v800_v57  ;;  %v868_v56 = vrot.slane %v3339_v36, 2  ;;  %v869_v57 = vrot.slane %v3415_v19, 2 }
  0x5e   : > { %2441 = vrot.lane.b32.xlu0 %v2440_v60, %s3040_s14  ;;  %v803_v60 = vrot.slane %v428_v50, 1  ;;  %v3466_v7 = vsel %vm550_vm1, %v868_v56, %v869_v57 }
  0x62   : > { %2461 = vrot.lane.b32.xlu1 %v3174_v34, %s3041_s17  ;;  %v707_v34 = vsel %vm501_vm0, %v705_v63, %v706_v0 }
  0x63   : > { %v2470_v11 = vpack.i.bf16 %v707_v34, %v627_v24 }
  0x64   : > { %2466 = vrot.lane.b32.xlu2 %v3214_v15, %s3041_s17  ;;  %v3312_v15 = vunpack.c.l.bf16 %v407_v10 }
  0x66   : > { %2456 = vrot.lane.b32.xlu0 %v3224_v21, %s3041_s17  ;;  %v412_v21 = vld [vmem:[%s3300_s29 + $0x1c] sm:$0x1]  ;;  %v2495_v22 = vpack.i.bf16 %v3312_v15, %v3310_v14  ;;  %v802_v58 = vrot.slane %v3312_v15, 1  ;;  %v850_v10 = vrot.slane %v3312_v15, 2 }
  0x67   : > { %v3332_v1 = vunpack.c.l.bf16 %v412_v21  ;;  %v853_v21 = vrot.slane %v3341_v37, 2 }
  0x69   : > { %v809_v24 = vrot.slane %v3332_v1, 1  ;;  %v857_v23 = vrot.slane %v3332_v1, 2 }
  0x6a   : > { %2476 = vrot.lane.b32.xlu1 %v3221_v20, %s3042_s30  ;;  %v410_v20 = vld [vmem:[%s3300_s29 + $0x14] sm:$0x1] }
  0x6b   : > { %v3330_v35 = vunpack.c.l.bf16 %v410_v20  ;;  %v3383_v55 = vsel %vm501_vm0, %v808_v48, %v809_v24 }
  0x6c   : > { %2481 = vrot.lane.b32.xlu2 %v3247_v3, %s3042_s30  ;;  %v416_v3 = vld [vmem:[%s3300_s29 + $0x2c] sm:$0x1] }
  0x6d   : > { %v3353_v43 = vunpack.c.l.bf16 %v416_v3  ;;  %v806_v46 = vrot.slane %v3330_v35, 1  ;;  %v854_v14 = vrot.slane %v3330_v35, 2  ;;  %v818_v3 = vrot.slane %v3413_v17, 1 }
  0x6e   : > { %2471 = vrot.lane.b32.xlu0 %v2470_v11, %s3041_s17  ;;  %v851_v11 = vrot.slane %v428_v50, 2 }
  0x6f   : > { %4675 = vst [vmem:[#allocation3_spill] sm:$0xff] %v3353_v43  ;;  %v4658_v53 = vrot.slane %v3353_v43, 1  ;;  %v3378_v47 = vsel %vm501_vm0, %v805_v45, %v806_v46  ;;  %v3436_v48 = vsel %vm550_vm1, %v853_v21, %v854_v14 }
  0x70   : > { %v2520_v63 = vpack.i.bf16 %v3383_v55, %v3378_v47  ;;  %v3427_v33 = vsel %vm550_vm1, %v850_v10, %v851_v11  ;;  %v860_v10 = vrot.slane %v3351_v42, 2  ;;  %v862_v11 = vrot.slane %v3324_v27, 2 }
  0x71   : > { %v3401_v34 = vsel %vm501_vm0, %v814_v52, %v4658_v53  ;;  %v2535_v45 = vpack.i.bf16 %v3427_v33, %v849_v31  ;;  %v866_v52 = vrot.slane %v3413_v17, 2 }
  0x72   : > { %2491 = vrot.lane.b32.xlu1 %v2490_v16, %s3042_s30  ;;  %v3411_v16 = vsel %vm501_vm0, %v802_v58, %v803_v60  ;;  %v3451_v58 = vsel %vm501_vm0, %v817_v5, %v818_v3  ;;  %v3456_v60 = vsel %vm501_vm0, %v820_v39, %v821_v40  ;;  %v3476_v14 = vsel %vm550_vm1, %v859_v8, %v860_v10 }
  0x73   : > { %v2515_v30 = vpack.i.bf16 %v3411_v16, %v801_v13  ;;  %v2530_v62 = vpack.i.bf16 %v3456_v60, %v3451_v58  ;;  %v863_v13 = vrot.slane %v3353_v43, 2 }
  0x74   : > { %2496 = vrot.lane.b32.xlu2 %v2495_v22, %s3043_s6  ;;  %v856_v22 = vrot.slane %v3343_v38, 2 }
  0x76   : > { %2486 = vrot.lane.b32.xlu0 %v3238_v32, %s3042_s30  ;;  %v812_v32 = vrot.slane %v3351_v42, 1  ;;  %v3439_v28 = vsel %vm550_vm1, %v856_v22, %v857_v23  ;;  %v3479_v22 = vsel %vm550_vm1, %v862_v11, %v863_v13  ;;  %v2555_v23 = vpack.i.bf16 %v3341_v37, %v3312_v15  ;;  %v422_v13 = vld [vmem:[%s3300_s29 + $0x44] sm:$0x1] }
  0x77   : > { %v2540_v61 = vpack.i.bf16 %v3439_v28, %v3436_v48  ;;  %v2545_v31 = vpack.i.bf16 %v3479_v22, %v3476_v14  ;;  %v2560_v11 = vpack.i.bf16 %v3322_v25, %v3343_v38 }
  0x78   : > { %v3396_v0 = vsel %vm501_vm0, %v811_v44, %v812_v32  ;;  %v865_v44 = vrot.slane %v3337_v9, 2 }
  0x79   : > { %v2525_v20 = vpack.i.bf16 %v3401_v34, %v3396_v0 }
  0x7a   : > { %2506 = vrot.lane.b32.xlu1 %v3349_v41, %s3043_s6 }
  0x7c   : > { %2511 = vrot.lane.b32.xlu2 %v3363_v51, %s3043_s6 }
  0x7e   : > { %2501 = vrot.lane.b32.xlu0 %v3373_v29, %s3043_s6  ;;  %v3405_v2 = vpop.permute.xlu2 %2356 }
  0x7f   : > { %v2359_v15 = vunpack.i.h.bf16 %v3405_v2 }
  0x82   : > { %2521 = vrot.lane.b32.xlu1 %v2520_v63, %s3044_s7  ;;  %v3463_v63 = vsel %vm550_vm1, %v865_v44, %v866_v52  ;;  %v2565_v44 = vpack.i.bf16 %v3337_v9, %v3324_v27  ;;  %v2358_v52 = vunpack.i.l.bf16 %v3405_v2 }
  0x83   : > { %v2550_v21 = vpack.i.bf16 %v3466_v7, %v3463_v63 }
  0x84   : > { %2526 = vrot.lane.b32.xlu2 %v2525_v20, %s3044_s7 }
  0x86   : > { %2516 = vrot.lane.b32.xlu0 %v2515_v30, %s3044_s7  ;;  %v3442_v50 = vpop.permute.xlu2 %2361  ;;  %v421_v30 = vld [vmem:[%s3300_s29 + $0x40] sm:$0xf] }
  0x87   : > { %v3488_v39 = vunpack.c.l.bf16 %v421_v30 }
  0x89   : > { %v2570_v57 = vpack.i.bf16 %v3488_v39, %v3339_v36 }
  0x8a   : > { %2536 = vrot.lane.b32.xlu1 %v2535_v45, %s3045_s13 }
  0x8c   : > { %2541 = vrot.lane.b32.xlu2 %v2540_v61, %s3045_s13 }
  0x8e   : > { %2531 = vrot.lane.b32.xlu0 %v2530_v62, %s3044_s7  ;;  %v2377_v20 = vpop.permute.xlu2 %2376 }
  0x8f   : > { %v2379_v61 = vunpack.i.h.bf16 %v2377_v20  ;;  %v2378_v62 = vunpack.i.l.bf16 %v2377_v20 }
  0x92   : > { %2551 = vrot.lane.b32.xlu1 %v2550_v21, %s3045_s13 }
  0x93   : > { %v3486_v5 = vpop.permute.xlu1 %2346 }
  0x94   : > { %2556 = vrot.lane.b32.xlu2 %v2555_v23, %s3046_s15 }
  0x96   : > { %2546 = vrot.lane.b32.xlu0 %v2545_v31, %s3045_s13  ;;  %v3490_v45 = vpop.permute.xlu2 %2391  ;;  %v3507_v31 = vunpack.c.l.bf16 %v422_v13  ;;  %v921_v13 = vrot.slane %v3488_v39, 1  ;;  %s2278_s13 = smul.u32 20, %s4708_s27 }
  0x98   : > { %v2337_v56 = vpop.permute.xlu0 %2336 }
  0x99   : > { %v2339_v8 = vunpack.i.h.bf16 %v2337_v56  ;;  %v2338_v10 = vunpack.i.l.bf16 %v2337_v56 }
  0x9a   : > { %2566 = vrot.lane.b32.xlu1 %v2565_v44, %s3046_s15 }
  0x9b   : > { %v1002_v21 = vsel %vm1000_vm2, %v3144_v12, %v2339_v8  ;;  %v1001_v2 = vsel %vm1000_vm2, %v3161_v26, %v2338_v10  ;;  %v2580_v12 = vpack.i.bf16 %v3396_v0, %v3383_v55  ;;  %v2585_v26 = vpack.i.bf16 %v3451_v58, %v3401_v34 }
  0x9c   : > { %v1011_v23 = vsel %vm1009_vm3, %v1002_v21, %v2359_v15  ;;  %v1010_v30 = vsel %vm1009_vm3, %v1001_v2, %v2358_v52  ;;  %2571 = vrot.lane.b32.xlu2 %v2570_v57, %s3046_s15  ;;  %v2352_v20 = vpop.permute.xlu1 %2351  ;;  %v2575_v15 = vpack.i.bf16 %v3378_v47, %v3411_v16  ;;  %v2364_v52 = vunpack.i.h.bf16 %v3442_v50 }
  0x9d   : > { %v3510_v44 = vsel %vm1018_vm4, %v1010_v30, %v2378_v62  ;;  %v3513_v56 = vsel %vm1018_vm4, %v1011_v23, %v2379_v61  ;;  %v2363_v57 = vunpack.i.l.bf16 %v3442_v50  ;;  %v2354_v62 = vunpack.i.h.bf16 %v2352_v20 }
  0x9e   : > { %2561 = vrot.lane.b32.xlu0 %v2560_v11, %s3046_s15  ;;  %v3515_v53 = vpop.permute.xlu2 %2406  ;;  %v2353_v8 = vunpack.i.l.bf16 %v2352_v20  ;;  %v922_v21 = vrot.slane %v3507_v31, 1  ;;  %v2349_v2 = vunpack.i.h.bf16 %v3486_v5  ;;  %v2348_v23 = vunpack.i.l.bf16 %v3486_v5  ;;  %s343_s15 = sadd.s32 %s2278_s13, %s3118_s26 }
  0x9f   : > { %v2394_v30 = vunpack.i.h.bf16 %v3490_v45  ;;  %v2393_v16 = vunpack.i.l.bf16 %v3490_v45  ;;  %v3544_v5 = vpack.i.bf16 %v812_v32, %v3396_v0  ;;  %v1008_v45 = vsel %vm1000_vm2, %v3199_v54, %v2354_v62 }
  0xa0   : > { %v2342_v61 = vpop.permute.xlu0 %2341  ;;  %v2595_v32 = vpack.i.bf16 %v3436_v48, %v3427_v33  ;;  %v2600_v54 = vpack.i.bf16 %v3476_v14, %v3439_v28  ;;  %v1006_v33 = vsel %vm1000_vm2, %v3137_v6, %v2349_v2  ;;  %v1005_v48 = vsel %vm1000_vm2, %v3134_v4, %v2348_v23 }
  0xa1   : > { %v2344_v10 = vunpack.i.h.bf16 %v2342_v61  ;;  %v2343_v11 = vunpack.i.l.bf16 %v2342_v61  ;;  %v3539_v61 = vpack.i.bf16 %v809_v24, %v3383_v55  ;;  %v2409_v23 = vunpack.i.h.bf16 %v3515_v53 }
  0xa2   : > { %2581 = vrot.lane.b32.xlu1 %v2580_v12, %s3047_s16  ;;  %v1007_v12 = vsel %vm1000_vm2, %v3192_v49, %v2353_v8  ;;  %v3563_v49 = vsel %vm501_vm0, %v921_v13, %v922_v21 }
  0xa3   : > { %v1004_v50 = vsel %vm1000_vm2, %v3204_v59, %v2344_v10  ;;  %v1003_v20 = vsel %vm1000_vm2, %v3151_v18, %v2343_v11  ;;  %v2590_v13 = vpack.i.bf16 %v3563_v49, %v3456_v60 }
  0xa4   : > { %2586 = vrot.lane.b32.xlu2 %v2585_v26, %s3047_s16  ;;  %v2372_v59 = vpop.permute.xlu1 %2371  ;;  %v1012_v18 = vsel %vm1009_vm3, %v1003_v20, %v2363_v57  ;;  %v1013_v10 = vsel %vm1009_vm3, %v1004_v50, %v2364_v52  ;;  %v949_v52 = vrot.slane %v3507_v31, 2 }
  0xa5   : > { %v2374_v24 = vunpack.i.h.bf16 %v2372_v59  ;;  %v2373_v55 = vunpack.i.l.bf16 %v2372_v59 }
  0xa6   : > { %2576 = vrot.lane.b32.xlu0 %v2575_v15, %s3047_s16  ;;  %v3554_v11 = vpop.permute.xlu2 %2421  ;;  %v948_v15 = vrot.slane %v3488_v39, 2 }
  0xa7   : > { %v1016_v0 = vsel %vm1009_vm3, %v1007_v12, %v2373_v55  ;;  %v1017_v26 = vsel %vm1009_vm3, %v1008_v45, %v2374_v24 }
  0xa8   : > { %v2367_v28 = vpop.permute.xlu0 %2366  ;;  %v3574_v14 = vsel %vm1018_vm4, %v1016_v0, %v2393_v16  ;;  %v3577_v57 = vsel %vm1018_vm4, %v1017_v26, %v2394_v30  ;;  %v950_v4 = vsel %vm550_vm1, %v948_v15, %v949_v52  ;;  %v2408_v30 = vunpack.i.l.bf16 %v3515_v53  ;;  %v423_v26 = vld [vmem:[%s3300_s29 + $0x48] sm:$0xf] }
  0xa9   : > { %v2369_v62 = vunpack.i.h.bf16 %v2367_v28  ;;  %v2368_v8 = vunpack.i.l.bf16 %v2367_v28  ;;  %v2610_v12 = vpack.i.bf16 %v950_v4, %v3466_v7  ;;  %v2605_v7 = vpack.i.bf16 %v3463_v63, %v3479_v22 }
  0xaa   : > { %2596 = vrot.lane.b32.xlu1 %v2595_v32, %s3048_s25 }
  0xab   : > { %v1015_v6 = vsel %vm1009_vm3, %v1006_v33, %v2369_v62  ;;  %v1014_v2 = vsel %vm1009_vm3, %v1005_v48, %v2368_v8  ;;  %v2424_v33 = vunpack.i.h.bf16 %v3554_v11  ;;  %v2423_v48 = vunpack.i.l.bf16 %v3554_v11 }
  0xac   : > { %2601 = vrot.lane.b32.xlu2 %v2600_v54, %s3048_s25  ;;  %v2387_v16 = vpop.permute.xlu1 %2386  ;;  %v3609_v62 = vunpack.c.l.bf16 %v423_v26  ;;  %v2635_v26 = vpack.i.bf16 %v806_v46, %v3378_v47  ;;  %v2655_v47 = vpack.i.bf16 %v818_v3, %v3451_v58  ;;  %v2660_v3 = vpack.i.bf16 %v821_v40, %v3456_v60 }
  0xad   : > { %v2389_v50 = vunpack.i.h.bf16 %v2387_v16  ;;  %v2388_v20 = vunpack.i.l.bf16 %v2387_v16 }
  0xae   : > { %2591 = vrot.lane.b32.xlu0 %v2590_v13, %s3047_s16  ;;  %v2437_v45 = vpop.permute.xlu2 %2436  ;;  %v2630_v11 = vpack.i.bf16 %v3609_v62, %v3488_v39  ;;  %s2207_s16 = sshll.u32 %s343_s15, 2 }
  0xaf   : > { %v1023_v59 = vsel %vm1018_vm4, %v1014_v2, %v2388_v20  ;;  %v1024_v24 = vsel %vm1018_vm4, %v1015_v6, %v2389_v50  ;;  %v2439_v16 = vunpack.i.h.bf16 %v2437_v45  ;;  %v2438_v50 = vunpack.i.l.bf16 %v2437_v45  ;;  %s3642_s27 = scalar_lea.vmem %s4654_s2, %s2207_s16 }
  0xb0   : > { %v2382_v55 = vpop.permute.xlu0 %2381  ;;  %v3594_v53 = vsel %vm1027_vm5, %v1023_v59, %v2408_v30  ;;  %v3597_v32 = vsel %vm1027_vm5, %v1024_v24, %v2409_v23 }
  0xb1   : > { %v2384_v54 = vunpack.i.h.bf16 %v2382_v55  ;;  %v2383_v0 = vunpack.i.l.bf16 %v2382_v55 }
  0xb2   : > { %2611 = vrot.lane.b32.xlu1 %v2610_v12, %s3048_s25 }
  0xb3   : > { %v1021_v15 = vsel %vm1018_vm4, %v1012_v18, %v2383_v0  ;;  %v1022_v52 = vsel %vm1018_vm4, %v1013_v10, %v2384_v54 }
  0xb4   : > { %2616 = vrot.lane.b32.xlu2 %v3373_v29, %s3049_s28  ;;  %v2402_v28 = vpop.permute.xlu1 %2401 }
  0xb5   : > { %v2404_v8 = vunpack.i.h.bf16 %v2402_v28  ;;  %v2403_v13 = vunpack.i.l.bf16 %v2402_v28 }
  0xb6   : > { %2606 = vrot.lane.b32.xlu0 %v2605_v7, %s3048_s25  ;;  %v2452_v63 = vpop.permute.xlu2 %2451 }
  0xb7   : > { %v1030_v22 = vsel %vm1027_vm5, %v1021_v15, %v2403_v13  ;;  %v1031_v18 = vsel %vm1027_vm5, %v1022_v52, %v2404_v8  ;;  %v2453_v28 = vunpack.i.l.bf16 %v2452_v63 }
  0xb8   : > { %v2397_v10 = vpop.permute.xlu0 %2396  ;;  %v3617_v29 = vsel %vm1036_vm6, %v1030_v22, %v2423_v48  ;;  %v3620_v6 = vsel %vm1036_vm6, %v1031_v18, %v2424_v33  ;;  %v445_v33 = vld [vmem:[%s3642_s27] sm:$0xf]  ;;  %v2454_v48 = vunpack.i.h.bf16 %v2452_v63 }
  0xb9   : > { %v2399_v2 = vunpack.i.h.bf16 %v2397_v10  ;;  %v2398_v4 = vunpack.i.l.bf16 %v2397_v10 }
  0xba   : > { %2626 = vrot.lane.b32.xlu1 %v3363_v51, %s3049_s28 }
  0xbb   : > { %v1028_v23 = vsel %vm1027_vm5, %v3510_v44, %v2398_v4  ;;  %v1029_v30 = vsel %vm1027_vm5, %v3513_v56, %v2399_v2  ;;  %v3637_v56 = vld [vmem:[%s3300_s29 + $0x4c] sm:$0x1] }
  0xbc   : > { %2631 = vrot.lane.b32.xlu2 %v2630_v11, %s3049_s28  ;;  %v2417_v20 = vpop.permute.xlu1 %2416  ;;  %v4659_v52 = vunpack.c.l.bf16 %v3637_v56 }
  0xbd   : > { %v2419_v12 = vunpack.i.h.bf16 %v2417_v20  ;;  %v2418_v59 = vunpack.i.l.bf16 %v2417_v20 }
  0xbe   : > { %2621 = vrot.lane.b32.xlu0 %v3349_v41, %s3049_s28  ;;  %v3632_v51 = vpop.permute.xlu2 %2466  ;;  %v1137_v18 = vrot.slane %v4659_v52, 1  ;;  %v3824_v52 = vld [vmem:[%s3642_s27 + $0x2c] sm:$0x1] }
  0xbf   : > { %v1037_v24 = vsel %vm1036_vm6, %v1028_v23, %v2418_v59  ;;  %v1038_v44 = vsel %vm1036_vm6, %v1029_v30, %v2419_v12  ;;  %v4676_v30 = vrot.slane %v3353_v43, 1  ;;  %v453_v59 = vld [vmem:[%s3642_s27 + $0x20] sm:$0xf] }
  0xc0   : > { %v2412_v55 = vpop.permute.xlu0 %2411  ;;  %v3645_v45 = vsel %vm1045_vm7, %v1037_v24, %v2438_v50  ;;  %v3648_v41 = vsel %vm1045_vm7, %v1038_v44, %v2439_v16  ;;  %v455_v24 = vld [vmem:[%s3642_s27 + $0x28] sm:$0xf]  ;;  %v2469_v44 = vunpack.i.h.bf16 %v3632_v51 }
  0xc1   : > { %v2414_v54 = vunpack.i.h.bf16 %v2412_v55  ;;  %v2413_v0 = vunpack.i.l.bf16 %v2412_v55  ;;  %v2650_v16 = vpack.i.bf16 %v4676_v30, %v3401_v34  ;;  %v2468_v55 = vunpack.i.l.bf16 %v3632_v51 }
  0xc2   : > { %2641 = vrot.lane.b32.xlu1 %v3539_v61, %s3035_s8  ;;  %v447_v61 = vld [vmem:[%s3642_s27 + $0x8] sm:$0xf] }
  0xc3   : > { %v1035_v7 = vsel %vm1027_vm5, %v3577_v57, %v2414_v54  ;;  %v1034_v15 = vsel %vm1027_vm5, %v3574_v14, %v2413_v0  ;;  %v1136_v14 = vrot.slane %v3609_v62, 1  ;;  %v3671_v57 = vunpack.c.l.bf16 %v445_v33  ;;  %v457_v0 = vld [vmem:[%s3642_s27 + $0x30] sm:$0xf] }
  0xc4   : > { %2646 = vrot.lane.b32.xlu2 %v3544_v5, %s3035_s8  ;;  %v2432_v8 = vpop.permute.xlu1 %2431  ;;  %v3677_v10 = vunpack.c.l.bf16 %v447_v61  ;;  %v3711_v33 = vunpack.c.l.bf16 %v455_v24  ;;  %v451_v61 = vld [vmem:[%s3642_s27 + $0x18] sm:$0xf] }
  0xc5   : > { %v2434_v13 = vunpack.i.h.bf16 %v2432_v8  ;;  %v2433_v22 = vunpack.i.l.bf16 %v2432_v8  ;;  %v1195_v50 = vrot.slane %v3671_v57, 7  ;;  %v1138_v20 = vsel %vm501_vm0, %v1136_v14, %v1137_v18  ;;  %v449_v8 = vld [vmem:[%s3642_s27 + $0x10] sm:$0xf] }
  0xc6   : > { %2636 = vrot.lane.b32.xlu0 %v2635_v26, %s3035_s8  ;;  %v3665_v46 = vpop.permute.xlu2 %2481  ;;  %v4666_v12 = vrot.slane %v3677_v10, 7  ;;  %v3737_v30 = vunpack.c.l.bf16 %v451_v61 }
  0xc7   : > { %v1043_v63 = vsel %vm1036_vm6, %v1034_v15, %v2433_v22  ;;  %v1044_v5 = vsel %vm1036_vm6, %v1035_v7, %v2434_v13  ;;  %v2670_v7 = vpack.i.bf16 %v1137_v18, %v1138_v20  ;;  %v3709_v15 = vunpack.c.l.bf16 %v453_v59 }
  0xc8   : > { %v2427_v11 = vpop.permute.xlu0 %2426  ;;  %v3683_v58 = vsel %vm1045_vm7, %v1043_v63, %v2453_v28  ;;  %v3686_v2 = vsel %vm1045_vm7, %v1044_v5, %v2454_v48  ;;  %v2675_v28 = vpack.i.bf16 %v4666_v12, %v1195_v50  ;;  %v3719_v22 = vunpack.c.l.bf16 %v457_v0 }
  0xc9   : > { %v2429_v4 = vunpack.i.h.bf16 %v2427_v11  ;;  %v2428_v23 = vunpack.i.l.bf16 %v2427_v11  ;;  %v2665_v11 = vpack.i.bf16 %v922_v21, %v3563_v49  ;;  %v2483_v21 = vunpack.i.l.bf16 %v3665_v46 }
  0xca   : > { %2656 = vrot.lane.b32.xlu1 %v2655_v47, %s3035_s8 }
  0xcb   : > { %v1041_v40 = vsel %vm1036_vm6, %v3594_v53, %v2428_v23  ;;  %v1042_v60 = vsel %vm1036_vm6, %v3597_v32, %v2429_v4  ;;  %v459_v32 = vld [vmem:[%s3642_s27 + $0x38] sm:$0xf]  ;;  %v4662_v4 = vrot.slane %v3711_v33, 7  ;;  %v3735_v23 = vunpack.c.l.bf16 %v449_v8 }
  0xcc   : > { %2661 = vrot.lane.b32.xlu2 %v2660_v3, %s3035_s8  ;;  %v2447_v34 = vpop.permute.xlu1 %2446  ;;  %v3721_v47 = vunpack.c.l.bf16 %v459_v32  ;;  %v4663_v3 = vrot.slane %v3709_v15, 7 }
  0xcd   : > { %v2449_v54 = vunpack.i.h.bf16 %v2447_v34  ;;  %v2448_v53 = vunpack.i.l.bf16 %v2447_v34 }
  0xce   : > { %2651 = vrot.lane.b32.xlu0 %v2650_v16, %s3035_s8  ;;  %v3707_v26 = vpop.permute.xlu2 %2496  ;;  %v4660_v20 = vrot.slane %v3721_v47, 7 }
  0xcf   : > { %v1050_v51 = vsel %vm1045_vm7, %v1041_v40, %v2448_v53  ;;  %v1051_v48 = vsel %vm1045_vm7, %v1042_v60, %v2449_v54  ;;  %v2484_v40 = vunpack.i.h.bf16 %v3665_v46  ;;  %v4661_v60 = vrot.slane %v3719_v22, 7  ;;  %v3762_v54 = vld [vmem:[%s3642_s27 + $0xc] sm:$0x1] }
  0xd0   : > { %v2442_v13 = vpop.permute.xlu0 %2441  ;;  %v3724_v14 = vsel %vm1054_vm8, %v1050_v51, %v2468_v55  ;;  %v3727_v63 = vsel %vm1054_vm8, %v1051_v48, %v2469_v44  ;;  %v4665_v46 = vrot.slane %v3735_v23, 7  ;;  %v4664_v44 = vrot.slane %v3737_v30, 7 }
  0xd1   : > { %v2444_v5 = vunpack.i.h.bf16 %v2442_v13  ;;  %v2443_v18 = vunpack.i.l.bf16 %v2442_v13  ;;  %v3768_v0 = vpack.i.bf16 %v4660_v20, %v4661_v60  ;;  %v4669_v61 = vunpack.c.l.bf16 %v3762_v54 }
  0xd2   : > { %2671 = vrot.lane.b32.xlu1 %v2670_v7, %s3035_s8  ;;  %v3785_v8 = vpack.i.bf16 %v4664_v44, %v4665_v46 }
  0xd3   : > { %v1048_v16 = vsel %vm1045_vm7, %v3617_v29, %v2443_v18  ;;  %v1049_v50 = vsel %vm1045_vm7, %v3620_v6, %v2444_v5  ;;  %v3755_v6 = vpack.i.bf16 %v4662_v4, %v4663_v3  ;;  %v446_v18 = vld [vmem:[%s3642_s27 + $0x4] sm:$0x1]  ;;  %v3851_v4 = vld [vmem:[%s3642_s27 + $0x3c] sm:$0x1] }
  0xd4   : > { %2676 = vrot.lane.b32.xlu2 %v2675_v28, %s3036_s9  ;;  %v2462_v49 = vpop.permute.xlu1 %2461  ;;  %v3777_v28 = vld [vmem:[%s3642_s27 + $0x14] sm:$0x1] }
  0xd5   : > { %v2464_v59 = vunpack.i.h.bf16 %v2462_v49  ;;  %v2463_v24 = vunpack.i.l.bf16 %v2462_v49  ;;  %4677 = vst [vmem:[#allocation4_spill] sm:$0xff] %v3755_v6 }
  0xd6   : > { %2666 = vrot.lane.b32.xlu0 %v2665_v11, %s3035_s8  ;;  %v3749_v29 = vpop.permute.xlu2 %2511  ;;  %v2499_v11 = vunpack.i.h.bf16 %v3707_v26  ;;  %s3050_s8 = smov 64  }
  0xd7   : > { %v1057_v55 = vsel %vm1054_vm8, %v1048_v16, %v2463_v24  ;;  %v1058_v34 = vsel %vm1054_vm8, %v1049_v50, %v2464_v59  ;;  %v2498_v16 = vunpack.i.l.bf16 %v3707_v26  ;;  %v466_v26 = vunpack.c.l.bf16 %v446_v18 }
  0xd8   : > { %v2457_v53 = vpop.permute.xlu0 %2456  ;;  %v3771_v32 = vsel %vm1063_vm9, %v1057_v55, %v2483_v21  ;;  %v3774_v7 = vsel %vm1063_vm9, %v1058_v34, %v2484_v40  ;;  %v470_v40 = vunpack.c.l.bf16 %v3777_v28  ;;  %v3810_v55 = vld [vmem:[%s3642_s27 + $0x24] sm:$0x1]  ;;  %v1286_v28 = vrot.slane %v3677_v10, 1 }
  0xd9   : > { %v2459_v51 = vunpack.i.h.bf16 %v2457_v53  ;;  %v2458_v48 = vunpack.i.l.bf16 %v2457_v53 }
  0xda   : > { %2686 = vrot.lane.b32.xlu1 %v3755_v6, %s3036_s9  ;;  %v3815_v53 = vpack.i.bf16 %v470_v40, %v3735_v23 }
  0xdb   : > { %v1055_v13 = vsel %vm1054_vm8, %v3645_v45, %v2458_v48  ;;  %v1056_v5 = vsel %vm1054_vm8, %v3648_v41, %v2459_v51  ;;  %v3805_v41 = vpack.i.bf16 %v4669_v61, %v3677_v10 }
  0xdc   : > { %2691 = vrot.lane.b32.xlu2 %v3768_v0, %s3036_s9  ;;  %v2477_v50 = vpop.permute.xlu1 %2476 }
  0xdd   : > { %v2479_v21 = vunpack.i.h.bf16 %v2477_v50  ;;  %v2478_v49 = vunpack.i.l.bf16 %v2477_v50 }
  0xde   : > { %2681 = vrot.lane.b32.xlu0 %v3785_v8, %s3036_s9  ;;  %v3800_v45 = vpop.permute.xlu2 %2526 }
  0xdf   : > { %v1064_v59 = vsel %vm1063_vm9, %v1055_v13, %v2478_v49  ;;  %v1065_v24 = vsel %vm1063_vm9, %v1056_v5, %v2479_v21  ;;  %v2695_v13 = vpack.i.bf16 %v466_v26, %v3671_v57  ;;  %v4667_v5 = vunpack.c.l.bf16 %v3810_v55 }
  0xe0   : > { %v2472_v34 = vpop.permute.xlu0 %2471  ;;  %v3818_v51 = vsel %vm1072_vm10, %v1064_v59, %v2498_v16  ;;  %v3821_v48 = vsel %vm1072_vm10, %v1065_v24, %v2499_v11  ;;  %v452_v11 = vld [vmem:[%s3642_s27 + $0x1c] sm:$0x1]  ;;  %v2514_v49 = vunpack.i.h.bf16 %v3749_v29  ;;  %v2513_v59 = vunpack.i.l.bf16 %v3749_v29 }
  0xe1   : > { %v2474_v18 = vunpack.i.h.bf16 %v2472_v34  ;;  %v2473_v50 = vunpack.i.l.bf16 %v2472_v34  ;;  %v4668_v34 = vunpack.c.l.bf16 %v3824_v52 }
  0xe2   : > { %2701 = vrot.lane.b32.xlu1 %v3805_v41, %s3037_s10 }
  0xe3   : > { %v1061_v21 = vsel %vm1054_vm8, %v3683_v58, %v2473_v50  ;;  %v1062_v16 = vsel %vm1054_vm8, %v3686_v2, %v2474_v18  ;;  %v3846_v2 = vpack.i.bf16 %v4667_v5, %v3709_v15  ;;  %v472_v18 = vunpack.c.l.bf16 %v452_v11 }
  0xe4   : > { %2706 = vrot.lane.b32.xlu2 %v3815_v53, %s3037_s10  ;;  %v2492_v24 = vpop.permute.xlu1 %2491 }
  0xe5   : > { %v2494_v20 = vunpack.i.h.bf16 %v2492_v24  ;;  %v2493_v60 = vunpack.i.l.bf16 %v2492_v24 }
  0xe6   : > { %2696 = vrot.lane.b32.xlu0 %v2695_v13, %s3037_s10  ;;  %v3841_v58 = vpop.permute.xlu2 %2541  ;;  %v3856_v13 = vpack.i.bf16 %v4668_v34, %v3711_v33 }
  0xe7   : > { %v1070_v29 = vsel %vm1063_vm9, %v1061_v21, %v2493_v60  ;;  %v1071_v50 = vsel %vm1063_vm9, %v1062_v16, %v2494_v20  ;;  %v1283_v60 = vrot.slane %v3671_v57, 1  ;;  %v1284_v21 = vrot.slane %v466_v26, 1 }
  0xe8   : > { %v2487_v3 = vpop.permute.xlu0 %2486  ;;  %v3859_v24 = vsel %vm1072_vm10, %v1070_v29, %v2513_v59  ;;  %v3862_v44 = vsel %vm1072_vm10, %v1071_v50, %v2514_v49  ;;  %v3868_v20 = vpack.i.bf16 %v472_v18, %v3737_v30  ;;  %v4672_v16 = vunpack.c.l.bf16 %v3851_v4  ;;  %v458_v29 = vld [vmem:[%s3642_s27 + $0x34] sm:$0x1] }
  0xe9   : > { %v2489_v11 = vunpack.i.h.bf16 %v2487_v3  ;;  %v2488_v46 = vunpack.i.l.bf16 %v2487_v3  ;;  %v2529_v3 = vunpack.i.h.bf16 %v3800_v45  ;;  %v2528_v57 = vunpack.i.l.bf16 %v3800_v45 }
  0xea   : > { %2716 = vrot.lane.b32.xlu1 %v3846_v2, %s3037_s10  ;;  %v1285_v5 = vsel %vm501_vm0, %v1283_v60, %v1284_v21  ;;  %v1290_v60 = vrot.slane %v470_v40, 1  ;;  %v4678_v40 = vunpack.c.l.bf16 %v3762_v54 }
  0xeb   : > { %v1068_v59 = vsel %vm1063_vm9, %v3724_v14, %v2488_v46  ;;  %v1069_v49 = vsel %vm1063_vm9, %v3727_v63, %v2489_v11  ;;  %v3888_v63 = vpack.i.bf16 %v4672_v16, %v3721_v47  ;;  %v478_v46 = vunpack.c.l.bf16 %v458_v29 }
  0xec   : > { %2721 = vrot.lane.b32.xlu2 %v3856_v13, %s3037_s10  ;;  %v2507_v26 = vpop.permute.xlu1 %2506  ;;  %v2735_v61 = vpack.i.bf16 %v1284_v21, %v1285_v5  ;;  %v1292_v29 = vrot.slane %v3737_v30, 1  ;;  %v1287_v5 = vrot.slane %v4678_v40, 1 }
  0xed   : > { %v2509_v50 = vunpack.i.h.bf16 %v2507_v26  ;;  %v2508_v12 = vunpack.i.l.bf16 %v2507_v26  ;;  %v1289_v26 = vrot.slane %v3735_v23, 1 }
  0xee   : > { %2711 = vrot.lane.b32.xlu0 %v3868_v20, %s3037_s10  ;;  %v3883_v14 = vpop.permute.xlu2 %2556 }
  0xef   : > { %v1077_v45 = vsel %vm1072_vm10, %v1068_v59, %v2508_v12  ;;  %v1078_v11 = vsel %vm1072_vm10, %v1069_v49, %v2509_v50  ;;  %v1293_v12 = vrot.slane %v472_v18, 1  ;;  %v3905_v59 = vpack.i.bf16 %v478_v46, %v3719_v22 }
  0xf0   : > { %v2502_v34 = vpop.permute.xlu0 %2501  ;;  %v3896_v6 = vsel %vm1081_vm11, %v1077_v45, %v2528_v57  ;;  %v3899_v27 = vsel %vm1081_vm11, %v1078_v11, %v2529_v3  ;;  %v1291_v49 = vsel %vm501_vm0, %v1289_v26, %v1290_v60  ;;  %v2544_v18 = vunpack.i.h.bf16 %v3841_v58 }
  0xf1   : > { %v2504_v16 = vunpack.i.h.bf16 %v2502_v34  ;;  %v2503_v43 = vunpack.i.l.bf16 %v2502_v34  ;;  %v2543_v3 = vunpack.i.l.bf16 %v3841_v58  ;;  %v1294_v54 = vsel %vm501_vm0, %v1292_v29, %v1293_v12 }
  0xf2   : > { %2731 = vrot.lane.b32.xlu1 %v3888_v63, %s3037_s10  ;;  %v4679_v11 = vunpack.c.l.bf16 %v3824_v52  ;;  %v3931_v40 = vpack.i.bf16 %v1293_v12, %v1294_v54  ;;  %v1295_v52 = vrot.slane %v3709_v15, 1 }
  0xf3   : > { %v1075_v21 = vsel %vm1072_vm10, %v3771_v32, %v2503_v43  ;;  %v1076_v34 = vsel %vm1072_vm10, %v3774_v7, %v2504_v16  ;;  %v3923_v32 = vpack.i.bf16 %v1290_v60, %v1291_v49  ;;  %v1288_v7 = vsel %vm501_vm0, %v1286_v28, %v1287_v5 }
  0xf4   : > { %2736 = vrot.lane.b32.xlu2 %v2735_v61, %s3038_s11  ;;  %v2522_v57 = vpop.permute.xlu1 %2521  ;;  %v1298_v61 = vrot.slane %v3711_v33, 1  ;;  %v1299_v26 = vrot.slane %v4679_v11, 1 }
  0xf5   : > { %v2524_v50 = vunpack.i.h.bf16 %v2522_v57  ;;  %v2523_v45 = vunpack.i.l.bf16 %v2522_v57 }
  0xf6   : > { %2726 = vrot.lane.b32.xlu0 %v3905_v59, %s3037_s10  ;;  %v3921_v43 = vpop.permute.xlu2 %2571 }
  0xf7   : > { %v1084_v16 = vsel %vm1081_vm11, %v1075_v21, %v2523_v45  ;;  %v1085_v58 = vsel %vm1081_vm11, %v1076_v34, %v2524_v50  ;;  %v1301_v21 = vrot.slane %v3719_v22, 1  ;;  %v1302_v45 = vrot.slane %v478_v46, 1 }
  0xf8   : > { %v2517_v29 = vpop.permute.xlu0 %2516  ;;  %v3934_v57 = vsel %vm1090_vm12, %v1084_v16, %v2543_v3  ;;  %v3937_v60 = vsel %vm1090_vm12, %v1085_v58, %v2544_v18  ;;  %v3942_v34 = vpack.i.bf16 %v1287_v5, %v1288_v7  ;;  %v1300_v18 = vsel %vm501_vm0, %v1298_v61, %v1299_v26 }
  0xf9   : > { %v2519_v49 = vunpack.i.h.bf16 %v2517_v29  ;;  %v2518_v28 = vunpack.i.l.bf16 %v2517_v29  ;;  %v4680_v50 = vunpack.c.l.bf16 %v3810_v55  ;;  %v2559_v46 = vunpack.i.h.bf16 %v3883_v14 }
  0xfa   : > { %2746 = vrot.lane.b32.xlu1 %v3923_v32, %s3038_s11  ;;  %v2558_v16 = vunpack.i.l.bf16 %v3883_v14  ;;  %v3959_v61 = vpack.i.bf16 %v1299_v26, %v1300_v18 }
  0xfb   : > { %v1082_v12 = vsel %vm1081_vm11, %v3818_v51, %v2518_v28  ;;  %v1083_v3 = vsel %vm1081_vm11, %v3821_v48, %v2519_v49  ;;  %v1296_v54 = vrot.slane %v4680_v50, 1  ;;  %v1303_v51 = vsel %vm501_vm0, %v1301_v21, %v1302_v45 }
  0xfc   : > { %2751 = vrot.lane.b32.xlu2 %v3931_v40, %s3038_s11  ;;  %v2537_v5 = vpop.permute.xlu1 %2536  ;;  %v3964_v49 = vpack.i.bf16 %v1302_v45, %v1303_v51  ;;  %v4683_v51 = vrot.slane %v3735_v23, 7 }
  0xfd   : > { %v2539_v7 = vunpack.i.h.bf16 %v2537_v5  ;;  %v2538_v58 = vunpack.i.l.bf16 %v2537_v5  ;;  %v1297_v14 = vsel %vm501_vm0, %v1295_v52, %v1296_v54  ;;  %v1304_v52 = vrot.slane %v3721_v47, 1 }
  0xfe   : > { %2741 = vrot.lane.b32.xlu0 %v3942_v34, %s3038_s11  ;;  %v2587_v48 = vpop.permute.xlu2 %2586  ;;  %v3974_v26 = vpack.i.bf16 %v1296_v54, %v1297_v14 }
  0xff   : > { %v1091_v55 = vsel %vm1090_vm12, %v1082_v12, %v2538_v58  ;;  %v1092_v11 = vsel %vm1090_vm12, %v1083_v3, %v2539_v7  ;;  %v4681_v3 = vunpack.c.l.bf16 %v3851_v4 }
 0x100   : > { %v2532_v29 = vpop.permute.xlu0 %2531  ;;  %v3967_v28 = vsel %vm1099_vm13, %v1091_v55, %v2558_v16  ;;  %v3970_v21 = vsel %vm1099_vm13, %v1092_v11, %v2559_v46  ;;  %v2574_v46 = vunpack.i.h.bf16 %v3921_v43  ;;  %v2573_v16 = vunpack.i.l.bf16 %v3921_v43 }
 0x101   : > { %v2534_v50 = vunpack.i.h.bf16 %v2532_v29  ;;  %v2533_v5 = vunpack.i.l.bf16 %v2532_v29  ;;  %v1305_v18 = vrot.slane %v4681_v3, 1  ;;  %v4684_v29 = vrot.slane %v3737_v30, 7 }
 0x102   : > { %2761 = vrot.lane.b32.xlu1 %v3959_v61, %s3038_s11 }
 0x103   : > { %v1088_v12 = vsel %vm1081_vm11, %v3859_v24, %v2533_v5  ;;  %v1089_v45 = vsel %vm1081_vm11, %v3862_v44, %v2534_v50  ;;  %v4682_v44 = vrot.slane %v3677_v10, 7  ;;  %v1306_v43 = vsel %vm501_vm0, %v1304_v52, %v1305_v18 }
 0x104   : > { %2766 = vrot.lane.b32.xlu2 %v3964_v49, %s3038_s11  ;;  %v2552_v54 = vpop.permute.xlu1 %2551  ;;  %v4685_v50 = vrot.slane %v3709_v15, 7  ;;  %v2589_v15 = vunpack.i.h.bf16 %v2587_v48  ;;  %v2588_v52 = vunpack.i.l.bf16 %v2587_v48 }
 0x105   : > { %v2554_v7 = vunpack.i.h.bf16 %v2552_v54  ;;  %v2553_v58 = vunpack.i.l.bf16 %v2552_v54  ;;  %v2775_v4 = vpack.i.bf16 %v4683_v51, %v4682_v44  ;;  %v4686_v51 = vrot.slane %v3711_v33, 7 }
 0x106   : > { %2756 = vrot.lane.b32.xlu0 %v3974_v26, %s3038_s11  ;;  %v2602_v24 = vpop.permute.xlu2 %2601  ;;  %v2780_v5 = vpack.i.bf16 %v4685_v50, %v4684_v29 }
 0x107   : > { %v1097_v55 = vsel %vm1090_vm12, %v1088_v12, %v2553_v58  ;;  %v1098_v11 = vsel %vm1090_vm12, %v1089_v45, %v2554_v7  ;;  %v4007_v12 = vpack.i.bf16 %v1305_v18, %v1306_v43  ;;  %v2604_v50 = vunpack.i.h.bf16 %v2602_v24 }
 0x108   : > { %v2547_v14 = vpop.permute.xlu0 %2546  ;;  %v4001_v3 = vsel %vm1099_vm13, %v1097_v55, %v2573_v16  ;;  %v4004_v10 = vsel %vm1099_vm13, %v1098_v11, %v2574_v46  ;;  %v2603_v33 = vunpack.i.l.bf16 %v2602_v24 }
 0x109   : > { %v2549_v23 = vunpack.i.h.bf16 %v2547_v14  ;;  %v2548_v54 = vunpack.i.l.bf16 %v2547_v14 }
 0x10a   : > { %2776 = vrot.lane.b32.xlu1 %v2775_v4, %s3039_s12 }
 0x10b   : > { %v1095_v45 = vsel %vm1090_vm12, %v3896_v6, %v2548_v54  ;;  %v1096_v30 = vsel %vm1090_vm12, %v3899_v27, %v2549_v23  ;;  %v4687_v27 = vrot.slane %v3719_v22, 7  ;;  %vm1126_vm12 = vcmask 490496  }
 0x10c   : > { %2781 = vrot.lane.b32.xlu2 %v2780_v5, %s3039_s12  ;;  %v2567_v16 = vpop.permute.xlu1 %2566 }
 0x10d   : > { %v2569_v7 = vunpack.i.h.bf16 %v2567_v16  ;;  %v2568_v46 = vunpack.i.l.bf16 %v2567_v16  ;;  %v2795_v48 = vpack.i.bf16 %v4687_v27, %v4686_v51 }
 0x10e   : > { %2771 = vrot.lane.b32.xlu0 %v4007_v12, %s3038_s11  ;;  %v2617_v58 = vpop.permute.xlu2 %2616 }
 0x10f   : > { %v1104_v18 = vsel %vm1099_vm13, %v1095_v45, %v2568_v46  ;;  %v1105_v44 = vsel %vm1099_vm13, %v1096_v30, %v2569_v7  ;;  %v2619_v7 = vunpack.i.h.bf16 %v2617_v58  ;;  %v2618_v46 = vunpack.i.l.bf16 %v2617_v58 }
 0x110   : > { %v2562_v6 = vpop.permute.xlu0 %2561  ;;  %v1113_v4 = vsel %vm1108_vm14, %v1104_v18, %v2588_v52  ;;  %v1114_v55 = vsel %vm1108_vm14, %v1105_v44, %v2589_v15 }
 0x111   : > { %v2564_v11 = vunpack.i.h.bf16 %v2562_v6  ;;  %v2563_v43 = vunpack.i.l.bf16 %v2562_v6 }
 0x112   : > { %2791 = vrot.lane.b32.xlu1 %v3815_v53, %s3040_s14 }
 0x113   : > { %v1102_v14 = vsel %vm1099_vm13, %v3934_v57, %v2563_v43  ;;  %v1103_v29 = vsel %vm1099_vm13, %v3937_v60, %v2564_v11 }
 0x114   : > { %2796 = vrot.lane.b32.xlu2 %v2795_v48, %s3039_s12  ;;  %v2582_v22 = vpop.permute.xlu1 %2581 }
 0x115   : > { %v2584_v5 = vunpack.i.h.bf16 %v2582_v22  ;;  %v2583_v23 = vunpack.i.l.bf16 %v2582_v22 }
 0x116   : > { %2786 = vrot.lane.b32.xlu0 %v3805_v41, %s3040_s14  ;;  %v2632_v54 = vpop.permute.xlu2 %2631 }
 0x117   : > { %v1111_v45 = vsel %vm1108_vm14, %v1102_v14, %v2583_v23  ;;  %v1112_v30 = vsel %vm1108_vm14, %v1103_v29, %v2584_v5  ;;  %v2634_v29 = vunpack.i.h.bf16 %v2632_v54 }
 0x118   : > { %v2577_v57 = vpop.permute.xlu0 %2576  ;;  %v1120_v15 = vsel %vm1117_vm15, %v1111_v45, %v2603_v33  ;;  %v1121_v60 = vsel %vm1117_vm15, %v1112_v30, %v2604_v50  ;;  %v2633_v50 = vunpack.i.l.bf16 %v2632_v54 }
 0x119   : > { %v2579_v24 = vunpack.i.h.bf16 %v2577_v57  ;;  %v2578_v52 = vunpack.i.l.bf16 %v2577_v57 }
 0x11a   : > { %2806 = vrot.lane.b32.xlu1 %v3923_v32, %s3041_s17 }
 0x11b   : > { %v1109_v16 = vsel %vm1108_vm14, %v3967_v28, %v2578_v52  ;;  %v1110_v41 = vsel %vm1108_vm14, %v3970_v21, %v2579_v24 }
 0x11c   : > { %2811 = vrot.lane.b32.xlu2 %v3856_v13, %s3040_s14  ;;  %v2597_v18 = vpop.permute.xlu1 %2596 }
 0x11d   : > { %v2599_v44 = vunpack.i.h.bf16 %v2597_v18  ;;  %v2598_v6 = vunpack.i.l.bf16 %v2597_v18 }
 0x11e   : > { %2801 = vrot.lane.b32.xlu0 %v3942_v34, %s3041_s17  ;;  %v4047_v51 = vpop.permute.xlu2 %2646 }
 0x11f   : > { %v1118_v27 = vsel %vm1117_vm15, %v1109_v16, %v2598_v6  ;;  %v1119_v28 = vsel %vm1117_vm15, %v1110_v41, %v2599_v44 }
 0x120   : > { %v2592_v48 = vpop.permute.xlu0 %2591  ;;  %v4052_v21 = vsel %vm1126_vm12, %v1118_v27, %v2618_v46  ;;  %v4055_v58 = vsel %vm1126_vm12, %v1119_v28, %v2619_v7  ;;  %v461_v46 = vld [vmem:[%s3642_s27 + $0x40] sm:$0xf] }
 0x121   : > { %v2594_v11 = vunpack.i.h.bf16 %v2592_v48  ;;  %v2593_v43 = vunpack.i.l.bf16 %v2592_v48  ;;  %v4092_v6 = vunpack.c.l.bf16 %v461_v46 }
 0x122   : > { %2821 = vrot.lane.b32.xlu1 %v3785_v8, %s3042_s30 }
 0x123   : > { %v1115_v34 = vsel %vm1108_vm14, %v4001_v3, %v2593_v43  ;;  %v1116_v14 = vsel %vm1108_vm14, %v4004_v10, %v2594_v11 }
 0x124   : > { %2826 = vrot.lane.b32.xlu2 %v3959_v61, %s3041_s17  ;;  %v2612_v33 = vpop.permute.xlu1 %2611 }
 0x125   : > { %v2614_v22 = vunpack.i.h.bf16 %v2612_v33  ;;  %v2613_v5 = vunpack.i.l.bf16 %v2612_v33 }
 0x126   : > { %2816 = vrot.lane.b32.xlu0 %v3905_v59, %s3040_s14  ;;  %v4067_v23 = vpop.permute.xlu2 %2661 }
 0x127   : > { %v1124_v8 = vsel %vm1117_vm15, %v1115_v34, %v2613_v5  ;;  %v1125_v3 = vsel %vm1117_vm15, %v1116_v14, %v2614_v22  ;;  %v1356_v34 = vrot.slane %v4092_v6, 7  ;;  %v4688_v5 = vrot.slane %v3721_v47, 7 }
 0x128   : > { %v2607_v45 = vpop.permute.xlu0 %2606  ;;  %v4072_v10 = vsel %vm1126_vm12, %v1124_v8, %v2633_v50  ;;  %v4075_v54 = vsel %vm1126_vm12, %v1125_v3, %v2634_v29 }
 0x129   : > { %v2609_v30 = vunpack.i.h.bf16 %v2607_v45  ;;  %v2608_v57 = vunpack.i.l.bf16 %v2607_v45 }
 0x12a   : > { %2836 = vrot.lane.b32.xlu1 %v3815_v53, %s3043_s6 }
 0x12b   : > { %v1122_v24 = vsel %vm1117_vm15, %v1113_v4, %v2608_v57  ;;  %v1123_v52 = vsel %vm1117_vm15, %v1114_v55, %v2609_v30 }
 0x12c   : > { %2841 = vrot.lane.b32.xlu2 %v3868_v20, %s3043_s6  ;;  %v2627_v16 = vpop.permute.xlu1 %2626 }
 0x12d   : > { %v2629_v41 = vunpack.i.h.bf16 %v2627_v16  ;;  %v2628_v7 = vunpack.i.l.bf16 %v2627_v16 }
 0x12e   : > { %2831 = vrot.lane.b32.xlu0 %v3964_v49, %s3041_s17  ;;  %v2677_v18 = vpop.permute.xlu2 %2676 }
 0x12f   : > { %v4087_v44 = vsel %vm1126_vm12, %v1122_v24, %v2628_v7  ;;  %v4090_v53 = vsel %vm1126_vm12, %v1123_v52, %v2629_v41  ;;  %v2679_v11 = vunpack.i.h.bf16 %v2677_v18  ;;  %v2678_v33 = vunpack.i.l.bf16 %v2677_v18 }
 0x130   : > { %v2622_v4 = vpop.permute.xlu0 %2621  ;;  %v2649_v18 = vunpack.i.h.bf16 %v4047_v51 }
 0x131   : > { %v2624_v55 = vunpack.i.h.bf16 %v2622_v4  ;;  %v2623_v27 = vunpack.i.l.bf16 %v2622_v4  ;;  %v2663_v4 = vunpack.i.l.bf16 %v4067_v23 }
 0x132   : > { %2851 = vrot.lane.b32.xlu1 %v3846_v2, %s3040_s14 }
 0x133   : > { %v4097_v28 = vsel %vm1126_vm12, %v1120_v15, %v2623_v27  ;;  %v4100_v48 = vsel %vm1126_vm12, %v1121_v60, %v2624_v55 }
 0x134   : > { %2856 = vrot.lane.b32.xlu2 %v3768_v0, %s3042_s30  ;;  %v2642_v43 = vpop.permute.xlu1 %2641  ;;  %v2870_v0 = vpack.i.bf16 %v1356_v34, %v4688_v5  ;;  %v2648_v5 = vunpack.i.l.bf16 %v4047_v51 }
 0x135   : > { %v2644_v14 = vunpack.i.h.bf16 %v2642_v43  ;;  %v2643_v29 = vunpack.i.l.bf16 %v2642_v43 }
 0x136   : > { %2846 = vrot.lane.b32.xlu0 %v3868_v20, %s3040_s14  ;;  %v2692_v50 = vpop.permute.xlu2 %2691 }
 0x137   : > { %v1610_v15 = vsel %vm1000_vm2, %v3332_v1, %v2644_v14  ;;  %v1609_v60 = vsel %vm1000_vm2, %v3343_v38, %v2643_v29  ;;  %v2694_v16 = vunpack.i.h.bf16 %v2692_v50  ;;  %v2693_v29 = vunpack.i.l.bf16 %v2692_v50 }
 0x138   : > { %v2637_v22 = vpop.permute.xlu0 %2636  ;;  %v4116_v8 = vsel %vm1009_vm3, %v1609_v60, %v2679_v11  ;;  %v4119_v20 = vsel %vm1009_vm3, %v1610_v15, %v2679_v11  ;;  %v4689_v11 = vunpack.c.l.bf16 %v3637_v56  ;;  %v1612_v56 = vsel %vm1000_vm2, %v3351_v42, %v2649_v18 }
 0x139   : > { %v2639_v3 = vunpack.i.h.bf16 %v2637_v22  ;;  %v2638_v45 = vunpack.i.l.bf16 %v2637_v22  ;;  %v1617_v50 = vsel %vm1000_vm2, %v3339_v36, %v2663_v4 }
 0x13a   : > { %2866 = vrot.lane.b32.xlu1 %v3931_v40, %s3044_s7 }
 0x13b   : > { %v1608_v1 = vsel %vm1000_vm2, %v3330_v35, %v2639_v3  ;;  %v1607_v38 = vsel %vm1000_vm2, %v3341_v37, %v2638_v45  ;;  %v462_v35 = vld [vmem:[%s3642_s27 + $0x44] sm:$0x1] }
 0x13c   : > { %2871 = vrot.lane.b32.xlu2 %v2870_v0, %s3039_s12  ;;  %v2657_v47 = vpop.permute.xlu1 %2656  ;;  %v4129_v30 = vsel %vm1009_vm3, %v1607_v38, %v2678_v33  ;;  %v4132_v57 = vsel %vm1009_vm3, %v1608_v1, %v2678_v33  ;;  %v482_v37 = vunpack.c.l.bf16 %v462_v35  ;;  %v1430_v35 = vrot.slane %v4092_v6, 1 }
 0x13d   : > { %v2659_v27 = vunpack.i.h.bf16 %v2657_v47  ;;  %v2658_v15 = vunpack.i.l.bf16 %v2657_v47 }
 0x13e   : > { %2861 = vrot.lane.b32.xlu0 %v3923_v32, %s3044_s7  ;;  %v4136_v24 = vpop.permute.xlu2 %2706  ;;  %v2664_v32 = vunpack.i.h.bf16 %v4067_v23  ;;  %v4156_v14 = vpack.i.bf16 %v482_v37, %v4092_v6 }
 0x13f   : > { %v1616_v0 = vsel %vm1000_vm2, %v3413_v17, %v2659_v27  ;;  %v1615_v51 = vsel %vm1000_vm2, %v3337_v9, %v2658_v15 }
 0x140   : > { %v4138_v52 = vpop.permute.xlu0 %2651 }
 0x141   : > { %v2654_v47 = vunpack.i.h.bf16 %v4138_v52 }
 0x142   : > { %2881 = vrot.lane.b32.xlu1 %v3974_v26, %s3041_s17 }
 0x144   : > { %2886 = vrot.lane.b32.xlu2 %v3905_v59, %s3043_s6  ;;  %v2672_v41 = vpop.permute.xlu1 %2671 }
 0x145   : > { %v2674_v7 = vunpack.i.h.bf16 %v2672_v41  ;;  %v2673_v46 = vunpack.i.l.bf16 %v2672_v41 }
 0x146   : > { %2876 = vrot.lane.b32.xlu0 %v3931_v40, %s3041_s17  ;;  %v2722_v55 = vpop.permute.xlu2 %2721 }
 0x147   : > { %v1622_v43 = vsel %vm1000_vm2, %v4689_v11, %v2674_v7  ;;  %v1621_v59 = vsel %vm1000_vm2, %v3609_v62, %v2673_v46  ;;  %v1618_v62 = vsel %vm1000_vm2, %v3415_v19, %v2664_v32  ;;  %v2723_v45 = vunpack.i.l.bf16 %v2722_v55 }
 0x148   : > { %v2667_v60 = vpop.permute.xlu0 %2666  ;;  %v4159_v23 = vsel %vm1009_vm3, %v1621_v59, %v2694_v16  ;;  %v4162_v40 = vsel %vm1009_vm3, %v1622_v43, %v2694_v16  ;;  %v2724_v17 = vunpack.i.h.bf16 %v2722_v55  ;;  %v1431_v16 = vrot.slane %v482_v37, 1  ;;  %v4690_v43 = vld [vmem:[#allocation3_spill] sm:$0xff] }
 0x149   : > { %v2669_v33 = vunpack.i.h.bf16 %v2667_v60  ;;  %v2668_v22 = vunpack.i.l.bf16 %v2667_v60  ;;  %v2709_v32 = vunpack.i.h.bf16 %v4136_v24  ;;  %v1611_v37 = vsel %vm1000_vm2, %v3322_v25, %v2648_v5  ;;  %v463_v5 = vld [vmem:[%s3642_s27 + $0x48] sm:$0xf] }
 0x14a   : > { %2896 = vrot.lane.b32.xlu1 %v3888_v63, %s3040_s14  ;;  %v1614_v59 = vsel %vm1000_vm2, %v4690_v43, %v2654_v47  ;;  %v464_v43 = vld [vmem:[%s3642_s27 + $0x4c] sm:$0x1]  ;;  %s2208_s27 = sshll.u32 %s4710_s18, 3 }
 0x14b   : > { %v1620_v3 = vsel %vm1000_vm2, %v3507_v31, %v2669_v33  ;;  %v1619_v42 = vsel %vm1000_vm2, %v3488_v39, %v2668_v22  ;;  %v2653_v39 = vunpack.i.l.bf16 %v4138_v52  ;;  %v2708_v52 = vunpack.i.l.bf16 %v4136_v24 }
 0x14c   : > { %2901 = vrot.lane.b32.xlu2 %v4156_v14, %s3040_s14  ;;  %v2687_v19 = vpop.permute.xlu1 %2686  ;;  %v4184_v1 = vsel %vm1009_vm3, %v1619_v42, %v2693_v29  ;;  %v4187_v36 = vsel %vm1009_vm3, %v1620_v3, %v2693_v29  ;;  %v4691_v29 = vld [vmem:[#allocation2_spill] sm:$0xff]  ;;  %v1432_v24 = vsel %vm501_vm0, %v1430_v35, %v1431_v16  ;;  %v4692_v42 = vld [vmem:[#allocation4_spill] sm:$0xff]  ;;  %v484_v6 = vunpack.c.l.bf16 %v464_v43 }
 0x14d   : > { %v2689_v38 = vunpack.i.h.bf16 %v2687_v19  ;;  %v2688_v31 = vunpack.i.l.bf16 %v2687_v19  ;;  %v1613_v15 = vsel %vm1000_vm2, %v4691_v29, %v2653_v39  ;;  %vm1952_vm2 = vcmask 60416  }
 0x14e   : > { %2891 = vrot.lane.b32.xlu0 %v3888_v63, %s3043_s6  ;;  %v2737_v9 = vpop.permute.xlu2 %2736 }
 0x14f   : > { %v1631_v41 = vsel %vm1009_vm3, %v1615_v51, %v2688_v31  ;;  %v1632_v7 = vsel %vm1009_vm3, %v1616_v0, %v2688_v31  ;;  %v1633_v46 = vsel %vm1009_vm3, %v1617_v50, %v2689_v38  ;;  %v1634_v18 = vsel %vm1009_vm3, %v1618_v62, %v2689_v38 }
 0x150   : > { %v2682_v4 = vpop.permute.xlu0 %2681  ;;  %v4201_v63 = vsel %vm1018_vm4, %v1633_v46, %v2723_v45  ;;  %v4206_v11 = vsel %vm1018_vm4, %v1634_v18, %v2724_v17  ;;  %v4230_v51 = vpack.i.bf16 %v1431_v16, %v1432_v24  ;;  %v483_v45 = vunpack.c.l.bf16 %v463_v5 }
 0x151   : > { %v2684_v55 = vunpack.i.h.bf16 %v2682_v4  ;;  %v2683_v27 = vunpack.i.l.bf16 %v2682_v4  ;;  %v2739_v38 = vunpack.i.h.bf16 %v2737_v9  ;;  %v2738_v31 = vunpack.i.l.bf16 %v2737_v9 }
 0x152   : > { %2911 = vrot.lane.b32.xlu1 %v3964_v49, %s3044_s7  ;;  %v1482_v46 = vrot.slane %v483_v45, 7  ;;  %v1556_v5 = vrot.slane %v483_v45, 1 }
 0x153   : > { %v1627_v60 = vsel %vm1009_vm3, %v1611_v37, %v2683_v27  ;;  %v1628_v25 = vsel %vm1009_vm3, %v1612_v56, %v2683_v27  ;;  %v1629_v33 = vsel %vm1009_vm3, %v1613_v15, %v2684_v55  ;;  %v1630_v22 = vsel %vm1009_vm3, %v1614_v59, %v2684_v55 }
 0x154   : > { %v2702_v62 = vpop.permute.xlu1 %2701  ;;  %2916 = vrot.lane.b32.xlu2 %v4007_v12, %s3044_s7  ;;  %v4223_v50 = vsel %vm1018_vm4, %v1627_v60, %v2708_v52  ;;  %v4226_v49 = vsel %vm1018_vm4, %v1628_v25, %v2709_v32  ;;  %v2940_v4 = vpack.i.bf16 %v1482_v46, %v1356_v34 }
 0x155   : > { %v2704_v0 = vunpack.i.h.bf16 %v2702_v62  ;;  %v2703_v3 = vunpack.i.l.bf16 %v2702_v62 }
 0x156   : > { %2906 = vrot.lane.b32.xlu0 %v4692_v42, %s3042_s30  ;;  %v2752_v56 = vpop.permute.xlu2 %2751 }
 0x157   : > { %v4234_v19 = vsel %vm1018_vm4, %v4116_v8, %v2703_v3  ;;  %v4238_v17 = vsel %vm1018_vm4, %v4119_v20, %v2704_v0  ;;  %v2754_v37 = vunpack.i.h.bf16 %v2752_v56  ;;  %v2753_v55 = vunpack.i.l.bf16 %v2752_v56 }
 0x158   : > { %v2697_v47 = vpop.permute.xlu0 %2696  ;;  %v1557_v0 = vrot.slane %v484_v6, 1 }
 0x159   : > { %v2699_v39 = vunpack.i.h.bf16 %v2697_v47  ;;  %v2698_v35 = vunpack.i.l.bf16 %v2697_v47 }
 0x15a   : > { %2926 = vrot.lane.b32.xlu1 %v4230_v51, %s3041_s17 }
 0x15b   : > { %v1639_v16 = vsel %vm1018_vm4, %v4129_v30, %v2698_v35  ;;  %v1640_v8 = vsel %vm1018_vm4, %v4132_v57, %v2699_v39  ;;  %v1558_v39 = vsel %vm501_vm0, %v1556_v5, %v1557_v0 }
 0x15c   : > { %v2717_v18 = vpop.permute.xlu1 %2716  ;;  %2931 = vrot.lane.b32.xlu2 %v3846_v2, %s3043_s6  ;;  %v4249_v20 = vsel %vm1027_vm5, %v1639_v16, %v2738_v31  ;;  %v4252_v9 = vsel %vm1027_vm5, %v1640_v8, %v2739_v38  ;;  %v2960_v38 = vpack.i.bf16 %v484_v6, %v483_v45 }
 0x15d   : > { %v2719_v32 = vunpack.i.h.bf16 %v2717_v18  ;;  %v2718_v52 = vunpack.i.l.bf16 %v2717_v18 }
 0x15e   : > { %2921 = vrot.lane.b32.xlu0 %v4007_v12, %s3041_s17  ;;  %v2767_v30 = vpop.permute.xlu2 %2766  ;;  %s2211_s17 = sshll.u32 %s4704_s19, 3 }
 0x15f   : > { %v4259_v57 = vsel %vm1018_vm4, %v1631_v41, %v2718_v52  ;;  %v4262_v2 = vsel %vm1018_vm4, %v1632_v7, %v2719_v32  ;;  %v2769_v3 = vunpack.i.h.bf16 %v2767_v30  ;;  %v2768_v42 = vunpack.i.l.bf16 %v2767_v30  ;;  %s361_s29 = sadd.s32 %s2211_s17, %s4710_s18 }
 0x160   : > { %v2712_v27 = vpop.permute.xlu0 %2711 }
 0x161   : > { %v2714_v59 = vunpack.i.h.bf16 %v2712_v27  ;;  %v2713_v29 = vunpack.i.l.bf16 %v2712_v27 }
 0x162   : > { %2941 = vrot.lane.b32.xlu1 %v2940_v4, %s3042_s30  ;;  %s2212_s30 = sshll.u32 %s361_s29, 3 }
 0x163   : > { %v1645_v12 = vsel %vm1018_vm4, %v1629_v33, %v2713_v29  ;;  %v1646_v15 = vsel %vm1018_vm4, %v1630_v22, %v2714_v59  ;;  %s363_s28 = scalar_lea.vmem %s4657_s5, %s2212_s30 }
 0x164   : > { %v2732_v34 = vpop.permute.xlu1 %2731  ;;  %v1661_v41 = vsel %vm1027_vm5, %v1645_v12, %v2753_v55  ;;  %v1662_v24 = vsel %vm1027_vm5, %v1646_v15, %v2754_v37  ;;  %2946 = vrot.lane.b32.xlu2 %v3974_v26, %s3044_s7 }
 0x165   : > { %v2734_v7 = vunpack.i.h.bf16 %v2732_v34  ;;  %v2733_v60 = vunpack.i.l.bf16 %v2732_v34 }
 0x166   : > { %2936 = vrot.lane.b32.xlu0 %v3856_v13, %s3043_s6  ;;  %v2782_v25 = vpop.permute.xlu2 %2781 }
 0x167   : > { %v1653_v33 = vsel %vm1018_vm4, %v4159_v23, %v2733_v60  ;;  %v1654_v22 = vsel %vm1018_vm4, %v4162_v40, %v2734_v7  ;;  %v2784_v62 = vunpack.i.h.bf16 %v2782_v25  ;;  %v2783_v45 = vunpack.i.l.bf16 %v2782_v25 }
 0x168   : > { %v2727_v56 = vpop.permute.xlu0 %2726 }
 0x169   : > { %v4279_v26 = vsel %vm1036_vm6, %v1661_v41, %v2784_v62  ;;  %v4282_v31 = vsel %vm1036_vm6, %v1662_v24, %v2784_v62  ;;  %v2729_v13 = vunpack.i.h.bf16 %v2727_v56  ;;  %v2728_v47 = vunpack.i.l.bf16 %v2727_v56 }
 0x16a   : > { %2956 = vrot.lane.b32.xlu1 %v4156_v14, %s3043_s6 }
 0x16b   : > { %v1651_v23 = vsel %vm1018_vm4, %v4184_v1, %v2728_v47  ;;  %v1652_v40 = vsel %vm1018_vm4, %v4187_v36, %v2729_v13  ;;  %v2970_v36 = vpack.i.bf16 %v1557_v0, %v1558_v39  ;;  %vm2011_vm4 = vcmask 1040384  }
 0x16c   : > { %v2747_v35 = vpop.permute.xlu1 %2746  ;;  %2961 = vrot.lane.b32.xlu2 %v2960_v38, %s3043_s6  ;;  %v4293_v46 = vsel %vm1027_vm5, %v1651_v23, %v2768_v42  ;;  %v4296_v16 = vsel %vm1027_vm5, %v1652_v40, %v2769_v3 }
 0x16d   : > { %v2749_v8 = vunpack.i.h.bf16 %v2747_v35  ;;  %v2748_v14 = vunpack.i.l.bf16 %v2747_v35 }
 0x16e   : > { %2951 = vrot.lane.b32.xlu0 %v3959_v61, %s3044_s7  ;;  %v4300_v1 = vpop.permute.xlu2 %2796 }
 0x16f   : > { %v1659_v18 = vsel %vm1027_vm5, %v4223_v50, %v2748_v14  ;;  %v1660_v32 = vsel %vm1027_vm5, %v4226_v49, %v2749_v8 }
 0x170   : > { %v2742_v52 = vpop.permute.xlu0 %2741  ;;  %v4307_v30 = vsel %vm1036_vm6, %v1659_v18, %v2783_v45  ;;  %v4310_v4 = vsel %vm1036_vm6, %v1660_v32, %v2783_v45 }
 0x171   : > { %v2744_v38 = vunpack.i.h.bf16 %v2742_v52 }
 0x172   : > { %2971 = vrot.lane.b32.xlu1 %v2970_v36, %s3044_s7 }
 0x173   : > { %v1658_v35 = vsel %vm1027_vm5, %v4238_v17, %v2744_v38 }
 0x174   : > { %v2762_v37 = vpop.permute.xlu1 %2761 }
 0x175   : > { %v2764_v61 = vunpack.i.h.bf16 %v2762_v37  ;;  %v2763_v55 = vunpack.i.l.bf16 %v2762_v37 }
 0x176   : > { %2966 = vrot.lane.b32.xlu0 %v4230_v51, %s3044_s7  ;;  %v4315_v27 = vpop.permute.xlu2 %2811 }
 0x177   : > { %v4319_v50 = vsel %vm1027_vm5, %v4201_v63, %v2763_v55  ;;  %v4323_v49 = vsel %vm1027_vm5, %v4206_v11, %v2764_v61 }
 0x178   : > { %v2757_v43 = vpop.permute.xlu0 %2756 }
 0x179   : > { %v2759_v59 = vunpack.i.h.bf16 %v2757_v43  ;;  %v2758_v29 = vunpack.i.l.bf16 %v2757_v43 }
 0x17b   : > { %v4327_v12 = vsel %vm1027_vm5, %v4262_v2, %v2759_v59  ;;  %v4331_v51 = vsel %vm1027_vm5, %v4259_v57, %v2758_v29 }
 0x17c   : > { %v2777_v15 = vpop.permute.xlu1 %2776 }
 0x17d   : > { %v2779_v13 = vunpack.i.h.bf16 %v2777_v15  ;;  %v2778_v36 = vunpack.i.l.bf16 %v2777_v15 }
 0x17e   : > { %v4333_v6 = vpop.permute.xlu2 %2826 }
 0x17f   : > { %v1674_v32 = vsel %vm1036_vm6, %v1658_v35, %v2779_v13 }
 0x180   : > { %v2772_v63 = vpop.permute.xlu0 %2771 }
 0x181   : > { %v2774_v34 = vunpack.i.h.bf16 %v2772_v63  ;;  %v2773_v41 = vunpack.i.l.bf16 %v2772_v63 }
 0x183   : > { %v4336_v11 = vsel %vm1027_vm5, %v1654_v22, %v2774_v34  ;;  %v4339_v24 = vsel %vm1027_vm5, %v1653_v33, %v2773_v41  ;;  %v2743_v33 = vunpack.i.l.bf16 %v2742_v52  ;;  %v1671_v41 = vsel %vm1036_vm6, %v4249_v20, %v2778_v36 }
 0x184   : > { %v2792_v7 = vpop.permute.xlu1 %2791 }
 0x185   : > { %v2794_v23 = vunpack.i.h.bf16 %v2792_v7  ;;  %v2793_v40 = vunpack.i.l.bf16 %v2792_v7  ;;  %v1657_v8 = vsel %vm1027_vm5, %v4234_v19, %v2743_v33  ;;  %vm2013_vm5 = vcmask 1041408  }
 0x186   : > { %v2842_v60 = vpop.permute.xlu2 %2841  ;;  %v1673_v18 = vsel %vm1036_vm6, %v1657_v8, %v2779_v13 }
 0x187   : > { %v1689_v37 = vsel %vm1045_vm7, %v1673_v18, %v2793_v40  ;;  %v1690_v61 = vsel %vm1045_vm7, %v1674_v32, %v2794_v23  ;;  %v2844_v55 = vunpack.i.h.bf16 %v2842_v60  ;;  %v2843_v43 = vunpack.i.l.bf16 %v2842_v60 }
 0x188   : > { %v2787_v2 = vpop.permute.xlu0 %2786  ;;  %v1672_v60 = vsel %vm1036_vm6, %v4252_v9, %v2778_v36 }
 0x189   : > { %v2789_v19 = vunpack.i.h.bf16 %v2787_v2  ;;  %v2788_v15 = vunpack.i.l.bf16 %v2787_v2 }
 0x18b   : > { %v1687_v35 = vsel %vm1045_vm7, %v1671_v41, %v2788_v15  ;;  %v1688_v8 = vsel %vm1045_vm7, %v1672_v60, %v2789_v19 }
 0x18c   : > { %v2807_v25 = vpop.permute.xlu1 %2806 }
 0x18d   : > { %v2809_v39 = vunpack.i.h.bf16 %v2807_v25  ;;  %v2808_v45 = vunpack.i.l.bf16 %v2807_v25 }
 0x18e   : > { %v4341_v5 = vpop.permute.xlu2 %2856 }
 0x18f   : > { %v1705_v59 = vsel %vm1054_vm8, %v1689_v37, %v2808_v45  ;;  %v1706_v17 = vsel %vm1054_vm8, %v1690_v61, %v2809_v39 }
 0x190   : > { %v2802_v57 = vpop.permute.xlu0 %2801 }
 0x191   : > { %v2804_v7 = vunpack.i.h.bf16 %v2802_v57  ;;  %v2803_v25 = vunpack.i.l.bf16 %v2802_v57 }
 0x193   : > { %v1704_v9 = vsel %vm1054_vm8, %v1688_v8, %v2804_v7 }
 0x194   : > { %v2822_v62 = vpop.permute.xlu1 %2821 }
 0x195   : > { %v2824_v14 = vunpack.i.h.bf16 %v2822_v62  ;;  %v2823_v33 = vunpack.i.l.bf16 %v2822_v62 }
 0x196   : > { %v4343_v0 = vpop.permute.xlu2 %2871 }
 0x197   : > { %v1721_v63 = vsel %vm1063_vm9, %v1705_v59, %v2824_v14  ;;  %v1722_v34 = vsel %vm1063_vm9, %v1706_v17, %v2824_v14  ;;  %v1703_v14 = vsel %vm1054_vm8, %v1687_v35, %v2803_v25  ;;  %v1720_v32 = vsel %vm1063_vm9, %v1704_v9, %v2823_v33 }
 0x198   : > { %v4345_v3 = vpop.permute.xlu0 %2816  ;;  %v1737_v2 = vsel %vm1072_vm10, %v1721_v63, %v2843_v43  ;;  %v1738_v45 = vsel %vm1072_vm10, %v1722_v34, %v2844_v55  ;;  %v2858_v9 = vunpack.i.l.bf16 %v4341_v5 }
 0x19c   : > { %v2837_v42 = vpop.permute.xlu1 %2836 }
 0x19d   : > { %v2839_v40 = vunpack.i.h.bf16 %v2837_v42  ;;  %v2838_v39 = vunpack.i.l.bf16 %v2837_v42  ;;  %v1719_v42 = vsel %vm1063_vm9, %v1703_v14, %v2823_v33  ;;  %v2798_v33 = vunpack.i.l.bf16 %v4300_v1 }
 0x19e   : > { %v4347_v56 = vpop.permute.xlu2 %2886  ;;  %v2859_v14 = vunpack.i.h.bf16 %v4341_v5 }
 0x19f   : > { %v1735_v55 = vsel %vm1072_vm10, %v1719_v42, %v2838_v39  ;;  %v1736_v43 = vsel %vm1072_vm10, %v1720_v32, %v2839_v40  ;;  %v2888_v5 = vunpack.i.l.bf16 %v4347_v56 }
 0x1a0   : > { %v4349_v22 = vpop.permute.xlu0 %2831 }
 0x1a1   : > { %v2834_v40 = vunpack.i.h.bf16 %v4349_v22  ;;  %v2833_v39 = vunpack.i.l.bf16 %v4349_v22  ;;  %v1679_v22 = vsel %vm1036_vm6, %v4331_v51, %v2798_v33 }
 0x1a4   : > { %v4351_v47 = vpop.permute.xlu1 %2851 }
 0x1a6   : > { %v4365_v29 = vpop.permute.xlu2 %2901 }
 0x1a8   : > { %v4359_v52 = vpop.permute.xlu0 %2846 }
 0x1ac   : > { %v2867_v38 = vpop.permute.xlu1 %2866 }
 0x1ad   : > { %v2869_v13 = vunpack.i.h.bf16 %v2867_v38  ;;  %v2868_v23 = vunpack.i.l.bf16 %v2867_v38  ;;  %v2799_v38 = vunpack.i.h.bf16 %v4300_v1 }
 0x1ae   : > { %v2917_v17 = vpop.permute.xlu2 %2916 }
 0x1af   : > { %v1753_v20 = vsel %vm1081_vm11, %v1737_v2, %v2868_v23  ;;  %v1754_v57 = vsel %vm1081_vm11, %v1738_v45, %v2869_v13  ;;  %v2819_v13 = vunpack.i.h.bf16 %v4345_v3  ;;  %v2818_v23 = vunpack.i.l.bf16 %v4345_v3 }
 0x1b0   : > { %v1786_v62 = vrot.slane %v1753_v20, 1  ;;  %v1787_v36 = vrot.slane %v1754_v57, 1  ;;  %v2862_v18 = vpop.permute.xlu0 %2861  ;;  %v2814_v2 = vunpack.i.h.bf16 %v4315_v27  ;;  %v2813_v45 = vunpack.i.l.bf16 %v4315_v27 }
 0x1b1   : > { %v2864_v37 = vunpack.i.h.bf16 %v2862_v18  ;;  %v2863_v61 = vunpack.i.l.bf16 %v2862_v18  ;;  %v1681_v35 = vsel %vm1036_vm6, %v4319_v50, %v2799_v38  ;;  %v1682_v1 = vsel %vm1036_vm6, %v4323_v49, %v2799_v38 }
 0x1b2   : > { %v1788_v59 = vsel %vm501_vm0, %v1786_v62, %v1787_v36  ;;  %v1680_v3 = vsel %vm1036_vm6, %v4327_v12, %v2798_v33  ;;  %v2829_v57 = vunpack.i.h.bf16 %v4333_v6  ;;  %v2828_v27 = vunpack.i.l.bf16 %v4333_v6 }
 0x1b3   : > { %v1751_v19 = vsel %vm1081_vm11, %v1735_v55, %v2863_v61  ;;  %v1752_v15 = vsel %vm1081_vm11, %v1736_v43, %v2864_v37  ;;  %v1698_v50 = vsel %vm1045_vm7, %v1682_v1, %v2819_v13  ;;  %v1697_v49 = vsel %vm1045_vm7, %v1681_v35, %v2818_v23 }
 0x1b4   : > { %v1783_v63 = vrot.slane %v1751_v19, 1  ;;  %v1784_v34 = vrot.slane %v1752_v15, 1  ;;  %v4388_v41 = vpop.permute.xlu1 %2881  ;;  %v1713_v62 = vsel %vm1054_vm8, %v1697_v49, %v2833_v39  ;;  %v1714_v36 = vsel %vm1054_vm8, %v1698_v50, %v2834_v40 }
 0x1b5   : > { %v1695_v12 = vsel %vm1045_vm7, %v1679_v22, %v2813_v45  ;;  %v1696_v51 = vsel %vm1045_vm7, %v1680_v3, %v2814_v2  ;;  %v2919_v18 = vunpack.i.h.bf16 %v2917_v17  ;;  %v2918_v42 = vunpack.i.l.bf16 %v2917_v17 }
 0x1b6   : > { %v1785_v7 = vsel %vm501_vm0, %v1783_v63, %v1784_v34  ;;  %v4408_v20 = vpop.permute.xlu2 %2931  ;;  %v1711_v6 = vsel %vm1054_vm8, %v1695_v12, %v2828_v27  ;;  %v1712_v37 = vsel %vm1054_vm8, %v1696_v51, %v2829_v57  ;;  %v2889_v43 = vunpack.i.h.bf16 %v4347_v56 }
 0x1b7   : > { %v2975_v25 = vpack.i.bf16 %v1788_v59, %v1785_v7  ;;  %v1729_v59 = vsel %vm1063_vm9, %v1713_v62, %v2859_v14  ;;  %v1730_v19 = vsel %vm1063_vm9, %v1714_v36, %v2859_v14  ;;  %v1727_v15 = vsel %vm1063_vm9, %v1711_v6, %v2858_v9 }
 0x1b8   : > { %v4392_v60 = vpop.permute.xlu0 %2876  ;;  %v2848_v63 = vunpack.i.l.bf16 %v4359_v52  ;;  %v1728_v7 = vsel %vm1063_vm9, %v1712_v37, %v2858_v9  ;;  %v1743_v2 = vsel %vm1072_vm10, %v1727_v15, %v2888_v5  ;;  %v2934_v14 = vunpack.i.h.bf16 %v4408_v20 }
 0x1b9   : > { %2976 = vrot.lane.b32.xlu2 %v2975_v25, %s3050_s8  ;;  %v2849_v25 = vunpack.i.h.bf16 %v4359_v52  ;;  %v1744_v45 = vsel %vm1072_vm10, %v1728_v7, %v2889_v43  ;;  %v2879_v35 = vunpack.i.h.bf16 %v4392_v60  ;;  %v2878_v1 = vunpack.i.l.bf16 %v4392_v60 }
 0x1ba   : > { %v1691_v52 = vsel %vm1045_vm7, %v4307_v30, %v2848_v63  ;;  %v2933_v50 = vunpack.i.l.bf16 %v4408_v20  ;;  %v2239_v63 = vld [vmem:[%s4655_s3 + $0x30] sm:$0xf] }
 0x1bb   : > { %v1692_v60 = vsel %vm1045_vm7, %v4310_v4, %v2849_v25  ;;  %v1707_v51 = vsel %vm1054_vm8, %v1691_v52, %v2878_v1  ;;  %v2883_v1 = vunpack.i.l.bf16 %v4388_v41 }
 0x1bc   : > { %v4406_v8 = vpop.permute.xlu1 %2896 }
 0x1be   : > { %v2947_v3 = vpop.permute.xlu2 %2946 }
 0x1bf   : > { %v2949_v30 = vunpack.i.h.bf16 %v2947_v3  ;;  %v2948_v12 = vunpack.i.l.bf16 %v2947_v3 }
 0x1c0   : > { %v2892_v32 = vpop.permute.xlu0 %2891 }
 0x1c1   : > { %v2894_v61 = vunpack.i.h.bf16 %v2892_v32  ;;  %v2893_v55 = vunpack.i.l.bf16 %v2892_v32 }
 0x1c3   : > { %v1745_v17 = vsel %vm1072_vm10, %v1729_v59, %v2893_v55  ;;  %v1746_v34 = vsel %vm1072_vm10, %v1730_v19, %v2894_v61 }
 0x1c4   : > { %v1761_v38 = vsel %vm1081_vm11, %v1745_v17, %v2918_v42  ;;  %v1762_v56 = vsel %vm1081_vm11, %v1746_v34, %v2919_v18  ;;  %v2912_v33 = vpop.permute.xlu1 %2911  ;;  %v1708_v18 = vsel %vm1054_vm8, %v1692_v60, %v2879_v35  ;;  %v2253_v17 = vld [vmem:[%s4655_s3 + $0x30] sm:$0x30]  ;;  %v2884_v35 = vunpack.i.h.bf16 %v4388_v41 }
 0x1c5   : > { %v1798_v13 = vrot.slane %v1761_v38, 1  ;;  %v1799_v23 = vrot.slane %v1762_v56, 1  ;;  %v2914_v40 = vunpack.i.h.bf16 %v2912_v33  ;;  %v2913_v39 = vunpack.i.l.bf16 %v2912_v33  ;;  %v2252_v38 = vld [vmem:[%s4655_s3 + $0x28] sm:$0xff] }
 0x1c6   : > { %v2240_v34 = vor.u32 %v2253_v17, %v2239_v63  ;;  %v2873_v56 = vunpack.i.l.bf16 %v4343_v0  ;;  %v2874_v33 = vunpack.i.h.bf16 %v4343_v0  ;;  %v2904_v0 = vunpack.i.h.bf16 %v4365_v29 }
 0x1c7   : > { %v1759_v22 = vsel %vm1081_vm11, %v1743_v2, %v2913_v39  ;;  %v1760_v57 = vsel %vm1081_vm11, %v1744_v45, %v2914_v40  ;;  %v1800_v27 = vsel %vm501_vm0, %v1798_v13, %v1799_v23  ;;  %v2854_v23 = vunpack.i.h.bf16 %v4351_v47  ;;  %v2251_v39 = vld [vmem:[%s4655_s3 + $0x20] sm:$0xff] }
 0x1c8   : > { %v1795_v49 = vrot.slane %v1759_v22, 1  ;;  %v1796_v9 = vrot.slane %v1760_v57, 1  ;;  %v4449_v62 = vpop.permute.xlu0 %2906  ;;  %v1913_v25 = vsel %vm550_vm1, %v2240_v34, 0  ;;  %v2853_v40 = vunpack.i.l.bf16 %v4351_v47 }
 0x1c9   : > { %v2908_v36 = vunpack.i.l.bf16 %v4449_v62  ;;  %1916 = vmatpush.bf16.msra.mxu0 %v1913_v25  ;;  %2255 = vmatpush.bf16.msra.mxu2 %v1913_v25  ;;  %v2903_v2 = vunpack.i.l.bf16 %v4365_v29  ;;  %v1683_v45 = vsel %vm1036_vm6, %v4293_v46, %v2873_v56  ;;  %v4498_v47 = vsel %vm1036_vm6, %v4296_v16, %v2873_v56 }
 0x1ca   : > { %v1797_v42 = vsel %vm501_vm0, %v1795_v49, %v1796_v9  ;;  %2256 = vmatpush.bf16.msra.mxu3 %v1913_v25  ;;  %2254 = vmatpush.bf16.msra.mxu1 %v1913_v25  ;;  %v1685_v3 = vsel %vm1036_vm6, %v4339_v24, %v2874_v33  ;;  %v1686_v52 = vsel %vm1036_vm6, %v4336_v11, %v2874_v33  ;;  %v2909_v22 = vunpack.i.h.bf16 %v4449_v62  ;;  %v2250_v11 = vld [vmem:[%s4655_s3 + $0x18] sm:$0xff] }
 0x1cb   : > { %v1723_v32 = vsel %vm1063_vm9, %v1707_v51, %v2908_v36  ;;  %v1724_v20 = vsel %vm1063_vm9, %v1708_v18, %v2908_v36  ;;  %v2980_v4 = vpack.i.bf16 %v1800_v27, %v1797_v42  ;;  %v1693_v46 = vsel %vm1045_vm7, %v4279_v26, %v2853_v40  ;;  %v2962_v27 = vpop.permute.xlu2 %2961  ;;  %v2248_v40 = vld [vmem:[%s4655_s3 + $0x8] sm:$0xff] }
 0x1cc   : > { %v1739_v6 = vsel %vm1072_vm10, %v1723_v32, %v2933_v50  ;;  %v1740_v37 = vsel %vm1072_vm10, %v1724_v20, %v2934_v14  ;;  %v4461_v61 = vpop.permute.xlu1 %2926  ;;  %v1694_v29 = vsel %vm1045_vm7, %v4282_v31, %v2854_v23  ;;  %v1701_v24 = vsel %vm1045_vm7, %v1685_v3, %v2903_v2 }
 0x1cd   : > { %v1755_v55 = vsel %vm1081_vm11, %v1739_v6, %v2948_v12  ;;  %v1756_v43 = vsel %vm1081_vm11, %v1740_v37, %v2949_v30  ;;  %2981 = vrot.lane.b32.xlu0 %v2980_v4, %s3050_s8  ;;  %1917 = vmatpush.bf16.msra.mxu0 %v2252_v38  ;;  %v2929_v41 = vunpack.i.h.bf16 %v4461_v61  ;;  %v2928_v16 = vunpack.i.l.bf16 %v4461_v61  ;;  %v2249_v6 = vld [vmem:[%s4655_s3 + $0x10] sm:$0xff] }
 0x1ce   : > { %v1789_v5 = vrot.slane %v1755_v55, 1  ;;  %v1790_v59 = vrot.slane %v1756_v43, 1  ;;  %2258 = vmatpush.bf16.msra.mxu2 %v2252_v38  ;;  %2259 = vmatpush.bf16.msra.mxu3 %v2252_v38  ;;  %v1702_v31 = vsel %vm1045_vm7, %v1686_v52, %v2904_v0  ;;  %v1709_v49 = vsel %vm1054_vm8, %v1693_v46, %v2883_v1 }
 0x1cf   : > { %2257 = vmatpush.bf16.msra.mxu1 %v2252_v38  ;;  %v1710_v9 = vsel %vm1054_vm8, %v1694_v29, %v2884_v35  ;;  %v2898_v62 = vunpack.i.l.bf16 %v4406_v8  ;;  %v2899_v60 = vunpack.i.h.bf16 %v4406_v8  ;;  %v1725_v36 = vsel %vm1063_vm9, %v1709_v49, %v2909_v22 }
 0x1d0   : > { %v4466_v19 = vpop.permute.xlu0 %2921  ;;  %v4469_v15 = vsel %vm501_vm0, %v1789_v5, %v1790_v59  ;;  %v1726_v30 = vsel %vm1063_vm9, %v1710_v9, %v2909_v22  ;;  %v2963_v12 = vunpack.i.l.bf16 %v2962_v27  ;;  %v1717_v18 = vsel %vm1054_vm8, %v1701_v24, %v2928_v16  ;;  %v2247_v9 = vld [vmem:[%s4655_s3] sm:$0xff] }
 0x1d1   : > { %1918 = vmatpush.bf16.msra.mxu0 %v2251_v39  ;;  %v1718_v42 = vsel %vm1054_vm8, %v1702_v31, %v2929_v41  ;;  %v2964_v4 = vunpack.i.h.bf16 %v2962_v27  ;;  %v1699_v55 = vsel %vm1045_vm7, %v1683_v45, %v2898_v62  ;;  %v2924_v63 = vunpack.i.h.bf16 %v4466_v19 }
 0x1d2   : > { %2261 = vmatpush.bf16.msra.mxu2 %v2251_v39  ;;  %2262 = vmatpush.bf16.msra.mxu3 %v2251_v39  ;;  %v2923_v17 = vunpack.i.l.bf16 %v4466_v19  ;;  %vm1831_vm1 = vcmask 523264  }
 0x1d3   : > { %2260 = vmatpush.bf16.msra.mxu1 %v2251_v39 }
 0x1d4   : > { %v4477_v7 = vpop.permute.xlu1 %2941  ;;  %v1715_v3 = vsel %vm1054_vm8, %v1699_v55, %v2923_v17 }
 0x1d5   : > { %v2944_v14 = vunpack.i.h.bf16 %v4477_v7  ;;  %1919 = vmatpush.bf16.msra.mxu0 %v2250_v11  ;;  %v2943_v56 = vunpack.i.l.bf16 %v4477_v7  ;;  %v1700_v7 = vsel %vm1045_vm7, %v4498_v47, %v2899_v60 }
 0x1d6   : > { %2264 = vmatpush.bf16.msra.mxu2 %v2250_v11  ;;  %2265 = vmatpush.bf16.msra.mxu3 %v2250_v11  ;;  %v1716_v52 = vsel %vm1054_vm8, %v1700_v7, %v2924_v63 }
 0x1d7   : > { %v1733_v8 = vsel %vm1063_vm9, %v1717_v18, %v2944_v14  ;;  %2263 = vmatpush.bf16.msra.mxu1 %v2250_v11  ;;  %v1734_v43 = vsel %vm1063_vm9, %v1718_v42, %v2944_v14  ;;  %v1731_v29 = vsel %vm1063_vm9, %v1715_v3, %v2943_v56  ;;  %v1732_v41 = vsel %vm1063_vm9, %v1716_v52, %v2943_v56 }
 0x1d8   : > { %v2937_v13 = vpop.permute.xlu0 %2936  ;;  %v1749_v33 = vsel %vm1072_vm10, %v1733_v8, %v2963_v12  ;;  %v1750_v39 = vsel %vm1072_vm10, %v1734_v43, %v2964_v4 }
 0x1d9   : > { %v2939_v50 = vunpack.i.h.bf16 %v2937_v13  ;;  %v2938_v26 = vunpack.i.l.bf16 %v2937_v13  ;;  %1920 = vmatpush.bf16.msra.mxu0 %v2249_v6 }
 0x1da   : > { %2267 = vmatpush.bf16.msra.mxu2 %v2249_v6  ;;  %2268 = vmatpush.bf16.msra.mxu3 %v2249_v6 }
 0x1db   : > { %v1741_v37 = vsel %vm1072_vm10, %v1725_v36, %v2938_v26  ;;  %v1742_v61 = vsel %vm1072_vm10, %v1726_v30, %v2939_v50  ;;  %2266 = vmatpush.bf16.msra.mxu1 %v2249_v6 }
 0x1dc   : > { %v4505_v57 = vpop.permute.xlu1 %2956 }
 0x1dd   : > { %v2959_v2 = vunpack.i.h.bf16 %v4505_v57  ;;  %v2958_v19 = vunpack.i.l.bf16 %v4505_v57  ;;  %1921 = vmatpush.bf16.msra.mxu0 %v2248_v40 }
 0x1de   : > { %2270 = vmatpush.bf16.msra.mxu2 %v2248_v40  ;;  %2271 = vmatpush.bf16.msra.mxu3 %v2248_v40 }
 0x1df   : > { %v1747_v47 = vsel %vm1072_vm10, %v1731_v29, %v2958_v19  ;;  %2269 = vmatpush.bf16.msra.mxu1 %v2248_v40 }
 0x1e0   : > { %v2952_v51 = vpop.permute.xlu0 %2951 }
 0x1e1   : > { %v2954_v32 = vunpack.i.h.bf16 %v2952_v51  ;;  %v2953_v20 = vunpack.i.l.bf16 %v2952_v51  ;;  %1922 = vmatpush.bf16.msra.mxu0 %v2247_v9 }
 0x1e2   : > { %2273 = vmatpush.bf16.msra.mxu2 %v2247_v9  ;;  %2274 = vmatpush.bf16.msra.mxu3 %v2247_v9 }
 0x1e3   : > { %v1757_v5 = vsel %vm1081_vm11, %v1741_v37, %v2953_v20  ;;  %v1758_v59 = vsel %vm1081_vm11, %v1742_v61, %v2954_v32  ;;  %2272 = vmatpush.bf16.msra.mxu1 %v2247_v9 }
 0x1e4   : > { %v1792_v34 = vrot.slane %v1757_v5, 1  ;;  %v1793_v25 = vrot.slane %v1758_v59, 1  ;;  %v2972_v38 = vpop.permute.xlu1 %2971 }
 0x1e5   : > { %v2974_v13 = vunpack.i.h.bf16 %v2972_v38  ;;  %v2973_v23 = vunpack.i.l.bf16 %v2972_v38 }
 0x1e6   : > { %v1794_v45 = vsel %vm501_vm0, %v1792_v34, %v1793_v25 }
 0x1e7   : > { %v1765_v0 = vsel %vm1081_vm11, %v1749_v33, %v2973_v23  ;;  %v1766_v35 = vsel %vm1081_vm11, %v1750_v39, %v2974_v13  ;;  %v2985_v1 = vpack.i.bf16 %v1794_v45, %v4469_v15  ;;  %v1748_v15 = vsel %vm1072_vm10, %v1732_v41, %v2959_v2 }
 0x1e8   : > { %v1804_v22 = vrot.slane %v1765_v0, 1  ;;  %v1805_v46 = vrot.slane %v1766_v35, 1  ;;  %v2967_v57 = vpop.permute.xlu0 %2966 }
 0x1e9   : > { %v2969_v16 = vunpack.i.h.bf16 %v2967_v57  ;;  %v2968_v27 = vunpack.i.l.bf16 %v2967_v57  ;;  %2986 = vrot.lane.b32.xlu1 %v2985_v1, %s3050_s8 }
 0x1ea   : > { %v1806_v11 = vsel %vm501_vm0, %v1804_v22, %v1805_v46 }
 0x1eb   : > { %v1763_v24 = vsel %vm1081_vm11, %v1747_v47, %v2968_v27  ;;  %v1764_v14 = vsel %vm1081_vm11, %v1748_v15, %v2969_v16 }
 0x1ec   : > { %v1801_v50 = vrot.slane %v1763_v24, 1  ;;  %v1802_v26 = vrot.slane %v1764_v14, 1 }
 0x1ee   : > { %v1803_v31 = vsel %vm501_vm0, %v1801_v50, %v1802_v26  ;;  %vm1899_vm0 = vcmask 883712  }
 0x1ef   : > { %v2990_v49 = vpack.i.bf16 %v1806_v11, %v1803_v31 }
 0x1f1   : > { %2991 = vrot.lane.b32.xlu2 %v2990_v49, %s3050_s8  ;;  %s2209_s8 = sshll.u32 %s4704_s19, 6 }
 0x1f2   : > { %s353_s9 = sadd.s32 %s2209_s8, %s2208_s27 }
 0x1f3   : > { %s2210_s10 = sshll.u32 %s353_s9, 2 }
 0x1f4   : > { %s4597_s14 = scalar_lea.vmem %s4656_s4, %s2210_s10 }
 0x213   : > { %v2977_v62 = vpop.permute.xlu2 %2976 }
 0x214   : > { %v2979_v60 = vunpack.i.h.bf16 %v2977_v62  ;;  %v2978_v36 = vunpack.i.l.bf16 %v2977_v62 }
 0x216   : > { %v1832_v30 = vsel %vm1831_vm1, %v4052_v21, %v2978_v36  ;;  %v1833_v12 = vsel %vm1831_vm1, %v4055_v58, %v2979_v60 }
 0x217   : > { %v1840_v51 = vpack.c.bf16 %v1833_v12, %v1832_v30 }
 0x219   : > { %2241 = vmatmul.msk.bf16.vlgmr.msra.gmra.mxu0 %vm1899_vm0, %v1840_v51 }
 0x23f   : > { %v2982_v18 = vpop.permute.xlu0 %2981 }
 0x240   : > { %v2984_v42 = vunpack.i.h.bf16 %v2982_v18  ;;  %v2983_v32 = vunpack.i.l.bf16 %v2982_v18 }
 0x242   : > { %v1836_v20 = vsel %vm1831_vm1, %v4087_v44, %v2983_v32  ;;  %v1837_v6 = vsel %vm1831_vm1, %v4090_v53, %v2984_v42 }
 0x243   : > { %v1842_v8 = vpack.c.bf16 %v1837_v6, %v1836_v20 }
 0x245   : > { %2243 = vmatmul.msk.bf16.vlgmr.msra.gmra.mxu2 %vm1899_vm0, %v1842_v8 }
 0x24b   : > { %v2992_v21 = vpop.permute.xlu2 %2991 }
 0x24c   : > { %v2994_v58 = vunpack.i.h.bf16 %v2992_v21  ;;  %v2993_v37 = vunpack.i.l.bf16 %v2992_v21 }
 0x24e   : > { %v1838_v61 = vsel %vm1831_vm1, %v4072_v10, %v2993_v37  ;;  %v1839_v4 = vsel %vm1831_vm1, %v4075_v54, %v2994_v58 }
 0x24f   : > { %v1843_v55 = vpack.c.bf16 %v1839_v4, %v1838_v61 }
 0x251   : > { %2244 = vmatmul.msk.bf16.vlgmr.msra.gmra.mxu3 %vm1899_vm0, %v1843_v55 }
 0x25b   : > { %v2987_v44 = vpop.permute.xlu1 %2986 }
 0x25c   : > { %v2989_v53 = vunpack.i.h.bf16 %v2987_v44  ;;  %v2988_v43 = vunpack.i.l.bf16 %v2987_v44 }
 0x25e   : > { %v1834_v5 = vsel %vm1831_vm1, %v4097_v28, %v2988_v43  ;;  %v1835_v59 = vsel %vm1831_vm1, %v4100_v48, %v2989_v53 }
 0x25f   : > { %v1841_v63 = vpack.c.bf16 %v1835_v59, %v1834_v5 }
 0x261   : > { %2242 = vmatmul.msk.bf16.vlgmr.msra.gmra.mxu1 %vm1899_vm0, %v1841_v63 }
 0x296   : > { %v1924_v10 = vpop.f32.mrf.mxu0 }
 0x297   : > { %v1944_v54 = vpack.c.bf16 %v1924_v10, %v1924_v10  ;;  %v1982_v28 = vmul.f32 %v1924_v10, %v1924_v10  ;;  %v1961_v17 = vsel %vm1009_vm3, %v1924_v10, 0.0 }
 0x299   : > { %1953 = vst.msk [vmem:[%s4597_s14] sm:$0xf] %vm1952_vm2, %v1944_v54  ;;  %v1990_v33 = vsel %vm1009_vm3, %v1982_v28, 0.0 }
 0x29e   : > { %v1926_v48 = vpop.f32.mrf.mxu0 }
 0x29f   : > { %v1945_v34 = vpack.c.bf16 %v1926_v48, %v1926_v48  ;;  %v1962_v25 = vsel %vm1009_vm3, %v1926_v48, 0.0  ;;  %v1983_v38 = vmul.f32 %v1926_v48, %v1926_v48 }
 0x2a0   : > { %v1963_v56 = vadd.f32 %v1962_v25, %v1961_v17 }
 0x2a1   : > { %1954 = vst.msk [vmem:[%s4597_s14 + $0x4] sm:$0xf] %vm1952_vm2, %v1945_v34  ;;  %v1991_v13 = vsel %vm1009_vm3, %v1983_v38, 0.0 }
 0x2a2   : > { %v1992_v23 = vadd.f32 %v1991_v13, %v1990_v33 }
 0x2c8   : > { %v1934_v40 = vpop.f32.mrf.mxu2 }
 0x2c9   : > { %v1948_v39 = vpack.c.bf16 %v1934_v40, %v1934_v40  ;;  %v1986_v41 = vmul.f32 %v1934_v40, %v1934_v40  ;;  %v1968_v24 = vsel %vm1009_vm3, %v1934_v40, 0.0 }
 0x2cb   : > { %1957 = vst.msk [vmem:[%s4597_s14 + $0x10] sm:$0xf] %vm1952_vm2, %v1948_v39  ;;  %v1997_v49 = vsel %vm1009_vm3, %v1986_v41, 0.0 }
 0x2d0   : > { %v1936_v2 = vpop.f32.mrf.mxu2 }
 0x2d1   : > { %v1949_v19 = vpack.c.bf16 %v1936_v2, %v1936_v2  ;;  %v1987_v14 = vmul.f32 %v1936_v2, %v1936_v2  ;;  %v1970_v9 = vsel %vm1009_vm3, %v1936_v2, 0.0 }
 0x2d3   : > { %1958 = vst.msk [vmem:[%s4597_s14 + $0x14] sm:$0xf] %vm1952_vm2, %v1949_v19  ;;  %v1999_v30 = vsel %vm1009_vm3, %v1987_v14, 0.0 }
 0x2d4   : > { %v1939_v45 = vpop.f32.mrf.mxu3 }
 0x2d5   : > { %v1950_v7 = vpack.c.bf16 %v1939_v45, %v1939_v45  ;;  %v1988_v62 = vmul.f32 %v1939_v45, %v1939_v45  ;;  %v1972_v12 = vsel %vm1009_vm3, %v1939_v45, 0.0 }
 0x2d7   : > { %1959 = vst.msk [vmem:[%s4597_s14 + $0x18] sm:$0xf] %vm1952_vm2, %v1950_v7  ;;  %v2001_v32 = vsel %vm1009_vm3, %v1988_v62, 0.0 }
 0x2dc   : > { %v1941_v0 = vpop.f32.mrf.mxu3 }
 0x2dd   : > { %v1951_v35 = vpack.c.bf16 %v1941_v0, %v1941_v0  ;;  %v1989_v51 = vmul.f32 %v1941_v0, %v1941_v0  ;;  %v1974_v20 = vsel %vm1009_vm3, %v1941_v0, 0.0 }
 0x2de   : > { %v1929_v1 = vpop.f32.mrf.mxu1 }
 0x2df   : > { %1960 = vst.msk [vmem:[%s4597_s14 + $0x1c] sm:$0xf] %vm1952_vm2, %v1951_v35  ;;  %v1946_v3 = vpack.c.bf16 %v1929_v1, %v1929_v1  ;;  %v1984_v52 = vmul.f32 %v1929_v1, %v1929_v1  ;;  %v1964_v22 = vsel %vm1009_vm3, %v1929_v1, 0.0  ;;  %v2003_v21 = vsel %vm1009_vm3, %v1989_v51, 0.0 }
 0x2e0   : > { %v1965_v57 = vadd.f32 %v1964_v22, %v1963_v56 }
 0x2e1   : > { %1955 = vst.msk [vmem:[%s4597_s14 + $0x8] sm:$0xf] %vm1952_vm2, %v1946_v3  ;;  %v1993_v46 = vsel %vm1009_vm3, %v1984_v52, 0.0 }
 0x2e2   : > { %v1994_v15 = vadd.f32 %v1993_v46, %v1992_v23 }
 0x2e6   : > { %v1931_v29 = vpop.f32.mrf.mxu1 }
 0x2e7   : > { %v1947_v16 = vpack.c.bf16 %v1931_v29, %v1931_v29  ;;  %v1966_v27 = vsel %vm1009_vm3, %v1931_v29, 0.0  ;;  %v1985_v47 = vmul.f32 %v1931_v29, %v1931_v29 }
 0x2e8   : > { %v1967_v11 = vadd.f32 %v1966_v27, %v1965_v57 }
 0x2e9   : > { %1956 = vst.msk [vmem:[%s4597_s14 + $0xc] sm:$0xf] %vm1952_vm2, %v1947_v16  ;;  %v1995_v50 = vsel %vm1009_vm3, %v1985_v47, 0.0 }
 0x2ea   : > { %v1969_v26 = vadd.f32 %v1968_v24, %v1967_v11  ;;  %v1996_v31 = vadd.f32 %v1995_v50, %v1994_v15 }
 0x2ec   : > { %v1971_v60 = vadd.f32 %v1970_v9, %v1969_v26  ;;  %v1998_v36 = vadd.f32 %v1997_v49, %v1996_v31 }
 0x2ee   : > { %v1973_v18 = vadd.f32 %v1972_v12, %v1971_v60  ;;  %v2000_v42 = vadd.f32 %v1999_v30, %v1998_v36 }
 0x2f0   : > { %v1975_v6 = vadd.f32 %v1974_v20, %v1973_v18  ;;  %v2002_v8 = vadd.f32 %v2001_v32, %v2000_v42 }
 0x2f2   : > { %v1976_v58 = vrot.slane %v1975_v6, 4  ;;  %v2004_v37 = vadd.f32 %v2003_v21, %v2002_v8 }
 0x2f4   : > { %v1977_v61 = vadd.f32 %v1976_v58, %v1975_v6  ;;  %v2005_v4 = vrot.slane %v2004_v37, 4 }
 0x2f6   : > { %v1978_v55 = vrot.slane %v1977_v61, 2  ;;  %v2006_v44 = vadd.f32 %v2005_v4, %v2004_v37 }
 0x2f8   : > { %v1979_v53 = vadd.f32 %v1978_v55, %v1977_v61  ;;  %v2007_v43 = vrot.slane %v2006_v44, 2 }
 0x2fa   : > { %v1980_v5 = vrot.slane %v1979_v53, 1  ;;  %v2008_v59 = vadd.f32 %v2007_v43, %v2006_v44 }
 0x2fc   : > { %v2009_v63 = vrot.slane %v2008_v59, 1  ;;  %v1981_v10 = vadd.f32 %v1980_v5, %v1979_v53 }
 0x2fe   : > { %v2010_v54 = vadd.f32 %v2009_v63, %v2008_v59 }
 0x300   : > { %v2012_v28 = vsel %vm2011_vm4, %v1981_v10, %v2010_v54 }
 0x301   : > { %v2014_v48 = vsel %vm2013_vm5, %v2012_v28, 0.0 }
 0x302   : > { %2015 = vst.msk [vmem:[%s363_s28] sm:$0xff] %vm1009_vm3, %v2014_v48 }
 0x303 PF: > { %s16_s22 = sadd.s32 1, %s3033_s22   ;;  %s4693_s18 = smov %s3025_s20 }
 0x304   : > { %p13_p10 = scmp.ge.s32.totalorder %s16_s22, 18   ;;  %s4694_s19 = smov %s3029_s21 }
 0x305   : > { %s4695_s20 = smov %s4698_s23  ;;  %s4696_s21 = smov %s4702_s24 }
 0x306   :  { %15 = sbr.rel (!%p13_p10) target bundleno = 3 (0x3), region = 84 }

// kernel: tile.18
= control target key start
LH: loop header
LB: loop body
LE: loop exit
PB: predicated region body
PF: predicated region fallthrough
CT: control target
= control target key end

     0   :  { %s131_s10 = smov 120   ;;  %s132_s11 = smov 104   ;;  %vm3_vm0 = vcmask 64512   ;;  %vm9_vm1 = vcmask 1048512   ;;  %vm15_vm2 = vcmask 982912   ;;  %vm21_vm3 = vcmask 917312   ;;  %s207_s0 = inlined_call_operand.vmem [shape: f32[16,8], index: 0, kind: input, shape index: {}]   ;;  %s208_s1 = inlined_call_operand.vmem [shape: f32[1,128], index: 1, kind: output, shape index: {}]  }
   0x1   :  { %v101_v0 = vld [vmem:[%s207_s0 + $0xf] sm:$0x1]   ;;  %v103_v1 = vld [vmem:[%s207_s0 + $0xd] sm:$0x1]   ;;  %v105_v2 = vld [vmem:[%s207_s0 + $0xb] sm:$0x1]  }
   0x2   :  { %7 = vrot.lane.b32.xlu0 %v101_v0, %s131_s10  ;;  %19 = vrot.lane.b32.xlu1 %v103_v1, %s132_s11  ;;  %s133_s14 = smov 88   ;;  %v102_v3 = vld [vmem:[%s207_s0 + $0xe] sm:$0x1]   ;;  %v104_v4 = vld [vmem:[%s207_s0 + $0xc] sm:$0x1]   ;;  %s134_s19 = smov 112  }
   0x3   :  { %31 = vrot.lane.b32.xlu2 %v105_v2, %s133_s14  ;;  %s135_s20 = smov 96   ;;  %v106_v5 = vld [vmem:[%s207_s0 + $0xa] sm:$0x1]   ;;  %s136_s23 = smov 80   ;;  %v107_v6 = vld [vmem:[%s207_s0 + $0x9] sm:$0x1]  }
   0x4   :  { %v108_v7 = vld [vmem:[%s207_s0 + $0x8] sm:$0x1]   ;;  %s137_s28 = smov 72   ;;  %s138_s29 = smov 64   ;;  %v109_v8 = vld [vmem:[%s207_s0 + $0x7] sm:$0x1]  }
   0x5   :  { %s139_s3 = smov 56   ;;  %v110_v9 = vld [vmem:[%s207_s0 + $0x6] sm:$0x1]   ;;  %v111_v10 = vld [vmem:[%s207_s0 + $0x5] sm:$0x1]   ;;  %s140_s8 = smov 48  }
   0x6   :  { %s141_s9 = smov 40   ;;  %v112_v11 = vld [vmem:[%s207_s0 + $0x4] sm:$0x1]   ;;  %s142_s12 = smov 32   ;;  %v113_v12 = vld [vmem:[%s207_s0 + $0x3] sm:$0x1]  }
   0x7   :  { %v114_v13 = vld [vmem:[%s207_s0 + $0x2] sm:$0x1]   ;;  %s143_s17 = smov 24   ;;  %s144_s18 = smov 16   ;;  %v115_v14 = vld [vmem:[%s207_s0 + $0x1] sm:$0x1]  }
   0x8   :  { %s145_s21 = smov 8   ;;  %v2_v15 = vld [vmem:[%s207_s0] sm:$0x1]   ;;  %vm27_vm4 = vcmask 851712   ;;  %vm33_vm5 = vcmask 786112   ;;  %vm39_vm6 = vcmask 720512  }
   0x9   :  { %4 = vst.msk [vmem:[#allocation0] sm:$0x1] %vm3_vm0, %v2_v15   ;;  %vm45_vm7 = vcmask 654912   ;;  %vm51_vm8 = vcmask 589312   ;;  %vm57_vm9 = vcmask 523712   ;;  %vm63_vm10 = vcmask 458112  }
   0xa   :  { %13 = vrot.lane.b32.xlu0 %v102_v3, %s134_s19  ;;  %25 = vrot.lane.b32.xlu1 %v104_v4, %s135_s20  ;;  %vm69_vm11 = vcmask 392512   ;;  %vm75_vm12 = vcmask 326912   ;;  %vm81_vm13 = vcmask 261312   ;;  %vm87_vm14 = vcmask 195712  }
   0xb   :  { %37 = vrot.lane.b32.xlu2 %v106_v5, %s136_s23  ;;  %vm93_vm15 = vcmask 130112  }
  0x12   :  { %43 = vrot.lane.b32.xlu0 %v107_v6, %s137_s28  ;;  %49 = vrot.lane.b32.xlu1 %v108_v7, %s138_s29 }
  0x13   :  { %55 = vrot.lane.b32.xlu2 %v109_v8, %s139_s3 }
  0x1a   :  { %61 = vrot.lane.b32.xlu0 %v110_v9, %s140_s8  ;;  %67 = vrot.lane.b32.xlu1 %v111_v10, %s141_s9 }
  0x1b   :  { %73 = vrot.lane.b32.xlu2 %v112_v11, %s142_s12 }
  0x22   :  { %79 = vrot.lane.b32.xlu0 %v113_v12, %s143_s17  ;;  %85 = vrot.lane.b32.xlu1 %v114_v13, %s144_s18 }
  0x23   :  { %91 = vrot.lane.b32.xlu2 %v115_v14, %s145_s21 }
  0x5d   :  { %v32_v16 = vpop.permute.xlu2 %31  }
  0x65   :  { %v38_v17 = vpop.permute.xlu2 %37  }
  0x6d   :  { %v56_v18 = vpop.permute.xlu2 %55  }
  0x74   :  { %v8_v19 = vpop.permute.xlu0 %7   ;;  %v20_v20 = vpop.permute.xlu1 %19  }
  0x75   :  { %10 = vst.msk [vmem:[#allocation0] sm:$0x1] %vm9_vm1, %v8_v19   ;;  %v74_v21 = vpop.permute.xlu2 %73  }
  0x7c   :  { %v14_v22 = vpop.permute.xlu0 %13   ;;  %v26_v23 = vpop.permute.xlu1 %25  }
  0x7d   :  { %16 = vst.msk [vmem:[#allocation0] sm:$0x1] %vm15_vm2, %v14_v22   ;;  %v92_v24 = vpop.permute.xlu2 %91  }
  0x7e   :  { %22 = vst.msk [vmem:[#allocation0] sm:$0x1] %vm21_vm3, %v20_v20  }
  0x7f   :  { %28 = vst.msk [vmem:[#allocation0] sm:$0x1] %vm27_vm4, %v26_v23  }
  0x80   :  { %34 = vst.msk [vmem:[#allocation0] sm:$0x1] %vm33_vm5, %v32_v16  }
  0x81   :  { %40 = vst.msk [vmem:[#allocation0] sm:$0x1] %vm39_vm6, %v38_v17  }
  0x84   :  { %v44_v25 = vpop.permute.xlu0 %43   ;;  %v50_v26 = vpop.permute.xlu1 %49  }
  0x85   :  { %46 = vst.msk [vmem:[#allocation0] sm:$0x1] %vm45_vm7, %v44_v25  }
  0x86   :  { %52 = vst.msk [vmem:[#allocation0] sm:$0x1] %vm51_vm8, %v50_v26  }
  0x87   :  { %58 = vst.msk [vmem:[#allocation0] sm:$0x1] %vm57_vm9, %v56_v18  }
  0x8c   :  { %v62_v27 = vpop.permute.xlu0 %61   ;;  %v68_v28 = vpop.permute.xlu1 %67  }
  0x8d   :  { %64 = vst.msk [vmem:[#allocation0] sm:$0x1] %vm63_vm10, %v62_v27  }
  0x8e   :  { %70 = vst.msk [vmem:[#allocation0] sm:$0x1] %vm69_vm11, %v68_v28  }
  0x8f   :  { %76 = vst.msk [vmem:[#allocation0] sm:$0x1] %vm75_vm12, %v74_v21  }
  0x94   :  { %v80_v29 = vpop.permute.xlu0 %79   ;;  %v86_v30 = vpop.permute.xlu1 %85  }
  0x95   :  { %82 = vst.msk [vmem:[#allocation0] sm:$0x1] %vm81_vm13, %v80_v29  }
  0x96   :  { %88 = vst.msk [vmem:[#allocation0] sm:$0x1] %vm87_vm14, %v86_v30  }
  0x97   :  { %94 = vst.msk [vmem:[#allocation0] sm:$0x1] %vm93_vm15, %v92_v24  }
  0x9e   :  { %v97_v31 = vld [vmem:[#allocation0] sm:$0x1] }
  0x9f   :  { %100 = vst [vmem:[%s208_s1] sm:$0x1] %v97_v31 }

// kernel: tile.13
= control target key start
LH: loop header
LB: loop body
LE: loop exit
PB: predicated region body
PF: predicated region fallthrough
CT: control target
= control target key end

     0   :  { %s28_s0 = inlined_call_operand.vmem [shape: f32[8], index: 0, kind: input, shape index: {}]   ;;  %s29_s1 = inlined_call_operand.vmem [shape: f32[16,8], index: 1, kind: output, shape index: {}]  }
   0x1   :  { %v4_v0 = vld [vmem:[%s28_s0] ss:$0 sm:$0xff] }
   0x2   :  { %5 = vst [vmem:[%s29_s1] sm:$0xff] %v4_v0 }
   0x3   :  { %8 = vst [vmem:[%s29_s1 + $0x8] sm:$0xff] %v4_v0 }

// kernel: double_conv_forward.4
= control target key start
LH: loop header
LB: loop body
LE: loop exit
PB: predicated region body
PF: predicated region fallthrough
CT: control target
= control target key end

     0   :  { %s4956_s24 = smov 0   ;;  %s4958_s25 = smov 0   ;;  %s8368_s0 = inlined_call_operand.vmem [shape: bf16[2,10,10,10,8], index: 0, kind: input, shape index: {}, may-alias: {0,1,2}]   ;;  %s8369_s1 = inlined_call_operand.vmem [shape: bf16[2,10,10,10,8], index: 1, kind: input, shape index: {}, may-alias: {0,1,2}]   ;;  %s8370_s2 = inlined_call_operand.vmem [shape: bf16[2,10,10,10,8], index: 2, kind: input, shape index: {}, may-alias: {0,1,2}]   ;;  %s8371_s3 = inlined_call_operand.vmem [shape: bf16[216,8], index: 3, kind: input, shape index: {}]   ;;  %s8372_s4 = inlined_call_operand.vmem [shape: f32[1,8], index: 4, kind: input, shape index: {}]   ;;  %s8373_s5 = inlined_call_operand.vmem [shape: f32[1,8], index: 5, kind: input, shape index: {}]   ;;  %s8374_s6 = inlined_call_operand.vmem [shape: f32[2,8,64,8], index: 6, kind: output, shape index: {0}]   ;;  %s8375_s7 = inlined_call_operand.vmem [shape: f32[2,8,8,8], index: 7, kind: output, shape index: {1}]  }
   0x1   :  { %s4960_s26 = smov 0   ;;  %s4962_s27 = smov 0  }
   0x2   :  { %s4964_s28 = smov 0  }
   0x3 LB: > { %s27_s29 = sadd.s32 1, %s4891_s26  ;;  %s30_s30 = sadd.s32 1, %s4895_s27  ;;  %s4899_s28 = sphi %s4964_s28, %s18_s28   ;;  %s4895_s27 = sphi %s4962_s27, %s8746_s27   ;;  %s4891_s26 = sphi %s4960_s26, %s8745_s26   ;;  %s4887_s25 = sphi %s4958_s25, %s8744_s25   ;;  %s4883_s24 = sphi %s4956_s24, %s8743_s24  }
   0x4   : > { %p28_p0 = scmp.ge.s32.totalorder %s27_s29, 8  ;;  %p3818_p1 = scmp.ge.s32.totalorder %s4899_s28, 1 }
   0x5   : > { %p302_p2 = scmp.lt.s32.totalorder %s4899_s28, 17 }
   0x6   : > { %s8748_s29 = smov (%p28_p0, %s27_s29), 0  ;;  %s8750_s30 = smov (!%p28_p0, %s30_s30), %s4895_s27 }
   0x7   : > { %p303_p3 = pnand %p3818_p1, %p302_p2  ;;  %p32_p4 = scmp.ge.s32.totalorder %s8750_s30, 2 }
   0x9   : > { %s8752_s30 = smov (%p32_p4, %s8750_s30), 0  ;;  %306 = sbr.rel (%p303_p3) target bundleno = 916 (0x394), region = 44 }
   0xe   : > { %p370_p5 = scmp.lt.s32.totalorder %s4887_s25, 1  ;;  %p372_p6 = scmp.lt.s32.totalorder %s4883_s24, 9  ;;  %v5004_v0 = vld [vmem:[%s8372_s4] ss:$0 sm:$0xff] }
   0xf   : > { %v5009_v1 = vld [vmem:[%s8373_s5] ss:$0 sm:$0xff]  ;;  %s4901_s20 = smov 24   ;;  %s4902_s21 = smov 48  }
  0x10   : > { %s8754_s25 = smov (!%p370_p5, %s4887_s25), 1  ;;  %s4903_s22 = smov 8  }
  0x11   : > { %s373_s8 = scalar_select %p372_p6, %s4883_s24, 9 }
  0x12   : > { %s4993_s9 = smul.u32 200, %s8754_s25  ;;  %s379_s23 = sadd.s32 1, %s4883_s24 }
  0x13   : > { %s3912_s10 = smul.u32 20, %s373_s8  ;;  %p5546_p7 = scmp.lt.s32.totalorder %s379_s23, 9 }
  0x14   : > { %s4905_s8 = smov 32   ;;  %s8378_s13 = smov 72  }
  0x15   : > { %s376_s11 = sadd.s32 %s4993_s9, %s3912_s10  ;;  %s8756_s23 = smov (!%p5546_p7, %s379_s23), 9 }
  0x16   : > { %s3819_s12 = sshll.u32 %s376_s11, 2  ;;  %s3914_s10 = smul.u32 20, %s8756_s23 }
  0x17   : > { %s4999_s15 = scalar_lea.vmem %s8368_s0, %s3819_s12  ;;  %s4904_s23 = smov 16  }
  0x18   : > { %v429_v2 = vld [vmem:[%s4999_s15 + $0x28] sm:$0xf]  ;;  %v431_v3 = vld [vmem:[%s4999_s15 + $0x30] sm:$0xf]  ;;  %v425_v4 = vld [vmem:[%s4999_s15 + $0x18] sm:$0xf]  ;;  %s5618_s11 = sadd.s32 %s3914_s10, %s4993_s9 }
  0x19   : > { %v449_v5 = vunpack.c.l.bf16 %v429_v2  ;;  %v451_v6 = vunpack.c.l.bf16 %v431_v3  ;;  %v427_v7 = vld [vmem:[%s4999_s15 + $0x20] sm:$0xf]  ;;  %v445_v8 = vunpack.c.l.bf16 %v425_v4  ;;  %v421_v9 = vld [vmem:[%s4999_s15 + $0x8] sm:$0xf]  ;;  %v423_v10 = vld [vmem:[%s4999_s15 + $0x10] sm:$0xf] }
  0x1a   : > { %v447_v11 = vunpack.c.l.bf16 %v427_v7  ;;  %v441_v12 = vunpack.c.l.bf16 %v421_v9  ;;  %v443_v13 = vunpack.c.l.bf16 %v423_v10  ;;  %v433_v14 = vld [vmem:[%s4999_s15 + $0x38] sm:$0xf]  ;;  %v435_v15 = vld [vmem:[%s4999_s15 + $0x40] sm:$0xf]  ;;  %v428_v32 = vld [vmem:[%s4999_s15 + $0x24] sm:$0x1] }
  0x1b   : > { %v473_v16 = vmul.f32 %v5004_v0, %v449_v5  ;;  %v475_v17 = vmul.f32 %v5004_v0, %v451_v6  ;;  %v469_v18 = vmul.f32 %v5004_v0, %v445_v8  ;;  %v453_v19 = vunpack.c.l.bf16 %v433_v14  ;;  %v430_v33 = vld [vmem:[%s4999_s15 + $0x2c] sm:$0x1]  ;;  %v419_v38 = vld [vmem:[%s4999_s15] sm:$0xf]  ;;  %v420_v43 = vld [vmem:[%s4999_s15 + $0x4] sm:$0x1] }
  0x1c   : > { %v471_v20 = vmul.f32 %v5004_v0, %v447_v11  ;;  %v465_v21 = vmul.f32 %v5004_v0, %v441_v12  ;;  %v467_v22 = vmul.f32 %v5004_v0, %v443_v13  ;;  %v455_v23 = vunpack.c.l.bf16 %v435_v15  ;;  %v422_v55 = vld [vmem:[%s4999_s15 + $0xc] sm:$0x1]  ;;  %s3820_s12 = sshll.u32 %s5618_s11, 2  ;;  %s4906_s10 = smov 40  }
  0x1d   : > { %v5026_v24 = vadd.f32 %v5009_v1, %v473_v16  ;;  %v5029_v25 = vadd.f32 %v5009_v1, %v475_v17  ;;  %v5032_v26 = vadd.f32 %v5009_v1, %v469_v18  ;;  %v477_v27 = vmul.f32 %v5004_v0, %v453_v19  ;;  %s4907_s11 = smov 56   ;;  %s4910_s14 = smov 80  }
  0x1e   : > { %v5036_v28 = vadd.f32 %v5009_v1, %v471_v20  ;;  %v5039_v29 = vadd.f32 %v5009_v1, %v465_v21  ;;  %v5042_v30 = vadd.f32 %v5009_v1, %v467_v22  ;;  %v479_v31 = vmul.f32 %v5004_v0, %v455_v23  ;;  %s4911_s16 = smov 88   ;;  %s390_s17 = sadd.s32 2, %s4883_s24 }
  0x1f   : > { %v517_v34 = vmin.f32 %v5026_v24, 30.0  ;;  %v519_v35 = vmin.f32 %v5029_v25, 30.0  ;;  %v513_v36 = vmin.f32 %v5032_v26, 30.0  ;;  %v5051_v37 = vadd.f32 %v5009_v1, %v477_v27  ;;  %p6421_p8 = scmp.lt.s32.totalorder %s390_s17, 9  ;;  %s4912_s19 = smov 96  }
  0x20   : > { %v515_v39 = vmin.f32 %v5036_v28, 30.0  ;;  %v509_v40 = vmin.f32 %v5039_v29, 30.0  ;;  %v511_v41 = vmin.f32 %v5042_v30, 30.0  ;;  %v5058_v42 = vadd.f32 %v5009_v1, %v479_v31  ;;  %p403_p9 = scmp.lt.s32.totalorder %s4883_s24, 7 }
  0x21   : > { %v547_v44 = vmul.f32 1.442695, %v517_v34  ;;  %v551_v45 = vmul.f32 1.442695, %v519_v35  ;;  %v539_v46 = vmul.f32 1.442695, %v513_v36  ;;  %v448_v47 = vunpack.c.l.bf16 %v428_v32 }
  0x22   : > { %v543_v48 = vmul.f32 1.442695, %v515_v39  ;;  %v531_v49 = vmul.f32 1.442695, %v509_v40  ;;  %v450_v50 = vunpack.c.l.bf16 %v430_v33  ;;  %v535_v51 = vmul.f32 1.442695, %v511_v41 }
  0x23   : > { %4613 = vpow2.f32 %v547_v44  ;;  %v521_v52 = vmin.f32 %v5051_v37, 30.0  ;;  %v472_v53 = vmul.f32 %v5004_v0, %v448_v47  ;;  %v439_v56 = vunpack.c.l.bf16 %v419_v38  ;;  %s8758_s17 = smov (!%p6421_p8, %s390_s17), 9  ;;  %s8760_s24 = smov (!%p403_p9, %s4883_s24), 7 }
  0x24   : > { %4615 = vpow2.f32 %v551_v45  ;;  %v474_v54 = vmul.f32 %v5004_v0, %v450_v50  ;;  %v440_v57 = vunpack.c.l.bf16 %v420_v43  ;;  %v523_v58 = vmin.f32 %v5058_v42, 30.0 }
  0x25   : > { %4617 = vpow2.f32 %v539_v46  ;;  %v5067_v59 = vadd.f32 %v5009_v1, %v472_v53  ;;  %v463_v61 = vmul.f32 %v5004_v0, %v439_v56  ;;  %v442_v63 = vunpack.c.l.bf16 %v422_v55 }
  0x26   : > { %4619 = vpow2.f32 %v543_v48  ;;  %v5070_v60 = vadd.f32 %v5009_v1, %v474_v54  ;;  %v555_v2 = vmul.f32 1.442695, %v521_v52  ;;  %v464_v3 = vmul.f32 %v5004_v0, %v440_v57 }
  0x27   : > { %4621 = vpow2.f32 %v531_v49  ;;  %v516_v62 = vmin.f32 %v5067_v59, 30.0  ;;  %v559_v5 = vmul.f32 1.442695, %v523_v58  ;;  %v5077_v10 = vadd.f32 %v5009_v1, %v463_v61 }
  0x28   : > { %4623 = vpow2.f32 %v535_v51  ;;  %v518_v6 = vmin.f32 %v5070_v60, 30.0  ;;  %v466_v13 = vmul.f32 %v5004_v0, %v442_v63  ;;  %v5081_v17 = vadd.f32 %v5009_v1, %v464_v3 }
  0x29   : > { %v4614_v4 = vpop.eup %4613  ;;  %v545_v9 = vmul.f32 1.442695, %v516_v62  ;;  %4625 = vpow2.f32 %v555_v2  ;;  %v507_v31 = vmin.f32 %v5077_v10, 30.0 }
  0x2a   : > { %v4616_v7 = vpop.eup %4615  ;;  %v577_v8 = vadd.f32 1.0, %v4614_v4  ;;  %4627 = vpow2.f32 %v559_v5  ;;  %v549_v21 = vmul.f32 1.442695, %v518_v6  ;;  %v5090_v36 = vadd.f32 %v5009_v1, %v466_v13 }
  0x2b   : > { %v4618_v11 = vpop.eup %4617  ;;  %v579_v12 = vadd.f32 1.0, %v4616_v7  ;;  %4629 = vpow2.f32 %v545_v9  ;;  %v508_v40 = vmin.f32 %v5081_v17, 30.0  ;;  %v5104_v50 = vmul.f32 1.442695, %v507_v31 }
  0x2c   : > { %v4620_v14 = vpop.eup %4619  ;;  %v597_v15 = vmul.f32 %v577_v8, %v577_v8  ;;  %v573_v16 = vadd.f32 1.0, %v4618_v11 }
  0x2d   : > { %v4622_v18 = vpop.eup %4621  ;;  %v599_v19 = vmul.f32 %v579_v12, %v579_v12  ;;  %v575_v20 = vadd.f32 1.0, %v4620_v14 }
  0x2e   : > { %v4624_v22 = vpop.eup %4623  ;;  %v5083_v23 = vadd.f32 1.0, %v597_v15  ;;  %v593_v27 = vmul.f32 %v573_v16, %v573_v16  ;;  %v569_v34 = vadd.f32 1.0, %v4622_v18 }
  0x2f   : > { %v5086_v32 = vadd.f32 1.0, %v599_v19  ;;  %v595_v33 = vmul.f32 %v575_v20, %v575_v20  ;;  %v571_v35 = vadd.f32 1.0, %v4624_v22  ;;  %v5096_v41 = vpop.eup %4625 }
  0x30   : > { %4631 = vrcp.f32 %v5083_v23  ;;  %v786_v38 = vand.u32 2147483647, %v5083_v23  ;;  %v788_v39 = vand.u32 2147483648, %v5083_v23  ;;  %v5100_v45 = vadd.f32 1.0, %v593_v27  ;;  %v4628_v47 = vpop.eup %4627 }
  0x31   : > { %4633 = vrcp.f32 %v5086_v32  ;;  %v816_v43 = vand.u32 2147483647, %v5086_v32  ;;  %v818_v44 = vand.u32 2147483648, %v5086_v32  ;;  %v5102_v46 = vadd.f32 1.0, %v595_v33  ;;  %v5106_v51 = vpop.eup %4629 }
  0x32   : > { %v589_v48 = vmul.f32 %v569_v34, %v569_v34  ;;  %v591_v49 = vmul.f32 %v571_v35, %v571_v35  ;;  %4635 = vpow2.f32 %v549_v21  ;;  %vm782_vm0 = vweird.f32 %v5083_v23 }
  0x33   : > { %vm812_vm1 = vweird.f32 %v5086_v32  ;;  %4637 = vrcp.f32 %v5100_v45  ;;  %v728_v52 = vand.u32 2147483648, %v5100_v45  ;;  %vm5112_vm2 = vcmp.eq.f32.partialorder %v786_v38, 8.507059e+37 }
  0x34   : > { %v789_v54 = vor.u32 1.1754944e-38, %v788_v39  ;;  %v726_v55 = vand.u32 2147483647, %v5100_v45  ;;  %4639 = vrcp.f32 %v5102_v46  ;;  %v758_v56 = vand.u32 2147483648, %v5102_v46 }
  0x35   : > { %vm5119_vm3 = vcmp.eq.f32.partialorder %v816_v43, 8.507059e+37  ;;  %v819_v61 = vor.u32 1.1754944e-38, %v818_v44  ;;  %v756_v62 = vand.u32 2147483647, %v5102_v46  ;;  %v5124_v63 = vadd.f32 1.0, %v589_v48 }
  0x36   : > { %v4632_v57 = vpop.eup %4631  ;;  %v5126_v2 = vadd.f32 1.0, %v591_v49  ;;  %vm722_vm4 = vweird.f32 %v5100_v45  ;;  %v5130_v5 = vor.u32 1.1754944e-38, %v728_v52  ;;  %vm752_vm5 = vweird.f32 %v5102_v46 }
  0x37   : > { %v4634_v3 = vpop.eup %4633  ;;  %v778_v4 = vmul.f32 %v4632_v57, %v5083_v23  ;;  %vm783_vm6 = vweird.f32 %v4632_v57  ;;  %v5134_v7 = vor.u32 1.1754944e-38, %v758_v56  ;;  %4641 = vrcp.f32 %v5124_v63 }
  0x38   : > { %v808_v6 = vmul.f32 %v4634_v3, %v5086_v32  ;;  %v5137_v8 = vpop.eup %4635  ;;  %vm5139_vm7 = vcmp.eq.f32.partialorder %v726_v55, 8.507059e+37  ;;  %v666_v12 = vand.u32 2147483647, %v5124_v63  ;;  %v668_v13 = vand.u32 2147483648, %v5124_v63  ;;  %vm5158_vm12 = vmor %vm782_vm0, %vm783_vm6 }
  0x39   : > { %v779_v9 = vsub.f32 1.0, %v778_v4  ;;  %4643 = vrcp.f32 %v5126_v2  ;;  %v4638_v14 = vpop.eup %4637  ;;  %vm813_vm8 = vweird.f32 %v4634_v3  ;;  %vm5146_vm9 = vcmp.eq.f32.partialorder %v756_v62, 8.507059e+37 }
  0x3a   : > { %v809_v15 = vsub.f32 1.0, %v808_v6  ;;  %v696_v18 = vand.u32 2147483647, %v5126_v2  ;;  %v698_v19 = vand.u32 2147483648, %v5126_v2  ;;  %v4640_v20 = vpop.eup %4639  ;;  %v718_v22 = vmul.f32 %v4638_v14, %v5100_v45  ;;  %vm5166_vm15 = vmor %vm812_vm1, %vm813_vm8 }
  0x3b   : > { %v780_v21 = vmul.f32 %v4632_v57, %v779_v9  ;;  %vm662_vm10 = vweird.f32 %v5124_v63  ;;  %vm723_vm13 = vweird.f32 %v4638_v14  ;;  %v748_v33 = vmul.f32 %v4640_v20, %v5102_v46 }
  0x3c   : > { %v810_v31 = vmul.f32 %v4634_v3, %v809_v15  ;;  %vm753_vm14 = vweird.f32 %v4640_v20  ;;  %v719_v38 = vsub.f32 1.0, %v718_v22  ;;  %vm5170_vm11 = vcmp.eq.f32.partialorder %v666_v12, 8.507059e+37  ;;  %vm5189_vm6 = vmor %vm722_vm4, %vm723_vm13 }
  0x3d   : > { %v781_v34 = vadd.f32 %v4632_v57, %v780_v21  ;;  %v669_v39 = vor.u32 1.1754944e-38, %v668_v13  ;;  %v699_v43 = vor.u32 1.1754944e-38, %v698_v19  ;;  %v4642_v44 = vpop.eup %4641  ;;  %v749_v49 = vsub.f32 1.0, %v748_v33 }
  0x3e   : > { %v811_v48 = vadd.f32 %v4634_v3, %v810_v31  ;;  %vm5174_vm0 = vcmp.eq.f32.partialorder %v696_v18, 8.507059e+37  ;;  %v581_v32 = vadd.f32 1.0, %v5096_v41  ;;  %v583_v55 = vadd.f32 1.0, %v4628_v47 }
  0x3f   : > { %v4644_v56 = vpop.eup %4643  ;;  %v785_v62 = vsel %vm5158_vm12, %v4632_v57, %v781_v34  ;;  %v720_v4 = vmul.f32 %v4638_v14, %v719_v38  ;;  %v658_v6 = vmul.f32 %v4642_v44, %v5124_v63  ;;  %vm663_vm1 = vweird.f32 %v4642_v44 }
  0x40   : > { %v790_v9 = vsel %vm5112_vm2, %v789_v54, %v785_v62  ;;  %v815_v12 = vsel %vm5166_vm15, %v4634_v3, %v811_v48  ;;  %v750_v47 = vmul.f32 %v4640_v20, %v749_v49  ;;  %v688_v57 = vmul.f32 %v4644_v56, %v5126_v2  ;;  %vm5199_vm2 = vmor %vm752_vm5, %vm753_vm14 }
  0x41   : > { %v791_v13 = vmul.f32 2.0, %v790_v9  ;;  %v820_v15 = vsel %vm5119_vm3, %v819_v61, %v815_v12  ;;  %v721_v18 = vadd.f32 %v4638_v14, %v720_v4  ;;  %v659_v45 = vsub.f32 1.0, %v658_v6  ;;  %vm5213_vm3 = vmor %vm662_vm10, %vm663_vm1 }
  0x42   : > { %v821_v54 = vmul.f32 2.0, %v820_v15  ;;  %v751_v3 = vadd.f32 %v4640_v20, %v750_v47  ;;  %v689_v19 = vsub.f32 1.0, %v688_v57  ;;  %vm693_vm4 = vweird.f32 %v4644_v56 }
  0x43   : > { %v937_v21 = vsub.f32 1.0, %v791_v13  ;;  %v725_v22 = vsel %vm5189_vm6, %v4638_v14, %v721_v18  ;;  %v660_v27 = vmul.f32 %v4642_v44, %v659_v45  ;;  %v601_v58 = vmul.f32 %v581_v32, %v581_v32 }
  0x44   : > { %v939_v61 = vsub.f32 1.0, %v821_v54  ;;  %v730_v46 = vsel %vm5139_vm7, %v5130_v5, %v725_v22  ;;  %v755_v31 = vsel %vm5199_vm2, %v4640_v20, %v751_v3  ;;  %v690_v34 = vmul.f32 %v4644_v56, %v689_v19 }
  0x45   : > { %v5218_v14 = vmul.f32 %v937_v21, %v5026_v24  ;;  %v731_v35 = vmul.f32 2.0, %v730_v46  ;;  %v760_v11 = vsel %vm5146_vm9, %v5134_v7, %v755_v31  ;;  %v661_v5 = vadd.f32 %v4642_v44, %v660_v27 }
  0x46   : > { %vm8445_vm5 = vweird.f32 %v5126_v2  ;;  %v5230_v63 = vmul.f32 %v939_v61, %v5029_v25  ;;  %v761_v38 = vmul.f32 2.0, %v760_v11  ;;  %v691_v48 = vadd.f32 %v4644_v56, %v690_v34 }
  0x47   : > { %vm5225_vm7 = vmor %vm8445_vm5, %vm693_vm4  ;;  %v621_v49 = vadd.f32 1.0, %v601_v58  ;;  %v933_v24 = vsub.f32 1.0, %v731_v35  ;;  %v665_v32 = vsel %vm5213_vm3, %v4642_v44, %v661_v5  ;;  %v603_v62 = vmul.f32 %v583_v55, %v583_v55 }
  0x48   : > { %4645 = vpow2.f32 %v5104_v50  ;;  %v3981_v2 = vpack.i.bf16 %v5230_v63, %v5218_v14  ;;  %v935_v7 = vsub.f32 1.0, %v761_v38  ;;  %v670_v16 = vsel %vm5170_vm11, %v669_v39, %v665_v32 }
  0x49   : > { %v695_v25 = vsel %vm5225_vm7, %v4644_v56, %v691_v48  ;;  %v5242_v4 = vmul.f32 %v933_v24, %v5032_v26  ;;  %v671_v6 = vmul.f32 2.0, %v670_v16  ;;  %4647 = vrcp.f32 %v621_v49  ;;  %v432_v48 = vld [vmem:[%s4999_s15 + $0x34] sm:$0x1] }
  0x4a   : > { %v700_v44 = vsel %vm5174_vm0, %v699_v43, %v695_v25  ;;  %3982 = vrot.lane.b32.xlu1 %v3981_v2, %s4901_s20  ;;  %v5248_v50 = vmul.f32 %v935_v7, %v5036_v28  ;;  %v846_v23 = vand.u32 2147483647, %v621_v49  ;;  %v576_v39 = vadd.f32 1.0, %v5106_v51 }
  0x4b   : > { %v701_v55 = vmul.f32 2.0, %v700_v44  ;;  %v929_v9 = vsub.f32 1.0, %v671_v6  ;;  %v848_v56 = vand.u32 2147483648, %v621_v49  ;;  %v5251_v12 = vadd.f32 1.0, %v603_v62  ;;  %v5304_v62 = vld [vmem:[%s4999_s15 + $0x3c] sm:$0x1] }
  0x4c   : > { %v578_v26 = vadd.f32 1.0, %v5137_v8  ;;  %v3976_v43 = vpack.i.bf16 %v5248_v50, %v5242_v4  ;;  %v510_v28 = vmin.f32 %v5090_v36, 30.0  ;;  %vm842_vm8 = vweird.f32 %v621_v49 }
  0x4d   : > { %v931_v52 = vsub.f32 1.0, %v701_v55  ;;  %v5257_v47 = vmul.f32 %v929_v9, %v5039_v29  ;;  %4649 = vrcp.f32 %v5251_v12  ;;  %v596_v57 = vmul.f32 %v576_v39, %v576_v39 }
  0x4e   : > { %v4646_v41 = vpop.eup %4645  ;;  %3977 = vrot.lane.b32.xlu0 %v3976_v43, %s4901_s20  ;;  %v529_v8 = vmul.f32 1.442695, %v508_v40  ;;  %vm5267_vm9 = vcmp.eq.f32.partialorder %v846_v23, 8.507059e+37  ;;  %v849_v29 = vor.u32 1.1754944e-38, %v848_v56  ;;  %v3996_v18 = vpack.i.bf16 %v5218_v14, %v5248_v50 }
  0x4f   : > { %v5263_v51 = vmul.f32 %v931_v52, %v5042_v30  ;;  %v4648_v13 = vpop.eup %4647  ;;  %v598_v53 = vmul.f32 %v578_v26, %v578_v26  ;;  %vm872_vm10 = vweird.f32 %v5251_v12  ;;  %v876_v54 = vand.u32 2147483647, %v5251_v12 }
  0x50   : > { %v838_v30 = vmul.f32 %v4648_v13, %v621_v49  ;;  %v878_v40 = vand.u32 2147483648, %v5251_v12  ;;  %v5278_v3 = vadd.f32 1.0, %v596_v57  ;;  %v2076_v21 = vrot.slane %v5248_v50, 1 }
  0x51   : > { %v3971_v45 = vpack.i.bf16 %v5263_v51, %v5257_v47  ;;  %v5280_v19 = vadd.f32 1.0, %v598_v53  ;;  %vm843_vm11 = vweird.f32 %v4648_v13  ;;  %4651 = vpow2.f32 %v529_v8 }
  0x52   : > { %v839_v22 = vsub.f32 1.0, %v838_v30  ;;  %v533_v27 = vmul.f32 1.442695, %v510_v28  ;;  %4653 = vrcp.f32 %v5278_v3  ;;  %v773_v61 = vand.u32 2147483648, %v5278_v3  ;;  %vm5291_vm12 = vmor %vm842_vm8, %vm843_vm11 }
  0x53   : > { %3972 = vrot.lane.b32.xlu2 %v3971_v45, %s4901_s20  ;;  %v4650_v58 = vpop.eup %4649  ;;  %v2079_v46 = vrot.slane %v5218_v14, 1  ;;  %v567_v31 = vadd.f32 1.0, %v4646_v41  ;;  %v771_v35 = vand.u32 2147483647, %v5278_v3  ;;  %4655 = vrcp.f32 %v5280_v19 }
  0x54   : > { %v840_v33 = vmul.f32 %v4648_v13, %v839_v22  ;;  %v868_v34 = vmul.f32 %v4650_v58, %v5251_v12  ;;  %vm873_vm13 = vweird.f32 %v4650_v58  ;;  %vm5295_vm14 = vcmp.eq.f32.partialorder %v876_v54, 8.507059e+37 }
  0x55   : > { %v879_v20 = vor.u32 1.1754944e-38, %v878_v40  ;;  %v801_v38 = vand.u32 2147483647, %v5280_v19  ;;  %v803_v49 = vand.u32 2147483648, %v5280_v19  ;;  %4657 = vpow2.f32 %v533_v27  ;;  %vm5321_vm6 = vmor %vm872_vm10, %vm873_vm13 }
  0x56   : > { %v841_v24 = vadd.f32 %v4648_v13, %v840_v33  ;;  %3997 = vrot.lane.b32.xlu0 %v3996_v18, %s4902_s21  ;;  %v869_v32 = vsub.f32 1.0, %v868_v34  ;;  %vm767_vm15 = vweird.f32 %v5278_v3  ;;  %v774_v2 = vor.u32 1.1754944e-38, %v773_v61  ;;  %v5336_v18 = vld [vmem:[%s4999_s15 + $0x48] sm:$0xf] }
  0x57   : > { %v3991_v7 = vpack.i.bf16 %v5242_v4, %v5263_v51  ;;  %v587_v16 = vmul.f32 %v567_v31, %v567_v31  ;;  %v4652_v25 = vpop.eup %4651  ;;  %vm5311_vm0 = vcmp.eq.f32.partialorder %v771_v35, 8.507059e+37  ;;  %vm797_vm1 = vweird.f32 %v5280_v19 }
  0x58   : > { %v845_v6 = vsel %vm5291_vm12, %v4648_v13, %v841_v24  ;;  %v870_v44 = vmul.f32 %v4650_v58, %v869_v32  ;;  %v452_v23 = vunpack.c.l.bf16 %v432_v48  ;;  %v4654_v39 = vpop.eup %4653  ;;  %vm5325_vm2 = vcmp.eq.f32.partialorder %v801_v38, 8.507059e+37 }
  0x59   : > { %v850_v9 = vsel %vm5267_vm9, %v849_v29, %v845_v6  ;;  %v568_v43 = vadd.f32 1.0, %v4652_v25  ;;  %v5329_v52 = vadd.f32 1.0, %v587_v16  ;;  %v454_v41 = vunpack.c.l.bf16 %v5304_v62  ;;  %v4656_v28 = vpop.eup %4655 }
  0x5a   : > { %v851_v57 = vmul.f32 2.0, %v850_v9  ;;  %v871_v8 = vadd.f32 %v4650_v58, %v870_v44  ;;  %v763_v13 = vmul.f32 %v4654_v39, %v5278_v3  ;;  %v804_v15 = vor.u32 1.1754944e-38, %v803_v49 }
  0x5b   : > { %vm768_vm4 = vweird.f32 %v4654_v39  ;;  %v793_v12 = vmul.f32 %v4656_v28, %v5280_v19  ;;  %v588_v29 = vmul.f32 %v568_v43, %v568_v43  ;;  %4659 = vrcp.f32 %v5329_v52  ;;  %v4658_v53 = vpop.eup %4657 }
  0x5c   : > { %v941_v45 = vsub.f32 1.0, %v851_v57  ;;  %v875_v30 = vsel %vm5321_vm6, %v4650_v58, %v871_v8  ;;  %v764_v54 = vsub.f32 1.0, %v763_v13  ;;  %vm798_vm3 = vweird.f32 %v4656_v28  ;;  %vm5351_vm5 = vmor %vm767_vm15, %vm768_vm4 }
  0x5d   : > { %v880_v40 = vsel %vm5295_vm14, %v879_v20, %v875_v30  ;;  %v794_v22 = vsub.f32 1.0, %v793_v12  ;;  %v570_v27 = vadd.f32 1.0, %v4658_v53  ;;  %v5342_v61 = vadd.f32 1.0, %v588_v29  ;;  %vm5362_vm7 = vmor %vm797_vm1, %vm798_vm3 }
  0x5e   : > { %v5345_v31 = vmul.f32 %v941_v45, %v5051_v37  ;;  %v881_v33 = vmul.f32 2.0, %v880_v40  ;;  %v765_v34 = vmul.f32 %v4654_v39, %v764_v54  ;;  %v457_v35 = vunpack.c.l.bf16 %v5336_v18 }
  0x5f   : > { %v795_v11 = vmul.f32 %v4656_v28, %v794_v22  ;;  %v590_v5 = vmul.f32 %v570_v27, %v570_v27  ;;  %4661 = vrcp.f32 %v5342_v61  ;;  %v476_v20 = vmul.f32 %v5004_v0, %v452_v23 }
  0x60   : > { %v4001_v37 = vpack.i.bf16 %v5345_v31, %v5230_v63  ;;  %v943_v38 = vsub.f32 1.0, %v881_v33  ;;  %v766_v48 = vadd.f32 %v4654_v39, %v765_v34  ;;  %vm632_vm8 = vweird.f32 %v5329_v52 }
  0x61   : > { %v4660_v24 = vpop.eup %4659  ;;  %v796_v32 = vadd.f32 %v4656_v28, %v795_v11  ;;  %vm2063_vm9 = vcmask 1046528   ;;  %v5367_v49 = vadd.f32 1.0, %v590_v5  ;;  %v636_v16 = vand.u32 2147483647, %v5329_v52 }
  0x62   : > { %v638_v25 = vand.u32 2147483648, %v5329_v52  ;;  %4002 = vrot.lane.b32.xlu1 %v4001_v37, %s4902_s21  ;;  %v5373_v6 = vmul.f32 %v943_v38, %v5058_v42  ;;  %v770_v19 = vsel %vm5351_vm5, %v4654_v39, %v766_v48  ;;  %v628_v44 = vmul.f32 %v4660_v24, %v5329_v52 }
  0x63   : > { %vm633_vm10 = vweird.f32 %v4660_v24  ;;  %v775_v23 = vsel %vm5311_vm0, %v774_v2, %v770_v19  ;;  %v800_v9 = vsel %vm5362_vm7, %v4656_v28, %v796_v32  ;;  %v651_v56 = vand.u32 2147483647, %v5342_v61 }
  0x64   : > { %v653_v43 = vand.u32 2147483648, %v5342_v61  ;;  %v3986_v42 = vpack.i.bf16 %v5373_v6, %v5345_v31  ;;  %v776_v57 = vmul.f32 2.0, %v775_v23  ;;  %v805_v39 = vsel %vm5325_vm2, %v804_v15, %v800_v9  ;;  %vm5399_vm13 = vmor %vm632_vm8, %vm633_vm10  ;;  %v426_v23 = vld [vmem:[%s4999_s15 + $0x1c] sm:$0x1]  ;;  %v436_v9 = vld [vmem:[%s4999_s15 + $0x44] sm:$0x1] }
  0x65   : > { %v629_v8 = vsub.f32 1.0, %v628_v44  ;;  %v4662_v13 = vpop.eup %4661  ;;  %v806_v12 = vmul.f32 2.0, %v805_v39  ;;  %vm5388_vm11 = vcmp.eq.f32.partialorder %v636_v16, 8.507059e+37  ;;  %v639_v2 = vor.u32 1.1754944e-38, %v638_v25  ;;  %v424_v25 = vld [vmem:[%s4999_s15 + $0x14] sm:$0x1] }
  0x66   : > { %4663 = vrcp.f32 %v5367_v49  ;;  %3987 = vrot.lane.b32.xlu2 %v3986_v42, %s4901_s20  ;;  %v936_v28 = vsub.f32 1.0, %v776_v57  ;;  %v643_v53 = vmul.f32 %v4662_v13, %v5342_v61  ;;  %vm647_vm12 = vweird.f32 %v5342_v61 }
  0x67   : > { %v630_v29 = vmul.f32 %v4660_v24, %v629_v8  ;;  %v938_v26 = vsub.f32 1.0, %v806_v12  ;;  %vm5403_vm14 = vcmp.eq.f32.partialorder %v651_v56, 8.507059e+37  ;;  %v654_v30 = vor.u32 1.1754944e-38, %v653_v43 }
  0x68   : > { %v681_v54 = vand.u32 2147483647, %v5367_v49  ;;  %v5409_v40 = vmul.f32 %v936_v28, %v5067_v59  ;;  %v644_v27 = vsub.f32 1.0, %v643_v53  ;;  %vm648_vm15 = vweird.f32 %v4662_v13 }
  0x69   : > { %v631_v22 = vadd.f32 %v4660_v24, %v630_v29  ;;  %v5412_v33 = vmul.f32 %v938_v26, %v5070_v60  ;;  %vm677_vm0 = vweird.f32 %v5367_v49  ;;  %v683_v52 = vand.u32 2147483648, %v5367_v49  ;;  %vm5434_vm6 = vmor %vm647_vm12, %vm648_vm15 }
  0x6a   : > { %v478_v34 = vmul.f32 %v5004_v0, %v454_v41  ;;  %v2077_v58 = vrot.slane %v5409_v40, 1  ;;  %v645_v11 = vmul.f32 %v4662_v13, %v644_v27  ;;  %vm5422_vm1 = vcmp.eq.f32.partialorder %v681_v54, 8.507059e+37 }
  0x6b   : > { %v635_v59 = vsel %vm5399_vm13, %v4660_v24, %v631_v22  ;;  %v5427_v60 = vadd.f32 %v5009_v1, %v476_v20  ;;  %v2080_v38 = vrot.slane %v5412_v33, 1  ;;  %v481_v20 = vmul.f32 %v5004_v0, %v457_v35 }
  0x6c   : > { %v4664_v37 = vpop.eup %4663  ;;  %v640_v62 = vsel %vm5388_vm11, %v639_v2, %v635_v59  ;;  %v5439_v48 = vadd.f32 %v5009_v1, %v478_v34  ;;  %v5447_v3 = vsel %vm2063_vm9, %v2076_v21, %v2077_v58  ;;  %v646_v61 = vadd.f32 %v4662_v13, %v645_v11 }
  0x6d   : > { %v641_v24 = vmul.f32 2.0, %v640_v62  ;;  %v673_v32 = vmul.f32 %v4664_v37, %v5367_v49  ;;  %v5453_v16 = vsel %vm2063_vm9, %v2079_v46, %v2080_v38  ;;  %vm678_vm2 = vweird.f32 %v4664_v37 }
  0x6e   : > { %v520_v18 = vmin.f32 %v5427_v60, 30.0  ;;  %v522_v35 = vmin.f32 %v5439_v48, 30.0  ;;  %v5460_v19 = vpack.i.bf16 %v5453_v16, %v5447_v3  ;;  %3992 = vrot.lane.b32.xlu2 %v3991_v7, %s4902_s21  ;;  %v650_v21 = vsel %vm5434_vm6, %v4662_v13, %v646_v61  ;;  %vm5480_vm4 = vmor %vm677_vm0, %vm678_vm2 }
  0x6f   : > { %v674_v46 = vsub.f32 1.0, %v673_v32  ;;  %v927_v44 = vsub.f32 1.0, %v641_v24  ;;  %v655_v56 = vsel %vm5403_vm14, %v654_v30, %v650_v21  ;;  %v5473_v57 = vadd.f32 %v5009_v1, %v481_v20 }
  0x70   : > { %v553_v43 = vmul.f32 1.442695, %v520_v18  ;;  %v557_v42 = vmul.f32 1.442695, %v522_v35  ;;  %4022 = vrot.lane.b32.xlu1 %v5460_v19, %s4903_s22  ;;  %v656_v7 = vmul.f32 2.0, %v655_v56  ;;  %v684_v8 = vor.u32 1.1754944e-38, %v683_v52 }
  0x71   : > { %v675_v39 = vmul.f32 %v4664_v37, %v674_v46  ;;  %v444_v13 = vunpack.c.l.bf16 %v424_v25  ;;  %v525_v55 = vmin.f32 %v5473_v57, 30.0  ;;  %v446_v2 = vunpack.c.l.bf16 %v426_v23 }
  0x72   : > { %4665 = vpow2.f32 %v553_v43  ;;  %v456_v28 = vunpack.c.l.bf16 %v436_v9  ;;  %v928_v53 = vsub.f32 1.0, %v656_v7  ;;  %v5486_v26 = vmul.f32 %v927_v44, %v5077_v10 }
  0x73   : > { %v676_v29 = vadd.f32 %v4664_v37, %v675_v39  ;;  %4667 = vpow2.f32 %v557_v42  ;;  %v563_v15 = vmul.f32 1.442695, %v525_v55  ;;  %v468_v45 = vmul.f32 %v5004_v0, %v444_v13 }
  0x74   : > { %v470_v49 = vmul.f32 %v5004_v0, %v446_v2  ;;  %v480_v30 = vmul.f32 %v5004_v0, %v456_v28  ;;  %v5494_v22 = vmul.f32 %v928_v53, %v5081_v17  ;;  %v2064_v59 = vrot.slane %v5486_v26, 1 }
  0x75   : > { %v680_v54 = vsel %vm5480_vm4, %v4664_v37, %v676_v29  ;;  %4669 = vpow2.f32 %v563_v15  ;;  %v5499_v10 = vadd.f32 %v5009_v1, %v468_v45  ;;  %v2082_v13 = vrot.slane %v5230_v63, 1 }
  0x76   : > { %v685_v27 = vsel %vm5422_vm1, %v684_v8, %v680_v54  ;;  %v5502_v52 = vadd.f32 %v5009_v1, %v470_v49  ;;  %v5505_v58 = vadd.f32 %v5009_v1, %v480_v30  ;;  %v2065_v17 = vrot.slane %v5494_v22, 1 }
  0x77   : > { %v686_v34 = vmul.f32 2.0, %v685_v27  ;;  %v512_v11 = vmin.f32 %v5499_v10, 30.0  ;;  %v2067_v1 = vrot.slane %v5257_v47, 1  ;;  %v2085_v55 = vrot.slane %v5345_v31, 1 }
  0x78   : > { %v4666_v0 = vpop.eup %4665  ;;  %v514_v5 = vmin.f32 %v5502_v52, 30.0  ;;  %v524_v18 = vmin.f32 %v5505_v58, 30.0  ;;  %v2066_v25 = vsel %vm2063_vm9, %v2064_v59, %v2065_v17  ;;  %v2070_v59 = vrot.slane %v5263_v51, 1 }
  0x79   : > { %v4668_v37 = vpop.eup %4667  ;;  %v930_v38 = vsub.f32 1.0, %v686_v34  ;;  %v580_v62 = vadd.f32 1.0, %v4666_v0  ;;  %v537_v20 = vmul.f32 1.442695, %v512_v11  ;;  %vm2112_vm4 = vcmask 1045504  }
  0x7a   : > { %v582_v41 = vadd.f32 1.0, %v4668_v37  ;;  %v541_v24 = vmul.f32 1.442695, %v514_v5  ;;  %v2073_v37 = vrot.slane %v5242_v4, 1 }
  0x7b   : > { %v5512_v61 = vmul.f32 %v930_v38, %v5090_v36  ;;  %v600_v32 = vmul.f32 %v580_v62, %v580_v62  ;;  %v4670_v35 = vpop.eup %4669  ;;  %4671 = vpow2.f32 %v537_v20  ;;  %v561_v36 = vmul.f32 1.442695, %v524_v18  ;;  %v5538_v38 = vld [vmem:[%s4999_s15 + $0x4c] sm:$0x1]  ;;  %s5669_s15 = scalar_lea.vmem %s8369_s1, %s3820_s12  ;;  %s8376_s12 = smov 64  }
  0x7c   : > { %v602_v21 = vmul.f32 %v582_v41, %v582_v41  ;;  %v585_v23 = vadd.f32 1.0, %v4670_v35  ;;  %4673 = vpow2.f32 %v541_v24 }
  0x7d   : > { %v2068_v46 = vrot.slane %v5512_v61, 1  ;;  %v620_v44 = vadd.f32 1.0, %v600_v32 }
  0x7e   : > { %v622_v9 = vadd.f32 1.0, %v602_v21  ;;  %v605_v39 = vmul.f32 %v585_v23, %v585_v23 }
  0x7f   : > { %v5519_v56 = vsel %vm2063_vm9, %v2067_v1, %v2068_v46  ;;  %4675 = vrcp.f32 %v620_v44  ;;  %v831_v42 = vand.u32 2147483647, %v620_v44  ;;  %v833_v7 = vand.u32 2147483648, %v620_v44 }
  0x80   : > { %v4011_v43 = vpack.i.bf16 %v5519_v56, %v2066_v25  ;;  %4677 = vrcp.f32 %v622_v9  ;;  %v5525_v2 = vadd.f32 1.0, %v605_v39  ;;  %vm827_vm3 = vweird.f32 %v620_v44 }
  0x81   : > { %v4672_v8 = vpop.eup %4671  ;;  %4679 = vpow2.f32 %v561_v36  ;;  %vm5527_vm5 = vcmp.eq.f32.partialorder %v831_v42, 8.507059e+37  ;;  %vm857_vm7 = vweird.f32 %v622_v9  ;;  %v834_v45 = vor.u32 1.1754944e-38, %v833_v7 }
  0x82   : > { %4012 = vrot.lane.b32.xlu0 %v4011_v43, %s4903_s22  ;;  %v4674_v12 = vpop.eup %4673  ;;  %v572_v28 = vadd.f32 1.0, %v4672_v8  ;;  %v861_v49 = vand.u32 2147483647, %v622_v9  ;;  %v863_v30 = vand.u32 2147483648, %v622_v9  ;;  %4681 = vrcp.f32 %v5525_v2 }
  0x83   : > { %v574_v53 = vadd.f32 1.0, %v4674_v12  ;;  %v906_v11 = vand.u32 2147483647, %v5525_v2  ;;  %v908_v5 = vand.u32 2147483648, %v5525_v2  ;;  %vm902_vm12 = vweird.f32 %v5525_v2 }
  0x84   : > { %v592_v34 = vmul.f32 %v572_v28, %v572_v28  ;;  %vm5552_vm11 = vcmp.eq.f32.partialorder %v861_v49, 8.507059e+37  ;;  %v864_v18 = vor.u32 1.1754944e-38, %v863_v30  ;;  %v458_v25 = vunpack.c.l.bf16 %v5538_v38  ;;  %v5724_v38 = vld [vmem:[%s8373_s5] ss:$0 sm:$0xff] }
  0x85   : > { %v4676_v15 = vpop.eup %4675  ;;  %v594_v0 = vmul.f32 %v574_v53, %v574_v53  ;;  %vm5564_vm14 = vcmp.eq.f32.partialorder %v906_v11, 8.507059e+37  ;;  %v909_v39 = vor.u32 1.1754944e-38, %v908_v5  ;;  %v2131_v28 = vrot.slane %v5230_v63, 2 }
  0x86   : > { %v4678_v54 = vpop.eup %4677  ;;  %v823_v27 = vmul.f32 %v4676_v15, %v620_v44  ;;  %vm828_vm8 = vweird.f32 %v4676_v15  ;;  %v5540_v41 = vadd.f32 1.0, %v592_v34  ;;  %v2134_v53 = vrot.slane %v5345_v31, 2 }
  0x87   : > { %v853_v17 = vmul.f32 %v4678_v54, %v622_v9  ;;  %v5542_v20 = vadd.f32 1.0, %v594_v0  ;;  %v5550_v24 = vpop.eup %4679  ;;  %vm858_vm10 = vweird.f32 %v4678_v54  ;;  %vm5560_vm13 = vmor %vm827_vm3, %vm828_vm8  ;;  %v2113_v9 = vrot.slane %v5486_v26, 2 }
  0x88   : > { %v824_v62 = vsub.f32 1.0, %v823_v27  ;;  %4683 = vrcp.f32 %v5540_v41  ;;  %v4682_v21 = vpop.eup %4681  ;;  %v711_v43 = vand.u32 2147483647, %v5540_v41  ;;  %vm5571_vm15 = vmor %vm857_vm7, %vm858_vm10  ;;  %v713_v8 = vand.u32 2147483648, %v5540_v41 }
  0x89   : > { %v854_v1 = vsub.f32 1.0, %v853_v17  ;;  %4685 = vrcp.f32 %v5542_v20  ;;  %v898_v44 = vmul.f32 %v4682_v21, %v5525_v2  ;;  %vm903_vm0 = vweird.f32 %v4682_v21 }
  0x8a   : > { %v825_v35 = vmul.f32 %v4676_v15, %v824_v62  ;;  %vm707_vm1 = vweird.f32 %v5540_v41  ;;  %vm5593_vm6 = vcmp.eq.f32.partialorder %v711_v43, 8.507059e+37  ;;  %vm737_vm2 = vweird.f32 %v5542_v20  ;;  %vm5604_vm3 = vmor %vm902_vm12, %vm903_vm0 }
  0x8b   : > { %v855_v23 = vmul.f32 %v4678_v54, %v854_v1  ;;  %v899_v30 = vsub.f32 1.0, %v898_v44  ;;  %v714_v62 = vor.u32 1.1754944e-38, %v713_v8  ;;  %v743_v32 = vand.u32 2147483648, %v5542_v20 }
  0x8c   : > { %v826_v42 = vadd.f32 %v4676_v15, %v825_v35  ;;  %v741_v35 = vand.u32 2147483647, %v5542_v20  ;;  %v2114_v43 = vrot.slane %v5494_v22, 2  ;;  %v2116_v2 = vrot.slane %v5257_v47, 2 }
  0x8d   : > { %v856_v12 = vadd.f32 %v4678_v54, %v855_v23  ;;  %v900_v5 = vmul.f32 %v4682_v21, %v899_v30 }
  0x8e   : > { %v830_v49 = vsel %vm5560_vm13, %v4676_v15, %v826_v42  ;;  %v4684_v17 = vpop.eup %4683  ;;  %vm5623_vm8 = vcmp.eq.f32.partialorder %v741_v35, 8.507059e+37  ;;  %v2117_v35 = vrot.slane %v5512_v61, 2 }
  0x8f   : > { %v835_v27 = vsel %vm5527_vm5, %v834_v45, %v830_v49  ;;  %v860_v34 = vsel %vm5571_vm15, %v4678_v54, %v856_v12  ;;  %v4686_v29 = vpop.eup %4685  ;;  %v703_v1 = vmul.f32 %v4684_v17, %v5540_v41  ;;  %v901_v46 = vadd.f32 %v4682_v21, %v900_v5 }
  0x90   : > { %v836_v11 = vmul.f32 2.0, %v835_v27  ;;  %v865_v15 = vsel %vm5552_vm11, %v864_v18, %v860_v34  ;;  %v733_v23 = vmul.f32 %v4686_v29, %v5542_v20  ;;  %vm708_vm5 = vweird.f32 %v4684_v17 }
  0x91   : > { %v866_v45 = vmul.f32 2.0, %v865_v15  ;;  %v704_v7 = vsub.f32 1.0, %v703_v1  ;;  %v905_v8 = vsel %vm5604_vm3, %v4682_v21, %v901_v46  ;;  %vm738_vm7 = vweird.f32 %v4686_v29  ;;  %vm5629_vm10 = vmor %vm707_vm1, %vm708_vm5 }
  0x92   : > { %v940_v18 = vsub.f32 1.0, %v836_v11  ;;  %v734_v12 = vsub.f32 1.0, %v733_v23  ;;  %v910_v22 = vsel %vm5564_vm14, %v909_v39, %v905_v8  ;;  %v744_v15 = vor.u32 1.1754944e-38, %v743_v32  ;;  %vm5635_vm11 = vmor %vm737_vm2, %vm738_vm7 }
  0x93   : > { %v942_v42 = vsub.f32 1.0, %v866_v45  ;;  %v705_v30 = vmul.f32 %v4684_v17, %v704_v7  ;;  %v2126_v46 = vrot.slane %v5409_v40, 2  ;;  %v2129_v7 = vrot.slane %v5412_v33, 2 }
  0x94   : > { %v960_v44 = vmul.f32 %v940_v18, %v5427_v60  ;;  %v911_v60 = vmul.f32 2.0, %v910_v22  ;;  %v735_v11 = vmul.f32 %v4686_v29, %v734_v12  ;;  %v2125_v18 = vrot.slane %v5248_v50, 2  ;;  %v967_v12 = vld [vmem:[%s5669_s15] sm:$0xf] }
  0x95   : > { %v962_v49 = vmul.f32 %v942_v42, %v5439_v48  ;;  %v706_v48 = vadd.f32 %v4684_v17, %v705_v30  ;;  %v2128_v42 = vrot.slane %v5218_v14, 2  ;;  %v584_v8 = vadd.f32 1.0, %v5550_v24 }
  0x96   : > { %v2083_v34 = vrot.slane %v960_v44, 1  ;;  %v2132_v39 = vrot.slane %v960_v44, 2  ;;  %v945_v54 = vsub.f32 1.0, %v911_v60  ;;  %v736_v1 = vadd.f32 %v4686_v29, %v735_v11 }
  0x97   : > { %v2086_v5 = vrot.slane %v962_v49, 1  ;;  %v2135_v45 = vrot.slane %v962_v49, 2  ;;  %v710_v32 = vsel %vm5629_vm10, %v4684_v17, %v706_v48  ;;  %v5703_v33 = vsel %vm2112_vm4, %v2125_v18, %v2126_v46 }
  0x98   : > { %v5643_v41 = vsel %vm2063_vm9, %v2082_v13, %v2083_v34  ;;  %v5660_v23 = vmul.f32 %v945_v54, %v5473_v57  ;;  %v715_v61 = vsel %vm5593_vm6, %v714_v62, %v710_v32  ;;  %v5676_v57 = vsel %vm2112_vm4, %v2131_v28, %v2132_v39  ;;  %v969_v34 = vld [vmem:[%s5669_s15 + $0x8] sm:$0xf]  ;;  %v975_v54 = vld [vmem:[%s5669_s15 + $0x20] sm:$0xf] }
  0x99   : > { %v5649_v20 = vsel %vm2063_vm9, %v2085_v55, %v2086_v5  ;;  %v740_v55 = vsel %vm5635_vm11, %v4686_v29, %v736_v1  ;;  %v716_v40 = vmul.f32 2.0, %v715_v61  ;;  %v5681_v0 = vsel %vm2112_vm4, %v2134_v53, %v2135_v45 }
  0x9a   : > { %v5657_v13 = vpack.i.bf16 %v5649_v20, %v5643_v41  ;;  %v745_v17 = vsel %vm5623_vm8, %v744_v15, %v740_v55  ;;  %v4006_v62 = vpack.i.bf16 %v5660_v23, %v5373_v6  ;;  %v2115_v28 = vsel %vm2112_vm4, %v2113_v9, %v2114_v43  ;;  %v5708_v9 = vld [vmem:[%s8372_s4] ss:$0 sm:$0xff] }
  0x9b   : > { %v746_v29 = vmul.f32 2.0, %v745_v17  ;;  %v932_v44 = vsub.f32 1.0, %v716_v40  ;;  %v5693_v53 = vsel %vm2112_vm4, %v2116_v2, %v2117_v35  ;;  %v5700_v22 = vpack.i.bf16 %v5681_v0, %v5676_v57  ;;  %v977_v17 = vld [vmem:[%s5669_s15 + $0x28] sm:$0xf] }
  0x9c   : > { %4027 = vrot.lane.b32.xlu1 %v5657_v13, %s4903_s22  ;;  %4007 = vrot.lane.b32.xlu2 %v4006_v62, %s4902_s21  ;;  %v482_v24 = vmul.f32 %v5708_v9, %v458_v25  ;;  %v2119_v2 = vrot.slane %v5263_v51, 2  ;;  %v2122_v30 = vrot.slane %v5242_v4, 2  ;;  %v604_v27 = vmul.f32 %v584_v8, %v584_v8 }
  0x9d   : > { %v934_v49 = vsub.f32 1.0, %v746_v29  ;;  %v952_v43 = vmul.f32 %v932_v44, %v5499_v10  ;;  %v5719_v21 = vsel %vm2112_vm4, %v2128_v42, %v2129_v7  ;;  %v987_v10 = vunpack.c.l.bf16 %v967_v12  ;;  %v979_v44 = vld [vmem:[%s5669_s15 + $0x30] sm:$0xf] }
  0x9e   : > { %v5727_v25 = vadd.f32 %v5724_v38, %v482_v24  ;;  %v4031_v15 = vpack.i.bf16 %v5693_v53, %v2115_v28  ;;  %v5730_v48 = vadd.f32 1.0, %v604_v27  ;;  %v989_v45 = vunpack.c.l.bf16 %v969_v34  ;;  %v981_v28 = vld [vmem:[%s5669_s15 + $0x38] sm:$0xf] }
  0x9f   : > { %v954_v60 = vmul.f32 %v934_v49, %v5502_v52  ;;  %v2071_v11 = vrot.slane %v952_v43, 1  ;;  %v2120_v5 = vrot.slane %v952_v43, 2  ;;  %v5741_v35 = vpack.i.bf16 %v5719_v21, %v5703_v33 }
  0xa0   : > { %v526_v39 = vmin.f32 %v5727_v25, 30.0  ;;  %v4061_v32 = vpack.i.bf16 %v5643_v41, %v5453_v16  ;;  %4687 = vrcp.f32 %v5730_v48  ;;  %v1007_v61 = vmul.f32 %v5708_v9, %v987_v10  ;;  %v971_v10 = vld [vmem:[%s5669_s15 + $0x10] sm:$0xf] }
  0xa1   : > { %v2074_v36 = vrot.slane %v954_v60, 1  ;;  %v2123_v52 = vrot.slane %v954_v60, 2  ;;  %v5737_v1 = vsel %vm2063_vm9, %v2070_v59, %v2071_v11  ;;  %v5752_v59 = vsel %vm2112_vm4, %v2119_v2, %v2120_v5 }
  0xa2   : > { %v2187_v40 = vrot.slane %v5373_v6, 1  ;;  %v995_v62 = vunpack.c.l.bf16 %v975_v54  ;;  %vm887_vm12 = vweird.f32 %v5730_v48  ;;  %v4081_v29 = vpack.i.bf16 %v5676_v57, %v5719_v21  ;;  %v973_v54 = vld [vmem:[%s5669_s15 + $0x18] sm:$0xf] }
  0xa3   : > { %v2075_v18 = vsel %vm2063_vm9, %v2073_v37, %v2074_v36  ;;  %v5755_v46 = vsel %vm2112_vm4, %v2122_v30, %v2123_v52  ;;  %v2214_v37 = vrot.slane %v5373_v6, 2  ;;  %v565_v42 = vmul.f32 1.442695, %v526_v39 }
  0xa4   : > { %4047 = vrot.lane.b32.xlu1 %v5700_v22, %s4904_s23  ;;  %v5759_v55 = vpack.i.bf16 %v2075_v18, %v5737_v1  ;;  %4032 = vrot.lane.b32.xlu2 %v4031_v15, %s4904_s23  ;;  %v1009_v7 = vmul.f32 %v5708_v9, %v989_v45  ;;  %v4056_v8 = vpack.i.bf16 %v5447_v3, %v2075_v18  ;;  %v891_v49 = vand.u32 2147483647, %v5730_v48 }
  0xa5   : > { %v5776_v12 = vpack.i.bf16 %v5755_v46, %v5752_v59  ;;  %v893_v24 = vand.u32 2147483648, %v5730_v48  ;;  %4689 = vpow2.f32 %v565_v42  ;;  %v5781_v43 = vadd.f32 %v5724_v38, %v1007_v61 }
  0xa6   : > { %4017 = vrot.lane.b32.xlu0 %v5759_v55, %s4903_s22  ;;  %v5784_v2 = vadd.f32 %v5724_v38, %v1009_v7  ;;  %v4688_v30 = vpop.eup %4687  ;;  %v997_v27 = vunpack.c.l.bf16 %v977_v17  ;;  %v1015_v3 = vmul.f32 %v5708_v9, %v995_v62  ;;  %v999_v34 = vunpack.c.l.bf16 %v979_v44 }
  0xa7   : > { %v1001_v60 = vunpack.c.l.bf16 %v981_v28  ;;  %v883_v11 = vmul.f32 %v4688_v30, %v5730_v48  ;;  %vm888_vm13 = vweird.f32 %v4688_v30  ;;  %v1047_v15 = vmin.f32 %v5781_v43, 30.0 }
  0xa8   : > { %v1049_v5 = vmin.f32 %v5784_v2, 30.0  ;;  %v1017_v36 = vmul.f32 %v5708_v9, %v997_v27  ;;  %v5793_v52 = vadd.f32 %v5724_v38, %v1015_v3  ;;  %v1019_v39 = vmul.f32 %v5708_v9, %v999_v34  ;;  %vm5819_vm15 = vmor %vm887_vm12, %vm888_vm13 }
  0xa9   : > { %v1021_v45 = vmul.f32 %v5708_v9, %v1001_v60  ;;  %v884_v18 = vsub.f32 1.0, %v883_v11  ;;  %v1067_v61 = vmul.f32 1.442695, %v1047_v15  ;;  %v991_v62 = vunpack.c.l.bf16 %v971_v10 }
  0xaa   : > { %v1071_v17 = vmul.f32 1.442695, %v1049_v5  ;;  %v4071_v42 = vpack.i.bf16 %v5752_v59, %v5693_v53  ;;  %v5802_v7 = vadd.f32 %v5724_v38, %v1017_v36  ;;  %v1055_v44 = vmin.f32 %v5793_v52, 30.0 }
  0xab   : > { %v5806_v28 = vadd.f32 %v5724_v38, %v1019_v39  ;;  %v4690_v27 = vpop.eup %4689  ;;  %vm5810_vm14 = vcmp.eq.f32.partialorder %v891_v49, 8.507059e+37  ;;  %4691 = vpow2.f32 %v1067_v61  ;;  %v993_v34 = vunpack.c.l.bf16 %v973_v54 }
  0xac   : > { %4057 = vrot.lane.b32.xlu1 %v4056_v8, %s4905_s8  ;;  %4037 = vrot.lane.b32.xlu2 %v5776_v12, %s4904_s23  ;;  %v885_v8 = vmul.f32 %v4688_v30, %v884_v18  ;;  %v894_v59 = vor.u32 1.1754944e-38, %v893_v24  ;;  %v586_v60 = vadd.f32 1.0, %v4690_v27  ;;  %v5824_v10 = vadd.f32 %v5724_v38, %v1021_v45 }
  0xad   : > { %v1011_v49 = vmul.f32 %v5708_v9, %v991_v62  ;;  %4693 = vpow2.f32 %v1071_v17  ;;  %v1057_v15 = vmin.f32 %v5802_v7, 30.0  ;;  %v1083_v5 = vmul.f32 1.442695, %v1055_v44 }
  0xae   : > { %4042 = vrot.lane.b32.xlu0 %v5741_v35, %s4904_s23  ;;  %v886_v11 = vadd.f32 %v4688_v30, %v885_v8  ;;  %v4051_v36 = vpack.i.bf16 %v5737_v1, %v5519_v56  ;;  %v606_v48 = vmul.f32 %v586_v60, %v586_v60  ;;  %v1059_v39 = vmin.f32 %v5806_v28, 30.0 }
  0xaf   : > { %v1013_v54 = vmul.f32 %v5708_v9, %v993_v34  ;;  %v4076_v45 = vpack.i.bf16 %v5703_v33, %v5755_v46  ;;  %4695 = vpow2.f32 %v1083_v5  ;;  %v1087_v18 = vmul.f32 1.442695, %v1057_v15 }
  0xb0   : > { %v890_v24 = vsel %vm5819_vm15, %v4688_v30, %v886_v11  ;;  %v5838_v17 = vadd.f32 1.0, %v606_v48  ;;  %v1061_v56 = vmin.f32 %v5824_v10, 30.0  ;;  %v5843_v30 = vadd.f32 %v5724_v38, %v1011_v49 }
  0xb1   : > { %v895_v61 = vsel %vm5810_vm14, %v894_v59, %v890_v24  ;;  %v4692_v1 = vpop.eup %4691  ;;  %4697 = vpow2.f32 %v1087_v18  ;;  %v1091_v33 = vmul.f32 1.442695, %v1059_v39  ;;  %v5847_v46 = vadd.f32 %v5724_v38, %v1013_v54 }
  0xb2   : > { %v896_v62 = vmul.f32 2.0, %v895_v61  ;;  %4699 = vrcp.f32 %v5838_v17  ;;  %v1107_v8 = vadd.f32 1.0, %v4692_v1  ;;  %v923_v3 = vand.u32 2147483648, %v5838_v17 }
  0xb3   : > { %v4694_v44 = vpop.eup %4693  ;;  %v2267_v34 = vrot.slane %v5660_v23, 1  ;;  %v1095_v59 = vmul.f32 1.442695, %v1061_v56  ;;  %vm917_vm0 = vweird.f32 %v5838_v17  ;;  %v1051_v16 = vmin.f32 %v5843_v30, 30.0 }
  0xb4   : > { %4072 = vrot.lane.b32.xlu1 %v4071_v42, %s4906_s10  ;;  %4062 = vrot.lane.b32.xlu2 %v4061_v32, %s4905_s8  ;;  %v944_v27 = vsub.f32 1.0, %v896_v62  ;;  %v921_v42 = vand.u32 2147483647, %v5838_v17  ;;  %v1109_v53 = vadd.f32 1.0, %v4694_v44  ;;  %v1127_v11 = vmul.f32 %v1107_v8, %v1107_v8 }
  0xb5   : > { %v4696_v60 = vpop.eup %4695  ;;  %4701 = vpow2.f32 %v1091_v33  ;;  %v1053_v15 = vmin.f32 %v5847_v46, 30.0  ;;  %v924_v24 = vor.u32 1.1754944e-38, %v923_v3 }
  0xb6   : > { %4052 = vrot.lane.b32.xlu0 %v4051_v36, %s4905_s8  ;;  %v964_v49 = vmul.f32 %v944_v27, %v5505_v58  ;;  %v1129_v41 = vmul.f32 %v1109_v53, %v1109_v53  ;;  %v1115_v32 = vadd.f32 1.0, %v4696_v60  ;;  %vm5861_vm1 = vcmp.eq.f32.partialorder %v921_v42, 8.507059e+37 }
  0xb7   : > { %v4698_v5 = vpop.eup %4697  ;;  %v5865_v54 = vadd.f32 1.0, %v1127_v11  ;;  %4703 = vpow2.f32 %v1095_v59  ;;  %v1075_v42 = vmul.f32 1.442695, %v1051_v16  ;;  %v1079_v59 = vmul.f32 1.442695, %v1053_v15 }
  0xb8   : > { %v2188_v36 = vrot.slane %v964_v49, 1  ;;  %v2215_v48 = vrot.slane %v964_v49, 2  ;;  %v4700_v58 = vpop.eup %4699  ;;  %v5867_v18 = vadd.f32 1.0, %v1129_v41  ;;  %v1117_v61 = vadd.f32 1.0, %v4698_v5 }
  0xb9   : > { %v913_v62 = vmul.f32 %v4700_v58, %v5838_v17  ;;  %v1135_v33 = vmul.f32 %v1115_v32, %v1115_v32  ;;  %4705 = vrcp.f32 %v5865_v54  ;;  %vm918_vm6 = vweird.f32 %v4700_v58 }
  0xba   : > { %v5872_v56 = vsel %vm2063_vm9, %v2187_v40, %v2188_v36  ;;  %v5877_v1 = vsel %vm2112_vm4, %v2214_v37, %v2215_v48  ;;  %v1176_v6 = vand.u32 2147483647, %v5865_v54  ;;  %4707 = vrcp.f32 %v5867_v18  ;;  %vm5897_vm2 = vmor %vm917_vm0, %vm918_vm6 }
  0xbb   : > { %v4066_v44 = vpack.i.bf16 %v5872_v56, %v5649_v20  ;;  %v4086_v27 = vpack.i.bf16 %v5877_v1, %v5681_v0  ;;  %v914_v40 = vsub.f32 1.0, %v913_v62  ;;  %v4702_v37 = vpop.eup %4701  ;;  %v2294_v20 = vrot.slane %v5660_v23, 2 }
  0xbc   : > { %4077 = vrot.lane.b32.xlu2 %v4076_v45, %s4906_s10  ;;  %v1178_v0 = vand.u32 2147483648, %v5865_v54  ;;  %v1137_v8 = vmul.f32 %v1117_v61, %v1117_v61  ;;  %v1206_v53 = vand.u32 2147483647, %v5867_v18  ;;  %v5893_v45 = vadd.f32 1.0, %v1135_v33 }
  0xbd   : > { %4087 = vrot.lane.b32.xlu1 %v4086_v27, %s4906_s10  ;;  %v915_v3 = vmul.f32 %v4700_v58, %v914_v40  ;;  %v4704_v60 = vpop.eup %4703  ;;  %vm1172_vm3 = vweird.f32 %v5865_v54  ;;  %v1208_v11 = vand.u32 2147483648, %v5867_v18  ;;  %4709 = vpow2.f32 %v1075_v42 }
  0xbe   : > { %4067 = vrot.lane.b32.xlu0 %v4066_v44, %s4905_s8  ;;  %v5903_v16 = vadd.f32 1.0, %v1137_v8  ;;  %vm5905_vm5 = vcmp.eq.f32.partialorder %v1176_v6, 8.507059e+37  ;;  %vm1202_vm7 = vweird.f32 %v5867_v18  ;;  %4711 = vrcp.f32 %v5893_v45 }
  0xbf   : > { %v916_v41 = vadd.f32 %v4700_v58, %v915_v3  ;;  %v4706_v17 = vpop.eup %4705  ;;  %v1179_v15 = vor.u32 1.1754944e-38, %v1178_v0  ;;  %v1296_v5 = vand.u32 2147483647, %v5893_v45  ;;  %v1119_v36 = vadd.f32 1.0, %v4702_v37 }
  0xc0   : > { %4713 = vrcp.f32 %v5903_v16  ;;  %v4708_v48 = vpop.eup %4707  ;;  %v1168_v62 = vmul.f32 %v4706_v17, %v5865_v54  ;;  %vm5916_vm8 = vcmp.eq.f32.partialorder %v1206_v53, 8.507059e+37  ;;  %v1298_v44 = vand.u32 2147483648, %v5893_v45 }
  0xc1   : > { %v920_v61 = vsel %vm5897_vm2, %v4700_v58, %v916_v41  ;;  %v1198_v42 = vmul.f32 %v4708_v48, %v5867_v18  ;;  %v1209_v40 = vor.u32 1.1754944e-38, %v1208_v11  ;;  %vm1292_vm10 = vweird.f32 %v5893_v45 }
  0xc2   : > { %v925_v27 = vsel %vm5861_vm1, %v924_v24, %v920_v61  ;;  %v1169_v6 = vsub.f32 1.0, %v1168_v62  ;;  %vm1173_vm11 = vweird.f32 %v4706_v17  ;;  %vm1322_vm12 = vweird.f32 %v5903_v16 }
  0xc3   : > { %v926_v58 = vmul.f32 2.0, %v925_v27  ;;  %v1326_v37 = vand.u32 2147483647, %v5903_v16  ;;  %v4710_v0 = vpop.eup %4709  ;;  %v1199_v39 = vsub.f32 1.0, %v1198_v42  ;;  %vm1203_vm13 = vweird.f32 %v4708_v48  ;;  %vm5945_vm15 = vmor %vm1172_vm3, %vm1173_vm11 }
  0xc4   : > { %4102 = vrot.lane.b32.xlu2 %v5657_v13, %s4907_s11  ;;  %vm5935_vm14 = vcmp.eq.f32.partialorder %v1296_v5, 8.507059e+37  ;;  %v1121_v24 = vadd.f32 1.0, %v4704_v60  ;;  %v1139_v8 = vmul.f32 %v1119_v36, %v1119_v36  ;;  %v4712_v3 = vpop.eup %4711  ;;  %v1170_v49 = vmul.f32 %v4706_v17, %v1169_v6  ;;  %vm5954_vm0 = vmor %vm1202_vm7, %vm1203_vm13 }
  0xc5   : > { %4097 = vrot.lane.b32.xlu1 %v5460_v19, %s4907_s11  ;;  %v946_v53 = vsub.f32 1.0, %v926_v58  ;;  %v1299_v11 = vor.u32 1.1754944e-38, %v1298_v44  ;;  %v1328_v41 = vand.u32 2147483648, %v5903_v16  ;;  %v1200_v57 = vmul.f32 %v4708_v48, %v1199_v39 }
  0xc6   : > { %4082 = vrot.lane.b32.xlu0 %v4081_v29, %s4906_s10  ;;  %v5940_v61 = vpop.eup %4713  ;;  %v1288_v21 = vmul.f32 %v4712_v3, %v5893_v45  ;;  %v1141_v29 = vmul.f32 %v1121_v24, %v1121_v24  ;;  %4715 = vpow2.f32 %v1079_v59  ;;  %v1171_v5 = vadd.f32 %v4706_v17, %v1170_v49 }
  0xc7   : > { %v966_v60 = vmul.f32 %v946_v53, %v5727_v25  ;;  %vm1293_vm1 = vweird.f32 %v4712_v3  ;;  %v1318_v54 = vmul.f32 %v5940_v61, %v5903_v16  ;;  %v1201_v62 = vadd.f32 %v4708_v48, %v1200_v57 }
  0xc8   : > { %v1289_v44 = vsub.f32 1.0, %v1288_v21  ;;  %v5960_v27 = vadd.f32 1.0, %v1139_v8  ;;  %v5962_v42 = vadd.f32 1.0, %v1141_v29  ;;  %v1175_v58 = vsel %vm5945_vm15, %v4706_v17, %v1171_v5  ;;  %vm5978_vm6 = vmor %vm1292_vm10, %vm1293_vm1 }
  0xc9   : > { %v2268_v59 = vrot.slane %v966_v60, 1  ;;  %v2295_v25 = vrot.slane %v966_v60, 2  ;;  %v1319_v18 = vsub.f32 1.0, %v1318_v54  ;;  %v1180_v6 = vsel %vm5905_vm5, %v1179_v15, %v1175_v58 }
  0xca   : > { %v1205_v39 = vsel %vm5954_vm0, %v4708_v48, %v1201_v62  ;;  %v1290_v24 = vmul.f32 %v4712_v3, %v1289_v44  ;;  %4717 = vrcp.f32 %v5960_v27  ;;  %v1181_v8 = vmul.f32 2.0, %v1180_v6 }
  0xcb   : > { %v1210_v53 = vsel %vm5916_vm8, %v1209_v40, %v1205_v39  ;;  %vm1323_vm2 = vweird.f32 %v5940_v61  ;;  %vm5983_vm3 = vcmp.eq.f32.partialorder %v1326_v37, 8.507059e+37  ;;  %v1329_v33 = vor.u32 1.1754944e-38, %v1328_v41 }
  0xcc   : > { %4117 = vrot.lane.b32.xlu2 %v5741_v35, %s8376_s12  ;;  %v4716_v15 = vpop.eup %4715  ;;  %v2269_v35 = vsel %vm2063_vm9, %v2267_v34, %v2268_v59  ;;  %v1211_v45 = vmul.f32 2.0, %v1210_v53  ;;  %v1291_v48 = vadd.f32 %v4712_v3, %v1290_v24  ;;  %v2296_v40 = vsel %vm2112_vm4, %v2294_v20, %v2295_v25  ;;  %vm6004_vm5 = vmor %vm1322_vm12, %vm1323_vm2  ;;  %v972_v34 = vld [vmem:[%s5669_s15 + $0x14] sm:$0x1] }
  0xcd   : > { %4112 = vrot.lane.b32.xlu1 %v5776_v12, %s8376_s12  ;;  %v1467_v37 = vsub.f32 1.0, %v1181_v8  ;;  %v1320_v49 = vmul.f32 %v5940_v61, %v1319_v18  ;;  %v1111_v19 = vadd.f32 1.0, %v4710_v0  ;;  %v1356_v23 = vand.u32 2147483647, %v5960_v27  ;;  %v974_v18 = vld [vmem:[%s5669_s15 + $0x1c] sm:$0x1] }
  0xce   : > { %4092 = vrot.lane.b32.xlu0 %v5759_v55, %s4907_s11  ;;  %v1469_v57 = vsub.f32 1.0, %v1211_v45  ;;  %v1295_v55 = vsel %vm5978_vm6, %v4712_v3, %v1291_v48  ;;  %4719 = vrcp.f32 %v5962_v42  ;;  %v4106_v20 = vpack.i.bf16 %v2269_v35, %v5872_v56 }
  0xcf   : > { %v6013_v0 = vmul.f32 %v1467_v37, %v5781_v43  ;;  %v1300_v3 = vsel %vm5935_vm14, %v1299_v11, %v1295_v55  ;;  %v1321_v41 = vadd.f32 %v5940_v61, %v1320_v49  ;;  %v4126_v21 = vpack.i.bf16 %v2296_v40, %v5877_v1 }
  0xd0   : > { %v4718_v16 = vpop.eup %4717  ;;  %v6020_v29 = vmul.f32 %v1469_v57, %v5784_v2  ;;  %v1301_v60 = vmul.f32 2.0, %v1300_v3  ;;  %v1358_v5 = vand.u32 2147483648, %v5960_v27  ;;  %vm1352_vm7 = vweird.f32 %v5960_v27  ;;  %v976_v57 = vld [vmem:[%s5669_s15 + $0x24] sm:$0x1] }
  0xd1   : > { %v1325_v56 = vsel %vm6004_vm5, %v5940_v61, %v1321_v41  ;;  %v1348_v43 = vmul.f32 %v4718_v16, %v5960_v27  ;;  %v992_v13 = vunpack.c.l.bf16 %v972_v34  ;;  %vm6032_vm8 = vcmp.eq.f32.partialorder %v1356_v23, 8.507059e+37  ;;  %v980_v23 = vld [vmem:[%s5669_s15 + $0x34] sm:$0x1] }
  0xd2   : > { %v4131_v11 = vpack.i.bf16 %v6020_v29, %v6013_v0  ;;  %v1330_v2 = vsel %vm5983_vm3, %v1329_v33, %v1325_v56  ;;  %v1475_v1 = vsub.f32 1.0, %v1301_v60  ;;  %vm1353_vm10 = vweird.f32 %v4718_v16 }
  0xd3   : > { %v1331_v54 = vmul.f32 2.0, %v1330_v2  ;;  %v1349_v62 = vsub.f32 1.0, %v1348_v43  ;;  %v1113_v61 = vadd.f32 1.0, %v4716_v15  ;;  %v1359_v59 = vor.u32 1.1754944e-38, %v1358_v5  ;;  %vm6049_vm12 = vmor %vm1352_vm7, %vm1353_vm10 }
  0xd4   : > { %v4720_v44 = vpop.eup %4719  ;;  %vm1382_vm11 = vweird.f32 %v5962_v42  ;;  %v1386_v25 = vand.u32 2147483647, %v5962_v42  ;;  %v1131_v58 = vmul.f32 %v1111_v19, %v1111_v19  ;;  %4132 = vrot.lane.b32.xlu2 %v4131_v11, %s8378_s13  ;;  %v6043_v39 = vmul.f32 %v1475_v1, %v5793_v52 }
  0xd5   : > { %4127 = vrot.lane.b32.xlu1 %v4126_v21, %s8376_s12  ;;  %v1477_v6 = vsub.f32 1.0, %v1331_v54  ;;  %v1350_v24 = vmul.f32 %v4718_v16, %v1349_v62  ;;  %v1378_v8 = vmul.f32 %v4720_v44, %v5962_v42  ;;  %vm1383_vm13 = vweird.f32 %v4720_v44 }
  0xd6   : > { %4107 = vrot.lane.b32.xlu0 %v4106_v20, %s4907_s11  ;;  %8523 = vst [vmem:[#allocation2_spill] sm:$0xff] %v6043_v39  ;;  %v1388_v32 = vand.u32 2147483648, %v5962_v42  ;;  %v1133_v17 = vmul.f32 %v1113_v61, %v1113_v61  ;;  %v6054_v15 = vadd.f32 1.0, %v1131_v58  ;;  %v994_v48 = vunpack.c.l.bf16 %v974_v18  ;;  %vm6077_vm14 = vmor %vm1382_vm11, %vm1383_vm13  ;;  %v978_v20 = vld [vmem:[%s5669_s15 + $0x2c] sm:$0x1] }
  0xd7   : > { %v6057_v52 = vmul.f32 %v1477_v6, %v5802_v7  ;;  %v1351_v35 = vadd.f32 %v4718_v16, %v1350_v24  ;;  %v1379_v45 = vsub.f32 1.0, %v1378_v8  ;;  %v1012_v40 = vmul.f32 %v5708_v9, %v992_v13  ;;  %v968_v8 = vld [vmem:[%s5669_s15 + $0x4] sm:$0x1] }
  0xd8   : > { %v6059_v33 = vadd.f32 1.0, %v1133_v17  ;;  %4721 = vrcp.f32 %v6054_v15  ;;  %v1236_v27 = vand.u32 2147483647, %v6054_v15  ;;  %v1238_v19 = vand.u32 2147483648, %v6054_v15  ;;  %v970_v17 = vld [vmem:[%s5669_s15 + $0xc] sm:$0x1] }
  0xd9   : > { %8526 = vst [vmem:[#allocation3_spill] sm:$0xff] %v6057_v52  ;;  %v6066_v37 = vpack.i.bf16 %v6057_v52, %v6043_v39  ;;  %v1355_v7 = vsel %vm6049_vm12, %v4718_v16, %v1351_v35  ;;  %v1380_v49 = vmul.f32 %v4720_v44, %v1379_v45  ;;  %vm6081_vm15 = vcmp.eq.f32.partialorder %v1386_v25, 8.507059e+37 }
  0xda   : > { %v1360_v55 = vsel %vm6032_vm8, %v1359_v59, %v1355_v7  ;;  %v1389_v34 = vor.u32 1.1754944e-38, %v1388_v32  ;;  %4723 = vrcp.f32 %v6059_v33  ;;  %vm1232_vm0 = vweird.f32 %v6054_v15 }
  0xdb   : > { %8527 = vst [vmem:[#allocation4_spill] sm:$0xff] %v6066_v37  ;;  %v1361_v3 = vmul.f32 2.0, %v1360_v55  ;;  %v1381_v41 = vadd.f32 %v4720_v44, %v1380_v49  ;;  %v1266_v16 = vand.u32 2147483647, %v6059_v33  ;;  %vm1262_vm1 = vweird.f32 %v6059_v33 }
  0xdc   : > { %v1014_v42 = vmul.f32 %v5708_v9, %v994_v48  ;;  %v6096_v21 = vadd.f32 %v5724_v38, %v1012_v40  ;;  %v996_v60 = vunpack.c.l.bf16 %v976_v57  ;;  %vm6100_vm6 = vcmp.eq.f32.partialorder %v1236_v27, 8.507059e+37 }
  0xdd   : > { %4142 = vrot.lane.b32.xlu1 %v6066_v37, %s8378_s13  ;;  %v1385_v5 = vsel %vm6077_vm14, %v4720_v44, %v1381_v41  ;;  %v1479_v56 = vsub.f32 1.0, %v1361_v3  ;;  %v998_v13 = vunpack.c.l.bf16 %v978_v20  ;;  %v1268_v1 = vand.u32 2147483648, %v6059_v33 }
  0xde   : > { %4122 = vrot.lane.b32.xlu0 %v5700_v22, %s8376_s12  ;;  %v1239_v22 = vor.u32 1.1754944e-38, %v1238_v19  ;;  %v4722_v11 = vpop.eup %4721  ;;  %v1390_v2 = vsel %vm6081_vm15, %v1389_v34, %v1385_v5  ;;  %v6108_v36 = vadd.f32 %v5724_v38, %v1014_v42  ;;  %v1052_v54 = vmin.f32 %v6096_v21, 30.0  ;;  %s3915_s12 = smul.u32 20, %s8758_s17  ;;  %s8699_s17 = smov 72  }
  0xdf   : > { %v1391_v62 = vmul.f32 2.0, %v1390_v2  ;;  %v6112_v61 = vmul.f32 %v1479_v56, %v5806_v28  ;;  %v1228_v44 = vmul.f32 %v4722_v11, %v6054_v15  ;;  %vm1233_vm2 = vweird.f32 %v4722_v11  ;;  %v982_v15 = vld [vmem:[%s5669_s15 + $0x3c] sm:$0x1] }
  0xe0   : > { %vm6115_vm3 = vcmp.eq.f32.partialorder %v1266_v16, 8.507059e+37  ;;  %v4724_v25 = vpop.eup %4723  ;;  %v1054_v58 = vmin.f32 %v6108_v36, 30.0  ;;  %v1077_v18 = vmul.f32 1.442695, %v1052_v54  ;;  %v1016_v6 = vmul.f32 %v5708_v9, %v996_v60  ;;  %vm6137_vm7 = vmor %vm1232_vm0, %vm1233_vm2 }
  0xe1   : > { %8534 = vst [vmem:[#allocation5_spill] sm:$0xff] %v6112_v61  ;;  %v1018_v24 = vmul.f32 %v5708_v9, %v998_v13  ;;  %v1481_v53 = vsub.f32 1.0, %v1391_v62  ;;  %v1229_v32 = vsub.f32 1.0, %v1228_v44  ;;  %v1258_v28 = vmul.f32 %v4724_v25, %v6059_v33 }
  0xe2   : > { %vm1263_vm5 = vweird.f32 %v4724_v25  ;;  %4725 = vpow2.f32 %v1077_v18  ;;  %v1081_v35 = vmul.f32 1.442695, %v1054_v58  ;;  %v6126_v45 = vadd.f32 %v5724_v38, %v1016_v6 }
  0xe3   : > { %v6129_v48 = vadd.f32 %v5724_v38, %v1018_v24  ;;  %v6132_v27 = vmul.f32 %v1481_v53, %v5824_v10  ;;  %v1230_v40 = vmul.f32 %v4722_v11, %v1229_v32  ;;  %v1259_v7 = vsub.f32 1.0, %v1258_v28  ;;  %vm6153_vm8 = vmor %vm1262_vm1, %vm1263_vm5 }
  0xe4   : > { %v988_v49 = vunpack.c.l.bf16 %v968_v8  ;;  %4727 = vpow2.f32 %v1081_v35  ;;  %v1056_v57 = vmin.f32 %v6126_v45, 30.0  ;;  %v990_v12 = vunpack.c.l.bf16 %v970_v17 }
  0xe5   : > { %8537 = vst [vmem:[#allocation6_spill] sm:$0xff] %v6132_v27  ;;  %v1058_v55 = vmin.f32 %v6129_v48, 30.0  ;;  %v6146_v10 = vpack.i.bf16 %v6132_v27, %v6112_v61  ;;  %v1231_v34 = vadd.f32 %v4722_v11, %v1230_v40  ;;  %v1260_v20 = vmul.f32 %v4724_v25, %v1259_v7 }
  0xe6   : > { %v1008_v3 = vmul.f32 %v5708_v9, %v988_v49  ;;  %v1269_v16 = vor.u32 1.1754944e-38, %v1268_v1  ;;  %v1085_v42 = vmul.f32 1.442695, %v1056_v57  ;;  %v1010_v5 = vmul.f32 %v5708_v9, %v990_v12 }
  0xe7   : > { %v1089_v60 = vmul.f32 1.442695, %v1058_v55  ;;  %4147 = vrot.lane.b32.xlu2 %v6146_v10, %s8378_s13  ;;  %v1235_v56 = vsel %vm6137_vm7, %v4722_v11, %v1231_v34  ;;  %v1261_v13 = vadd.f32 %v4724_v25, %v1260_v20  ;;  %v1000_v33 = vunpack.c.l.bf16 %v980_v23 }
  0xe8   : > { %v6163_v2 = vadd.f32 %v5724_v38, %v1008_v3  ;;  %v4726_v54 = vpop.eup %4725  ;;  %v1240_v62 = vsel %vm6100_vm6, %v1239_v22, %v1235_v56  ;;  %4729 = vpow2.f32 %v1085_v42  ;;  %v6168_v1 = vadd.f32 %v5724_v38, %v1010_v5 }
  0xe9   : > { %v1002_v44 = vunpack.c.l.bf16 %v982_v15  ;;  %v1241_v58 = vmul.f32 2.0, %v1240_v62  ;;  %v1265_v18 = vsel %vm6153_vm8, %v4724_v25, %v1261_v13  ;;  %v1112_v6 = vadd.f32 1.0, %v4726_v54 }
  0xea   : > { %v4728_v11 = vpop.eup %4727  ;;  %v1270_v24 = vsel %vm6115_vm3, %v1269_v16, %v1265_v18  ;;  %4731 = vpow2.f32 %v1089_v60  ;;  %v1048_v8 = vmin.f32 %v6163_v2, 30.0  ;;  %v1050_v28 = vmin.f32 %v6168_v1, 30.0 }
  0xeb   : > { %v1271_v53 = vmul.f32 2.0, %v1270_v24  ;;  %v1471_v43 = vsub.f32 1.0, %v1241_v58  ;;  %v1114_v22 = vadd.f32 1.0, %v4728_v11  ;;  %v1132_v32 = vmul.f32 %v1112_v6, %v1112_v6 }
  0xec   : > { %v1069_v17 = vmul.f32 1.442695, %v1048_v8  ;;  %v1020_v35 = vmul.f32 %v5708_v9, %v1000_v33  ;;  %v1022_v40 = vmul.f32 %v5708_v9, %v1002_v44  ;;  %v1073_v34 = vmul.f32 1.442695, %v1050_v28 }
  0xed   : > { %v1473_v25 = vsub.f32 1.0, %v1271_v53  ;;  %v6179_v7 = vmul.f32 %v1471_v43, %v5843_v30  ;;  %v1134_v59 = vmul.f32 %v1114_v22, %v1114_v22  ;;  %v1152_v49 = vadd.f32 1.0, %v1132_v32 }
  0xee   : > { %v4730_v19 = vpop.eup %4729  ;;  %4733 = vpow2.f32 %v1069_v17  ;;  %v6185_v20 = vadd.f32 %v5724_v38, %v1020_v35  ;;  %v6188_v9 = vadd.f32 %v5724_v38, %v1022_v40  ;;  %v2373_v41 = vrot.slane %v6043_v39, 1 }
  0xef   : > { %8542 = vst [vmem:[#allocation7_spill] sm:$0xff] %v6179_v7  ;;  %v6182_v57 = vmul.f32 %v1473_v25, %v5847_v46  ;;  %v1154_v55 = vadd.f32 1.0, %v1134_v59  ;;  %4735 = vrcp.f32 %v1152_v49  ;;  %v1116_v23 = vadd.f32 1.0, %v4730_v19 }
  0xf0   : > { %v4732_v12 = vpop.eup %4731  ;;  %v1251_v3 = vand.u32 2147483647, %v1152_v49  ;;  %vm1247_vm10 = vweird.f32 %v1152_v49  ;;  %v1060_v42 = vmin.f32 %v6185_v20, 30.0  ;;  %v1062_v38 = vmin.f32 %v6188_v9, 30.0 }
  0xf1   : > { %8543 = vst [vmem:[#allocation8_spill] sm:$0xff] %v6182_v57  ;;  %v6192_v30 = vpack.i.bf16 %v6182_v57, %v6179_v7  ;;  %4737 = vrcp.f32 %v1154_v55  ;;  %v1118_v46 = vadd.f32 1.0, %v4732_v12  ;;  %v1136_v15 = vmul.f32 %v1116_v23, %v1116_v23 }
  0xf2   : > { %4739 = vpow2.f32 %v1073_v34  ;;  %v1253_v5 = vand.u32 2147483648, %v1152_v49  ;;  %v2367_v56 = vrot.slane %v6179_v7, 1  ;;  %vm6200_vm11 = vcmp.eq.f32.partialorder %v1251_v3, 8.507059e+37 }
  0xf3   : > { %8544 = vst [vmem:[#allocation9_spill] sm:$0xff] %v6192_v30  ;;  %4137 = vrot.lane.b32.xlu0 %v6192_v30, %s8378_s13  ;;  %v1138_v13 = vmul.f32 %v1118_v46, %v1118_v46  ;;  %v1156_v33 = vadd.f32 1.0, %v1136_v15  ;;  %vm1277_vm12 = vweird.f32 %v1154_v55  ;;  %v1281_v44 = vand.u32 2147483647, %v1154_v55  ;;  %s6489_s13 = sadd.s32 %s3915_s12, %s4993_s9 }
  0xf4   : > { %v4734_v16 = vpop.eup %4733  ;;  %v1283_v18 = vand.u32 2147483648, %v1154_v55  ;;  %v1093_v53 = vmul.f32 1.442695, %v1060_v42  ;;  %v1254_v43 = vor.u32 1.1754944e-38, %v1253_v5  ;;  %v2370_v22 = vrot.slane %v6182_v57, 1  ;;  %s3821_s9 = sshll.u32 %s6489_s13, 2 }
  0xf5   : > { %v4736_v60 = vpop.eup %4735  ;;  %v6204_v6 = vadd.f32 1.0, %v1138_v13  ;;  %4741 = vrcp.f32 %v1156_v33  ;;  %v1108_v11 = vadd.f32 1.0, %v4734_v16  ;;  %v1311_v32 = vand.u32 2147483647, %v1156_v33  ;;  %s6533_s12 = scalar_lea.vmem %s8370_s2, %s3821_s9 }
  0xf6   : > { %v1243_v54 = vmul.f32 %v4736_v60, %v1152_v49  ;;  %vm1248_vm13 = vweird.f32 %v4736_v60  ;;  %vm6208_vm15 = vcmp.eq.f32.partialorder %v1281_v44, 8.507059e+37  ;;  %v1284_v59 = vor.u32 1.1754944e-38, %v1283_v18 }
  0xf7   : > { %v4738_v58 = vpop.eup %4737  ;;  %4743 = vrcp.f32 %v6204_v6  ;;  %vm6213_vm0 = vmor %vm1247_vm10, %vm1248_vm13  ;;  %v1128_v12 = vmul.f32 %v1108_v11, %v1108_v11  ;;  %v1097_v23 = vmul.f32 1.442695, %v1062_v38  ;;  %vm1307_vm1 = vweird.f32 %v1156_v33 }
  0xf8   : > { %v1244_v24 = vsub.f32 1.0, %v1243_v54  ;;  %v1273_v8 = vmul.f32 %v4738_v58, %v1154_v55  ;;  %v4740_v28 = vpop.eup %4739  ;;  %vm1278_vm14 = vweird.f32 %v4738_v58  ;;  %4745 = vpow2.f32 %v1093_v53 }
  0xf9   : > { %v1110_v19 = vadd.f32 1.0, %v4740_v28  ;;  %vm6218_vm6 = vmor %vm1277_vm12, %vm1278_vm14  ;;  %vm6222_vm2 = vcmp.eq.f32.partialorder %v1311_v32, 8.507059e+37  ;;  %v1313_v16 = vand.u32 2147483648, %v1156_v33  ;;  %v6226_v5 = vadd.f32 1.0, %v1128_v12 }
  0xfa   : > { %v1245_v17 = vmul.f32 %v4736_v60, %v1244_v24  ;;  %v1274_v35 = vsub.f32 1.0, %v1273_v8  ;;  %v1341_v44 = vand.u32 2147483647, %v6204_v6  ;;  %vm1337_vm5 = vweird.f32 %v6204_v6 }
  0xfb   : > { %v4742_v46 = vpop.eup %4741  ;;  %v1130_v42 = vmul.f32 %v1110_v19, %v1110_v19  ;;  %4747 = vrcp.f32 %v6226_v5  ;;  %v1343_v62 = vand.u32 2147483648, %v6204_v6  ;;  %v1314_v19 = vor.u32 1.1754944e-38, %v1313_v16 }
  0xfc   : > { %v1246_v34 = vadd.f32 %v4736_v60, %v1245_v17  ;;  %v1275_v3 = vmul.f32 %v4738_v58, %v1274_v35  ;;  %v1303_v54 = vmul.f32 %v4742_v46, %v1156_v33  ;;  %vm1308_vm3 = vweird.f32 %v4742_v46 }
  0xfd   : > { %v4744_v55 = vpop.eup %4743  ;;  %v6233_v11 = vadd.f32 1.0, %v1130_v42  ;;  %vm6245_vm8 = vmor %vm1307_vm1, %vm1308_vm3  ;;  %vm6249_vm10 = vcmp.eq.f32.partialorder %v1341_v44, 8.507059e+37  ;;  %v1344_v42 = vor.u32 1.1754944e-38, %v1343_v62  ;;  %vm1187_vm12 = vweird.f32 %v6226_v5 }
  0xfe   : > { %v1250_v38 = vsel %vm6213_vm0, %v4736_v60, %v1246_v34  ;;  %v1276_v13 = vadd.f32 %v4738_v58, %v1275_v3  ;;  %v1304_v53 = vsub.f32 1.0, %v1303_v54  ;;  %v1333_v60 = vmul.f32 %v4744_v55, %v6204_v6 }
  0xff   : > { %v1255_v18 = vsel %vm6200_vm11, %v1254_v43, %v1250_v38  ;;  %vm1338_vm7 = vweird.f32 %v4744_v55  ;;  %v4746_v43 = vpop.eup %4745  ;;  %4749 = vrcp.f32 %v6233_v11  ;;  %vm1217_vm14 = vweird.f32 %v6233_v11 }
 0x100   : > { %v1256_v24 = vmul.f32 2.0, %v1255_v18  ;;  %v1280_v8 = vsel %vm6218_vm6, %v4738_v58, %v1276_v13  ;;  %v1305_v35 = vmul.f32 %v4742_v46, %v1304_v53  ;;  %v1334_v25 = vsub.f32 1.0, %v1333_v60  ;;  %vm6261_vm11 = vmor %vm1337_vm5, %vm1338_vm7  ;;  %v6276_v53 = vpop.permute.xlu2 %3972 }
 0x101   : > { %v1285_v32 = vsel %vm6208_vm15, %v1284_v59, %v1280_v8  ;;  %v1193_v59 = vand.u32 2147483648, %v6226_v5  ;;  %v4748_v33 = vpop.eup %4747  ;;  %4751 = vpow2.f32 %v1097_v23  ;;  %v1120_v38 = vadd.f32 1.0, %v4746_v43 }
 0x102   : > { %v1286_v28 = vmul.f32 2.0, %v1285_v32  ;;  %v1472_v17 = vsub.f32 1.0, %v1256_v24  ;;  %v1306_v3 = vadd.f32 %v4742_v46, %v1305_v35  ;;  %v1335_v15 = vmul.f32 %v4744_v55, %v1334_v25 }
 0x103   : > { %v1183_v18 = vmul.f32 %v4748_v33, %v6226_v5  ;;  %v1191_v24 = vand.u32 2147483647, %v6226_v5  ;;  %v1194_v8 = vor.u32 1.1754944e-38, %v1193_v59  ;;  %vm1188_vm13 = vweird.f32 %v4748_v33 }
 0x104   : > { %v1474_v12 = vsub.f32 1.0, %v1286_v28  ;;  %v6256_v34 = vmul.f32 %v1472_v17, %v6096_v21  ;;  %v1310_v54 = vsel %vm6245_vm8, %v4742_v46, %v1306_v3  ;;  %v1336_v44 = vadd.f32 %v4744_v55, %v1335_v15  ;;  %vm6308_vm15 = vmor %vm1187_vm12, %vm1188_vm13 }
 0x105   : > { %v1315_v6 = vsel %vm6222_vm2, %v1314_v19, %v1310_v54  ;;  %v4750_v60 = vpop.eup %4749  ;;  %v1184_v62 = vsub.f32 1.0, %v1183_v18  ;;  %v1221_v43 = vand.u32 2147483647, %v6233_v11  ;;  %v1223_v19 = vand.u32 2147483648, %v6233_v11 }
 0x106   : > { %8559 = vst [vmem:[#allocation10_spill] sm:$0xff] %v6256_v34  ;;  %v6267_v13 = vmul.f32 %v1474_v12, %v6108_v36  ;;  %v8382_v21 = vrot.slane %v6256_v34, 1  ;;  %v1316_v46 = vmul.f32 2.0, %v1315_v6  ;;  %v1340_v49 = vsel %vm6261_vm11, %v4744_v55, %v1336_v44 }
 0x107   : > { %v1345_v32 = vsel %vm6249_vm10, %v1344_v42, %v1340_v49  ;;  %v1213_v35 = vmul.f32 %v4750_v60, %v6233_v11  ;;  %v4752_v55 = vpop.eup %4751  ;;  %v1185_v58 = vmul.f32 %v4748_v33, %v1184_v62  ;;  %vm1218_vm0 = vweird.f32 %v4750_v60 }
 0x108   : > { %v6283_v36 = vsel %vm2063_vm9, %v2367_v56, %v8382_v21  ;;  %v8383_v23 = vrot.slane %v6267_v13, 1  ;;  %v1346_v28 = vmul.f32 2.0, %v1345_v32  ;;  %v1476_v17 = vsub.f32 1.0, %v1316_v46  ;;  %vm6326_vm2 = vmor %vm1217_vm14, %vm1218_vm0 }
 0x109   : > { %v1214_v12 = vsub.f32 1.0, %v1213_v35  ;;  %v2376_v3 = vrot.slane %v6057_v52, 1  ;;  %v1186_v15 = vadd.f32 %v4748_v33, %v1185_v58  ;;  %vm1192_vm1 = vcmp.eq.f32.partialorder %v1191_v24, 8.507059e+37  ;;  %v6347_v35 = vpop.permute.xlu2 %3987 }
 0x10a   : > { %v6296_v56 = vsel %vm2063_vm9, %v2370_v22, %v8383_v23  ;;  %v1478_v40 = vsub.f32 1.0, %v1346_v28  ;;  %v6304_v59 = vmul.f32 %v1476_v17, %v6126_v45  ;;  %vm6314_vm6 = vcmp.eq.f32.partialorder %v1221_v43, 8.507059e+37 }
 0x10b   : > { %v4156_v25 = vpack.i.bf16 %v6296_v56, %v6283_v36  ;;  %v1215_v42 = vmul.f32 %v4750_v60, %v1214_v12  ;;  %v1122_v54 = vadd.f32 1.0, %v4752_v55  ;;  %v1190_v44 = vsel %vm6308_vm15, %v4748_v33, %v1186_v15 }
 0x10c   : > { %v6319_v45 = vmul.f32 %v1478_v40, %v6129_v48  ;;  %v8385_v5 = vrot.slane %v6304_v59, 1  ;;  %v1224_v18 = vor.u32 1.1754944e-38, %v1223_v19  ;;  %v2415_v24 = vrot.slane %v6179_v7, 2 }
 0x10d   : > { %4157 = vrot.lane.b32.xlu1 %v4156_v25, %s4910_s14  ;;  %v1140_v46 = vmul.f32 %v1120_v38, %v1120_v38  ;;  %v1195_v33 = vsel %vm1192_vm1, %v1194_v8, %v1190_v44  ;;  %v1216_v32 = vadd.f32 %v4750_v60, %v1215_v42  ;;  %v2416_v62 = vrot.slane %v6256_v34, 2  ;;  %v983_v42 = vld [vmem:[%s5669_s15 + $0x40] sm:$0xf] }
 0x10e   : > { %8566 = vst [vmem:[#allocation11_spill] sm:$0xff] %v6319_v45  ;;  %v6336_v48 = vsel %vm2063_vm9, %v2373_v41, %v8385_v5  ;;  %v8380_v49 = vrot.slane %v6319_v45, 1  ;;  %v1196_v11 = vmul.f32 2.0, %v1195_v33  ;;  %v1142_v43 = vmul.f32 %v1122_v54, %v1122_v54  ;;  %v6555_v5 = vld [vmem:[%s6533_s12] sm:$0xf] }
 0x10f   : > { %v1160_v28 = vadd.f32 1.0, %v1140_v46  ;;  %v1220_v17 = vsel %vm6326_vm2, %v4750_v60, %v1216_v32  ;;  %v2418_v41 = vrot.slane %v6182_v57, 2  ;;  %v2419_v8 = vrot.slane %v6267_v13, 2 }
 0x110   : > { %v6343_v38 = vsel %vm2063_vm9, %v2376_v3, %v8380_v49  ;;  %v1225_v25 = vsel %vm6314_vm6, %v1224_v18, %v1220_v17  ;;  %v1468_v58 = vsub.f32 1.0, %v1196_v11  ;;  %v6355_v19 = vadd.f32 1.0, %v1142_v43 }
 0x111   : > { %v4161_v55 = vpack.i.bf16 %v6343_v38, %v6336_v48  ;;  %v1226_v40 = vmul.f32 2.0, %v1225_v25  ;;  %4753 = vrcp.f32 %v1160_v28  ;;  %v2361_v22 = vrot.slane %v6013_v0, 1 }
 0x112   : > { %v1488_v60 = vmul.f32 %v1468_v58, %v6163_v2  ;;  %4755 = vrcp.f32 %v6355_v19  ;;  %v2409_v3 = vrot.slane %v6013_v0, 2  ;;  %v6363_v15 = vsel %vm2112_vm4, %v2415_v24, %v2416_v62 }
 0x113   : > { %4162 = vrot.lane.b32.xlu2 %v4161_v55, %s4910_s14  ;;  %v1470_v12 = vsub.f32 1.0, %v1226_v40  ;;  %v6366_v16 = vsel %vm2112_vm4, %v2418_v41, %v2419_v8  ;;  %v2364_v2 = vrot.slane %v6020_v29, 1  ;;  %v2412_v18 = vrot.slane %v6020_v29, 2  ;;  %v6384_v40 = vpop.permute.xlu2 %3992 }
 0x114   : > { %v2362_v54 = vrot.slane %v1488_v60, 1  ;;  %v2410_v44 = vrot.slane %v1488_v60, 2  ;;  %v4176_v46 = vpack.i.bf16 %v6366_v16, %v6363_v15  ;;  %v1003_v33 = vunpack.c.l.bf16 %v983_v42 }
 0x115   : > { %v1490_v6 = vmul.f32 %v1470_v12, %v6168_v1  ;;  %vm1367_vm3 = vweird.f32 %v1160_v28  ;;  %v1371_v41 = vand.u32 2147483647, %v1160_v28  ;;  %v1373_v1 = vand.u32 2147483648, %v1160_v28 }
 0x116   : > { %v2363_v24 = vsel %vm2063_vm9, %v2361_v22, %v2362_v54  ;;  %v2411_v11 = vsel %vm2112_vm4, %v2409_v3, %v2410_v44  ;;  %v1403_v58 = vand.u32 2147483648, %v6355_v19  ;;  %vm1397_vm7 = vweird.f32 %v6355_v19  ;;  %v984_v54 = vld [vmem:[%s5669_s15 + $0x44] sm:$0x1] }
 0x117   : > { %v4754_v0 = vpop.eup %4753  ;;  %v2365_v32 = vrot.slane %v1490_v6, 1  ;;  %v2413_v62 = vrot.slane %v1490_v6, 2  ;;  %v1401_v42 = vand.u32 2147483647, %v6355_v19  ;;  %v985_v6 = vld [vmem:[%s5669_s15 + $0x48] sm:$0xf] }
 0x118   : > { %v4756_v43 = vpop.eup %4755  ;;  %v1363_v17 = vmul.f32 %v4754_v0, %v1160_v28  ;;  %vm1368_vm5 = vweird.f32 %v4754_v0  ;;  %vm6401_vm11 = vcmp.eq.f32.partialorder %v1371_v41, 8.507059e+37  ;;  %v4191_v28 = vpack.i.bf16 %v6179_v7, %v6020_v29 }
 0x119   : > { %v6377_v8 = vsel %vm2063_vm9, %v2364_v2, %v2365_v32  ;;  %v6380_v55 = vsel %vm2112_vm4, %v2412_v18, %v2413_v62  ;;  %v1393_v25 = vmul.f32 %v4756_v43, %v6355_v19  ;;  %vm1398_vm8 = vweird.f32 %v4756_v43  ;;  %vm6397_vm10 = vmor %vm1367_vm3, %vm1368_vm5 }
 0x11a   : > { %v4151_v60 = vpack.i.bf16 %v6377_v8, %v2363_v24  ;;  %v4171_v22 = vpack.i.bf16 %v6380_v55, %v2411_v11  ;;  %v1364_v12 = vsub.f32 1.0, %v1363_v17  ;;  %v1404_v32 = vor.u32 1.1754944e-38, %v1403_v58  ;;  %vm6407_vm12 = vmor %vm1397_vm7, %vm1398_vm8  ;;  %v6416_v17 = vld [vmem:[%s8372_s4] ss:$0 sm:$0xff] }
 0x11b   : > { %4177 = vrot.lane.b32.xlu2 %v4176_v46, %s4911_s16  ;;  %v1394_v3 = vsub.f32 1.0, %v1393_v25  ;;  %v1374_v46 = vor.u32 1.1754944e-38, %v1373_v1  ;;  %v1023_v41 = vmul.f32 %v6416_v17, %v1003_v33  ;;  %v1004_v1 = vunpack.c.l.bf16 %v984_v54  ;;  %v6430_v58 = vld [vmem:[%s8373_s5] ss:$0 sm:$0xff]  ;;  %v6442_v54 = vpop.permute.xlu1 %3982  ;;  %v6456_v18 = vpop.permute.xlu2 %4007 }
 0x11c   : > { %4152 = vrot.lane.b32.xlu0 %v4151_v60, %s4910_s14  ;;  %4172 = vrot.lane.b32.xlu1 %v4171_v22, %s4911_s16  ;;  %v1365_v44 = vmul.f32 %v4754_v0, %v1364_v12  ;;  %vm1402_vm13 = vcmp.eq.f32.partialorder %v1401_v42, 8.507059e+37  ;;  %v1005_v25 = vunpack.c.l.bf16 %v985_v6  ;;  %8576 = vst [vmem:[#allocation12_spill] sm:$0xff] %v6456_v18  ;;  %vm2562_vm14 = vcmask 64512  }
 0x11d   : > { %v1395_v24 = vmul.f32 %v4756_v43, %v1394_v3  ;;  %v6433_v33 = vadd.f32 %v6430_v58, %v1023_v41  ;;  %v1024_v60 = vmul.f32 %v6416_v17, %v1004_v1  ;;  %vm2571_vm15 = vcmask 130048  }
 0x11e   : > { %v1366_v11 = vadd.f32 %v4754_v0, %v1365_v44  ;;  %v1025_v3 = vmul.f32 %v6416_v17, %v1005_v25  ;;  %v6444_v44 = vpop.permute.xlu0 %3977  ;;  %v4231_v30 = vpack.i.bf16 %v6363_v15, %v6380_v55  ;;  %vm2580_vm6 = vcmask 195584  }
 0x11f   : > { %v1396_v19 = vadd.f32 %v4756_v43, %v1395_v24  ;;  %v1063_v6 = vmin.f32 %v6433_v33, 30.0  ;;  %v6448_v2 = vadd.f32 %v6430_v58, %v1024_v60  ;;  %v2382_v60 = vrot.slane %v6132_v27, 1 }
 0x120   : > { %v1370_v29 = vsel %vm6397_vm10, %v4754_v0, %v1366_v11 }
 0x121   : > { %v1375_v22 = vsel %vm6401_vm11, %v1374_v46, %v1370_v29  ;;  %v1400_v12 = vsel %vm6407_vm12, %v4756_v43, %v1396_v19  ;;  %v6459_v46 = vadd.f32 %v6430_v58, %v1025_v3  ;;  %v1064_v11 = vmin.f32 %v6448_v2, 30.0 }
 0x122   : > { %v1376_v42 = vmul.f32 2.0, %v1375_v22  ;;  %v1405_v0 = vsel %vm1402_vm13, %v1404_v32, %v1400_v12  ;;  %v1099_v32 = vmul.f32 1.442695, %v1063_v6  ;;  %v2427_v19 = vrot.slane %v6112_v61, 2 }
 0x123   : > { %4192 = vrot.lane.b32.xlu2 %v4191_v28, %s4912_s19  ;;  %v1406_v43 = vmul.f32 2.0, %v1405_v0  ;;  %8577 = vst [vmem:[#allocation13_spill] sm:$0xff] %v6459_v46  ;;  %v2379_v28 = vrot.slane %v6112_v61, 1  ;;  %v1065_v41 = vmin.f32 %v6459_v46, 30.0  ;;  %v1101_v25 = vmul.f32 1.442695, %v1064_v11 }
 0x124   : > { %v1480_v24 = vsub.f32 1.0, %v1376_v42  ;;  %4757 = vpow2.f32 %v1099_v32  ;;  %v2430_v22 = vrot.slane %v6132_v27, 2 }
 0x125   : > { %v1482_v62 = vsub.f32 1.0, %v1406_v43  ;;  %v1103_v12 = vmul.f32 1.442695, %v1065_v41  ;;  %4759 = vpow2.f32 %v1101_v25  ;;  %v2421_v43 = vrot.slane %v6043_v39, 2 }
 0x126   : > { %v6465_v1 = vmul.f32 %v1480_v24, %v6185_v20  ;;  %v2422_v24 = vrot.slane %v6304_v59, 2 }
 0x127   : > { %v6470_v29 = vmul.f32 %v1482_v62, %v6188_v9  ;;  %4761 = vpow2.f32 %v1103_v12  ;;  %v2424_v62 = vrot.slane %v6057_v52, 2  ;;  %v6505_v12 = vpop.permute.xlu1 %4002 }
 0x128   : > { %8578 = vst [vmem:[#allocation14_spill] sm:$0xff] %v6465_v1  ;;  %v8381_v3 = vrot.slane %v6465_v1, 1  ;;  %v2428_v42 = vrot.slane %v6465_v1, 2 }
 0x129   : > { %v8384_v20 = vrot.slane %v6470_v29, 1  ;;  %v2431_v0 = vrot.slane %v6470_v29, 2 }
 0x12a   : > { %v6481_v9 = vsel %vm2063_vm9, %v2379_v28, %v8381_v3  ;;  %v6484_v6 = vsel %vm2112_vm4, %v2427_v19, %v2428_v42  ;;  %v2425_v28 = vrot.slane %v6319_v45, 2  ;;  %v4758_v41 = vpop.eup %4757  ;;  %v6507_v42 = vpop.permute.xlu0 %3997 }
 0x12b   : > { %v6494_v32 = vsel %vm2063_vm9, %v2382_v60, %v8384_v20  ;;  %v6497_v11 = vsel %vm2112_vm4, %v2430_v22, %v2431_v0  ;;  %v1123_v49 = vadd.f32 1.0, %v4758_v41  ;;  %v6512_v3 = vpop.permute.xlu2 %4032  ;;  %v4760_v21 = vpop.eup %4759  ;;  %v6521_v60 = vsel %vm2112_vm4, %v2421_v43, %v2422_v24  ;;  %v6550_v43 = vld [vmem:[%s5669_s15 + $0x4c] sm:$0x1]  ;;  %s4913_s15 = smov 104  }
 0x12c   : > { %v4166_v19 = vpack.i.bf16 %v6494_v32, %v6481_v9  ;;  %v4186_v25 = vpack.i.bf16 %v6497_v11, %v6484_v6  ;;  %v6524_v41 = vsel %vm2112_vm4, %v2424_v62, %v2425_v28  ;;  %v1124_v23 = vadd.f32 1.0, %v4760_v21 }
 0x12d   : > { %v4762_v22 = vpop.eup %4761  ;;  %v1143_v7 = vmul.f32 %v1123_v49, %v1123_v49  ;;  %v4201_v21 = vpack.i.bf16 %v6112_v61, %v6057_v52  ;;  %v4181_v62 = vpack.i.bf16 %v6524_v41, %v6521_v60  ;;  %v4196_v28 = vpack.i.bf16 %v6043_v39, %v6182_v57  ;;  %v6562_v57 = vld [vmem:[%s6533_s12 + $0x8] sm:$0xf] }
 0x12e   : > { %4167 = vrot.lane.b32.xlu0 %v4166_v19, %s4910_s14  ;;  %4187 = vrot.lane.b32.xlu1 %v4186_v25, %s4911_s16  ;;  %v1125_v45 = vadd.f32 1.0, %v4762_v22  ;;  %v4216_v25 = vpack.i.bf16 %v6336_v48, %v6296_v56  ;;  %v1144_v24 = vmul.f32 %v1124_v23, %v1124_v23  ;;  %v4035_v61 = vunpack.i.h.bf16 %v6512_v3 }
 0x12f   : > { %v6539_v49 = vadd.f32 1.0, %v1143_v7  ;;  %v4023_v39 = vpop.permute.xlu1 %4022  ;;  %v4034_v18 = vunpack.i.l.bf16 %v6512_v3 }
 0x130   : > { %v1145_v20 = vmul.f32 %v1125_v45, %v1125_v45  ;;  %v1006_v45 = vunpack.c.l.bf16 %v6550_v43  ;;  %v6572_v34 = vadd.f32 1.0, %v1144_v24  ;;  %v4025_v43 = vunpack.i.h.bf16 %v4023_v39 }
 0x131   : > { %4763 = vrcp.f32 %v6539_v49  ;;  %v1416_v52 = vand.u32 2147483647, %v6539_v49  ;;  %vm1412_vm0 = vweird.f32 %v6539_v49  ;;  %v1418_v0 = vand.u32 2147483648, %v6539_v49 }
 0x132   : > { %v4013_v22 = vpop.permute.xlu0 %4012  ;;  %v6574_v3 = vadd.f32 1.0, %v1145_v20  ;;  %4765 = vrcp.f32 %v6572_v34  ;;  %v4024_v23 = vunpack.i.l.bf16 %v4023_v39  ;;  %v1431_v15 = vand.u32 2147483647, %v6572_v34 }
 0x133   : > { %v4015_v7 = vunpack.i.h.bf16 %v4013_v22  ;;  %v4014_v19 = vunpack.i.l.bf16 %v4013_v22  ;;  %v4038_v1 = vpop.permute.xlu2 %4037  ;;  %vm6593_vm1 = vcmp.eq.f32.partialorder %v1416_v52, 8.507059e+37  ;;  %v1433_v55 = vand.u32 2147483648, %v6572_v34 }
 0x134   : > { %4767 = vrcp.f32 %v6574_v3  ;;  %v4039_v39 = vunpack.i.l.bf16 %v4038_v1  ;;  %v1419_v46 = vor.u32 1.1754944e-38, %v1418_v0  ;;  %vm1427_vm5 = vweird.f32 %v6572_v34 }
 0x135   : > { %vm6630_vm7 = vcmp.eq.f32.partialorder %v1431_v15, 8.507059e+37  ;;  %vm1442_vm10 = vweird.f32 %v6574_v3 }
 0x136   : > { %4182 = vrot.lane.b32.xlu0 %v4181_v62, %s4911_s16  ;;  %4202 = vrot.lane.b32.xlu1 %v4201_v21, %s4912_s19  ;;  %v2564_v21 = vsel %vm2562_vm14, %v5257_v47, %v4015_v7  ;;  %v2563_v62 = vsel %vm2562_vm14, %v5486_v26, %v4014_v19  ;;  %v4040_v19 = vunpack.i.h.bf16 %v4038_v1  ;;  %s4914_s16 = smov 112   ;;  %v8593_v26 = vunpack.i.h.bf16 %v6444_v44 }
 0x137   : > { %v4764_v22 = vpop.eup %4763  ;;  %v6584_v37 = vsel %vm2571_vm15, %v2564_v21, %v4035_v61  ;;  %v2572_v20 = vsel %vm2571_vm15, %v2563_v62, %v4034_v18  ;;  %v2568_v18 = vsel %vm2562_vm14, %v5218_v14, %v4025_v43  ;;  %v4028_v7 = vpop.permute.xlu1 %4027  ;;  %v8581_v14 = vunpack.i.l.bf16 %v6276_v53 }
 0x138   : > { %v1408_v24 = vmul.f32 %v4764_v22, %v6539_v49  ;;  %vm1413_vm2 = vweird.f32 %v4764_v22  ;;  %v4766_v43 = vpop.eup %4765  ;;  %v4030_v0 = vunpack.i.h.bf16 %v4028_v7 }
 0x139   : > { %v6609_v1 = vsel %vm2580_vm6, %v2572_v20, %v8581_v14  ;;  %vm6614_vm3 = vmor %vm1412_vm0, %vm1413_vm2  ;;  %v1423_v20 = vmul.f32 %v4766_v43, %v6572_v34  ;;  %v6625_v14 = vmul.f32 %v6416_v17, %v1006_v45  ;;  %vm1428_vm8 = vweird.f32 %v4766_v43 }
 0x13a   : > { %v1409_v61 = vsub.f32 1.0, %v1408_v24  ;;  %v4018_v21 = vpop.permute.xlu0 %4017  ;;  %v2567_v24 = vsel %vm2562_vm14, %v5248_v50, %v4024_v23  ;;  %v6627_v49 = vpop.eup %4767  ;;  %v2570_v15 = vsel %vm2562_vm14, %v5345_v31, %v4030_v0  ;;  %vm6651_vm11 = vmor %vm1427_vm5, %vm1428_vm8  ;;  %v1448_v34 = vand.u32 2147483648, %v6574_v3 }
 0x13b   : > { %v4020_v52 = vunpack.i.h.bf16 %v4018_v21  ;;  %v4019_v62 = vunpack.i.l.bf16 %v4018_v21  ;;  %v1438_v45 = vmul.f32 %v6627_v49, %v6574_v3  ;;  %vm1443_vm12 = vweird.f32 %v6627_v49 }
 0x13c   : > { %v1410_v47 = vmul.f32 %v4764_v22, %v1409_v61  ;;  %vm6704_vm0 = vmor %vm1442_vm10, %vm1443_vm12  ;;  %vm2589_vm2 = vcmask 261120   ;;  %vm2616_vm5 = vcmask 457728  }
 0x13d   : > { %v2565_v50 = vsel %vm2562_vm14, %v5263_v51, %v4019_v62 }
 0x13e   : > { %4197 = vrot.lane.b32.xlu0 %v4196_v28, %s4912_s19  ;;  %4217 = vrot.lane.b32.xlu1 %v4216_v25, %s4913_s15  ;;  %v4029_v28 = vunpack.i.l.bf16 %v4028_v7  ;;  %v2566_v25 = vsel %vm2562_vm14, %v5242_v4, %v4020_v52  ;;  %v1411_v23 = vadd.f32 %v4764_v22, %v1410_v47  ;;  %v1434_v4 = vor.u32 1.1754944e-38, %v1433_v55  ;;  %v6634_v52 = vpop.permute.xlu2 %4062 }
 0x13f   : > { %v2575_v21 = vsel %vm2571_vm15, %v2566_v25, %v4040_v19  ;;  %v2574_v51 = vsel %vm2571_vm15, %v2565_v50, %v4039_v39  ;;  %v1424_v19 = vsub.f32 1.0, %v1423_v20  ;;  %v4048_v61 = vpop.permute.xlu1 %4047  ;;  %v1439_v50 = vsub.f32 1.0, %v1438_v45 }
 0x140   : > { %v1415_v47 = vsel %vm6614_vm3, %v4764_v22, %v1411_v23  ;;  %v2569_v55 = vsel %vm2562_vm14, %v5230_v63, %v4029_v28  ;;  %v1446_v23 = vand.u32 2147483647, %v6574_v3  ;;  %v4049_v31 = vunpack.i.l.bf16 %v4048_v61 }
 0x141   : > { %v1420_v62 = vsel %vm6593_vm1, %v1419_v46, %v1415_v47  ;;  %v1425_v25 = vmul.f32 %v4766_v43, %v1424_v19  ;;  %v4050_v46 = vunpack.i.h.bf16 %v4048_v61  ;;  %v8588_v28 = vpack.i.bf16 %v6283_v36, %v6377_v8 }
 0x142   : > { %v1421_v39 = vmul.f32 2.0, %v1420_v62  ;;  %v4043_v22 = vpop.permute.xlu0 %4042  ;;  %v2578_v19 = vsel %vm2571_vm15, %v2569_v55, %v4049_v31  ;;  %vm6691_vm13 = vcmp.eq.f32.partialorder %v1446_v23, 8.507059e+37  ;;  %vm8402_vm1 = vcmask 326656  }
 0x143   : > { %v4045_v0 = vunpack.i.h.bf16 %v4043_v22  ;;  %v4044_v20 = vunpack.i.l.bf16 %v4043_v22  ;;  %v1426_v47 = vadd.f32 %v4766_v43, %v1425_v25  ;;  %v2579_v45 = vsel %vm2571_vm15, %v2570_v15, %v4050_v46 }
 0x144   : > { %v1483_v63 = vsub.f32 1.0, %v1421_v39  ;;  %v8591_v22 = vunpack.i.l.bf16 %v6442_v54 }
 0x145   : > { %v2577_v62 = vsel %vm2571_vm15, %v2568_v18, %v4045_v0  ;;  %v2576_v39 = vsel %vm2571_vm15, %v2567_v24, %v4044_v20  ;;  %v1430_v8 = vsel %vm6651_vm11, %v4766_v43, %v1426_v47  ;;  %v1440_v18 = vmul.f32 %v6627_v49, %v1439_v50 }
 0x146   : > { %4212 = vrot.lane.b32.xlu0 %v8588_v28, %s4913_s15  ;;  %4232 = vrot.lane.b32.xlu1 %v4231_v30, %s4914_s16  ;;  %v6667_v61 = vmul.f32 %v1483_v63, %v6433_v33  ;;  %v8590_v30 = vunpack.i.h.bf16 %v6442_v54  ;;  %v2585_v55 = vsel %vm2580_vm6, %v2576_v39, %v8591_v22  ;;  %v1435_v15 = vsel %vm6630_vm7, %v1434_v4, %v1430_v8  ;;  %v4078_v7 = vpop.permute.xlu2 %4077 }
 0x147   : > { %v8592_v24 = vunpack.i.l.bf16 %v6444_v44  ;;  %v2584_v43 = vsel %vm2580_vm6, %v2575_v21, %v8593_v26  ;;  %v1436_v31 = vmul.f32 2.0, %v1435_v15  ;;  %v4065_v54 = vunpack.i.h.bf16 %v6634_v52  ;;  %v4058_v23 = vpop.permute.xlu1 %4057 }
 0x148   : > { %8589 = vst [vmem:[#allocation15_spill] sm:$0xff] %v6667_v61  ;;  %v2586_v25 = vsel %vm2580_vm6, %v2577_v62, %v8590_v30  ;;  %v4206_v46 = vpack.i.bf16 %v6667_v61, %v6132_v27  ;;  %v4064_v0 = vunpack.i.l.bf16 %v6634_v52  ;;  %v1441_v4 = vadd.f32 %v6627_v49, %v1440_v18 }
 0x149   : > { %v2583_v33 = vsel %vm2580_vm6, %v2574_v51, %v8592_v24  ;;  %v1449_v51 = vor.u32 1.1754944e-38, %v1448_v34  ;;  %v8596_v44 = vunpack.i.h.bf16 %v6276_v53  ;;  %v1484_v20 = vsub.f32 1.0, %v1436_v31 }
 0x14a   : > { %4207 = vrot.lane.b32.xlu2 %v4206_v46, %s4912_s19  ;;  %v4080_v63 = vunpack.i.h.bf16 %v4078_v7  ;;  %v4079_v28 = vunpack.i.l.bf16 %v4078_v7  ;;  %v4053_v47 = vpop.permute.xlu0 %4052  ;;  %v8599_v53 = vrot.slane %v6304_v59, 1  ;;  %v4059_v62 = vunpack.i.l.bf16 %v4058_v23  ;;  %s4915_s19 = smov 120  }
 0x14b   : > { %v2582_v21 = vsel %vm2580_vm6, %v6584_v37, %v8596_v44  ;;  %v4060_v37 = vunpack.i.h.bf16 %v4058_v23  ;;  %v4055_v39 = vunpack.i.h.bf16 %v4053_v47  ;;  %v6714_v8 = vmul.f32 %v1484_v20, %v6448_v2 }
 0x14c   : > { %v6711_v34 = vpack.i.bf16 %v8599_v53, %v6336_v48  ;;  %v2483_v3 = vrot.slane %v6667_v61, 1  ;;  %v2510_v30 = vrot.slane %v6667_v61, 2  ;;  %v1445_v22 = vsel %vm6704_vm0, %v6627_v49, %v1441_v4 }
 0x14d   : > { %8600 = vst [vmem:[#allocation16_spill] sm:$0xff] %v6714_v8  ;;  %v2592_v15 = vsel %vm2589_vm2, %v2583_v33, %v4059_v62  ;;  %v2593_v48 = vsel %vm2589_vm2, %v2584_v43, %v4060_v37  ;;  %v4054_v18 = vunpack.i.l.bf16 %v4053_v47  ;;  %v2484_v24 = vrot.slane %v6714_v8, 1 }
 0x14e   : > { %v2511_v26 = vrot.slane %v6714_v8, 2  ;;  %v2601_v2 = vsel %vm8402_vm1, %v2592_v15, %v4079_v28  ;;  %v2602_v46 = vsel %vm8402_vm1, %v2593_v48, %v4080_v63  ;;  %v2591_v7 = vsel %vm2589_vm2, %v2582_v21, %v4055_v39 }
 0x14f   : > { %v2590_v31 = vsel %vm2589_vm2, %v6609_v1, %v4054_v18  ;;  %v8601_v49 = vunpack.i.l.bf16 %v6347_v35  ;;  %v8602_v43 = vunpack.c.l.bf16 %v6555_v5  ;;  %v6739_v44 = vsel %vm2063_vm9, %v2483_v3, %v2484_v24  ;;  %v1517_v3 = vld [vmem:[%s6533_s12 + $0x28] sm:$0xf] }
 0x150   : > { %v2512_v20 = vsel %vm2112_vm4, %v2510_v30, %v2511_v26  ;;  %v8603_v63 = vunpack.i.h.bf16 %v6347_v35  ;;  %v6747_v21 = vadd.f32 %v6430_v58, %v6625_v14  ;;  %v4226_v5 = vpack.i.bf16 %v6739_v44, %v6494_v32  ;;  %v1519_v30 = vld [vmem:[%s6533_s12 + $0x30] sm:$0xf] }
 0x151   : > { %v2587_v33 = vsel %vm2580_vm6, %v2578_v19, %v8601_v49  ;;  %v1547_v4 = vmul.f32 %v6416_v17, %v8602_v43  ;;  %v4246_v19 = vpack.i.bf16 %v2512_v20, %v6497_v11  ;;  %v1450_v28 = vsel %vm6691_vm13, %v1449_v51, %v1445_v22 }
 0x152   : > { %v2588_v1 = vsel %vm2580_vm6, %v2579_v45, %v8603_v63  ;;  %v8604_v52 = vunpack.c.l.bf16 %v6562_v57  ;;  %v8605_v35 = vpack.i.bf16 %v6481_v9, %v6343_v38  ;;  %v4241_v14 = vpack.i.bf16 %v6484_v6, %v6524_v41  ;;  %v4073_v45 = vpop.permute.xlu1 %4072  ;;  %v4068_v47 = vpop.permute.xlu0 %4067  ;;  %4227 = vrot.lane.b32.xlu0 %v4226_v5, %s4913_s15 }
 0x153   : > { %v8606_v11 = vrot.slane %v6470_v29, 1  ;;  %v2594_v57 = vsel %vm2589_vm2, %v2585_v55, %v4064_v0  ;;  %v2595_v51 = vsel %vm2589_vm2, %v2586_v25, %v4065_v54  ;;  %4247 = vrot.lane.b32.xlu1 %v4246_v19, %s4914_s16  ;;  %v4075_v53 = vunpack.i.h.bf16 %v4073_v45 }
 0x154   : > { %v1549_v23 = vmul.f32 %v6416_v17, %v8604_v52  ;;  %4222 = vrot.lane.b32.xlu2 %v8605_v35, %s4913_s15  ;;  %v4074_v37 = vunpack.i.l.bf16 %v4073_v45  ;;  %v4070_v6 = vunpack.i.h.bf16 %v4068_v47  ;;  %vm2607_vm4 = vcmask 392192  }
 0x155   : > { %v6766_v50 = vpack.i.bf16 %v8606_v11, %v6494_v32  ;;  %v6772_v41 = vmul.f32 2.0, %v1450_v28  ;;  %v4069_v62 = vunpack.i.l.bf16 %v4068_v47  ;;  %v1066_v39 = vmin.f32 %v6747_v21, 30.0  ;;  %v1515_v32 = vld [vmem:[%s6533_s12 + $0x20] sm:$0xf] }
 0x156   : > { %v2599_v55 = vsel %vm8402_vm1, %v2590_v31, %v4074_v37  ;;  %v2600_v25 = vsel %vm8402_vm1, %v2591_v7, %v4075_v53  ;;  %v2597_v54 = vsel %vm2589_vm2, %v2588_v1, %v4070_v6  ;;  %v6781_v0 = vadd.f32 %v6430_v58, %v1547_v4  ;;  %v6801_v1 = vpop.permute.xlu2 %4102 }
 0x157   : > { %v2596_v22 = vsel %vm2589_vm2, %v2587_v33, %v4069_v62  ;;  %v1105_v15 = vmul.f32 1.442695, %v1066_v39  ;;  %v6786_v48 = vadd.f32 %v6430_v58, %v1549_v23  ;;  %v8607_v18 = vunpack.i.l.bf16 %v6507_v42  ;;  %v1521_v33 = vld [vmem:[%s6533_s12 + $0x38] sm:$0xf] }
 0x158   : > { %v1587_v31 = vmin.f32 %v6781_v0, 30.0  ;;  %v8608_v7 = vunpack.i.h.bf16 %v6507_v42  ;;  %v1535_v43 = vunpack.c.l.bf16 %v1515_v32  ;;  %v1537_v4 = vunpack.c.l.bf16 %v1517_v3  ;;  %v1511_v42 = vld [vmem:[%s6533_s12 + $0x10] sm:$0xf]  ;;  %v1513_v32 = vld [vmem:[%s6533_s12 + $0x18] sm:$0xf] }
 0x159   : > { %v6791_v26 = vsel %vm2607_vm4, %v2601_v2, %v8607_v18  ;;  %4769 = vpow2.f32 %v1105_v15  ;;  %v1589_v20 = vmin.f32 %v6786_v48, 30.0  ;;  %v1539_v63 = vunpack.c.l.bf16 %v1519_v30 }
 0x15a   : > { %v6797_v49 = vsel %vm2607_vm4, %v2602_v46, %v8608_v7  ;;  %v8609_v2 = vrot.slane %v6267_v13, 1  ;;  %v1607_v19 = vmul.f32 1.442695, %v1587_v31  ;;  %v1555_v28 = vmul.f32 %v6416_v17, %v1535_v43  ;;  %v4088_v23 = vpop.permute.xlu1 %4087  ;;  %v4083_v35 = vpop.permute.xlu0 %4082  ;;  %4242 = vrot.lane.b32.xlu0 %v4241_v14, %s4914_s16 }
 0x15b   : > { %v8610_v46 = vpack.i.bf16 %v6521_v60, %v6366_v16  ;;  %v1485_v52 = vsub.f32 1.0, %v6772_v41  ;;  %v1611_v45 = vmul.f32 1.442695, %v1589_v20  ;;  %v1557_v47 = vmul.f32 %v6416_v17, %v1537_v4  ;;  %4262 = vrot.lane.b32.xlu1 %v6146_v10, %s4915_s19 }
 0x15c   : > { %v4276_v5 = vpack.i.bf16 %v8609_v2, %v6296_v56  ;;  %v1541_v11 = vunpack.c.l.bf16 %v1521_v33  ;;  %v4090_v56 = vunpack.i.h.bf16 %v4088_v23  ;;  %v4089_v53 = vunpack.i.l.bf16 %v4088_v23 }
 0x15d   : > { %4237 = vrot.lane.b32.xlu2 %v8610_v46, %s4914_s16  ;;  %v4085_v37 = vunpack.i.h.bf16 %v4083_v35  ;;  %v4084_v16 = vunpack.i.l.bf16 %v4083_v35  ;;  %4771 = vpow2.f32 %v1607_v19  ;;  %v6818_v60 = vadd.f32 %v6430_v58, %v1555_v28 }
 0x15e   : > { %v1559_v6 = vmul.f32 %v6416_v17, %v1539_v63  ;;  %v1531_v41 = vunpack.c.l.bf16 %v1511_v42  ;;  %v6822_v62 = vsel %vm8402_vm1, %v2596_v22, %v4089_v53  ;;  %v6825_v14 = vsel %vm8402_vm1, %v2597_v54, %v4090_v56  ;;  %v8615_v63 = vld [vmem:[#allocation13_spill] sm:$0xff] }
 0x15f   : > { %v2603_v39 = vsel %vm8402_vm1, %v2594_v57, %v4084_v16  ;;  %v2604_v10 = vsel %vm8402_vm1, %v2595_v51, %v4085_v37  ;;  %v4770_v3 = vpop.eup %4769  ;;  %v8611_v30 = vunpack.i.l.bf16 %v6505_v12  ;;  %v8612_v18 = vunpack.i.h.bf16 %v6505_v12  ;;  %v8617_v42 = vld [vmem:[#allocation9_spill] sm:$0xff] }
 0x160   : > { %4773 = vpow2.f32 %v1611_v45  ;;  %v8613_v54 = vunpack.i.l.bf16 %v6384_v40  ;;  %v1126_v57 = vadd.f32 1.0, %v4770_v3  ;;  %v8614_v51 = vunpack.i.h.bf16 %v6384_v40 }
 0x161   : > { %v6833_v15 = vsel %vm2607_vm4, %v2603_v39, %v8611_v30  ;;  %v6838_v31 = vsel %vm2607_vm4, %v2604_v10, %v8612_v18  ;;  %v6851_v43 = vadd.f32 %v6430_v58, %v1557_v47  ;;  %v1595_v12 = vmin.f32 %v6818_v60, 30.0  ;;  %v8621_v10 = vld [vmem:[#allocation14_spill] sm:$0xff]  ;;  %v8623_v18 = vld [vmem:[#allocation11_spill] sm:$0xff] }
 0x162   : > { %v6843_v22 = vsel %vm2607_vm4, %v2599_v55, %v8613_v54  ;;  %v6848_v7 = vsel %vm2607_vm4, %v2600_v25, %v8614_v51  ;;  %v1561_v4 = vmul.f32 %v6416_v17, %v1541_v11  ;;  %v6856_v33 = vadd.f32 %v6430_v58, %v1559_v6  ;;  %v8619_v6 = vld [vmem:[#allocation10_spill] sm:$0xff] }
 0x163   : > { %v1533_v20 = vunpack.c.l.bf16 %v1513_v32  ;;  %v1551_v55 = vmul.f32 %v6416_v17, %v1531_v41  ;;  %v6860_v2 = vmul.f32 %v1485_v52, %v8615_v63  ;;  %v1146_v40 = vmul.f32 %v1126_v57, %v1126_v57  ;;  %v4772_v28 = vpop.eup %4771  ;;  %v8618_v52 = vld [vmem:[#allocation4_spill] sm:$0xff]  ;;  %4277 = vrot.lane.b32.xlu1 %v4276_v5, %s4903_s22 }
 0x164   : > { %v1597_v25 = vmin.f32 %v6851_v43, 30.0  ;;  %v1623_v19 = vmul.f32 1.442695, %v1595_v12  ;;  %v4105_v46 = vunpack.i.h.bf16 %v6801_v1  ;;  %v6867_v23 = vadd.f32 %v6430_v58, %v1561_v4  ;;  %4257 = vrot.lane.b32.xlu0 %v8618_v52, %s4915_s19 }
 0x165   : > { %8616 = vst [vmem:[#allocation13_spill] sm:$0xff] %v6860_v2  ;;  %4252 = vrot.lane.b32.xlu2 %v8617_v42, %s4915_s19  ;;  %v1599_v35 = vmin.f32 %v6856_v33, 30.0  ;;  %v1553_v45 = vmul.f32 %v6416_v17, %v1533_v20  ;;  %v6874_v47 = vadd.f32 1.0, %v1146_v40  ;;  %v1647_v11 = vadd.f32 1.0, %v4772_v28  ;;  %v6883_v17 = vpop.permute.xlu2 %4117  ;;  %v4093_v28 = vpop.permute.xlu0 %4092 }
 0x166   : > { %v1627_v56 = vmul.f32 1.442695, %v1597_v25  ;;  %v6877_v53 = vadd.f32 %v6430_v58, %v1551_v55  ;;  %v4774_v37 = vpop.eup %4773  ;;  %v4104_v16 = vunpack.i.l.bf16 %v6801_v1  ;;  %v8620_v41 = vrot.slane %v8619_v6, 1 }
 0x167   : > { %v8622_v32 = vrot.slane %v8621_v10, 1  ;;  %4775 = vpow2.f32 %v1623_v19  ;;  %v4266_v3 = vpack.i.bf16 %v6860_v2, %v6667_v61  ;;  %v4120_v30 = vunpack.i.h.bf16 %v6883_v17 }
 0x168   : > { %v4271_v39 = vpack.i.bf16 %v8620_v41, %v6283_v36  ;;  %v8624_v54 = vrot.slane %v8623_v18, 1  ;;  %4777 = vrcp.f32 %v6874_v47  ;;  %v2698_v36 = vrot.slane %v6860_v2, 1 }
 0x169   : > { %v4291_v5 = vpack.i.bf16 %v8622_v32, %v6481_v9  ;;  %v1649_v51 = vadd.f32 1.0, %v4774_v37  ;;  %v1667_v12 = vmul.f32 %v1647_v11, %v1647_v11  ;;  %v1601_v4 = vmin.f32 %v6867_v23, 30.0  ;;  %v4098_v9 = vpop.permute.xlu1 %4097 }
 0x16a   : > { %v6894_v57 = vpack.i.bf16 %v8624_v54, %v6343_v38  ;;  %4779 = vpow2.f32 %v1627_v56  ;;  %v1631_v20 = vmul.f32 1.442695, %v1599_v35  ;;  %v6900_v55 = vadd.f32 %v6430_v58, %v1553_v45 }
 0x16b   : > { %v1591_v63 = vmin.f32 %v6877_v53, 30.0  ;;  %v1669_v40 = vmul.f32 %v1649_v51, %v1649_v51  ;;  %v6903_v25 = vadd.f32 1.0, %v1667_v12  ;;  %v4100_v38 = vunpack.i.h.bf16 %v4098_v9  ;;  %4292 = vrot.lane.b32.xlu1 %v4291_v5, %s4903_s22 }
 0x16c   : > { %v4099_v19 = vunpack.i.l.bf16 %v4098_v9  ;;  %vm1457_vm3 = vweird.f32 %v6874_v47  ;;  %v1461_v42 = vand.u32 2147483647, %v6874_v47  ;;  %v1463_v52 = vand.u32 2147483648, %v6874_v47  ;;  %4272 = vrot.lane.b32.xlu0 %v4271_v39, %s4903_s22 }
 0x16d   : > { %v4094_v11 = vunpack.i.l.bf16 %v4093_v28  ;;  %v4776_v56 = vpop.eup %4775  ;;  %4267 = vrot.lane.b32.xlu2 %v4266_v3, %s4915_s19  ;;  %v6909_v58 = vadd.f32 1.0, %v1669_v40  ;;  %4781 = vrcp.f32 %v6903_v25  ;;  %v4095_v35 = vunpack.i.h.bf16 %v4093_v28 }
 0x16e   : > { %v4778_v45 = vpop.eup %4777  ;;  %v1716_v37 = vand.u32 2147483647, %v6903_v25  ;;  %v6917_v41 = vsel %vm2616_vm5, %v6791_v26, %v4099_v19  ;;  %v6921_v32 = vsel %vm2616_vm5, %v6797_v49, %v4100_v38  ;;  %v6932_v39 = vpack.i.bf16 %v2484_v24, %v6739_v44 }
 0x16f   : > { %v6925_v3 = vsel %vm2616_vm5, %v6843_v22, %v4094_v11  ;;  %v1453_v54 = vmul.f32 %v4778_v45, %v6874_v47  ;;  %4783 = vrcp.f32 %v6909_v58  ;;  %v1635_v5 = vmul.f32 1.442695, %v1601_v4 }
 0x170   : > { %v4780_v26 = vpop.eup %4779  ;;  %vm1458_vm7 = vweird.f32 %v4778_v45  ;;  %vm6934_vm8 = vcmp.eq.f32.partialorder %v1461_v42, 8.507059e+37  ;;  %v1464_v49 = vor.u32 1.1754944e-38, %v1463_v52  ;;  %v1718_v22 = vand.u32 2147483648, %v6903_v25 }
 0x171   : > { %v1454_v12 = vsub.f32 1.0, %v1453_v54  ;;  %v6941_v9 = vsel %vm2616_vm5, %v6848_v7, %v4095_v35  ;;  %v1655_v40 = vadd.f32 1.0, %v4776_v56  ;;  %v1657_v38 = vadd.f32 1.0, %v4780_v26  ;;  %vm6952_vm12 = vmor %vm1457_vm3, %vm1458_vm7 }
 0x172   : > { %vm1712_vm10 = vweird.f32 %v6903_v25  ;;  %vm6944_vm11 = vcmp.eq.f32.partialorder %v1716_v37, 8.507059e+37  ;;  %v1746_v44 = vand.u32 2147483647, %v6909_v58  ;;  %4785 = vpow2.f32 %v1631_v20 }
 0x173   : > { %v4782_v4 = vpop.eup %4781  ;;  %v1455_v19 = vmul.f32 %v4778_v45, %v1454_v12  ;;  %v1675_v28 = vmul.f32 %v1655_v40, %v1655_v40  ;;  %v1677_v42 = vmul.f32 %v1657_v38, %v1657_v38  ;;  %4787 = vpow2.f32 %v1635_v5 }
 0x174   : > { %v1708_v52 = vmul.f32 %v4782_v4, %v6903_v25  ;;  %v1719_v11 = vor.u32 1.1754944e-38, %v1718_v22  ;;  %vm1742_vm13 = vweird.f32 %v6909_v58  ;;  %v1748_v56 = vand.u32 2147483648, %v6909_v58  ;;  %4287 = vrot.lane.b32.xlu0 %v6894_v57, %s4903_s22 }
 0x175   : > { %v4784_v20 = vpop.eup %4783  ;;  %4282 = vrot.lane.b32.xlu2 %v6711_v34, %s4903_s22  ;;  %v1456_v35 = vadd.f32 %v4778_v45, %v1455_v19  ;;  %v6961_v37 = vadd.f32 1.0, %v1675_v28  ;;  %v6963_v54 = vadd.f32 1.0, %v1677_v42  ;;  %v1593_v47 = vmin.f32 %v6900_v55, 30.0 }
 0x176   : > { %v1709_v5 = vsub.f32 1.0, %v1708_v52  ;;  %vm1713_vm0 = vweird.f32 %v4782_v4  ;;  %v1738_v26 = vmul.f32 %v4784_v20, %v6909_v58  ;;  %v1615_v22 = vmul.f32 1.442695, %v1591_v63 }
 0x177   : > { %v1460_v12 = vsel %vm6952_vm12, %v4778_v45, %v1456_v35  ;;  %vm1743_vm3 = vweird.f32 %v4784_v20  ;;  %vm6971_vm7 = vcmp.eq.f32.partialorder %v1746_v44, 8.507059e+37  ;;  %4789 = vrcp.f32 %v6961_v37  ;;  %vm6981_vm12 = vmor %vm1712_vm10, %vm1713_vm0 }
 0x178   : > { %v4786_v40 = vpop.eup %4785  ;;  %v1465_v38 = vsel %vm6934_vm8, %v1464_v49, %v1460_v12  ;;  %v1710_v57 = vmul.f32 %v4782_v4, %v1709_v5  ;;  %v1739_v19 = vsub.f32 1.0, %v1738_v26  ;;  %v1836_v28 = vand.u32 2147483647, %v6961_v37  ;;  %vm6990_vm1 = vmor %vm1742_vm13, %vm1743_vm3 }
 0x179   : > { %v4788_v42 = vpop.eup %4787  ;;  %v1466_v63 = vmul.f32 2.0, %v1465_v38  ;;  %v1749_v44 = vor.u32 1.1754944e-38, %v1748_v56  ;;  %4791 = vrcp.f32 %v6963_v54  ;;  %v1619_v7 = vmul.f32 1.442695, %v1593_v47 }
 0x17a   : > { %v1711_v52 = vadd.f32 %v4782_v4, %v1710_v57  ;;  %v1740_v35 = vmul.f32 %v4784_v20, %v1739_v19  ;;  %vm1832_vm8 = vweird.f32 %v6961_v37  ;;  %4793 = vpow2.f32 %v1615_v22 }
 0x17b   : > { %v1486_v51 = vsub.f32 1.0, %v1466_v63  ;;  %v1838_v25 = vand.u32 2147483648, %v6961_v37  ;;  %v1659_v5 = vadd.f32 1.0, %v4786_v40  ;;  %v1661_v56 = vadd.f32 1.0, %v4788_v42 }
 0x17c   : > { %v1715_v47 = vsel %vm6981_vm12, %v4782_v4, %v1711_v52  ;;  %v1741_v26 = vadd.f32 %v4784_v20, %v1740_v35  ;;  %vm6997_vm10 = vcmp.eq.f32.partialorder %v1836_v28, 8.507059e+37  ;;  %vm1862_vm0 = vweird.f32 %v6963_v54  ;;  %4302 = vrot.lane.b32.xlu0 %v6932_v39, %s4903_s22 }
 0x17d   : > { %v1866_v58 = vand.u32 2147483647, %v6963_v54  ;;  %v4790_v22 = vpop.eup %4789  ;;  %4297 = vrot.lane.b32.xlu2 %v6766_v50, %s4903_s22  ;;  %v7006_v38 = vmul.f32 %v1486_v51, %v6747_v21  ;;  %v1720_v40 = vsel %vm6944_vm11, %v1719_v11, %v1715_v47  ;;  %v1679_v4 = vmul.f32 %v1659_v5, %v1659_v5 }
 0x17e   : > { %4795 = vpow2.f32 %v1619_v7  ;;  %v1721_v57 = vmul.f32 2.0, %v1720_v40  ;;  %v1745_v19 = vsel %vm6990_vm1, %v4784_v20, %v1741_v26  ;;  %v1828_v28 = vmul.f32 %v4790_v22, %v6961_v37 }
 0x17f   : > { %8639 = vst [vmem:[#allocation9_spill] sm:$0xff] %v7006_v38  ;;  %vm1833_vm13 = vweird.f32 %v4790_v22  ;;  %v4792_v42 = vpop.eup %4791  ;;  %v2699_v50 = vrot.slane %v7006_v38, 1  ;;  %v1750_v21 = vsel %vm6971_vm7, %v1749_v44, %v1745_v19  ;;  %v1681_v24 = vmul.f32 %v1661_v56, %v1661_v56  ;;  %v7032_v56 = vld [vmem:[%s6533_s12 + $0xc] sm:$0x1] }
 0x180   : > { %v7018_v11 = vadd.f32 1.0, %v1679_v4  ;;  %v4794_v63 = vpop.eup %4793  ;;  %v1751_v45 = vmul.f32 2.0, %v1750_v21  ;;  %v2007_v7 = vsub.f32 1.0, %v1721_v57  ;;  %v1829_v20 = vsub.f32 1.0, %v1828_v28  ;;  %vm7037_vm1 = vmor %vm1832_vm8, %vm1833_vm13 }
 0x181   : > { %v1858_v52 = vmul.f32 %v4792_v42, %v6963_v54  ;;  %v2700_v39 = vsel %vm2063_vm9, %v2698_v36, %v2699_v50  ;;  %v1868_v35 = vand.u32 2147483648, %v6963_v54  ;;  %v7025_v51 = vadd.f32 1.0, %v1681_v24 }
 0x182   : > { %4797 = vrcp.f32 %v7018_v11  ;;  %v4306_v34 = vpack.i.bf16 %v2699_v50, %v2700_v39  ;;  %v2009_v44 = vsub.f32 1.0, %v1751_v45  ;;  %v7029_v49 = vmul.f32 %v2007_v7, %v6781_v0 }
 0x183   : > { %v1830_v5 = vmul.f32 %v4790_v22, %v1829_v20  ;;  %v1839_v26 = vor.u32 1.1754944e-38, %v1838_v25  ;;  %v1859_v40 = vsub.f32 1.0, %v1858_v52  ;;  %vm1863_vm11 = vweird.f32 %v4792_v42 }
 0x184   : > { %v4796_v47 = vpop.eup %4795  ;;  %v1898_v4 = vand.u32 2147483648, %v7018_v11  ;;  %4307 = vrot.lane.b32.xlu1 %v4306_v34, %s4903_s22  ;;  %v7044_v0 = vmul.f32 %v2009_v44, %v6786_v48  ;;  %v2757_v57 = vrot.slane %v7029_v49, 7  ;;  %4799 = vrcp.f32 %v7025_v51  ;;  %vm7058_vm7 = vmor %vm1862_vm0, %vm1863_vm11 }
 0x185   : > { %v1831_v19 = vadd.f32 %v4790_v22, %v1830_v5  ;;  %v1860_v37 = vmul.f32 %v4792_v42, %v1859_v40  ;;  %vm7048_vm3 = vcmp.eq.f32.partialorder %v1866_v58, 8.507059e+37  ;;  %v1869_v25 = vor.u32 1.1754944e-38, %v1868_v35 }
 0x186   : > { %v1530_v50 = vunpack.c.l.bf16 %v7032_v56  ;;  %v8403_v21 = vrot.slane %v7044_v0, 7  ;;  %vm1892_vm12 = vweird.f32 %v7018_v11  ;;  %v1896_v58 = vand.u32 2147483647, %v7018_v11 }
 0x187   : > { %v1835_v24 = vsel %vm7037_vm1, %v4790_v22, %v1831_v19  ;;  %v1861_v20 = vadd.f32 %v4792_v42, %v1860_v37  ;;  %v1651_v52 = vadd.f32 1.0, %v4794_v63  ;;  %v1653_v39 = vadd.f32 1.0, %v4796_v47 }
 0x188   : > { %v4798_v45 = vpop.eup %4797  ;;  %v1840_v7 = vsel %vm6997_vm10, %v1839_v26, %v1835_v24  ;;  %v4311_v22 = vpack.i.bf16 %v8403_v21, %v2757_v57  ;;  %v1899_v34 = vor.u32 1.1754944e-38, %v1898_v4  ;;  %v1926_v5 = vand.u32 2147483647, %v7025_v51 }
 0x189   : > { %v1841_v35 = vmul.f32 2.0, %v1840_v7  ;;  %v1888_v54 = vmul.f32 %v4798_v45, %v7018_v11  ;;  %v1865_v44 = vsel %vm7058_vm7, %v4792_v42, %v1861_v20  ;;  %vm1893_vm8 = vweird.f32 %v4798_v45 }
 0x18a   : > { %v1671_v56 = vmul.f32 %v1651_v52, %v1651_v52  ;;  %v4800_v36 = vpop.eup %4799  ;;  %4312 = vrot.lane.b32.xlu2 %v4311_v22, %s4904_s23  ;;  %v1870_v12 = vsel %vm7048_vm3, %v1869_v25, %v1865_v44  ;;  %v1673_v26 = vmul.f32 %v1653_v39, %v1653_v39  ;;  %vm1922_vm10 = vweird.f32 %v7025_v51  ;;  %vm7088_vm0 = vmor %vm1892_vm12, %vm1893_vm8  ;;  %v4108_v25 = vpop.permute.xlu0 %4107 }
 0x18b   : > { %v2015_v63 = vsub.f32 1.0, %v1841_v35  ;;  %v1889_v47 = vsub.f32 1.0, %v1888_v54  ;;  %v1871_v40 = vmul.f32 2.0, %v1870_v12  ;;  %v1918_v57 = vmul.f32 %v4800_v36, %v7025_v51 }
 0x18c   : > { %v7077_v4 = vadd.f32 1.0, %v1671_v56  ;;  %v1928_v37 = vand.u32 2147483648, %v7025_v51  ;;  %v7083_v24 = vadd.f32 1.0, %v1673_v26  ;;  %vm1923_vm13 = vweird.f32 %v4800_v36  ;;  %v7120_v51 = vld [vmem:[%s8372_s4] ss:$0 sm:$0xff] }
 0x18d   : > { %v7080_v42 = vmul.f32 %v2015_v63, %v6818_v60  ;;  %v1890_v19 = vmul.f32 %v4798_v45, %v1889_v47  ;;  %v2017_v28 = vsub.f32 1.0, %v1871_v40  ;;  %v1919_v48 = vsub.f32 1.0, %v1918_v57  ;;  %vm7107_vm3 = vmor %vm1922_vm10, %vm1923_vm13  ;;  %v1522_v57 = vld [vmem:[%s6533_s12 + $0x3c] sm:$0x1] }
 0x18e   : > { %4801 = vrcp.f32 %v7077_v4  ;;  %vm1897_vm1 = vcmp.eq.f32.partialorder %v1896_v58, 8.507059e+37  ;;  %vm7094_vm11 = vcmp.eq.f32.partialorder %v1926_v5, 8.507059e+37  ;;  %v1776_v39 = vand.u32 2147483647, %v7077_v4 }
 0x18f   : > { %v8408_v60 = vrot.slane %v7080_v42, 7  ;;  %v1891_v7 = vadd.f32 %v4798_v45, %v1890_v19  ;;  %v7099_v52 = vmul.f32 %v2017_v28, %v6851_v43  ;;  %v1920_v11 = vmul.f32 %v4800_v36, %v1919_v48 }
 0x190   : > { %4803 = vrcp.f32 %v7083_v24  ;;  %v1929_v58 = vor.u32 1.1754944e-38, %v1928_v37  ;;  %v1778_v54 = vand.u32 2147483648, %v7077_v4  ;;  %v1806_v43 = vand.u32 2147483647, %v7083_v24 }
 0x191   : > { %v1895_v22 = vsel %vm7088_vm0, %v4798_v45, %v1891_v7  ;;  %v8404_v44 = vrot.slane %v7099_v52, 7  ;;  %v1921_v56 = vadd.f32 %v4800_v36, %v1920_v11  ;;  %v1808_v12 = vand.u32 2147483648, %v7083_v24 }
 0x192   : > { %v1900_v5 = vsel %vm1897_vm1, %v1899_v34, %v1895_v22  ;;  %v4119_v63 = vunpack.i.l.bf16 %v6883_v17  ;;  %vm1772_vm7 = vweird.f32 %v7077_v4  ;;  %v1550_v47 = vmul.f32 %v7120_v51, %v1530_v50 }
 0x193   : > { %v1901_v45 = vmul.f32 2.0, %v1900_v5  ;;  %v7127_v34 = vpack.i.bf16 %v8404_v44, %v8408_v60  ;;  %v1925_v40 = vsel %vm7107_vm3, %v4800_v36, %v1921_v56  ;;  %vm7131_vm12 = vcmp.eq.f32.partialorder %v1776_v39, 8.507059e+37  ;;  %v8656_v5 = vld [vmem:[#allocation12_spill] sm:$0xff] }
 0x194   : > { %v4802_v26 = vpop.eup %4801  ;;  %vm1802_vm8 = vweird.f32 %v7083_v24  ;;  %v1930_v19 = vsel %vm7094_vm11, %v1929_v58, %v1925_v40  ;;  %v1779_v28 = vor.u32 1.1754944e-38, %v1778_v54  ;;  %vm7141_vm0 = vcmp.eq.f32.partialorder %v1806_v43, 8.507059e+37  ;;  %v1508_v40 = vld [vmem:[%s6533_s12 + $0x4] sm:$0x1] }
 0x195   : > { %v2019_v50 = vsub.f32 1.0, %v1901_v45  ;;  %v1768_v37 = vmul.f32 %v4802_v26, %v7077_v4  ;;  %4322 = vrot.lane.b32.xlu1 %v7127_v34, %s4904_s23  ;;  %v1931_v36 = vmul.f32 2.0, %v1930_v19  ;;  %vm1773_vm10 = vweird.f32 %v4802_v26  ;;  %v1512_v45 = vld [vmem:[%s6533_s12 + $0x14] sm:$0x1] }
 0x196   : > { %v4804_v48 = vpop.eup %4803  ;;  %v1809_v20 = vor.u32 1.1754944e-38, %v1808_v12  ;;  %v4110_v58 = vunpack.i.h.bf16 %v4108_v25  ;;  %v4109_v54 = vunpack.i.l.bf16 %v4108_v25  ;;  %v8657_v56 = vunpack.i.l.bf16 %v8656_v5  ;;  %vm7168_vm1 = vmor %vm1772_vm7, %vm1773_vm10 }
 0x197   : > { %v7146_v11 = vmul.f32 %v2019_v50, %v6856_v33  ;;  %v1769_v39 = vsub.f32 1.0, %v1768_v37  ;;  %v1798_v22 = vmul.f32 %v4804_v48, %v7083_v24  ;;  %vm1803_vm13 = vweird.f32 %v4804_v48  ;;  %v1516_v37 = vld [vmem:[%s6533_s12 + $0x24] sm:$0x1] }
 0x198   : > { %v2021_v35 = vsub.f32 1.0, %v1931_v36  ;;  %v2614_v43 = vsel %vm2607_vm4, %v6822_v62, %v8657_v56  ;;  %v8658_v33 = vunpack.i.h.bf16 %v8656_v5  ;;  %v1518_v36 = vld [vmem:[%s6533_s12 + $0x2c] sm:$0x1]  ;;  %v1532_v5 = vunpack.c.l.bf16 %v1512_v45  ;;  %vm7190_vm11 = vmor %vm1802_vm8, %vm1803_vm13 }
 0x199   : > { %v8407_v12 = vrot.slane %v7146_v11, 7  ;;  %v1770_v19 = vmul.f32 %v4802_v26, %v1769_v39  ;;  %v1799_v21 = vsub.f32 1.0, %v1798_v22  ;;  %v7173_v39 = vsel %vm2616_vm5, %v2614_v43, %v4109_v54 }
 0x19a   : > { %v2615_v50 = vsel %vm2607_vm4, %v6825_v14, %v8658_v33  ;;  %v7163_v25 = vmul.f32 %v2021_v35, %v6867_v23  ;;  %v7181_v14 = vld [vmem:[%s8373_s5] ss:$0 sm:$0xff]  ;;  %v1528_v56 = vunpack.c.l.bf16 %v1508_v40  ;;  %vm2625_vm3 = vcmask 523264  }
 0x19b   : > { %v7176_v22 = vsel %vm2616_vm5, %v2615_v50, %v4110_v58  ;;  %v7184_v23 = vadd.f32 %v7181_v14, %v1550_v47  ;;  %v1771_v35 = vadd.f32 %v4802_v26, %v1770_v19  ;;  %v1800_v4 = vmul.f32 %v4804_v48, %v1799_v21 }
 0x19c   : > { %v8405_v33 = vrot.slane %v7163_v25, 7  ;;  %v1536_v47 = vunpack.c.l.bf16 %v1516_v37  ;;  %v1538_v43 = vunpack.c.l.bf16 %v1518_v36  ;;  %v1552_v40 = vmul.f32 %v7120_v51, %v1532_v5 }
 0x19d   : > { %v1590_v54 = vmin.f32 %v7184_v23, 30.0  ;;  %v1775_v21 = vsel %vm7168_vm1, %v4802_v26, %v1771_v35  ;;  %v1801_v45 = vadd.f32 %v4804_v48, %v1800_v4  ;;  %v1548_v19 = vmul.f32 %v7120_v51, %v1528_v56  ;;  %v1514_v4 = vld [vmem:[%s6533_s12 + $0x1c] sm:$0x1] }
 0x19e   : > { %v7203_v24 = vpack.i.bf16 %v8405_v33, %v8407_v12  ;;  %v1780_v50 = vsel %vm7131_vm12, %v1779_v28, %v1775_v21  ;;  %v7211_v26 = vsel %vm2616_vm5, %v6833_v15, %v4104_v16  ;;  %v7216_v62 = vadd.f32 %v7181_v14, %v1552_v40 }
 0x19f   : > { %v1613_v44 = vmul.f32 1.442695, %v1590_v54  ;;  %v1781_v37 = vmul.f32 2.0, %v1780_v50  ;;  %v1805_v36 = vsel %vm7190_vm11, %v4804_v48, %v1801_v45  ;;  %v7219_v35 = vadd.f32 %v7181_v14, %v1548_v19 }
 0x1a0   : > { %8663 = vst [vmem:[#allocation4_spill] sm:$0xff] %v7203_v24  ;;  %4327 = vrot.lane.b32.xlu2 %v7203_v24, %s4904_s23  ;;  %v1810_v28 = vsel %vm7141_vm0, %v1809_v20, %v1805_v36  ;;  %v7231_v15 = vsel %vm2616_vm5, %v6838_v31, %v4105_v46  ;;  %v1556_v16 = vmul.f32 %v7120_v51, %v1536_v47  ;;  %v1592_v56 = vmin.f32 %v7216_v62, 30.0  ;;  %v7243_v47 = vpop.permute.xlu1 %4112 }
 0x1a1   : > { %4805 = vpow2.f32 %v1613_v44  ;;  %v1811_v48 = vmul.f32 2.0, %v1810_v28  ;;  %v2011_v5 = vsub.f32 1.0, %v1781_v37  ;;  %v1588_v58 = vmin.f32 %v7219_v35, 30.0 }
 0x1a2   : > { %v7237_v54 = vadd.f32 %v7181_v14, %v1556_v16  ;;  %v1558_v7 = vmul.f32 %v7120_v51, %v1538_v43  ;;  %v1534_v44 = vunpack.c.l.bf16 %v1514_v4  ;;  %v1542_v20 = vunpack.c.l.bf16 %v1522_v57  ;;  %v7251_v43 = vpop.permute.xlu2 %4132 }
 0x1a3   : > { %v2013_v1 = vsub.f32 1.0, %v1811_v48  ;;  %v7241_v21 = vmul.f32 %v2011_v5, %v6877_v53  ;;  %v1617_v31 = vmul.f32 1.442695, %v1592_v56  ;;  %v1609_v46 = vmul.f32 1.442695, %v1588_v58 }
 0x1a4   : > { %v1596_v45 = vmin.f32 %v7237_v54, 30.0  ;;  %v7247_v40 = vadd.f32 %v7181_v14, %v1558_v7  ;;  %v1554_v19 = vmul.f32 %v7120_v51, %v1534_v44  ;;  %v1562_v50 = vmul.f32 %v7120_v51, %v1542_v20 }
 0x1a5   : > { %8664 = vst [vmem:[#allocation10_spill] sm:$0xff] %v7241_v21  ;;  %v7254_v37 = vmul.f32 %v2013_v1, %v6900_v55  ;;  %v8406_v53 = vrot.slane %v7241_v21, 7  ;;  %4807 = vpow2.f32 %v1617_v31  ;;  %v7266_v55 = vsel %vm2625_vm3, %v6917_v41, %v4119_v63 }
 0x1a6   : > { %4809 = vpow2.f32 %v1609_v46  ;;  %v1625_v4 = vmul.f32 1.442695, %v1596_v45  ;;  %v1598_v57 = vmin.f32 %v7247_v40, 30.0  ;;  %v7259_v28 = vadd.f32 %v7181_v14, %v1554_v19 }
 0x1a7   : > { %v4806_v36 = vpop.eup %4805  ;;  %v8409_v16 = vrot.slane %v7254_v37, 7  ;;  %v7272_v5 = vsel %vm2625_vm3, %v6921_v32, %v4120_v30  ;;  %v7276_v7 = vadd.f32 %v7181_v14, %v1562_v50  ;;  %v1520_v32 = vld [vmem:[%s6533_s12 + $0x34] sm:$0x1] }
 0x1a8   : > { %v1650_v48 = vadd.f32 1.0, %v4806_v36  ;;  %v1629_v56 = vmul.f32 1.442695, %v1598_v57  ;;  %v1594_v58 = vmin.f32 %v7259_v28, 30.0  ;;  %4811 = vpow2.f32 %v1625_v4  ;;  %v4128_v19 = vpop.permute.xlu1 %4127 }
 0x1a9   : > { %v7282_v44 = vpack.i.bf16 %v8409_v16, %v8406_v53  ;;  %v1602_v31 = vmin.f32 %v7276_v7, 30.0  ;;  %v1540_v50 = vunpack.c.l.bf16 %v1520_v32  ;;  %v4130_v4 = vunpack.i.h.bf16 %v4128_v19 }
 0x1aa   : > { %v1670_v41 = vmul.f32 %v1650_v48, %v1650_v48  ;;  %v1621_v63 = vmul.f32 1.442695, %v1594_v58  ;;  %4813 = vpow2.f32 %v1629_v56  ;;  %v7288_v36 = vpop.permute.xlu2 %4147  ;;  %v4129_v57 = vunpack.i.l.bf16 %v4128_v19  ;;  %v4123_v48 = vpop.permute.xlu0 %4122 }
 0x1ab   : > { %8665 = vst [vmem:[#allocation12_spill] sm:$0xff] %v7282_v44  ;;  %v4808_v17 = vpop.eup %4807  ;;  %4317 = vrot.lane.b32.xlu0 %v7282_v44, %s4904_s23  ;;  %v1637_v56 = vmul.f32 1.442695, %v1602_v31  ;;  %v4124_v32 = vunpack.i.l.bf16 %v4123_v48  ;;  %v1560_v19 = vmul.f32 %v7120_v51, %v1540_v50 }
 0x1ac   : > { %v1690_v30 = vadd.f32 1.0, %v1670_v41  ;;  %v4810_v20 = vpop.eup %4809  ;;  %v1652_v1 = vadd.f32 1.0, %v4808_v17  ;;  %4815 = vpow2.f32 %v1621_v63  ;;  %v7292_v63 = vsel %vm2625_vm3, %v7173_v39, %v4129_v57 }
 0x1ad   : > { %v1648_v45 = vadd.f32 1.0, %v4810_v20  ;;  %v7296_v17 = vsel %vm2625_vm3, %v7176_v22, %v4130_v4  ;;  %v4125_v20 = vunpack.i.h.bf16 %v4123_v48  ;;  %v7303_v31 = vsel %vm2625_vm3, %v7211_v26, %v4124_v32 }
 0x1ae   : > { %4817 = vrcp.f32 %v1690_v30  ;;  %v1672_v46 = vmul.f32 %v1652_v1, %v1652_v1  ;;  %v4812_v58 = vpop.eup %4811  ;;  %v1761_v12 = vand.u32 2147483647, %v1690_v30  ;;  %v1763_v60 = vand.u32 2147483648, %v1690_v30 }
 0x1af   : > { %v1668_v41 = vmul.f32 %v1648_v45, %v1648_v45  ;;  %v7307_v39 = vsel %vm2625_vm3, %v7231_v15, %v4125_v20  ;;  %v1656_v22 = vadd.f32 1.0, %v4812_v58  ;;  %vm1757_vm7 = vweird.f32 %v1690_v30 }
 0x1b0   : > { %v1692_v33 = vadd.f32 1.0, %v1672_v46  ;;  %v4814_v53 = vpop.eup %4813  ;;  %vm7310_vm8 = vcmp.eq.f32.partialorder %v1761_v12, 8.507059e+37  ;;  %v1764_v32 = vor.u32 1.1754944e-38, %v1763_v60  ;;  %v7315_v15 = vadd.f32 %v7181_v14, %v1560_v19 }
 0x1b1   : > { %v7299_v45 = vadd.f32 1.0, %v1668_v41  ;;  %v1676_v50 = vmul.f32 %v1656_v22, %v1656_v22  ;;  %v1658_v41 = vadd.f32 1.0, %v4814_v53 }
 0x1b2   : > { %v4816_v1 = vpop.eup %4815  ;;  %4819 = vrcp.f32 %v1692_v33  ;;  %v1791_v57 = vand.u32 2147483647, %v1692_v33  ;;  %v1793_v48 = vand.u32 2147483648, %v1692_v33  ;;  %v7319_v10 = vpop.permute.xlu2 %4162  ;;  %vm1787_vm0 = vweird.f32 %v1692_v33 }
 0x1b3   : > { %4821 = vpow2.f32 %v1637_v56  ;;  %v1654_v16 = vadd.f32 1.0, %v4816_v1  ;;  %v7317_v56 = vadd.f32 1.0, %v1676_v50  ;;  %v1678_v44 = vmul.f32 %v1658_v41, %v1658_v41 }
 0x1b4   : > { %v4818_v46 = vpop.eup %4817  ;;  %4823 = vrcp.f32 %v7299_v45  ;;  %vm7327_vm13 = vcmp.eq.f32.partialorder %v1791_v57, 8.507059e+37  ;;  %v1794_v1 = vor.u32 1.1754944e-38, %v1793_v48  ;;  %vm1727_vm11 = vweird.f32 %v7299_v45 }
 0x1b5   : > { %v1753_v4 = vmul.f32 %v4818_v46, %v1690_v30  ;;  %vm1758_vm12 = vweird.f32 %v4818_v46  ;;  %v1674_v18 = vmul.f32 %v1654_v16, %v1654_v16  ;;  %v1733_v16 = vand.u32 2147483648, %v7299_v45 }
 0x1b6   : > { %vm7323_vm10 = vmor %vm1757_vm7, %vm1758_vm12  ;;  %4825 = vrcp.f32 %v7317_v56  ;;  %v7334_v50 = vadd.f32 1.0, %v1678_v44 }
 0x1b7   : > { %v1754_v51 = vsub.f32 1.0, %v1753_v4  ;;  %v1731_v4 = vand.u32 2147483647, %v7299_v45  ;;  %v7336_v41 = vadd.f32 1.0, %v1674_v18  ;;  %v1734_v26 = vor.u32 1.1754944e-38, %v1733_v16 }
 0x1b8   : > { %v4820_v58 = vpop.eup %4819  ;;  %4827 = vrcp.f32 %v7334_v50 }
 0x1b9   : > { %v1755_v20 = vmul.f32 %v4818_v46, %v1754_v51  ;;  %v1783_v12 = vmul.f32 %v4820_v58, %v1692_v33  ;;  %v4822_v19 = vpop.eup %4821  ;;  %vm1788_vm1 = vweird.f32 %v4820_v58  ;;  %4829 = vrcp.f32 %v7336_v41 }
 0x1ba   : > { %v4824_v30 = vpop.eup %4823  ;;  %vm7348_vm7 = vmor %vm1787_vm0, %vm1788_vm1 }
 0x1bb   : > { %v1756_v22 = vadd.f32 %v4818_v46, %v1755_v20  ;;  %v1784_v51 = vsub.f32 1.0, %v1783_v12  ;;  %v1723_v48 = vmul.f32 %v4824_v30, %v7299_v45  ;;  %v1851_v20 = vand.u32 2147483647, %v7317_v56 }
 0x1bc   : > { %v1853_v12 = vand.u32 2147483648, %v7317_v56  ;;  %vm1728_vm12 = vweird.f32 %v4824_v30 }
 0x1bd   : > { %v1760_v57 = vsel %vm7323_vm10, %v4818_v46, %v1756_v22  ;;  %v1785_v8 = vmul.f32 %v4820_v58, %v1784_v51  ;;  %v1724_v46 = vsub.f32 1.0, %v1723_v48  ;;  %vm7352_vm10 = vcmp.eq.f32.partialorder %v1731_v4, 8.507059e+37  ;;  %v4826_v51 = vpop.eup %4825  ;;  %vm7363_vm0 = vmor %vm1727_vm11, %vm1728_vm12 }
 0x1be   : > { %v1765_v61 = vsel %vm7310_vm8, %v1764_v32, %v1760_v57  ;;  %v1662_v32 = vadd.f32 1.0, %v4822_v19  ;;  %vm1847_vm8 = vweird.f32 %v7317_v56  ;;  %vm7368_vm1 = vcmp.eq.f32.partialorder %v1851_v20, 8.507059e+37  ;;  %v4828_v45 = vpop.eup %4827 }
 0x1bf   : > { %v1766_v44 = vmul.f32 2.0, %v1765_v61  ;;  %v1786_v22 = vadd.f32 %v4820_v58, %v1785_v8  ;;  %v1725_v2 = vmul.f32 %v4824_v30, %v1724_v46  ;;  %v1843_v8 = vmul.f32 %v4826_v51, %v7317_v56  ;;  %v7378_v46 = vpop.permute.xlu2 %4177 }
 0x1c0   : > { %v1854_v16 = vor.u32 1.1754944e-38, %v1853_v12  ;;  %vm1848_vm11 = vweird.f32 %v4826_v51  ;;  %v1881_v20 = vand.u32 2147483647, %v7334_v50  ;;  %v1873_v60 = vmul.f32 %v4828_v45, %v7334_v50 }
 0x1c1   : > { %v2010_v57 = vsub.f32 1.0, %v1766_v44  ;;  %v1790_v33 = vsel %vm7348_vm7, %v4820_v58, %v1786_v22  ;;  %v1726_v58 = vadd.f32 %v4824_v30, %v1725_v2  ;;  %vm1877_vm7 = vweird.f32 %v7334_v50  ;;  %vm7396_vm12 = vmor %vm1847_vm8, %vm1848_vm11 }
 0x1c2   : > { %v1795_v44 = vsel %vm7327_vm13, %v1794_v1, %v1790_v33  ;;  %v1844_v22 = vsub.f32 1.0, %v1843_v8  ;;  %v1883_v2 = vand.u32 2147483648, %v7334_v50  ;;  %v4830_v1 = vpop.eup %4829  ;;  %vm1817_vm13 = vweird.f32 %v7336_v41 }
 0x1c3   : > { %v7373_v48 = vmul.f32 %v2010_v57, %v7184_v23  ;;  %v1796_v18 = vmul.f32 2.0, %v1795_v44  ;;  %v1730_v23 = vsel %vm7363_vm0, %v4824_v30, %v1726_v58  ;;  %v1874_v4 = vsub.f32 1.0, %v1873_v60 }
 0x1c4   : > { %v1735_v33 = vsel %vm7352_vm10, %v1734_v26, %v1730_v23  ;;  %v1845_v8 = vmul.f32 %v4826_v51, %v1844_v22  ;;  %vm1878_vm0 = vweird.f32 %v4828_v45  ;;  %v1813_v58 = vmul.f32 %v4830_v1, %v7336_v41 }
 0x1c5   : > { %v7383_v12 = vpack.i.bf16 %v7373_v48, %v7044_v0  ;;  %v2012_v57 = vsub.f32 1.0, %v1796_v18  ;;  %v1736_v44 = vmul.f32 2.0, %v1735_v33  ;;  %v1821_v18 = vand.u32 2147483647, %v7336_v41  ;;  %vm7414_vm8 = vmor %vm1877_vm7, %vm1878_vm0 }
 0x1c6   : > { %v1846_v26 = vadd.f32 %v4826_v51, %v1845_v8  ;;  %v1823_v22 = vand.u32 2147483648, %v7336_v41  ;;  %v1875_v33 = vmul.f32 %v4828_v45, %v1874_v4  ;;  %v1814_v61 = vsub.f32 1.0, %v1813_v58 }
 0x1c7   : > { %8680 = vst [vmem:[#allocation17_spill] sm:$0xff] %v7383_v12  ;;  %4337 = vrot.lane.b32.xlu1 %v7383_v12, %s4901_s20  ;;  %v7402_v53 = vmul.f32 %v2012_v57, %v7216_v62  ;;  %v2008_v23 = vsub.f32 1.0, %v1736_v44  ;;  %vm1818_vm10 = vweird.f32 %v4830_v1  ;;  %vm7418_vm11 = vcmp.eq.f32.partialorder %v1881_v20, 8.507059e+37  ;;  %v7440_v41 = vpop.permute.xlu2 %4192 }
 0x1c8   : > { %v1850_v60 = vsel %vm7396_vm12, %v4826_v51, %v1846_v26  ;;  %v1884_v8 = vor.u32 1.1754944e-38, %v1883_v2  ;;  %v1876_v58 = vadd.f32 %v4828_v45, %v1875_v33  ;;  %v1815_v12 = vmul.f32 %v4830_v1, %v1814_v61  ;;  %vm7429_vm7 = vmor %vm1817_vm13, %vm1818_vm10  ;;  %v7438_v26 = vpop.permute.xlu1 %4142 }
 0x1c9   : > { %v7408_v56 = vpack.i.bf16 %v7402_v53, %v7241_v21  ;;  %v2028_v44 = vmul.f32 %v2008_v23, %v7219_v35  ;;  %v1855_v4 = vsel %vm7368_vm1, %v1854_v16, %v1850_v60  ;;  %v1824_v20 = vor.u32 1.1754944e-38, %v1823_v22 }
 0x1ca   : > { %v1856_v50 = vmul.f32 2.0, %v1855_v4  ;;  %v1682_v30 = vmul.f32 %v1662_v32, %v1662_v32  ;;  %v1880_v35 = vsel %vm7414_vm8, %v4828_v45, %v1876_v58  ;;  %v1816_v19 = vadd.f32 %v4830_v1, %v1815_v12  ;;  %v7446_v45 = vpop.permute.xlu0 %4137 }
 0x1cb   : > { %8683 = vst [vmem:[#allocation18_spill] sm:$0xff] %v7408_v56  ;;  %4342 = vrot.lane.b32.xlu2 %v7408_v56, %s4901_s20  ;;  %v4331_v2 = vpack.i.bf16 %v2028_v44, %v7029_v49  ;;  %vm1822_vm1 = vcmp.eq.f32.partialorder %v1821_v18, 8.507059e+37  ;;  %v1885_v16 = vsel %vm7418_vm11, %v1884_v8, %v1880_v35  ;;  %v4150_v33 = vunpack.i.h.bf16 %v7288_v36 }
 0x1cc   : > { %v2016_v61 = vsub.f32 1.0, %v1856_v50  ;;  %v1702_v23 = vadd.f32 1.0, %v1682_v30  ;;  %v1886_v32 = vmul.f32 2.0, %v1885_v16  ;;  %v1820_v22 = vsel %vm7429_vm7, %v4830_v1, %v1816_v19 }
 0x1cd   : > { %4332 = vrot.lane.b32.xlu0 %v4331_v2, %s4901_s20  ;;  %v8690_v12 = vmin.f32 %v7315_v15, 30.0  ;;  %v4149_v60 = vunpack.i.l.bf16 %v7288_v36  ;;  %v1825_v57 = vsel %vm1822_vm1, %v1824_v20, %v1820_v22  ;;  %vm2634_vm13 = vcmask 588800  }
 0x1ce   : > { %v7452_v62 = vmul.f32 %v2016_v61, %v7237_v54  ;;  %4831 = vrcp.f32 %v1702_v23  ;;  %v2018_v8 = vsub.f32 1.0, %v1886_v32  ;;  %v1826_v4 = vmul.f32 2.0, %v1825_v57 }
 0x1cf   : > { %v1633_v18 = vmul.f32 1.442695, %v8690_v12  ;;  %v2845_v54 = vrot.slane %v7029_v49, 1  ;;  %v2846_v36 = vrot.slane %v2028_v44, 1  ;;  %v7466_v51 = vsel %vm2634_vm13, %v7292_v63, %v4149_v60  ;;  %v7485_v61 = vpop.permute.xlu2 %4207 }
 0x1d0   : > { %v7456_v58 = vpack.i.bf16 %v7452_v62, %v7080_v42  ;;  %v7459_v1 = vmul.f32 %v2018_v8, %v7247_v40  ;;  %v2014_v50 = vsub.f32 1.0, %v1826_v4  ;;  %v7470_v20 = vsel %vm2634_vm13, %v7296_v17, %v4150_v33  ;;  %v7483_v19 = vpop.permute.xlu1 %4157 }
 0x1d1   : > { %4833 = vpow2.f32 %v1633_v18  ;;  %vm1937_vm12 = vweird.f32 %v1702_v23  ;;  %v1943_v35 = vand.u32 2147483648, %v1702_v23  ;;  %v2847_v17 = vsel %vm2063_vm9, %v2845_v54, %v2846_v36 }
 0x1d2   : > { %4352 = vrot.lane.b32.xlu1 %v7456_v58, %s4901_s20  ;;  %v7474_v40 = vpack.i.bf16 %v7459_v1, %v7099_v52  ;;  %v2034_v30 = vmul.f32 %v2014_v50, %v7259_v28  ;;  %v1941_v16 = vand.u32 2147483647, %v1702_v23  ;;  %v7489_v32 = vpop.permute.xlu0 %4152  ;;  %v4371_v12 = vpack.i.bf16 %v2846_v36, %v2847_v17 }
 0x1d3   : > { %v1944_v60 = vor.u32 1.1754944e-38, %v1943_v35  ;;  %v2854_v57 = vrot.slane %v7254_v37, 1  ;;  %v4145_v38 = vunpack.i.h.bf16 %v7438_v26 }
 0x1d4   : > { %v4832_v2 = vpop.eup %4831  ;;  %4357 = vrot.lane.b32.xlu2 %v7474_v40, %s4901_s20  ;;  %v7480_v49 = vpack.i.bf16 %v2034_v30, %v7254_v37  ;;  %v2855_v8 = vrot.slane %v2034_v30, 1  ;;  %vm1942_vm8 = vcmp.eq.f32.partialorder %v1941_v16, 8.507059e+37 }
 0x1d5   : > { %v1933_v44 = vmul.f32 %v4832_v2, %v1702_v23  ;;  %vm1938_vm0 = vweird.f32 %v4832_v2 }
 0x1d6   : > { %4347 = vrot.lane.b32.xlu0 %v7480_v49, %s4901_s20  ;;  %vm1939_vm10 = vmor %vm1937_vm12, %vm1938_vm0  ;;  %v2856_v23 = vsel %vm2063_vm9, %v2854_v57, %v2855_v8  ;;  %vm2643_vm0 = vcmask 654336  }
 0x1d7   : > { %v4834_v63 = vpop.eup %4833  ;;  %v1934_v28 = vsub.f32 1.0, %v1933_v44 }
 0x1d8   : > { %v1660_v33 = vadd.f32 1.0, %v4834_v63  ;;  %v7494_v63 = vpop.permute.xlu1 %4172 }
 0x1d9   : > { %v1935_v22 = vmul.f32 %v4832_v2, %v1934_v28  ;;  %v7496_v28 = vpop.permute.xlu2 %4222 }
 0x1da   : > { %v1680_v18 = vmul.f32 %v1660_v33, %v1660_v33  ;;  %v7498_v17 = vpop.permute.xlu0 %4167  ;;  %v7500_v33 = vpack.i.bf16 %v2855_v8, %v2856_v23 }
 0x1db   : > { %v1936_v4 = vadd.f32 %v4832_v2, %v1935_v22  ;;  %v2851_v22 = vrot.slane %v7241_v21, 1  ;;  %v4114_v21 = vunpack.i.l.bf16 %v7243_v47 }
 0x1dc   : > { %v1700_v50 = vadd.f32 1.0, %v1680_v18  ;;  %4372 = vrot.lane.b32.xlu2 %v4371_v12, %s4905_s8  ;;  %v2852_v12 = vrot.slane %v7402_v53, 1 }
 0x1dd   : > { %v1940_v54 = vsel %vm1939_vm10, %v4832_v2, %v1936_v4  ;;  %vm2652_vm10 = vcmask 719872  }
 0x1de   : > { %4835 = vrcp.f32 %v1700_v50  ;;  %v1945_v44 = vsel %vm1942_vm8, %v1944_v60, %v1940_v54  ;;  %v1913_v60 = vand.u32 2147483648, %v1700_v50  ;;  %vm1907_vm11 = vweird.f32 %v1700_v50 }
 0x1df   : > { %v1946_v36 = vmul.f32 2.0, %v1945_v44  ;;  %v1911_v8 = vand.u32 2147483647, %v1700_v50  ;;  %v2853_v23 = vsel %vm2063_vm9, %v2851_v22, %v2852_v12  ;;  %v2861_v22 = vrot.slane %v7459_v1, 1 }
 0x1e0   : > { %v7516_v4 = vpop.permute.xlu1 %4187  ;;  %v7530_v56 = vpack.i.bf16 %v2852_v12, %v2853_v23  ;;  %vm2661_vm8 = vcmask 785408  }
 0x1e1   : > { %v2022_v35 = vsub.f32 1.0, %v1946_v36  ;;  %v7518_v54 = vpop.permute.xlu2 %4237  ;;  %v1914_v36 = vor.u32 1.1754944e-38, %v1913_v60  ;;  %vm1912_vm12 = vcmp.eq.f32.partialorder %v1911_v8, 8.507059e+37  ;;  %v4135_v8 = vunpack.i.h.bf16 %v7251_v43 }
 0x1e2   : > { %v7522_v53 = vpop.permute.xlu0 %4182 }
 0x1e3   : > { %v7503_v16 = vmul.f32 %v2022_v35, %v7276_v7  ;;  %v3892_v7 = vld [vmem:[%s8371_s3 + $0x38] sm:$0xff] }
 0x1e4   : > { %v4836_v30 = vpop.eup %4835  ;;  %4387 = vrot.lane.b32.xlu2 %v7500_v33, %s4905_s8  ;;  %3509 = vmatpush.bf16.msra.mxu0 %v3892_v7 }
 0x1e5   : > { %v1903_v2 = vmul.f32 %v4836_v30, %v1700_v50  ;;  %v7509_v18 = vpack.i.bf16 %v7503_v16, %v7163_v25  ;;  %vm1908_vm7 = vweird.f32 %v4836_v30  ;;  %v3891_v50 = vld [vmem:[%s8371_s3 + $0x30] sm:$0xff]  ;;  %3898 = vmatpush.bf16.msra.mxu2 %v3892_v7  ;;  %v4144_v7 = vunpack.i.l.bf16 %v7438_v26 }
 0x1e6   : > { %vm1909_vm1 = vmor %vm1907_vm11, %vm1908_vm7  ;;  %vm2670_vm11 = vcmask 850944   ;;  %vm2679_vm7 = vcmask 916480  }
 0x1e7   : > { %8691 = vst [vmem:[#allocation19_spill] sm:$0xff] %v7509_v18  ;;  %v1904_v57 = vsub.f32 1.0, %v1903_v2  ;;  %4367 = vrot.lane.b32.xlu1 %v7509_v18, %s4901_s20  ;;  %v4115_v2 = vunpack.i.h.bf16 %v7243_v47  ;;  %v4165_v47 = vunpack.i.h.bf16 %v7319_v10 }
 0x1e8   : > { %3510 = vmatpush.bf16.msra.mxu0 %v3891_v50  ;;  %v7542_v23 = vpop.permute.xlu1 %4202 }
 0x1e9   : > { %v1905_v44 = vmul.f32 %v4836_v30, %v1904_v57  ;;  %v2860_v57 = vrot.slane %v7099_v52, 1  ;;  %3899 = vmatpush.bf16.msra.mxu2 %v3891_v50  ;;  %v7544_v1 = vpop.permute.xlu2 %4252  ;;  %v2626_v50 = vsel %vm2625_vm3, %v6925_v3, %v4114_v21  ;;  %v2627_v26 = vsel %vm2625_vm3, %v6941_v9, %v4115_v2  ;;  %v3889_v3 = vld [vmem:[%s8371_s3 + $0x20] sm:$0xff] }
 0x1ea   : > { %v2639_v9 = vsel %vm2634_vm13, %v7303_v31, %v4144_v7  ;;  %v2640_v21 = vsel %vm2634_vm13, %v7307_v39, %v4145_v38  ;;  %v4160_v7 = vunpack.i.h.bf16 %v7483_v19 }
 0x1eb   : > { %v1906_v35 = vadd.f32 %v4836_v30, %v1905_v44  ;;  %v4134_v44 = vunpack.i.l.bf16 %v7251_v43  ;;  %v4139_v43 = vunpack.i.l.bf16 %v7446_v45  ;;  %v2862_v27 = vsel %vm2063_vm9, %v2860_v57, %v2861_v22 }
 0x1ec   : > { %v7575_v31 = vpack.i.bf16 %v2861_v22, %v2862_v27  ;;  %v2857_v22 = vrot.slane %v7080_v42, 1  ;;  %v7613_v2 = vsel %vm2643_vm0, %v2640_v21, %v4165_v47 }
 0x1ed   : > { %v1910_v18 = vsel %vm1909_vm1, %v4836_v30, %v1906_v35  ;;  %v3890_v30 = vld [vmem:[%s8371_s3 + $0x28] sm:$0xff]  ;;  %v2848_v35 = vrot.slane %v7044_v0, 1  ;;  %vm2688_vm1 = vcmask 982016  }
 0x1ee   : > { %v1915_v60 = vsel %vm1912_vm12, %v1914_v36, %v1910_v18  ;;  %v4164_v18 = vunpack.i.l.bf16 %v7319_v10  ;;  %v7554_v36 = vpop.permute.xlu0 %4197  ;;  %3511 = vmatpush.bf16.msra.mxu0 %v3890_v30  ;;  %3900 = vmatpush.bf16.msra.mxu2 %v3890_v30  ;;  %v2637_v30 = vsel %vm2634_vm13, %v7266_v55, %v4139_v43  ;;  %v2849_v10 = vrot.slane %v7373_v48, 1 }
 0x1ef   : > { %v1916_v12 = vmul.f32 2.0, %v1915_v60  ;;  %4382 = vrot.lane.b32.xlu1 %v7530_v56, %s4905_s8  ;;  %v4140_v60 = vunpack.i.h.bf16 %v7446_v45  ;;  %v4194_v45 = vunpack.i.l.bf16 %v7440_v41  ;;  %v4159_v55 = vunpack.i.l.bf16 %v7483_v19  ;;  %v3888_v19 = vld [vmem:[%s8371_s3 + $0x18] sm:$0xff] }
 0x1f0   : > { %v2636_v43 = vsel %vm2634_vm13, %v2627_v26, %v4135_v8  ;;  %v7587_v27 = vsel %vm2643_vm0, %v2639_v9, %v4164_v18  ;;  %v4154_v26 = vunpack.i.l.bf16 %v7489_v32  ;;  %v2850_v18 = vsel %vm2063_vm9, %v2848_v35, %v2849_v10 }
 0x1f1   : > { %v2020_v24 = vsub.f32 1.0, %v1916_v12  ;;  %v2863_v12 = vrot.slane %v7146_v11, 1  ;;  %v2638_v38 = vsel %vm2634_vm13, %v7272_v5, %v4140_v60  ;;  %v4155_v5 = vunpack.i.h.bf16 %v7489_v32  ;;  %v7600_v8 = vpop.permute.xlu2 %4267  ;;  %v3887_v32 = vld [vmem:[%s8371_s3 + $0x10] sm:$0xff] }
 0x1f2   : > { %3512 = vmatpush.bf16.msra.mxu0 %v3889_v3  ;;  %3901 = vmatpush.bf16.msra.mxu2 %v3889_v3  ;;  %v4175_v60 = vunpack.i.h.bf16 %v7494_v63  ;;  %v4174_v9 = vunpack.i.l.bf16 %v7494_v63  ;;  %v2646_v35 = vsel %vm2643_vm0, %v2637_v30, %v4159_v55  ;;  %v7625_v47 = vpack.i.bf16 %v2849_v10, %v2850_v18 }
 0x1f3   : > { %v2040_v57 = vmul.f32 %v2020_v24, %v7315_v15  ;;  %v2635_v24 = vsel %vm2634_vm13, %v2626_v50, %v4134_v44  ;;  %v2858_v44 = vrot.slane %v7452_v62, 1  ;;  %v7598_v50 = vpop.permute.xlu1 %4217  ;;  %v8693_v55 = vrot.slane %v7080_v42, 7 }
 0x1f5   : > { %v7580_v39 = vpack.i.bf16 %v2040_v57, %v7146_v11  ;;  %v2864_v15 = vrot.slane %v2040_v57, 1  ;;  %v4170_v57 = vunpack.i.h.bf16 %v7498_v17  ;;  %v2859_v21 = vsel %vm2063_vm9, %v2857_v22, %v2858_v44 }
 0x1f6   : > { %v4213_v62 = vpop.permute.xlu0 %4212  ;;  %3513 = vmatpush.bf16.msra.mxu0 %v3888_v19  ;;  %3902 = vmatpush.bf16.msra.mxu2 %v3888_v19  ;;  %v2644_v19 = vsel %vm2643_vm0, %v2635_v24, %v4154_v26  ;;  %v7641_v24 = vpack.i.bf16 %v2858_v44, %v2859_v21  ;;  %v4190_v22 = vunpack.i.h.bf16 %v7516_v4  ;;  %v4254_v21 = vunpack.i.l.bf16 %v7544_v1 }
 0x1f7   : > { %4362 = vrot.lane.b32.xlu0 %v7580_v39, %s4901_s20  ;;  %v2865_v48 = vsel %vm2063_vm9, %v2863_v12, %v2864_v15  ;;  %4397 = vrot.lane.b32.xlu1 %v7575_v31, %s4905_s8  ;;  %v4169_v12 = vunpack.i.l.bf16 %v7498_v17  ;;  %v2645_v17 = vsel %vm2643_vm0, %v2636_v43, %v4155_v5  ;;  %v2653_v63 = vsel %vm2652_vm10, %v2644_v19, %v4174_v9  ;;  %v3885_v19 = vld [vmem:[%s8371_s3] sm:$0xff]  ;;  %s8705_s20 = smov 64  }
 0x1f8   : > { %v7607_v3 = vpack.i.bf16 %v2864_v15, %v2865_v48  ;;  %v2647_v15 = vsel %vm2643_vm0, %v2638_v38, %v4160_v7  ;;  %v2654_v30 = vsel %vm2652_vm10, %v2645_v17, %v4175_v60  ;;  %v4225_v38 = vunpack.i.h.bf16 %v7496_v28 }
 0x1f9   : > { %v8692_v7 = vrot.slane %v7254_v37, 7  ;;  %v4224_v43 = vunpack.i.l.bf16 %v7496_v28  ;;  %v2650_v10 = vsel %vm2643_vm0, %v7466_v51, %v4169_v12  ;;  %v2651_v5 = vsel %vm2643_vm0, %v7470_v20, %v4170_v57  ;;  %v3886_v20 = vld [vmem:[%s8371_s3 + $0x8] sm:$0xff]  ;;  %v7655_v60 = vpop.permute.xlu2 %4282 }
 0x1fa   : > { %4402 = vrot.lane.b32.xlu2 %v7607_v3, %s4905_s8  ;;  %3514 = vmatpush.bf16.msra.mxu0 %v3887_v32  ;;  %v8694_v37 = vunpack.i.l.bf16 %v7378_v46  ;;  %v4189_v51 = vunpack.i.l.bf16 %v7516_v4  ;;  %v4215_v26 = vunpack.i.h.bf16 %v4213_v62  ;;  %v4214_v18 = vunpack.i.l.bf16 %v4213_v62 }
 0x1fb   : > { %v4411_v48 = vpack.i.bf16 %v8693_v55, %v8692_v7  ;;  %3903 = vmatpush.bf16.msra.mxu2 %v3887_v32  ;;  %v4233_v44 = vpop.permute.xlu1 %4232  ;;  %v4185_v57 = vunpack.i.h.bf16 %v7522_v53  ;;  %v4184_v4 = vunpack.i.l.bf16 %v7522_v53  ;;  %v2866_v62 = vrot.slane %v7163_v25, 1 }
 0x1fc   : > { %v7646_v42 = vsel %vm2652_vm10, %v2646_v35, %v8694_v37  ;;  %v4235_v12 = vunpack.i.h.bf16 %v4233_v44  ;;  %v4234_v32 = vunpack.i.l.bf16 %v4233_v44  ;;  %v4255_v17 = vunpack.i.h.bf16 %v7544_v1 }
 0x1fd   : > { %v2662_v53 = vsel %vm2661_vm8, %v2653_v63, %v4194_v45  ;;  %v8695_v7 = vunpack.i.h.bf16 %v7440_v41  ;;  %v2659_v55 = vsel %vm2652_vm10, %v2650_v10, %v4189_v51  ;;  %v2660_v9 = vsel %vm2652_vm10, %v2651_v5, %v4190_v22 }
 0x1fe   : > { %v4228_v35 = vpop.permute.xlu0 %4227  ;;  %3515 = vmatpush.bf16.msra.mxu0 %v3886_v20  ;;  %v2671_v37 = vsel %vm2670_vm11, %v2662_v53, %v4214_v18  ;;  %v4239_v45 = vunpack.i.l.bf16 %v7518_v54  ;;  %v8696_v10 = vunpack.i.h.bf16 %v7378_v46  ;;  %v2657_v5 = vsel %vm2652_vm10, %v7587_v27, %v4184_v4 }
 0x1ff   : > { %4377 = vrot.lane.b32.xlu0 %v7625_v47, %s4905_s8  ;;  %4412 = vrot.lane.b32.xlu1 %v4411_v48, %s4906_s10  ;;  %v2867_v48 = vrot.slane %v7503_v16, 1  ;;  %v2663_v1 = vsel %vm2661_vm8, %v2654_v30, %v8695_v7  ;;  %v2680_v44 = vsel %vm2679_vm7, %v2671_v37, %v4234_v32  ;;  %v4204_v22 = vunpack.i.l.bf16 %v7542_v23 }
 0x200   : > { %3904 = vmatpush.bf16.msra.mxu2 %v3886_v20  ;;  %v2672_v20 = vsel %vm2670_vm11, %v2663_v1, %v4215_v26  ;;  %v2689_v41 = vsel %vm2688_vm1, %v2680_v44, %v4254_v21  ;;  %v2656_v51 = vsel %vm2652_vm10, %v2647_v15, %v8696_v10  ;;  %v4230_v18 = vunpack.i.h.bf16 %v4228_v35 }
 0x201   : > { %v2681_v16 = vsel %vm2679_vm7, %v2672_v20, %v4235_v12  ;;  %v2868_v30 = vsel %vm2063_vm9, %v2866_v62, %v2867_v48  ;;  %v4229_v12 = vunpack.i.l.bf16 %v4228_v35  ;;  %v4205_v62 = vunpack.i.h.bf16 %v7542_v23  ;;  %v7699_v21 = vpop.permute.xlu2 %4297 }
 0x202   : > { %4417 = vrot.lane.b32.xlu2 %v7480_v49, %s4902_s21  ;;  %3516 = vmatpush.bf16.msra.mxu0 %v3885_v19  ;;  %v2690_v63 = vsel %vm2688_vm1, %v2681_v16, %v4255_v17  ;;  %v2658_v17 = vsel %vm2652_vm10, %v7613_v2, %v4185_v57  ;;  %v7701_v27 = vpack.i.bf16 %v2867_v48, %v2868_v30  ;;  %v4199_v35 = vunpack.i.l.bf16 %v7554_v36 }
 0x203   : > { %v3377_v26 = vpack.c.bf16 %v2690_v63, %v2689_v41  ;;  %v4248_v32 = vpop.permute.xlu1 %4247  ;;  %v4270_v4 = vunpack.i.h.bf16 %v7600_v8  ;;  %v4269_v2 = vunpack.i.l.bf16 %v7600_v8  ;;  %v4200_v23 = vunpack.i.h.bf16 %v7554_v36  ;;  %v1523_v63 = vld [vmem:[%s6533_s12 + $0x40] sm:$0xf] }
 0x204   : > { %3905 = vmatpush.bf16.msra.mxu2 %v3885_v19  ;;  %v4250_v46 = vunpack.i.h.bf16 %v4248_v32  ;;  %v4249_v15 = vunpack.i.l.bf16 %v4248_v32  ;;  %v4219_v57 = vunpack.i.l.bf16 %v7598_v50  ;;  %v8697_v53 = vunpack.i.l.bf16 %v7485_v61 }
 0x205   : > { %3517 = vmatmul.bf16.vlgmr.msra.gmra.mxu0 %v3377_v26  ;;  %v8698_v48 = vunpack.i.h.bf16 %v7485_v61  ;;  %v2666_v37 = vsel %vm2661_vm8, %v2657_v5, %v4204_v22  ;;  %v4220_v20 = vunpack.i.h.bf16 %v7598_v50  ;;  %v2667_v44 = vsel %vm2661_vm8, %v2658_v17, %v4205_v62 }
 0x206   : > { %v4243_v19 = vpop.permute.xlu0 %4242  ;;  %v2668_v7 = vsel %vm2661_vm8, %v2659_v55, %v8697_v53  ;;  %v2664_v61 = vsel %vm2661_vm8, %v7646_v42, %v4199_v35  ;;  %v1543_v50 = vunpack.c.l.bf16 %v1523_v63  ;;  %v2665_v30 = vsel %vm2661_vm8, %v2656_v51, %v4200_v23 }
 0x207   : > { %4392 = vrot.lane.b32.xlu0 %v7641_v24, %s4905_s8  ;;  %4427 = vrot.lane.b32.xlu1 %v7500_v33, %s4907_s11  ;;  %v2669_v1 = vsel %vm2661_vm8, %v2660_v9, %v8698_v48  ;;  %v2677_v8 = vsel %vm2670_vm11, %v2668_v7, %v4229_v12  ;;  %v2673_v10 = vsel %vm2670_vm11, %v2664_v61, %v4219_v57  ;;  %v4245_v42 = vunpack.i.h.bf16 %v4243_v19  ;;  %v7742_v12 = vld [vmem:[%s8372_s4] ss:$0 sm:$0xff] }
 0x208   : > { %v2678_v36 = vsel %vm2670_vm11, %v2669_v1, %v4230_v18  ;;  %v2686_v16 = vsel %vm2679_vm7, %v2677_v8, %v4249_v15  ;;  %v2674_v5 = vsel %vm2670_vm11, %v2665_v30, %v4220_v20  ;;  %v4244_v22 = vunpack.i.l.bf16 %v4243_v19 }
 0x209   : > { %v2687_v41 = vsel %vm2679_vm7, %v2678_v36, %v4250_v46  ;;  %v7727_v9 = vsel %vm2688_vm1, %v2686_v16, %v4269_v2  ;;  %v1563_v51 = vmul.f32 %v7742_v12, %v1543_v50  ;;  %v4313_v19 = vpop.permute.xlu2 %4312  ;;  %v2676_v2 = vsel %vm2670_vm11, %v2667_v44, %v4225_v38  ;;  %v1524_v44 = vld [vmem:[%s6533_s12 + $0x44] sm:$0x1] }
 0x20a   : > { %4432 = vrot.lane.b32.xlu2 %v7641_v24, %s4907_s11  ;;  %v7730_v55 = vsel %vm2688_vm1, %v2687_v41, %v4270_v4  ;;  %v2675_v4 = vsel %vm2670_vm11, %v2666_v37, %v4224_v43  ;;  %v2682_v23 = vsel %vm2679_vm7, %v2673_v10, %v4239_v45  ;;  %v2685_v7 = vsel %vm2679_vm7, %v2676_v2, %v4245_v42  ;;  %v8703_v42 = vld [vmem:[#allocation8_spill] sm:$0xff] }
 0x20b   : > { %v3383_v26 = vpack.c.bf16 %v7730_v55, %v7727_v9  ;;  %v4263_v18 = vpop.permute.xlu1 %4262  ;;  %v7748_v35 = vadd.f32 %v7181_v14, %v1563_v51  ;;  %v8700_v14 = vunpack.i.h.bf16 %v7518_v54  ;;  %v2684_v53 = vsel %vm2679_vm7, %v2675_v4, %v4244_v22  ;;  %v8704_v51 = vld [vmem:[#allocation7_spill] sm:$0xff] }
 0x20c   : > { %v4265_v32 = vunpack.i.h.bf16 %v4263_v18  ;;  %v4264_v17 = vunpack.i.l.bf16 %v4263_v18  ;;  %v8701_v54 = vrot.slane %v7099_v52, 7  ;;  %v8702_v8 = vrot.slane %v7146_v11, 7 }
 0x20d   : > { %v2683_v57 = vsel %vm2679_vm7, %v2674_v5, %v8700_v14  ;;  %v1603_v48 = vmin.f32 %v7748_v35, 30.0  ;;  %v1544_v41 = vunpack.c.l.bf16 %v1524_v44  ;;  %v4315_v63 = vunpack.i.h.bf16 %v4313_v19 }
 0x20e   : > { %v4258_v62 = vpop.permute.xlu0 %4257  ;;  %v2693_v43 = vsel %vm2688_vm1, %v2684_v53, %v4264_v17  ;;  %v2694_v28 = vsel %vm2688_vm1, %v2685_v7, %v4265_v32  ;;  %v4461_v36 = vpack.i.bf16 %v8702_v8, %v8701_v54  ;;  %v4314_v30 = vunpack.i.l.bf16 %v4313_v19  ;;  %v4860_v17 = vld [vmem:[%s8373_s5] ss:$0 sm:$0xff] }
 0x20f   : > { %4407 = vrot.lane.b32.xlu0 %v7701_v27, %s4905_s8  ;;  %4442 = vrot.lane.b32.xlu1 %v7456_v58, %s8699_s17  ;;  %v4260_v46 = vunpack.i.h.bf16 %v4258_v62  ;;  %v4259_v15 = vunpack.i.l.bf16 %v4258_v62  ;;  %v3381_v37 = vpack.c.bf16 %v2694_v28, %v2693_v43  ;;  %v1639_v20 = vmul.f32 1.442695, %v1603_v48  ;;  %s3823_s8 = sshll.u32 %s8754_s25, 6 }
 0x210   : > { %v1564_v5 = vmul.f32 %v7742_v12, %v1544_v41  ;;  %v4285_v53 = vunpack.i.h.bf16 %v7655_v60  ;;  %v4284_v7 = vunpack.i.l.bf16 %v7655_v60 }
 0x211   : > { %v2691_v38 = vsel %vm2688_vm1, %v2682_v23, %v4259_v15  ;;  %v2692_v1 = vsel %vm2688_vm1, %v2683_v57, %v4260_v46  ;;  %3527 = vmatmul.bf16.vlgmr.msra.gmra.mxu2 %v3381_v37  ;;  %4837 = vpow2.f32 %v1639_v20  ;;  %v7795_v46 = vpop.permute.xlu2 %4327  ;;  %v1525_v15 = vld [vmem:[%s6533_s12 + $0x48] sm:$0xf]  ;;  %v4299_v37 = vunpack.i.l.bf16 %v7699_v21  ;;  %v8706_v20 = vld [vmem:[#allocation2_spill] sm:$0xff] }
 0x212   : > { %4447 = vrot.lane.b32.xlu2 %v7474_v40, %s8699_s17  ;;  %v3379_v45 = vpack.c.bf16 %v2692_v1, %v2691_v38  ;;  %v7793_v62 = vadd.f32 %v4860_v17, %v1564_v5  ;;  %v1545_v57 = vunpack.c.l.bf16 %v1525_v15  ;;  %v4300_v1 = vunpack.i.h.bf16 %v7699_v21 }
 0x213   : > { %v4278_v16 = vpop.permute.xlu1 %4277  ;;  %v7826_v60 = vsel %vm2562_vm14, %v6304_v59, %v4285_v53  ;;  %v7830_v54 = vsel %vm2562_vm14, %v8706_v20, %v4284_v7 }
 0x214   : > { %v4280_v61 = vunpack.i.h.bf16 %v4278_v16  ;;  %v4279_v50 = vunpack.i.l.bf16 %v4278_v16  ;;  %v1604_v14 = vmin.f32 %v7793_v62, 30.0  ;;  %v7838_v21 = vsel %vm2562_vm14, %v6470_v29, %v4300_v1  ;;  %v8707_v16 = vld [vmem:[#allocation6_spill] sm:$0xff] }
 0x215   : > { %3522 = vmatmul.bf16.gmra.mxu0 %v3379_v45  ;;  %v1565_v45 = vmul.f32 %v7742_v12, %v1545_v57  ;;  %v7842_v41 = vsel %vm2562_vm14, %v8707_v16, %v4299_v37 }
 0x216   : > { %v4273_v52 = vpop.permute.xlu0 %4272  ;;  %v3171_v22 = vsel %vm2562_vm14, %v8703_v42, %v4279_v50  ;;  %v1641_v38 = vmul.f32 1.442695, %v1604_v14  ;;  %v8711_v14 = vld [vmem:[#allocation16_spill] sm:$0xff] }
 0x217   : > { %4422 = vrot.lane.b32.xlu0 %v7456_v58, %s4902_s21  ;;  %4457 = vrot.lane.b32.xlu1 %v7575_v31, %s4910_s14  ;;  %v4275_v11 = vunpack.i.h.bf16 %v4273_v52  ;;  %v4274_v10 = vunpack.i.l.bf16 %v4273_v52  ;;  %v3172_v58 = vsel %vm2562_vm14, %v6267_v13, %v4280_v61  ;;  %v4838_v19 = vpop.eup %4837  ;;  %v7799_v13 = vsel %vm2571_vm15, %v3171_v22, %v4315_v63 }
 0x218   : > { %v7802_v4 = vsel %vm2571_vm15, %v3172_v58, %v4315_v63  ;;  %v1663_v23 = vadd.f32 1.0, %v4838_v19  ;;  %4839 = vpow2.f32 %v1641_v38  ;;  %v7832_v8 = vadd.f32 %v4860_v17, %v1565_v45  ;;  %v8708_v58 = vld [vmem:[#allocation4_spill] sm:$0xff]  ;;  %v8710_v19 = vld [vmem:[#allocation13_spill] sm:$0xff] }
 0x219   : > { %v3170_v18 = vsel %vm2562_vm14, %v8619_v6, %v4275_v11  ;;  %v3169_v32 = vsel %vm2562_vm14, %v8704_v51, %v4274_v10  ;;  %v4330_v63 = vunpack.i.h.bf16 %v7795_v46  ;;  %v4329_v52 = vunpack.i.l.bf16 %v7795_v46  ;;  %v8709_v46 = vld [vmem:[#allocation9_spill] sm:$0xff] }
 0x21a   : > { %4462 = vrot.lane.b32.xlu2 %v4461_v36, %s4906_s10  ;;  %v7805_v6 = vsel %vm2571_vm15, %v3169_v32, %v4314_v30  ;;  %v7808_v2 = vsel %vm2571_vm15, %v3170_v18, %v4314_v30  ;;  %v1683_v28 = vmul.f32 %v1663_v23, %v1663_v23  ;;  %v1526_v36 = vld [vmem:[%s6533_s12 + $0x4c] sm:$0x1]  ;;  %v1605_v59 = vmin.f32 %v7832_v8, 30.0  ;;  %v8714_v38 = vld [vmem:[#allocation5_spill] sm:$0xff] }
 0x21b   : > { %v4293_v48 = vpop.permute.xlu1 %4292  ;;  %v1546_v44 = vunpack.c.l.bf16 %v1526_v36 }
 0x21c   : > { %v4295_v30 = vunpack.i.h.bf16 %v4293_v48  ;;  %v4294_v29 = vunpack.i.l.bf16 %v4293_v48  ;;  %v1643_v10 = vmul.f32 1.442695, %v1605_v59 }
 0x21d   : > { %v1566_v50 = vmul.f32 %v7742_v12, %v1546_v44 }
 0x21e   : > { %v7817_v43 = vpop.permute.xlu0 %4287  ;;  %v4840_v5 = vpop.eup %4839  ;;  %v3177_v1 = vsel %vm2562_vm14, %v8714_v38, %v4294_v29 }
 0x21f   : > { %4437 = vrot.lane.b32.xlu0 %v7127_v34, %s8705_s20  ;;  %4472 = vrot.lane.b32.xlu1 %v7580_v39, %s4902_s21  ;;  %v7822_v34 = vadd.f32 1.0, %v1683_v28  ;;  %v4290_v42 = vunpack.i.h.bf16 %v7817_v43  ;;  %v7860_v18 = vadd.f32 %v4860_v17, %v1566_v50  ;;  %v1664_v9 = vadd.f32 1.0, %v4840_v5  ;;  %v8712_v17 = vld [vmem:[#allocation15_spill] sm:$0xff]  ;;  %v8713_v28 = vld [vmem:[#allocation14_spill] sm:$0xff] }
 0x221   : > { %4841 = vrcp.f32 %v7822_v34  ;;  %3532 = vmatmul.bf16.gmra.mxu2 %v3383_v26  ;;  %v4289_v26 = vunpack.i.l.bf16 %v7817_v43  ;;  %v1684_v48 = vmul.f32 %v1664_v9, %v1664_v9  ;;  %v3178_v43 = vsel %vm2562_vm14, %v8713_v28, %v4295_v30  ;;  %v8715_v30 = vld [vmem:[#allocation11_spill] sm:$0xff] }
 0x222   : > { %4477 = vrot.lane.b32.xlu2 %v7575_v31, %s4907_s11  ;;  %4843 = vpow2.f32 %v1643_v10  ;;  %v1606_v31 = vmin.f32 %v7860_v18, 30.0  ;;  %v3176_v29 = vsel %vm2562_vm14, %v8715_v30, %v4290_v42  ;;  %vm1952_vm12 = vweird.f32 %v7822_v34 }
 0x223   : > { %v4308_v11 = vpop.permute.xlu1 %4307  ;;  %v7877_v20 = vadd.f32 1.0, %v1684_v48 }
 0x224   : > { %v4309_v12 = vunpack.i.l.bf16 %v4308_v11  ;;  %v1645_v37 = vmul.f32 1.442695, %v1606_v31 }
 0x225   : > { %v7846_v61 = vpop.permute.xlu2 %4342 }
 0x226   : > { %v4303_v22 = vpop.permute.xlu0 %4302  ;;  %v3183_v23 = vsel %vm2562_vm14, %v8710_v19, %v4309_v12  ;;  %4845 = vpow2.f32 %v1645_v37  ;;  %v1958_v12 = vand.u32 2147483648, %v7822_v34 }
 0x227   : > { %4452 = vrot.lane.b32.xlu0 %v7641_v24, %s4910_s14  ;;  %4487 = vrot.lane.b32.xlu1 %v8708_v58, %s8705_s20  ;;  %v4310_v24 = vunpack.i.h.bf16 %v4308_v11  ;;  %v4305_v51 = vunpack.i.h.bf16 %v4303_v22  ;;  %v4304_v32 = vunpack.i.l.bf16 %v4303_v22  ;;  %v4842_v55 = vpop.eup %4841  ;;  %v7880_v36 = vsel %vm2571_vm15, %v3183_v23, %v4330_v63  ;;  %v8716_v11 = vld [vmem:[#allocation3_spill] sm:$0xff] }
 0x228   : > { %v1948_v7 = vmul.f32 %v4842_v55, %v7822_v34  ;;  %v4844_v50 = vpop.eup %4843  ;;  %v3175_v10 = vsel %vm2562_vm14, %v8716_v11, %v4289_v26  ;;  %4847 = vrcp.f32 %v7877_v20  ;;  %vm1953_vm8 = vweird.f32 %v4842_v55 }
 0x229   : > { %v3184_v15 = vsel %vm2562_vm14, %v8709_v46, %v4310_v24  ;;  %v3182_v57 = vsel %vm2562_vm14, %v8711_v14, %v4305_v51  ;;  %v3181_v53 = vsel %vm2562_vm14, %v8712_v17, %v4304_v32  ;;  %v1665_v42 = vadd.f32 1.0, %v4844_v50  ;;  %vm1954_vm11 = vmor %vm1952_vm12, %vm1953_vm8 }
 0x22a   : > { %v1949_v45 = vsub.f32 1.0, %v1948_v7  ;;  %v7883_v44 = vsel %vm2571_vm15, %v3184_v15, %v4330_v63  ;;  %v7886_v16 = vsel %vm2571_vm15, %v3181_v53, %v4329_v52  ;;  %v7889_v59 = vsel %vm2571_vm15, %v3182_v57, %v4329_v52  ;;  %4492 = vrot.lane.b32.xlu2 %v7580_v39, %s8699_s17 }
 0x22b   : > { %v4323_v5 = vpop.permute.xlu1 %4322  ;;  %v1685_v53 = vmul.f32 %v1665_v42, %v1665_v42 }
 0x22c   : > { %v1950_v63 = vmul.f32 %v4842_v55, %v1949_v45  ;;  %v4325_v58 = vunpack.i.h.bf16 %v4323_v5  ;;  %v4324_v24 = vunpack.i.l.bf16 %v4323_v5  ;;  %v4846_v57 = vpop.eup %4845 }
 0x22d   : > { %v7932_v28 = vadd.f32 1.0, %v1685_v53 }
 0x22e   : > { %v4358_v52 = vpop.permute.xlu2 %4357  ;;  %v7904_v26 = vsel %vm2571_vm15, %v3177_v1, %v4324_v24  ;;  %v7907_v46 = vsel %vm2571_vm15, %v3178_v43, %v4324_v24  ;;  %v3195_v15 = vsel %vm2571_vm15, %v7842_v41, %v4325_v58  ;;  %v3196_v39 = vsel %vm2571_vm15, %v7838_v21, %v4325_v58  ;;  %v4848_v41 = vpop.eup %4847  ;;  %v8717_v43 = vld [vmem:[#allocation17_spill] sm:$0xff] }
 0x22f   : > { %4467 = vrot.lane.b32.xlu0 %v7474_v40, %s4902_s21  ;;  %4502 = vrot.lane.b32.xlu1 %v7607_v3, %s4910_s14  ;;  %v4318_v40 = vpop.permute.xlu0 %4317  ;;  %v4360_v22 = vunpack.i.h.bf16 %v4358_v52  ;;  %v4359_v51 = vunpack.i.l.bf16 %v4358_v52  ;;  %v1951_v17 = vadd.f32 %v4842_v55, %v1950_v63  ;;  %v1956_v21 = vand.u32 2147483647, %v7822_v34  ;;  %v8718_v63 = vld [vmem:[#allocation19_spill] sm:$0xff] }
 0x230   : > { %v4320_v32 = vunpack.i.h.bf16 %v4318_v40  ;;  %v4319_v9 = vunpack.i.l.bf16 %v4318_v40  ;;  %4849 = vrcp.f32 %v7932_v28  ;;  %vm1968_vm1 = vweird.f32 %v4848_v41 }
 0x231   : > { %v1955_v7 = vsel %vm1954_vm11, %v4842_v55, %v1951_v17  ;;  %vm1957_vm7 = vcmp.eq.f32.partialorder %v1956_v21, 8.507059e+37  ;;  %v7939_v1 = vsel %vm2580_vm6, %v3195_v15, %v4359_v51  ;;  %v7942_v55 = vsel %vm2580_vm6, %v3196_v39, %v4360_v22 }
 0x232   : > { %v7915_v19 = vsel %vm2571_vm15, %v7830_v54, %v4319_v9  ;;  %v7919_v23 = vsel %vm2571_vm15, %v7826_v60, %v4319_v9  ;;  %v7922_v31 = vsel %vm2571_vm15, %v3175_v10, %v4320_v32  ;;  %v7925_v14 = vsel %vm2571_vm15, %v3176_v29, %v4320_v32  ;;  %4507 = vrot.lane.b32.xlu2 %v7701_v27, %s4910_s14 }
 0x233   : > { %v1959_v54 = vor.u32 1.1754944e-38, %v1958_v12  ;;  %v1963_v60 = vmul.f32 %v4848_v41, %v7877_v20  ;;  %vm1967_vm15 = vweird.f32 %v7877_v20  ;;  %v1973_v24 = vand.u32 2147483648, %v7877_v20  ;;  %v8719_v12 = vld [vmem:[#allocation18_spill] sm:$0xff] }
 0x234   : > { %vm7961_vm12 = vmor %vm1967_vm15, %vm1968_vm1  ;;  %v1971_v22 = vand.u32 2147483647, %v7877_v20  ;;  %v8722_v39 = vrot.slane %v7044_v0, 7  ;;  %vm1982_vm11 = vweird.f32 %v7932_v28 }
 0x235   : > { %v1960_v48 = vsel %vm1957_vm7, %v1959_v54, %v1955_v7  ;;  %v1964_v38 = vsub.f32 1.0, %v1963_v60 }
 0x236   : > { %v1961_v50 = vmul.f32 2.0, %v1960_v48  ;;  %v4373_v52 = vpop.permute.xlu2 %4372  ;;  %v4850_v40 = vpop.eup %4849  ;;  %v1974_v48 = vor.u32 1.1754944e-38, %v1973_v24  ;;  %vm1972_vm8 = vcmp.eq.f32.partialorder %v1971_v22, 8.507059e+37 }
 0x237   : > { %4482 = vrot.lane.b32.xlu0 %v7607_v3, %s4907_s11  ;;  %4517 = vrot.lane.b32.xlu1 %v8717_v43, %s4902_s21  ;;  %v1666_v3 = vadd.f32 1.0, %v4846_v57  ;;  %v1965_v11 = vmul.f32 %v4848_v41, %v1964_v38  ;;  %v4375_v32 = vunpack.i.h.bf16 %v4373_v52  ;;  %v8723_v57 = vld [vmem:[#allocation10_spill] sm:$0xff]  ;;  %v1978_v53 = vmul.f32 %v4850_v40, %v7932_v28 }
 0x238   : > { %v2023_v5 = vsub.f32 1.0, %v1961_v50  ;;  %v8724_v17 = vrot.slane %v8723_v57, 7  ;;  %vm1983_vm7 = vweird.f32 %v4850_v40  ;;  %v8725_v50 = vld [vmem:[#allocation12_spill] sm:$0xff] }
 0x239   : > { %v4338_v34 = vpop.permute.xlu1 %4337  ;;  %v1686_v10 = vmul.f32 %v1666_v3, %v1666_v3  ;;  %v1966_v58 = vadd.f32 %v4848_v41, %v1965_v11  ;;  %v1979_v0 = vsub.f32 1.0, %v1978_v53  ;;  %v1986_v11 = vand.u32 2147483647, %v7932_v28  ;;  %vm8003_vm15 = vmor %vm1982_vm11, %vm1983_vm7 }
 0x23a   : > { %v4340_v37 = vunpack.i.h.bf16 %v4338_v34  ;;  %v4339_v45 = vunpack.i.l.bf16 %v4338_v34  ;;  %4522 = vrot.lane.b32.xlu2 %v8719_v12, %s4902_s21  ;;  %v4511_v21 = vpack.i.bf16 %v8724_v17, %v8722_v39  ;;  %v7971_v54 = vmul.f32 %v2023_v5, %v7748_v35 }
 0x23b   : > { %v1706_v51 = vadd.f32 1.0, %v1686_v10  ;;  %v1970_v60 = vsel %vm7961_vm12, %v4848_v41, %v1966_v58  ;;  %v1988_v10 = vand.u32 2147483648, %v7932_v28  ;;  %vm1987_vm1 = vcmp.eq.f32.partialorder %v1986_v11, 8.507059e+37 }
 0x23c   : > { %v7947_v30 = vsel %vm2580_vm6, %v7799_v13, %v4339_v45  ;;  %v7951_v29 = vsel %vm2580_vm6, %v7802_v4, %v4340_v37  ;;  %v4374_v13 = vunpack.i.l.bf16 %v4373_v52  ;;  %v2918_v38 = vrot.slane %v7971_v54, 7 }
 0x23d   : > { %4851 = vrcp.f32 %v1706_v51  ;;  %v1980_v45 = vmul.f32 %v4850_v40, %v1979_v0  ;;  %vm1997_vm12 = vweird.f32 %v1706_v51  ;;  %v2001_v22 = vand.u32 2147483647, %v1706_v51 }
 0x23e   : > { %v8018_v57 = vpop.permute.xlu2 %4387 }
 0x23f   : > { %4497 = vrot.lane.b32.xlu0 %v8718_v63, %s8699_s17  ;;  %4532 = vrot.lane.b32.xlu1 %v7530_v56, %s4907_s11  ;;  %v4333_v4 = vpop.permute.xlu0 %4332  ;;  %v1981_v5 = vadd.f32 %v4850_v40, %v1980_v45  ;;  %vm2002_vm7 = vcmp.eq.f32.partialorder %v2001_v22, 8.507059e+37 }
 0x240   : > { %v4335_v9 = vunpack.i.h.bf16 %v4333_v4  ;;  %v4334_v15 = vunpack.i.l.bf16 %v4333_v4  ;;  %v2003_v4 = vand.u32 2147483648, %v1706_v51 }
 0x241   : > { %v1985_v28 = vsel %vm8003_vm15, %v4850_v40, %v1981_v5  ;;  %vm3505_vm15 = vcmask 1043456  }
 0x242   : > { %v3201_v7 = vsel %vm2580_vm6, %v7805_v6, %v4334_v15  ;;  %v3202_v20 = vsel %vm2580_vm6, %v7808_v2, %v4335_v9  ;;  %v1975_v2 = vsel %vm1972_vm8, %v1974_v48, %v1970_v60  ;;  %4537 = vrot.lane.b32.xlu2 %v8725_v50, %s8705_s20  ;;  %v2004_v9 = vor.u32 1.1754944e-38, %v2003_v4 }
 0x243   : > { %v7981_v43 = vsel %vm2589_vm2, %v3201_v7, %v4374_v13  ;;  %v7984_v34 = vsel %vm2589_vm2, %v3202_v20, %v4375_v32  ;;  %v4852_v52 = vpop.eup %4851  ;;  %v1989_v13 = vor.u32 1.1754944e-38, %v1988_v10 }
 0x244   : > { %v4353_v35 = vpop.permute.xlu1 %4352  ;;  %v1993_v24 = vmul.f32 %v4852_v52, %v1706_v51  ;;  %vm1998_vm8 = vweird.f32 %v4852_v52 }
 0x245   : > { %v4355_v6 = vunpack.i.h.bf16 %v4353_v35  ;;  %v4354_v37 = vunpack.i.l.bf16 %v4353_v35  ;;  %vm1999_vm11 = vmor %vm1997_vm12, %vm1998_vm8 }
 0x246   : > { %v1994_v42 = vsub.f32 1.0, %v1993_v24 }
 0x247   : > { %4512 = vrot.lane.b32.xlu0 %v4511_v21, %s4906_s10  ;;  %4547 = vrot.lane.b32.xlu1 %v7480_v49, %s8699_s17  ;;  %v7993_v41 = vsel %vm2580_vm6, %v7904_v26, %v4354_v37  ;;  %v7997_v3 = vsel %vm2580_vm6, %v7907_v46, %v4355_v6  ;;  %v8728_v49 = vrot.slane %v7163_v25, 7  ;;  %v1976_v46 = vmul.f32 2.0, %v1975_v2 }
 0x248   : > { %v1995_v32 = vmul.f32 %v4852_v52, %v1994_v42  ;;  %v1990_v25 = vsel %vm1987_vm1, %v1989_v13, %v1985_v28  ;;  %vm8729_vm1 = vcmask 326656  }
 0x249   : > { %v4561_v26 = vpack.i.bf16 %v2918_v38, %v8728_v49  ;;  %v2024_v15 = vsub.f32 1.0, %v1976_v46  ;;  %v1991_v40 = vmul.f32 2.0, %v1990_v25  ;;  %v3897_v25 = vld [vmem:[%s8371_s3 + $0x60] sm:$0xff]  ;;  %vm8731_vm12 = vmmov %vm8729_vm1 }
 0x24a   : > { %4552 = vrot.lane.b32.xlu2 %v7530_v56, %s4910_s14  ;;  %v1996_v39 = vadd.f32 %v4852_v52, %v1995_v32  ;;  %v2992_v56 = vrot.slane %v7971_v54, 1  ;;  %vm8732_vm8 = vmmov %vm8729_vm1 }
 0x24b   : > { %v2044_v21 = vmul.f32 %v2024_v15, %v7793_v62  ;;  %v2025_v53 = vsub.f32 1.0, %v1991_v40 }
 0x24c   : > { %v2000_v17 = vsel %vm1999_vm11, %v4852_v52, %v1996_v39  ;;  %vm8733_vm11 = vmmov %vm8729_vm1 }
 0x24d   : > { %v2005_v51 = vsel %vm2002_vm7, %v2004_v9, %v2000_v17  ;;  %v2993_v20 = vrot.slane %v2044_v21, 1  ;;  %v2045_v35 = vmul.f32 %v2025_v53, %v7832_v8  ;;  %v4591_v6 = vpack.i.bf16 %v2044_v21, %v7971_v54  ;;  %v8042_v8 = vpop.permute.xlu0 %4347  ;;  %v3895_v21 = vld [vmem:[%s8371_s3 + $0x50] sm:$0xff]  ;;  %vm8734_vm7 = vmmov %vm8729_vm1 }
 0x24f   : > { %4527 = vrot.lane.b32.xlu0 %v7625_v47, %s4907_s11  ;;  %4562 = vrot.lane.b32.xlu1 %v4561_v26, %s4906_s10  ;;  %v2006_v47 = vmul.f32 2.0, %v2005_v51  ;;  %v3044_v52 = vrot.slane %v2045_v35, 7 }
 0x251   : > { %v2026_v7 = vsub.f32 1.0, %v2006_v47  ;;  %v4586_v42 = vpack.i.bf16 %v3044_v52, %v2918_v38 }
 0x252   : > { %4567 = vrot.lane.b32.xlu2 %v8718_v63, %s4902_s21 }
 0x253   : > { %v2046_v60 = vmul.f32 %v2026_v7, %v7860_v18  ;;  %v3118_v18 = vrot.slane %v2045_v35, 1 }
 0x254   : > { %v4403_v2 = vpop.permute.xlu2 %4402 }
 0x255   : > { %v3119_v63 = vrot.slane %v2046_v60, 1  ;;  %v4596_v10 = vpack.i.bf16 %v2046_v60, %v2045_v35  ;;  %v4405_v49 = vunpack.i.h.bf16 %v4403_v2  ;;  %v4404_v46 = vunpack.i.l.bf16 %v4403_v2 }
 0x256   : > { %v4344_v2 = vunpack.i.l.bf16 %v7846_v61 }
 0x257   : > { %4542 = vrot.lane.b32.xlu0 %v8719_v12, %s8699_s17  ;;  %4577 = vrot.lane.b32.xlu1 %v7701_v27, %s4907_s11  ;;  %v2994_v12 = vsel %vm2063_vm9, %v2992_v56, %v2993_v20  ;;  %v3120_v50 = vsel %vm2063_vm9, %v3118_v18, %v3119_v63  ;;  %v4389_v18 = vunpack.i.l.bf16 %v8018_v57 }
 0x258   : > { %v4581_v37 = vpack.i.bf16 %v2993_v20, %v2994_v12  ;;  %v4349_v12 = vunpack.i.l.bf16 %v8042_v8 }
 0x259   : > { %v4368_v48 = vpop.permute.xlu1 %4367 }
 0x25a   : > { %v4370_v0 = vunpack.i.h.bf16 %v4368_v48  ;;  %v4369_v62 = vunpack.i.l.bf16 %v4368_v48  ;;  %4582 = vrot.lane.b32.xlu2 %v4581_v37, %s4907_s11  ;;  %s3825_s11 = sshll.u32 %s8754_s25, 3 }
 0x25b   : > { %s415_s18 = sadd.s32 %s3825_s11, %s8760_s24 }
 0x25c   : > { %v8034_v45 = vsel %vm2580_vm6, %v7880_v36, %v4369_v62  ;;  %v8038_v27 = vsel %vm2580_vm6, %v7883_v44, %v4370_v0  ;;  %v4606_v36 = vpack.i.bf16 %v3119_v63, %v3120_v50  ;;  %v3411_v44 = vld [vmem:[%s8371_s3 + $0x68] sm:$0xf]  ;;  %v3207_v50 = vsel %vm2580_vm6, %v7922_v31, %v4349_v12  ;;  %s3826_s15 = sshll.u32 %s415_s18, 3 }
 0x25d   : > { %v3465_v5 = vunpack.c.l.b16 %v3411_v44  ;;  %v3223_v31 = vsel %vm2589_vm2, %v3207_v50, %v4389_v18  ;;  %s417_s22 = scalar_lea.vmem %s8375_s7, %s3826_s15 }
 0x25f   : > { %4557 = vrot.lane.b32.xlu0 %v7500_v33, %s4910_s14  ;;  %4592 = vrot.lane.b32.xlu1 %v4591_v6, %s8699_s17  ;;  %v8053_v33 = vpop.permute.xlu2 %4417  ;;  %v3479_v58 = vpack.c.b16 %v3465_v5, %v3465_v5 }
 0x261   : > { %v8047_v11 = vpop.permute.xlu1 %4382  ;;  %v3507_v28 = vsel %vm3505_vm15, %v3479_v58, 0  ;;  %vm8735_vm15 = vmmov %vm8729_vm1 }
 0x262   : > { %4597 = vrot.lane.b32.xlu2 %v4596_v10, %s8699_s17  ;;  %3906 = vmatpush.bf16.msra.mxu3 %v3507_v28 }
 0x263   : > { %3540 = vmatpush.bf16.msra.mxu1 %v3507_v28 }
 0x266   : > { %3907 = vmatpush.bf16.msra.mxu3 %v3897_v25 }
 0x267   : > { %4572 = vrot.lane.b32.xlu0 %v4591_v6, %s4902_s21  ;;  %4607 = vrot.lane.b32.xlu1 %v4606_v36, %s4910_s14  ;;  %v8075_v54 = vpop.permute.xlu2 %4432  ;;  %v4350_v6 = vunpack.i.h.bf16 %v8042_v8  ;;  %v4385_v8 = vunpack.i.h.bf16 %v8047_v11 }
 0x268   : > { %3541 = vmatpush.bf16.msra.mxu1 %v3897_v25 }
 0x269   : > { %v4363_v26 = vpop.permute.xlu0 %4362  ;;  %v8057_v4 = vpop.permute.xlu1 %4397  ;;  %v3208_v10 = vsel %vm2580_vm6, %v7925_v14, %v4350_v6  ;;  %v4419_v14 = vunpack.i.l.bf16 %v8053_v33 }
 0x26a   : > { %v4365_v24 = vunpack.i.h.bf16 %v4363_v26  ;;  %v4364_v13 = vunpack.i.l.bf16 %v4363_v26  ;;  %v4420_v26 = vunpack.i.h.bf16 %v8053_v33 }
 0x26c   : > { %v3213_v22 = vsel %vm2580_vm6, %v7886_v16, %v4364_v13  ;;  %v3214_v32 = vsel %vm2580_vm6, %v7889_v59, %v4365_v24  ;;  %v3896_v59 = vld [vmem:[%s8371_s3 + $0x58] sm:$0xff]  ;;  %v4435_v24 = vunpack.i.h.bf16 %v8075_v54 }
 0x26d   : > { %v8069_v9 = vsel %vm2589_vm2, %v3213_v22, %v4404_v46  ;;  %v8072_v15 = vsel %vm2589_vm2, %v3214_v32, %v4405_v49  ;;  %3908 = vmatpush.bf16.msra.mxu3 %v3896_v59  ;;  %3542 = vmatpush.bf16.msra.mxu1 %v3896_v59 }
 0x26f   : > { %4587 = vrot.lane.b32.xlu0 %v4586_v42, %s8705_s20  ;;  %v8099_v7 = vpop.permute.xlu2 %4447 }
 0x270   : > { %v4450_v42 = vunpack.i.h.bf16 %v8099_v7  ;;  %v4449_v32 = vunpack.i.l.bf16 %v8099_v7 }
 0x271   : > { %v4378_v16 = vpop.permute.xlu0 %4377  ;;  %v4413_v40 = vpop.permute.xlu1 %4412  ;;  %3909 = vmatpush.bf16.msra.mxu3 %v3895_v21  ;;  %3543 = vmatpush.bf16.msra.mxu1 %v3895_v21 }
 0x272   : > { %v4380_v38 = vunpack.i.h.bf16 %v4378_v16  ;;  %v4379_v39 = vunpack.i.l.bf16 %v4378_v16  ;;  %v4415_v44 = vunpack.i.h.bf16 %v4413_v40  ;;  %v4414_v58 = vunpack.i.l.bf16 %v4413_v40 }
 0x274   : > { %v8082_v17 = vsel %vm2589_vm2, %v7951_v29, %v4380_v38  ;;  %v8086_v51 = vsel %vm2589_vm2, %v7947_v30, %v4379_v39  ;;  %v3894_v29 = vld [vmem:[%s8371_s3 + $0x48] sm:$0xff]  ;;  %v3893_v30 = vld [vmem:[%s8371_s3 + $0x40] sm:$0xff]  ;;  %v3239_v13 = vsel %vm8729_vm1, %v3223_v31, %v4415_v44 }
 0x275   : > { %3910 = vmatpush.bf16.msra.mxu3 %v3894_v29  ;;  %3544 = vmatpush.bf16.msra.mxu1 %v3894_v29 }
 0x277   : > { %4602 = vrot.lane.b32.xlu0 %v4581_v37, %s4910_s14  ;;  %v8114_v35 = vpop.permute.xlu2 %4462  ;;  %v4345_v37 = vunpack.i.h.bf16 %v7846_v61  ;;  %v3205_v61 = vsel %vm2580_vm6, %v7915_v19, %v4344_v2  ;;  %v4434_v19 = vunpack.i.l.bf16 %v8075_v54  ;;  %s3822_s14 = sshll.u32 %s8760_s24, 3 }
 0x278   : > { %s407_s23 = sadd.s32 %s3823_s8, %s3822_s14 }
 0x279   : > { %v8092_v47 = vpop.permute.xlu0 %4392  ;;  %v8097_v53 = vpop.permute.xlu1 %4427  ;;  %3911 = vmatpush.bf16.msra.mxu3 %v3893_v30  ;;  %3545 = vmatpush.bf16.msra.mxu1 %v3893_v30  ;;  %s3824_s20 = sshll.u32 %s407_s23, 3 }
 0x27a   : > { %v4430_v54 = vunpack.i.h.bf16 %v8097_v53  ;;  %v4429_v38 = vunpack.i.l.bf16 %v8097_v53  ;;  %s8313_s21 = scalar_lea.vmem %s8374_s6, %s3824_s20 }
 0x27f   : > { %v8133_v49 = vpop.permute.xlu2 %4477 }
 0x281   : > { %v4408_v56 = vpop.permute.xlu0 %4407  ;;  %v8104_v48 = vpop.permute.xlu1 %4442 }
 0x282   : > { %v4410_v20 = vunpack.i.h.bf16 %v4408_v56  ;;  %v4409_v60 = vunpack.i.l.bf16 %v4408_v56  ;;  %v4445_v50 = vunpack.i.h.bf16 %v8104_v48 }
 0x284   : > { %v8108_v0 = vsel %vm2589_vm2, %v8038_v27, %v4410_v20  ;;  %v8112_v62 = vsel %vm2589_vm2, %v8034_v45, %v4409_v60  ;;  %v4390_v27 = vunpack.i.h.bf16 %v8018_v57  ;;  %v4384_v45 = vunpack.i.l.bf16 %v8047_v11 }
 0x285   : > { %v3206_v57 = vsel %vm2580_vm6, %v7919_v23, %v4345_v37  ;;  %vm8730_vm6 = vmmov %vm8729_vm1 }
 0x286   : > { %v3221_v46 = vsel %vm2589_vm2, %v3205_v61, %v4384_v45  ;;  %v3224_v11 = vsel %vm2589_vm2, %v3208_v10, %v4390_v27  ;;  %v3222_v28 = vsel %vm2589_vm2, %v3206_v57, %v4385_v8  ;;  %v4444_v45 = vunpack.i.l.bf16 %v8104_v48 }
 0x287   : > { %v3240_v23 = vsel %vm8730_vm6, %v3224_v11, %v4415_v44  ;;  %v3237_v25 = vsel %vm8731_vm12, %v3221_v46, %v4414_v58  ;;  %v3238_v16 = vsel %vm8732_vm8, %v3222_v28, %v4414_v58  ;;  %v4493_v44 = vpop.permute.xlu2 %4492  ;;  %v4395_v11 = vunpack.i.h.bf16 %v8092_v47  ;;  %vm8737_vm6 = vmmov %vm8729_vm1 }
 0x288   : > { %v3253_v12 = vsel %vm2607_vm4, %v3237_v25, %v4419_v14  ;;  %v3254_v6 = vsel %vm2607_vm4, %v3238_v16, %v4420_v26  ;;  %v4479_v25 = vunpack.i.l.bf16 %v8133_v49  ;;  %vm8738_vm12 = vmmov %vm8729_vm1 }
 0x289   : > { %v4423_v63 = vpop.permute.xlu0 %4422  ;;  %v4458_v36 = vpop.permute.xlu1 %4457  ;;  %v3269_v2 = vsel %vm2616_vm5, %v3253_v12, %v4429_v38  ;;  %v3270_v18 = vsel %vm2616_vm5, %v3254_v6, %v4430_v54  ;;  %vm8739_vm8 = vmmov %vm8729_vm1 }
 0x28a   : > { %v4425_v5 = vunpack.i.h.bf16 %v4423_v63  ;;  %v4424_v52 = vunpack.i.l.bf16 %v4423_v63  ;;  %v4460_v40 = vunpack.i.h.bf16 %v4458_v36  ;;  %v4459_v21 = vunpack.i.l.bf16 %v4458_v36 }
 0x28c   : > { %v3255_v22 = vsel %vm2607_vm4, %v3239_v13, %v4424_v52  ;;  %v3256_v33 = vsel %vm2607_vm4, %v3240_v23, %v4425_v5  ;;  %v4394_v13 = vunpack.i.l.bf16 %v8092_v47  ;;  %v4464_v23 = vunpack.i.l.bf16 %v8114_v35 }
 0x28d   : > { %v3271_v30 = vsel %vm2616_vm5, %v3255_v22, %v4434_v19  ;;  %v3272_v56 = vsel %vm2616_vm5, %v3256_v33, %v4435_v24  ;;  %v3226_v22 = vsel %vm2589_vm2, %v7997_v3, %v4395_v11 }
 0x28e   : > { %v3225_v54 = vsel %vm2589_vm2, %v7993_v41, %v4394_v13  ;;  %v3242_v3 = vsel %vm8734_vm7, %v3226_v22, %v4464_v23  ;;  %vm8741_vm7 = vmmov %vm8729_vm1 }
 0x28f   : > { %v4508_v16 = vpop.permute.xlu2 %4507 }
 0x290   : > { %v4510_v13 = vunpack.i.h.bf16 %v4508_v16 }
 0x291   : > { %v4438_v59 = vpop.permute.xlu0 %4437  ;;  %v8152_v29 = vpop.permute.xlu1 %4472 }
 0x292   : > { %v4440_v39 = vunpack.i.h.bf16 %v4438_v59  ;;  %v4439_v20 = vunpack.i.l.bf16 %v4438_v59 }
 0x294   : > { %v3287_v7 = vsel %vm2625_vm3, %v3271_v30, %v4440_v39  ;;  %v3288_v60 = vsel %vm2625_vm3, %v3272_v56, %v4440_v39  ;;  %v3285_v8 = vsel %vm2625_vm3, %v3269_v2, %v4439_v20  ;;  %v3286_v5 = vsel %vm2625_vm3, %v3270_v18, %v4439_v20 }
 0x295   : > { %v3303_v53 = vsel %vm2634_vm13, %v3287_v7, %v4449_v32  ;;  %v3304_v37 = vsel %vm2634_vm13, %v3288_v60, %v4450_v42  ;;  %v3301_v26 = vsel %vm2634_vm13, %v3285_v8, %v4444_v45  ;;  %v3302_v14 = vsel %vm2634_vm13, %v3286_v5, %v4445_v50 }
 0x296   : > { %v3319_v63 = vsel %vm2643_vm0, %v3303_v53, %v4459_v21  ;;  %v3320_v27 = vsel %vm2643_vm0, %v3304_v37, %v4460_v40  ;;  %v4480_v32 = vunpack.i.h.bf16 %v8133_v49  ;;  %v3241_v40 = vsel %vm8733_vm11, %v3225_v54, %v4464_v23  ;;  %vm8740_vm11 = vmmov %vm8729_vm1 }
 0x297   : > { %v3354_v36 = vrot.slane %v3319_v63, 1  ;;  %v3355_v10 = vrot.slane %v3320_v27, 1  ;;  %v4495_v21 = vunpack.i.h.bf16 %v4493_v44  ;;  %v4494_v30 = vunpack.i.l.bf16 %v4493_v44 }
 0x298   : > { %v4400_v63 = vunpack.i.h.bf16 %v8057_v4  ;;  %v4399_v27 = vunpack.i.l.bf16 %v8057_v4  ;;  %v4475_v8 = vunpack.i.h.bf16 %v8152_v29  ;;  %v4474_v5 = vunpack.i.l.bf16 %v8152_v29 }
 0x299   : > { %v4453_v52 = vpop.permute.xlu0 %4452  ;;  %v3356_v61 = vsel %vm2063_vm9, %v3354_v36, %v3355_v10  ;;  %v8171_v31 = vpop.permute.xlu1 %4487  ;;  %v4465_v10 = vunpack.i.h.bf16 %v8114_v35 }
 0x29a   : > { %v4455_v57 = vunpack.i.h.bf16 %v4453_v52  ;;  %v4454_v58 = vunpack.i.l.bf16 %v4453_v52  ;;  %v4489_v47 = vunpack.i.l.bf16 %v8171_v31  ;;  %v8206_v52 = vpop.permute.xlu2 %4522  ;;  %v3228_v4 = vsel %vm2589_vm2, %v7942_v55, %v4400_v63 }
 0x29b   : > { %v3244_v35 = vsel %vm8729_vm1, %v3228_v4, %v4465_v10 }
 0x29c   : > { %v3317_v48 = vsel %vm2643_vm0, %v3301_v26, %v4454_v58  ;;  %v3318_v46 = vsel %vm2643_vm0, %v3302_v14, %v4455_v57  ;;  %v3227_v26 = vsel %vm2589_vm2, %v7939_v1, %v4399_v27  ;;  %v3260_v29 = vsel %vm2607_vm4, %v3244_v35, %v4475_v8  ;;  %vm8736_vm2 = vmmov %vm8729_vm1 }
 0x29d   : > { %v3351_v24 = vrot.slane %v3317_v48, 1  ;;  %v3352_v19 = vrot.slane %v3318_v46, 1  ;;  %v3243_v14 = vsel %vm8735_vm15, %v3227_v26, %v4465_v10  ;;  %v4490_v46 = vunpack.i.h.bf16 %v8171_v31  ;;  %vm8742_vm15 = vmmov %vm8729_vm1 }
 0x29e   : > { %v3259_v48 = vsel %vm2607_vm4, %v3243_v14, %v4474_v5  ;;  %v4509_v1 = vunpack.i.l.bf16 %v4508_v16  ;;  %v4525_v27 = vunpack.i.h.bf16 %v8206_v52 }
 0x29f   : > { %v3353_v28 = vsel %vm2063_vm9, %v3351_v24, %v3352_v19 }
 0x2a0   : > { %v3380_v42 = vpack.c.bf16 %v3356_v61, %v3353_v28 }
 0x2a1   : > { %v4468_v33 = vpop.permute.xlu0 %4467  ;;  %v4503_v39 = vpop.permute.xlu1 %4502 }
 0x2a2   : > { %v4470_v59 = vunpack.i.h.bf16 %v4468_v33  ;;  %v4469_v38 = vunpack.i.l.bf16 %v4468_v33  ;;  %3880 = vmatmul.msk.bf16.vlgmr.msra.gmra.mxu3 %vm2652_vm10, %v3380_v42  ;;  %v4505_v20 = vunpack.i.h.bf16 %v4503_v39  ;;  %v4504_v7 = vunpack.i.l.bf16 %v4503_v39  ;;  %v4538_v54 = vpop.permute.xlu2 %4537 }
 0x2a3   : > { %v4540_v35 = vunpack.i.h.bf16 %v4538_v54 }
 0x2a4   : > { %v3257_v56 = vsel %vm2607_vm4, %v3241_v40, %v4469_v38  ;;  %v3258_v49 = vsel %vm2607_vm4, %v3242_v3, %v4470_v59 }
 0x2a5   : > { %v3273_v41 = vsel %vm2616_vm5, %v3257_v56, %v4479_v25  ;;  %v3274_v60 = vsel %vm2616_vm5, %v3258_v49, %v4480_v32 }
 0x2a6   : > { %v3289_v12 = vsel %vm2625_vm3, %v3273_v41, %v4489_v47  ;;  %v3290_v6 = vsel %vm2625_vm3, %v3274_v60, %v4489_v47 }
 0x2a7   : > { %v3305_v53 = vsel %vm2634_vm13, %v3289_v12, %v4494_v30  ;;  %v3306_v37 = vsel %vm2634_vm13, %v3290_v6, %v4495_v21 }
 0x2a8   : > { %v3321_v2 = vsel %vm2643_vm0, %v3305_v53, %v4504_v7  ;;  %v3322_v18 = vsel %vm2643_vm0, %v3306_v37, %v4505_v20 }
 0x2a9   : > { %v4483_v50 = vpop.permute.xlu0 %4482  ;;  %v3357_v45 = vrot.slane %v3321_v2, 1  ;;  %v3358_v36 = vrot.slane %v3322_v18, 1  ;;  %v4518_v44 = vpop.permute.xlu1 %4517  ;;  %v4539_v2 = vunpack.i.l.bf16 %v4538_v54 }
 0x2aa   : > { %v4485_v57 = vunpack.i.h.bf16 %v4483_v50  ;;  %v4484_v58 = vunpack.i.l.bf16 %v4483_v50  ;;  %v4553_v3 = vpop.permute.xlu2 %4552  ;;  %v4520_v49 = vunpack.i.h.bf16 %v4518_v44  ;;  %v4519_v20 = vunpack.i.l.bf16 %v4518_v44 }
 0x2ab   : > { %v3359_v61 = vsel %vm2063_vm9, %v3357_v45, %v3358_v36  ;;  %v4524_v50 = vunpack.i.l.bf16 %v8206_v52  ;;  %v4555_v45 = vunpack.i.h.bf16 %v4553_v3  ;;  %v4554_v36 = vunpack.i.l.bf16 %v4553_v3 }
 0x2ac   : > { %v3276_v11 = vsel %vm2616_vm5, %v3260_v29, %v4485_v57  ;;  %v3275_v24 = vsel %vm2616_vm5, %v3259_v48, %v4484_v58 }
 0x2ad   : > { %v3291_v42 = vsel %vm2625_vm3, %v3275_v24, %v4490_v46  ;;  %v3292_v22 = vsel %vm2625_vm3, %v3276_v11, %v4490_v46 }
 0x2b1   : > { %v4498_v19 = vpop.permute.xlu0 %4497  ;;  %v4533_v55 = vpop.permute.xlu1 %4532 }
 0x2b2   : > { %v4500_v23 = vunpack.i.h.bf16 %v4498_v19  ;;  %v4499_v28 = vunpack.i.l.bf16 %v4498_v19  ;;  %v4535_v10 = vunpack.i.h.bf16 %v4533_v55  ;;  %v4534_v44 = vunpack.i.l.bf16 %v4533_v55 }
 0x2b4   : > { %v3307_v33 = vsel %vm2634_vm13, %v3291_v42, %v4499_v28  ;;  %v3308_v32 = vsel %vm2634_vm13, %v3292_v22, %v4500_v23 }
 0x2b5   : > { %v3323_v31 = vsel %vm2643_vm0, %v3307_v33, %v4509_v1  ;;  %v3324_v25 = vsel %vm2643_vm0, %v3308_v32, %v4510_v13 }
 0x2b6   : > { %v3360_v59 = vrot.slane %v3323_v31, 1  ;;  %v3361_v38 = vrot.slane %v3324_v25, 1 }
 0x2b8   : > { %v3362_v16 = vsel %vm2063_vm9, %v3360_v59, %v3361_v38 }
 0x2b9   : > { %v4513_v47 = vpop.permute.xlu0 %4512  ;;  %v3382_v39 = vpack.c.bf16 %v3362_v16, %v3359_v61  ;;  %v4548_v40 = vpop.permute.xlu1 %4547 }
 0x2ba   : > { %v4514_v21 = vunpack.i.l.bf16 %v4513_v47  ;;  %v4515_v6 = vunpack.i.h.bf16 %v4513_v47  ;;  %v4550_v13 = vunpack.i.h.bf16 %v4548_v40  ;;  %v4549_v1 = vunpack.i.l.bf16 %v4548_v40 }
 0x2bb   : > { %3881 = vmatmul.msk.bf16.gmra.mxu3 %vm2652_vm10, %v3382_v39 }
 0x2bc   : > { %v3233_v7 = vsel %vm8736_vm2, %v7981_v43, %v4514_v21  ;;  %v3234_v41 = vsel %vm8737_vm6, %v7984_v34, %v4514_v21  ;;  %v8240_v34 = vpop.permute.xlu2 %4567  ;;  %v3235_v61 = vsel %vm8738_vm12, %v8086_v51, %v4515_v6  ;;  %v3236_v57 = vsel %vm8739_vm8, %v8082_v17, %v4515_v6 }
 0x2bd   : > { %v3249_v53 = vsel %vm2607_vm4, %v3233_v7, %v4519_v20  ;;  %v3250_v37 = vsel %vm2607_vm4, %v3234_v41, %v4520_v49  ;;  %v3251_v51 = vsel %vm2607_vm4, %v3235_v61, %v4524_v50  ;;  %v3252_v46 = vsel %vm2607_vm4, %v3236_v57, %v4525_v27 }
 0x2be   : > { %v3267_v24 = vsel %vm2616_vm5, %v3251_v51, %v4534_v44  ;;  %v3268_v19 = vsel %vm2616_vm5, %v3252_v46, %v4535_v10  ;;  %v4570_v41 = vunpack.i.h.bf16 %v8240_v34 }
 0x2bf   : > { %v3283_v55 = vsel %vm2625_vm3, %v3267_v24, %v4540_v35  ;;  %v3284_v42 = vsel %vm2625_vm3, %v3268_v19, %v4540_v35 }
 0x2c0   : > { %v3299_v32 = vsel %vm2634_vm13, %v3283_v55, %v4549_v1  ;;  %v3300_v31 = vsel %vm2634_vm13, %v3284_v42, %v4550_v13 }
 0x2c1   : > { %v4528_v30 = vpop.permute.xlu0 %4527  ;;  %v8228_v56 = vpop.permute.xlu1 %4562 }
 0x2c2   : > { %v4530_v60 = vunpack.i.h.bf16 %v4528_v30  ;;  %v4529_v12 = vunpack.i.l.bf16 %v4528_v30  ;;  %v4565_v21 = vunpack.i.h.bf16 %v8228_v56  ;;  %v4564_v20 = vunpack.i.l.bf16 %v8228_v56 }
 0x2c4   : > { %v3265_v18 = vsel %vm2616_vm5, %v3249_v53, %v4529_v12  ;;  %v3266_v63 = vsel %vm2616_vm5, %v3250_v37, %v4530_v60  ;;  %v4583_v25 = vpop.permute.xlu2 %4582  ;;  %v3247_v60 = vsel %vm8740_vm11, %v8112_v62, %v4565_v21  ;;  %v3248_v12 = vsel %vm8741_vm7, %v8108_v0, %v4565_v21 }
 0x2c5   : > { %v3281_v58 = vsel %vm2625_vm3, %v3265_v18, %v4539_v2  ;;  %v3282_v26 = vsel %vm2625_vm3, %v3266_v63, %v4539_v2  ;;  %v4585_v6 = vunpack.i.h.bf16 %v4583_v25  ;;  %v4584_v53 = vunpack.i.l.bf16 %v4583_v25  ;;  %v3518_v25 = vpop.f32.mrf.mxu0 }
 0x2c6   : > { %v4569_v2 = vunpack.i.l.bf16 %v8240_v34  ;;  %v3245_v56 = vsel %vm8742_vm15, %v8069_v9, %v4564_v20  ;;  %v3246_v50 = vsel %vm8729_vm1, %v8072_v15, %v4564_v20 }
 0x2c7   : > { %v3262_v57 = vsel %vm2607_vm4, %v3246_v50, %v4570_v41 }
 0x2c8   : > { %v3261_v15 = vsel %vm2607_vm4, %v3245_v56, %v4569_v2 }
 0x2c9   : > { %v4543_v43 = vpop.permute.xlu0 %4542  ;;  %v8248_v52 = vpop.permute.xlu1 %4577 }
 0x2ca   : > { %v4545_v8 = vunpack.i.h.bf16 %v4543_v43  ;;  %v4544_v5 = vunpack.i.l.bf16 %v4543_v43  ;;  %v4580_v62 = vunpack.i.h.bf16 %v8248_v52 }
 0x2cc   : > { %v3297_v4 = vsel %vm2634_vm13, %v3281_v58, %v4544_v5  ;;  %v3298_v14 = vsel %vm2634_vm13, %v3282_v26, %v4545_v8  ;;  %v4598_v7 = vpop.permute.xlu2 %4597 }
 0x2cd   : > { %v3313_v48 = vsel %vm2643_vm0, %v3297_v4, %v4554_v36  ;;  %v3314_v29 = vsel %vm2643_vm0, %v3298_v14, %v4555_v45  ;;  %v4600_v27 = vunpack.i.h.bf16 %v4598_v7  ;;  %v4599_v0 = vunpack.i.l.bf16 %v4598_v7 }
 0x2ce   : > { %v3345_v17 = vrot.slane %v3313_v48, 1  ;;  %v3346_v11 = vrot.slane %v3314_v29, 1  ;;  %v4579_v45 = vunpack.i.l.bf16 %v8248_v52  ;;  %v3278_v4 = vsel %vm2616_vm5, %v3262_v57, %v4580_v62 }
 0x2d0   : > { %v3347_v23 = vsel %vm2063_vm9, %v3345_v17, %v3346_v11  ;;  %v3277_v52 = vsel %vm2616_vm5, %v3261_v15, %v4579_v45 }
 0x2d1   : > { %v4558_v28 = vpop.permute.xlu0 %4557  ;;  %v4593_v47 = vpop.permute.xlu1 %4592 }
 0x2d2   : > { %v4560_v22 = vunpack.i.h.bf16 %v4558_v28  ;;  %v4559_v33 = vunpack.i.l.bf16 %v4558_v28  ;;  %v4595_v48 = vunpack.i.h.bf16 %v4593_v47  ;;  %v4594_v29 = vunpack.i.l.bf16 %v4593_v47 }
 0x2d4   : > { %v3315_v54 = vsel %vm2643_vm0, %v3299_v32, %v4559_v33  ;;  %v3316_v59 = vsel %vm2643_vm0, %v3300_v31, %v4560_v22 }
 0x2d5   : > { %v3348_v38 = vrot.slane %v3315_v54, 1  ;;  %v3349_v16 = vrot.slane %v3316_v59, 1  ;;  %v3520_v54 = vpop.f32.mrf.mxu0 }
 0x2d7   : > { %v3350_v39 = vsel %vm2063_vm9, %v3348_v38, %v3349_v16 }
 0x2d8   : > { %v3378_v40 = vpack.c.bf16 %v3350_v39, %v3347_v23 }
 0x2d9   : > { %v4573_v3 = vpop.permute.xlu0 %4572  ;;  %v4608_v37 = vpop.permute.xlu1 %4607 }
 0x2da   : > { %3879 = vmatmul.msk.bf16.vlgmr.msra.gmra.mxu1 %vm2652_vm10, %v3378_v40  ;;  %v4575_v30 = vunpack.i.h.bf16 %v4573_v3  ;;  %v4574_v49 = vunpack.i.l.bf16 %v4573_v3  ;;  %v4610_v10 = vunpack.i.h.bf16 %v4608_v37  ;;  %v4609_v34 = vunpack.i.l.bf16 %v4608_v37  ;;  %v3528_v3 = vpop.f32.mrf.mxu2 }
 0x2dc   : > { %v3263_v18 = vsel %vm2607_vm4, %v3247_v60, %v4574_v49  ;;  %v3264_v63 = vsel %vm2607_vm4, %v3248_v12, %v4575_v30  ;;  %vm3627_vm4 = vcmask 1041408  }
 0x2dd   : > { %v3279_v44 = vsel %vm2616_vm5, %v3263_v18, %v4584_v53  ;;  %v3280_v8 = vsel %vm2616_vm5, %v3264_v63, %v4585_v6  ;;  %v3523_v59 = vpop.f32.mrf.mxu0 }
 0x2e1   : > { %v4588_v43 = vpop.permute.xlu0 %4587 }
 0x2e2   : > { %v4590_v36 = vunpack.i.h.bf16 %v4588_v43  ;;  %v4589_v5 = vunpack.i.l.bf16 %v4588_v43  ;;  %v3530_v49 = vpop.f32.mrf.mxu2 }
 0x2e4   : > { %v3295_v61 = vsel %vm2625_vm3, %v3279_v44, %v4590_v36  ;;  %v3296_v9 = vsel %vm2625_vm3, %v3280_v8, %v4590_v36  ;;  %v3293_v17 = vsel %vm2625_vm3, %v3277_v52, %v4589_v5  ;;  %v3294_v11 = vsel %vm2625_vm3, %v3278_v4, %v4589_v5 }
 0x2e5   : > { %v3311_v58 = vsel %vm2634_vm13, %v3295_v61, %v4599_v0  ;;  %v3312_v26 = vsel %vm2634_vm13, %v3296_v9, %v4600_v27  ;;  %v3309_v23 = vsel %vm2634_vm13, %v3293_v17, %v4594_v29  ;;  %v3310_v28 = vsel %vm2634_vm13, %v3294_v11, %v4595_v48  ;;  %v3525_v47 = vpop.f32.mrf.mxu0 }
 0x2e6   : > { %v3327_v14 = vsel %vm2643_vm0, %v3311_v58, %v4609_v34  ;;  %v3328_v35 = vsel %vm2643_vm0, %v3312_v26, %v4610_v10 }
 0x2e7   : > { %v3366_v51 = vrot.slane %v3327_v14, 1  ;;  %v3367_v46 = vrot.slane %v3328_v35, 1 }
 0x2e9   : > { %v4603_v24 = vpop.permute.xlu0 %4602  ;;  %v3368_v19 = vsel %vm2063_vm9, %v3366_v51, %v3367_v46 }
 0x2ea   : > { %v4605_v13 = vunpack.i.h.bf16 %v4603_v24  ;;  %v4604_v1 = vunpack.i.l.bf16 %v4603_v24  ;;  %v3533_v61 = vpop.f32.mrf.mxu2 }
 0x2ec   : > { %v3325_v55 = vsel %vm2643_vm0, %v3309_v23, %v4604_v1  ;;  %v3326_v42 = vsel %vm2643_vm0, %v3310_v28, %v4605_v13 }
 0x2ed   : > { %v3363_v22 = vrot.slane %v3325_v55, 1  ;;  %v3364_v33 = vrot.slane %v3326_v42, 1 }
 0x2ef   : > { %v3365_v32 = vsel %vm2063_vm9, %v3363_v22, %v3364_v33  ;;  %vm3625_vm9 = vcmask 1040384  }
 0x2f0   : > { %v3384_v31 = vpack.c.bf16 %v3368_v19, %v3365_v32 }
 0x2f2   : > { %3882 = vmatmul.msk.bf16.gmra.mxu3 %vm2652_vm10, %v3384_v31  ;;  %v3535_v51 = vpop.f32.mrf.mxu2 }
 0x325   : > { %v3552_v38 = vpop.f32.mrf.mxu3 }
 0x326   : > { %v3553_v16 = vadd.f32 %v3552_v38, %v3523_v59 }
 0x328   : > { %3569 = vst.msk [vmem:[%s8313_s21 + $0x10] sm:$0xff] %vm2562_vm14, %v3553_v16  ;;  %v3598_v37 = vmul.f32 %v3553_v16, %v3553_v16  ;;  %v3578_v56 = vsel %vm2562_vm14, %v3553_v16, 0.0 }
 0x32a   : > { %v3607_v36 = vsel %vm2562_vm14, %v3598_v37, 0.0 }
 0x32d   : > { %v3554_v39 = vpop.f32.mrf.mxu3 }
 0x32e   : > { %v3555_v40 = vadd.f32 %v3554_v39, %v3525_v47 }
 0x330   : > { %3570 = vst.msk [vmem:[%s8313_s21 + $0x18] sm:$0xff] %vm2562_vm14, %v3555_v40  ;;  %v3599_v50 = vmul.f32 %v3555_v40, %v3555_v40  ;;  %v3580_v10 = vsel %vm2562_vm14, %v3555_v40, 0.0 }
 0x332   : > { %v3609_v8 = vsel %vm2562_vm14, %v3599_v50, 0.0 }
 0x33e   : > { %v3557_v21 = vpop.f32.mrf.mxu3 }
 0x33f   : > { %v3558_v30 = vadd.f32 %v3557_v21, %v3528_v3 }
 0x341   : > { %3571 = vst.msk [vmem:[%s8313_s21 + $0x20] sm:$0xff] %vm2562_vm14, %v3558_v30  ;;  %v3600_v15 = vmul.f32 %v3558_v30, %v3558_v30  ;;  %v3582_v58 = vsel %vm2562_vm14, %v3558_v30, 0.0 }
 0x343   : > { %v3611_v52 = vsel %vm2562_vm14, %v3600_v15, 0.0 }
 0x346   : > { %v3559_v20 = vpop.f32.mrf.mxu3 }
 0x347   : > { %v3560_v7 = vadd.f32 %v3559_v20, %v3530_v49 }
 0x349   : > { %3572 = vst.msk [vmem:[%s8313_s21 + $0x28] sm:$0xff] %vm2562_vm14, %v3560_v7  ;;  %v3601_v4 = vmul.f32 %v3560_v7, %v3560_v7  ;;  %v3584_v48 = vsel %vm2562_vm14, %v3560_v7, 0.0 }
 0x34b   : > { %v3613_v11 = vsel %vm2562_vm14, %v3601_v4, 0.0 }
 0x357   : > { %v3547_v41 = vpop.f32.mrf.mxu1 }
 0x358   : > { %v3548_v60 = vadd.f32 %v3547_v41, %v3518_v25 }
 0x35a   : > { %3567 = vst.msk [vmem:[%s8313_s21] sm:$0xff] %vm2562_vm14, %v3548_v60  ;;  %v3596_v6 = vmul.f32 %v3548_v60, %v3548_v60  ;;  %v3575_v2 = vsel %vm2562_vm14, %v3548_v60, 0.0 }
 0x35c   : > { %v3604_v62 = vsel %vm2562_vm14, %v3596_v6, 0.0 }
 0x35f   : > { %v3549_v12 = vpop.f32.mrf.mxu1 }
 0x360   : > { %v3550_v53 = vadd.f32 %v3549_v12, %v3520_v54 }
 0x362   : > { %3568 = vst.msk [vmem:[%s8313_s21 + $0x8] sm:$0xff] %vm2562_vm14, %v3550_v53  ;;  %v3576_v18 = vsel %vm2562_vm14, %v3550_v53, 0.0  ;;  %v3597_v63 = vmul.f32 %v3550_v53, %v3550_v53 }
 0x363   : > { %v3577_v27 = vadd.f32 %v3576_v18, %v3575_v2 }
 0x364   : > { %v3605_v43 = vsel %vm2562_vm14, %v3597_v63, 0.0 }
 0x365   : > { %v3579_v0 = vadd.f32 %v3578_v56, %v3577_v27  ;;  %v3606_v45 = vadd.f32 %v3605_v43, %v3604_v62 }
 0x367   : > { %v3581_v34 = vadd.f32 %v3580_v10, %v3579_v0  ;;  %v3608_v44 = vadd.f32 %v3607_v36, %v3606_v45 }
 0x369   : > { %v3610_v5 = vadd.f32 %v3609_v8, %v3608_v44  ;;  %v3583_v26 = vadd.f32 %v3582_v58, %v3581_v34 }
 0x36b   : > { %v3612_v35 = vadd.f32 %v3611_v52, %v3610_v5  ;;  %v3585_v46 = vadd.f32 %v3584_v48, %v3583_v26 }
 0x36d   : > { %v3614_v1 = vadd.f32 %v3613_v11, %v3612_v35 }
 0x375   : > { %v3562_v9 = vpop.f32.mrf.mxu3 }
 0x376   : > { %v3563_v57 = vadd.f32 %v3562_v9, %v3533_v61 }
 0x378   : > { %3573 = vst.msk [vmem:[%s8313_s21 + $0x30] sm:$0xff] %vm2562_vm14, %v3563_v57  ;;  %v3602_v14 = vmul.f32 %v3563_v57, %v3563_v57  ;;  %v3586_v29 = vsel %vm2562_vm14, %v3563_v57, 0.0 }
 0x379   : > { %v3587_v13 = vadd.f32 %v3586_v29, %v3585_v46 }
 0x37a   : > { %v3615_v24 = vsel %vm2562_vm14, %v3602_v14, 0.0 }
 0x37b   : > { %v3616_v55 = vadd.f32 %v3615_v24, %v3614_v1 }
 0x37d   : > { %v3564_v17 = vpop.f32.mrf.mxu3 }
 0x37e   : > { %v3565_v19 = vadd.f32 %v3564_v17, %v3535_v51 }
 0x380   : > { %3574 = vst.msk [vmem:[%s8313_s21 + $0x38] sm:$0xff] %vm2562_vm14, %v3565_v19  ;;  %v3588_v23 = vsel %vm2562_vm14, %v3565_v19, 0.0  ;;  %v3603_v28 = vmul.f32 %v3565_v19, %v3565_v19 }
 0x381   : > { %v3589_v42 = vadd.f32 %v3588_v23, %v3587_v13 }
 0x382   : > { %v3617_v22 = vsel %vm2562_vm14, %v3603_v28, 0.0 }
 0x383   : > { %v3590_v33 = vrot.slane %v3589_v42, 4  ;;  %v3618_v32 = vadd.f32 %v3617_v22, %v3616_v55 }
 0x385   : > { %v3591_v31 = vadd.f32 %v3590_v33, %v3589_v42  ;;  %v3619_v25 = vrot.slane %v3618_v32, 4 }
 0x387   : > { %v3592_v54 = vrot.slane %v3591_v31, 2  ;;  %v3620_v59 = vadd.f32 %v3619_v25, %v3618_v32 }
 0x389   : > { %v3593_v38 = vadd.f32 %v3592_v54, %v3591_v31  ;;  %v3621_v16 = vrot.slane %v3620_v59, 2 }
 0x38b   : > { %v3594_v47 = vrot.slane %v3593_v38, 1  ;;  %v3622_v39 = vadd.f32 %v3621_v16, %v3620_v59 }
 0x38d   : > { %v3623_v40 = vrot.slane %v3622_v39, 1  ;;  %v3595_v3 = vadd.f32 %v3594_v47, %v3593_v38 }
 0x38f   : > { %v3624_v21 = vadd.f32 %v3623_v40, %v3622_v39 }
 0x391   : > { %v3626_v30 = vsel %vm3625_vm9, %v3595_v3, %v3624_v21 }
 0x392   : > { %v3628_v49 = vsel %vm3627_vm4, %v3626_v30, 0.0 }
 0x393   : > { %3629 = vst.msk [vmem:[%s417_s22] sm:$0xff] %vm2562_vm14, %v3628_v49 }
 0x394 PF: > { %s18_s28 = sadd.s32 1, %s4899_s28   ;;  %s8743_s24 = smov %s4891_s26 }
 0x395   : > { %p15_p10 = scmp.ge.s32.totalorder %s18_s28, 18   ;;  %s8744_s25 = smov %s4895_s27 }
 0x396   : > { %s8745_s26 = smov %s8748_s29  ;;  %s8746_s27 = smov %s8752_s30 }
 0x397   :  { %17 = sbr.rel (!%p15_p10) target bundleno = 3 (0x3), region = 92 }

// kernel: double_conv_forward.5
= control target key start
LH: loop header
LB: loop body
LE: loop exit
PB: predicated region body
PF: predicated region fallthrough
CT: control target
= control target key end

     0   :  { %s411_s12 = smov 0   ;;  %s497_s0 = inlined_call_operand.vmem [shape: f32[64,128], index: 0, kind: input, shape index: {}]   ;;  %s498_s1 = inlined_call_operand.vmem [shape: f32[1,128], index: 1, kind: input, shape index: {}]   ;;  %s499_s2 = inlined_call_operand.vmem [shape: f32[1,128], index: 2, kind: input, shape index: {}]   ;;  %s500_s3 = inlined_call_operand.vmem [shape: f32[64,128], index: 3, kind: output, shape index: {}]  }
   0x1 LB: > { %s346_s13 = sadd.s32 4294967295, %s389_s12   ;;  %p350_p0 = scmp.ge.s32.totalorder %s389_s12, 1  ;;  %s389_s12 = sphi %s411_s12, %s13_s12  }
   0x2   : > { %p138_p1 = scmp.lt.s32.totalorder %s389_s12, 3 }
   0x4   : > { %p139_p2 = pnand %p350_p0, %p138_p1 }
   0x5   : > { %s351_s14 = sshll.u32 (!%p139_p2), %s346_s13, 2 }
   0x6   : > { %142 = sbr.rel (%p139_p2) target bundleno = 63 (0x3f), region = 32  ;;  %p163_p3 = scmp.lt.s32.totalorder (!%p139_p2), %s351_s14, 7 }
   0xb   : > { %s514_s14 = smov (!%p163_p3, %s351_s14), 7  ;;  %v365_v0 = vld [vmem:[%s498_s1] ss:$0 sm:$0xff] }
   0xc   : > { %s352_s17 = sshll.u32 %s514_s14, 3  ;;  %v366_v1 = vld [vmem:[%s499_s2] ss:$0 sm:$0xff] }
   0xd   : > { %s166_s20 = scalar_lea.vmem %s497_s0, %s352_s17  ;;  %s172_s25 = scalar_lea.vmem %s500_s3, %s352_s17 }
   0xe   : > { %v174_v2 = vld [vmem:[%s166_s20] sm:$0xff]  ;;  %v175_v3 = vld [vmem:[%s166_s20 + $0x8] sm:$0xff]  ;;  %v176_v4 = vld [vmem:[%s166_s20 + $0x10] sm:$0xff] }
   0xf   : > { %v182_v5 = vmul.f32 %v365_v0, %v174_v2  ;;  %v183_v6 = vmul.f32 %v365_v0, %v175_v3  ;;  %v184_v7 = vmul.f32 %v365_v0, %v176_v4  ;;  %v177_v8 = vld [vmem:[%s166_s20 + $0x18] sm:$0xff] }
  0x10   : > { %v185_v9 = vmul.f32 %v365_v0, %v177_v8 }
  0x11   : > { %v433_v10 = vadd.f32 %v366_v1, %v182_v5  ;;  %v435_v11 = vadd.f32 %v366_v1, %v183_v6  ;;  %v437_v12 = vadd.f32 %v366_v1, %v184_v7 }
  0x12   : > { %v439_v13 = vadd.f32 %v366_v1, %v185_v9 }
  0x13   : > { %v194_v14 = vmin.f32 %v433_v10, 30.0  ;;  %v195_v15 = vmin.f32 %v435_v11, 30.0  ;;  %v196_v16 = vmin.f32 %v437_v12, 30.0 }
  0x14   : > { %v197_v17 = vmin.f32 %v439_v13, 30.0 }
  0x15   : > { %v198_v18 = vmul.f32 1.442695, %v194_v14  ;;  %v200_v19 = vmul.f32 1.442695, %v195_v15  ;;  %v202_v20 = vmul.f32 1.442695, %v196_v16 }
  0x16   : > { %v204_v21 = vmul.f32 1.442695, %v197_v17 }
  0x17   : > { %367 = vpow2.f32 %v198_v18 }
  0x18   : > { %369 = vpow2.f32 %v200_v19 }
  0x19   : > { %371 = vpow2.f32 %v202_v20 }
  0x1a   : > { %373 = vpow2.f32 %v204_v21 }
  0x1d   : > { %v368_v22 = vpop.eup %367 }
  0x1e   : > { %v370_v23 = vpop.eup %369  ;;  %v206_v24 = vadd.f32 1.0, %v368_v22 }
  0x1f   : > { %v372_v25 = vpop.eup %371  ;;  %v207_v26 = vadd.f32 1.0, %v370_v23 }
  0x20   : > { %v374_v27 = vpop.eup %373  ;;  %v210_v28 = vmul.f32 %v206_v24, %v206_v24  ;;  %v208_v29 = vadd.f32 1.0, %v372_v25 }
  0x21   : > { %v211_v30 = vmul.f32 %v207_v26, %v207_v26  ;;  %v209_v31 = vadd.f32 1.0, %v374_v27 }
  0x22   : > { %v214_v32 = vadd.f32 1.0, %v210_v28  ;;  %v212_v33 = vmul.f32 %v208_v29, %v208_v29 }
  0x23   : > { %v215_v34 = vadd.f32 1.0, %v211_v30  ;;  %v213_v35 = vmul.f32 %v209_v31, %v209_v31 }
  0x24   : > { %375 = vrcp.f32 %v214_v32  ;;  %v216_v36 = vadd.f32 1.0, %v212_v33  ;;  %v227_v38 = vand.u32 2147483647, %v214_v32  ;;  %v229_v39 = vand.u32 2147483648, %v214_v32 }
  0x25   : > { %377 = vrcp.f32 %v215_v34  ;;  %v217_v37 = vadd.f32 1.0, %v213_v35  ;;  %v242_v41 = vand.u32 2147483647, %v215_v34  ;;  %v244_v42 = vand.u32 2147483648, %v215_v34 }
  0x26   : > { %379 = vrcp.f32 %v216_v36  ;;  %vm223_vm0 = vweird.f32 %v214_v32  ;;  %vm238_vm1 = vweird.f32 %v215_v34  ;;  %vm445_vm3 = vcmp.eq.f32.partialorder %v227_v38, 8.507059e+37 }
  0x27   : > { %381 = vrcp.f32 %v217_v37  ;;  %v230_v48 = vor.u32 1.1754944e-38, %v229_v39  ;;  %vm449_vm5 = vcmp.eq.f32.partialorder %v242_v41, 8.507059e+37  ;;  %v245_v52 = vor.u32 1.1754944e-38, %v244_v42 }
  0x28   : > { %vm253_vm6 = vweird.f32 %v216_v36  ;;  %v257_v56 = vand.u32 2147483647, %v216_v36  ;;  %v259_v59 = vand.u32 2147483648, %v216_v36  ;;  %vm268_vm8 = vweird.f32 %v217_v37 }
  0x29   : > { %v274_v0 = vand.u32 2147483648, %v217_v37  ;;  %v272_v3 = vand.u32 2147483647, %v217_v37 }
  0x2a   : > { %v376_v40 = vpop.eup %375  ;;  %vm465_vm12 = vcmp.eq.f32.partialorder %v257_v56, 8.507059e+37  ;;  %v260_v14 = vor.u32 1.1754944e-38, %v259_v59 }
  0x2b   : > { %v378_v43 = vpop.eup %377  ;;  %v219_v44 = vmul.f32 %v376_v40, %v214_v32  ;;  %vm224_vm2 = vweird.f32 %v376_v40  ;;  %v275_v19 = vor.u32 1.1754944e-38, %v274_v0  ;;  %vm273_vm15 = vcmp.eq.f32.partialorder %v272_v3, 8.507059e+37 }
  0x2c   : > { %v234_v45 = vmul.f32 %v378_v43, %v215_v34  ;;  %v380_v49 = vpop.eup %379  ;;  %vm239_vm4 = vweird.f32 %v378_v43  ;;  %vm454_vm7 = vmor %vm223_vm0, %vm224_vm2 }
  0x2d   : > { %v220_v46 = vsub.f32 1.0, %v219_v44  ;;  %v382_v53 = vpop.eup %381  ;;  %v249_v55 = vmul.f32 %v380_v49, %v216_v36  ;;  %vm459_vm9 = vmor %vm238_vm1, %vm239_vm4  ;;  %vm254_vm10 = vweird.f32 %v380_v49 }
  0x2e   : > { %v235_v50 = vsub.f32 1.0, %v234_v45  ;;  %v264_v60 = vmul.f32 %v382_v53, %v217_v37  ;;  %vm269_vm11 = vweird.f32 %v382_v53  ;;  %vm474_vm13 = vmor %vm253_vm6, %vm254_vm10 }
  0x2f   : > { %v221_v54 = vmul.f32 %v376_v40, %v220_v46  ;;  %v250_v63 = vsub.f32 1.0, %v249_v55  ;;  %vm270_vm14 = vmor %vm268_vm8, %vm269_vm11 }
  0x30   : > { %v236_v58 = vmul.f32 %v378_v43, %v235_v50  ;;  %v265_v2 = vsub.f32 1.0, %v264_v60 }
  0x31   : > { %v222_v61 = vadd.f32 %v376_v40, %v221_v54  ;;  %v251_v5 = vmul.f32 %v380_v49, %v250_v63 }
  0x32   : > { %v237_v1 = vadd.f32 %v378_v43, %v236_v58  ;;  %v266_v15 = vmul.f32 %v382_v53, %v265_v2 }
  0x33   : > { %v226_v4 = vsel %vm454_vm7, %v376_v40, %v222_v61  ;;  %v252_v18 = vadd.f32 %v380_v49, %v251_v5 }
  0x34   : > { %v231_v7 = vsel %vm445_vm3, %v230_v48, %v226_v4  ;;  %v241_v8 = vsel %vm459_vm9, %v378_v43, %v237_v1  ;;  %v267_v21 = vadd.f32 %v382_v53, %v266_v15 }
  0x35   : > { %v232_v16 = vmul.f32 2.0, %v231_v7  ;;  %v246_v17 = vsel %vm449_vm5, %v245_v52, %v241_v8  ;;  %v256_v23 = vsel %vm474_vm13, %v380_v49, %v252_v18 }
  0x36   : > { %v247_v20 = vmul.f32 2.0, %v246_v17  ;;  %v261_v25 = vsel %vm465_vm12, %v260_v14, %v256_v23  ;;  %v271_v26 = vsel %vm270_vm14, %v382_v53, %v267_v21 }
  0x37   : > { %v278_v22 = vsub.f32 1.0, %v232_v16  ;;  %v262_v28 = vmul.f32 2.0, %v261_v25  ;;  %v276_v29 = vsel %vm273_vm15, %v275_v19, %v271_v26 }
  0x38   : > { %v279_v24 = vsub.f32 1.0, %v247_v20  ;;  %v277_v31 = vmul.f32 2.0, %v276_v29 }
  0x39   : > { %v282_v27 = vmul.f32 %v278_v22, %v433_v10  ;;  %v280_v32 = vsub.f32 1.0, %v262_v28 }
  0x3a   : > { %v283_v30 = vmul.f32 %v279_v24, %v435_v11  ;;  %v281_v33 = vsub.f32 1.0, %v277_v31 }
  0x3b   : > { %286 = vst [vmem:[%s172_s25] sm:$0xff] %v282_v27  ;;  %v284_v34 = vmul.f32 %v280_v32, %v437_v12 }
  0x3c   : > { %287 = vst [vmem:[%s172_s25 + $0x8] sm:$0xff] %v283_v30  ;;  %v285_v35 = vmul.f32 %v281_v33, %v439_v13 }
  0x3d   : > { %288 = vst [vmem:[%s172_s25 + $0x10] sm:$0xff] %v284_v34 }
  0x3e   : > { %289 = vst [vmem:[%s172_s25 + $0x18] sm:$0xff] %v285_v35 }
  0x3f PF: > { %s13_s12 = sadd.s32 1, %s389_s12  }
  0x40   : > { %p10_p4 = scmp.ge.s32.totalorder %s13_s12, 4  }
  0x42   :  { %12 = sbr.rel (!%p10_p4) target bundleno = 1 (0x1), region = 62 }

</bundles_post_ra>
